<compile_context>
chip_gen: v6e
topology: v6e:2x2x1
jax: 0.10.0
libtpu: 0.0.40
codegen_flags: <defaults>
</compile_context>

<pallas_src>
import functools

import jax
import jax.numpy as jnp
from jax.experimental import pallas as pl
from jax.experimental.pallas import tpu as pltpu

_EPS = 1e-5  # nn.InstanceNorm2d default eps


def _round_up(x, m):
    return (x + m - 1) // m * m


def _resblock_kernel(xpad_ref, xres_ref, w1_ref, g1_ref, b1_ref,
                     w2_ref, g2_ref, b2_ref, out_ref,
                     col_ref, ypad_ref, acc_ref, *, H, W, C, d):
    """Per-sample fused ResidualBlock.

    xpad_ref: (1, H+2d, W+2d, C) bf16   spatially padded input (true C channels)
    xres_ref: (1, H, W, C)       f32    unpadded input for the residual add
    w*_ref:   (9*C, Cp)          bf16   im2col-layout conv weights (out-ch padded to Cp)
    g*/b*:    (1, Cp)            f32    InstanceNorm affine params
    out_ref:  (1, H, W, C)       f32
    col_ref:  (H*W, 9*C)         bf16   VMEM scratch: im2col LHS (reused by both convs)
    ypad_ref: (H+2d, W+2d, C)    bf16   VMEM scratch: padded intermediate activation
    acc_ref:  (H*W, Cp)          f32    VMEM scratch: MXU accumulator (single store/conv)
    """
    HW = H * W
    Hp = H + 2 * d
    Wp = W + 2 * d
    inv_hw = 1.0 / HW

    def fill_col(read_window):
        # im2col: lay the 9 tap windows side by side along the contraction axis.
        for kh in range(3):
            for kw in range(3):
                tap = kh * 3 + kw
                win = read_window(kh * d, kw * d)                # (H, W, C) bf16
                col_ref[:, tap * C:(tap + 1) * C] = win.reshape(HW, C)

    def norm_coeffs(g, b):
        # One-pass InstanceNorm folded to y = acc * scale + shift (all f32).
        a = acc_ref[...]
        mean = jnp.sum(a, axis=0, keepdims=True) * inv_hw        # (1, Cp)
        ex2 = jnp.sum(a * a, axis=0, keepdims=True) * inv_hw     # (1, Cp)
        var = jnp.maximum(ex2 - mean * mean, 0.0)
        scale = jax.lax.rsqrt(var + _EPS) * g
        shift = b - mean * scale
        return scale, shift

    # ---- conv1: im2col + single bf16 MXU matmul (f32 accumulate) -> norm1 -> relu ----
    fill_col(lambda dh, dw: xpad_ref[0, dh:dh + H, dw:dw + W, :])
    acc_ref[...] = jnp.dot(col_ref[...], w1_ref[...],
                           preferred_element_type=jnp.float32)
    scale1, shift1 = norm_coeffs(g1_ref[...], b1_ref[...])
    y1 = jnp.maximum(acc_ref[...] * scale1 + shift1, 0.0)        # (HW, Cp) f32

    # Padded intermediate: zero only the d-wide border strips (tiny at true-C width);
    # the interior is fully overwritten right below.  Re-done every step on purpose
    # (per-core scratch under a "parallel" grid axis — see header comment).
    ypad_ref[0:d, :, :] = jnp.zeros((d, Wp, C), jnp.bfloat16)
    ypad_ref[d + H:Hp, :, :] = jnp.zeros((d, Wp, C), jnp.bfloat16)
    ypad_ref[d:d + H, 0:d, :] = jnp.zeros((H, d, C), jnp.bfloat16)
    ypad_ref[d:d + H, d + W:Wp, :] = jnp.zeros((H, d, C), jnp.bfloat16)
    ypad_ref[d:d + H, d:d + W, :] = y1[:, :C].astype(jnp.bfloat16).reshape(H, W, C)

    # ---- conv2: im2col + single matmul -> norm2 -> residual add -> relu ----
    fill_col(lambda dh, dw: ypad_ref[dh:dh + H, dw:dw + W, :])
    acc_ref[...] = jnp.dot(col_ref[...], w2_ref[...],
                           preferred_element_type=jnp.float32)
    scale2, shift2 = norm_coeffs(g2_ref[...], b2_ref[...])
    y2 = (acc_ref[...] * scale2 + shift2)[:, :C].reshape(H, W, C)  # f32
    out_ref[0] = jnp.maximum(xres_ref[0] + y2, 0.0)


def residual_block_pallas(x_nchw, params, dilation=1):
    """x_nchw: (N, C, H, W) float32.  params = (w1, g1, b1, w2, g2, b2),
    conv weights in HWIO layout (3, 3, Cin, Cout)."""
    w1, g1, b1, w2, g2, b2 = params
    N, C, H, W = x_nchw.shape
    d = int(dilation)
    Hp, Wp = H + 2 * d, W + 2 * d
    Cp = _round_up(C, 128)     # lane-dense output-channel / matmul-N dimension
    K = 9 * C                  # im2col contraction dimension
    HW = H * W

    x_nhwc = jnp.transpose(x_nchw, (0, 2, 3, 1)).astype(jnp.float32)
    xpad_bf16 = jnp.pad(x_nhwc, ((0, 0), (d, d), (d, d), (0, 0))).astype(jnp.bfloat16)

    def prep_w(w):
        # (3, 3, C, C) HWIO -> (9*C, Cp) bf16; row index = (kh*3 + kw)*C + cin,
        # output channels zero-padded to Cp.
        w2d = w.astype(jnp.float32).reshape(K, C)
        return jnp.pad(w2d, ((0, 0), (0, Cp - C))).astype(jnp.bfloat16)

    def prep_g(g):   # gamma padded with 1 (padded channels are dead; avoids NaN)
        return jnp.pad(g.astype(jnp.float32), (0, Cp - C),
                       constant_values=1.0).reshape(1, Cp)

    def prep_b(b):
        return jnp.pad(b.astype(jnp.float32), (0, Cp - C)).reshape(1, Cp)

    kernel = functools.partial(_resblock_kernel, H=H, W=W, C=C, d=d)

    # VMEM budget: double-buffered inputs/outputs + weights + scratch, 2x headroom,
    # capped below v7x's 64 MiB physical VMEM.
    bf16, f32 = 2, 4
    blk_bytes = (2 * Hp * Wp * C * bf16        # xpad (double buffered)
                 + 2 * HW * C * f32            # residual x
                 + 2 * 2 * K * Cp * bf16       # w1, w2
                 + 2 * 4 * Cp * f32            # gammas / betas
                 + 2 * HW * C * f32            # out
                 + HW * K * bf16               # im2col scratch
                 + Hp * Wp * C * bf16          # ypad scratch
                 + HW * Cp * f32)              # accumulator scratch
    vmem_limit = int(min(56 * 2**20, max(2 * blk_bytes + (4 << 20), 16 * 2**20)))

    out_nhwc = pl.pallas_call(
        kernel,
        out_shape=jax.ShapeDtypeStruct((N, H, W, C), jnp.float32),
        grid_spec=pltpu.PrefetchScalarGridSpec(
            num_scalar_prefetch=0,
            grid=(N,),
            in_specs=[
                pl.BlockSpec((1, Hp, Wp, C), lambda n: (n, 0, 0, 0)),   # padded x (bf16)
                pl.BlockSpec((1, H, W, C), lambda n: (n, 0, 0, 0)),     # residual x (f32)
                pl.BlockSpec((K, Cp), lambda n: (0, 0)),                # w1
                pl.BlockSpec((1, Cp), lambda n: (0, 0)),                # gamma1
                pl.BlockSpec((1, Cp), lambda n: (0, 0)),                # beta1
                pl.BlockSpec((K, Cp), lambda n: (0, 0)),                # w2
                pl.BlockSpec((1, Cp), lambda n: (0, 0)),                # gamma2
                pl.BlockSpec((1, Cp), lambda n: (0, 0)),                # beta2
            ],
            out_specs=pl.BlockSpec((1, H, W, C), lambda n: (n, 0, 0, 0)),
            scratch_shapes=[pltpu.VMEM((HW, K), jnp.bfloat16),          # im2col LHS
                            pltpu.VMEM((Hp, Wp, C), jnp.bfloat16),      # padded y
                            pltpu.VMEM((HW, Cp), jnp.float32)],         # f32 accumulator
        ),
        compiler_params=pltpu.CompilerParams(
            dimension_semantics=("parallel",),
            vmem_limit_bytes=vmem_limit),
    )(xpad_bf16, x_nhwc, prep_w(w1), prep_g(g1), prep_b(b1),
      prep_w(w2), prep_g(g2), prep_b(b2))

    return jnp.transpose(out_nhwc, (0, 3, 1, 2))


def residual_block_reference(x_nchw, params, dilation=1):
    """Pure-JAX (f32) reference matching the PyTorch module semantics."""
    w1, g1, b1, w2, g2, b2 = params
    d = int(dilation)

    def conv(x_nhwc, w_hwio):
        return jax.lax.conv_general_dilated(
            x_nhwc, w_hwio, window_strides=(1, 1),
            padding=((d, d), (d, d)), rhs_dilation=(d, d),
            dimension_numbers=("NHWC", "HWIO", "NHWC"))

    def inorm(y, g, b):
        mean = jnp.mean(y, axis=(1, 2), keepdims=True)
        var = jnp.mean((y - mean) ** 2, axis=(1, 2), keepdims=True)
        return ((y - mean) * jax.lax.rsqrt(var + _EPS)
                * g.reshape(1, 1, 1, -1) + b.reshape(1, 1, 1, -1))

    x = jnp.transpose(x_nchw, (0, 2, 3, 1)).astype(jnp.float32)
    y = jax.nn.relu(inorm(conv(x, w1), g1, b1))
    y = inorm(conv(y, w2), g2, b2)
    out = jax.nn.relu(x + y)
    return jnp.transpose(out, (0, 3, 1, 2))


if __name__ == "__main__":
    N, C, H, W = 2, 4, 16, 16
    key = jax.random.PRNGKey(0)
    kx, kw1, kg1, kb1, kw2, kg2, kb2 = jax.random.split(key, 7)

    x = jax.random.normal(kx, (N, C, H, W), dtype=jnp.float32)
    # Deterministic synthetic parameters (conv weights in HWIO; norm affine per channel).
    w1 = 0.3 * jax.random.normal(kw1, (3, 3, C, C), dtype=jnp.float32)
    g1 = 1.0 + 0.1 * jax.random.normal(kg1, (C,), dtype=jnp.float32)
    b1 = 0.1 * jax.random.normal(kb1, (C,), dtype=jnp.float32)
    w2 = 0.3 * jax.random.normal(kw2, (3, 3, C, C), dtype=jnp.float32)
    g2 = 1.0 + 0.1 * jax.random.normal(kg2, (C,), dtype=jnp.float32)
    b2 = 0.1 * jax.random.normal(kb2, (C,), dtype=jnp.float32)
    params = (w1, g1, b1, w2, g2, b2)

    out = residual_block_pallas(x, params, dilation=1)
    out = jax.block_until_ready(out)

    ref = jax.block_until_ready(residual_block_reference(x, params, dilation=1))
    assert out.shape == (N, C, H, W)
    # bf16 matmul operands (f32 accumulation / statistics) vs f32 reference:
    # expected agreement at the ~1e-2 level.
    assert bool(jnp.allclose(out, ref, atol=5e-2, rtol=5e-2)), "mismatch vs JAX reference"

    print("KERNEL_OK")
</pallas_src>

<mosaic_0001>
module attributes {stable_mosaic.version = 11 : i64} {
  func.func @_resblock_kernel(%arg0: i32, %arg1: memref<1x18x18x4xbf16, #tpu.memory_space<vmem>>, %arg2: memref<1x16x16x4xf32, #tpu.memory_space<vmem>>, %arg3: memref<36x128xbf16, #tpu.memory_space<vmem>>, %arg4: memref<1x128xf32, #tpu.memory_space<vmem>>, %arg5: memref<1x128xf32, #tpu.memory_space<vmem>>, %arg6: memref<36x128xbf16, #tpu.memory_space<vmem>>, %arg7: memref<1x128xf32, #tpu.memory_space<vmem>>, %arg8: memref<1x128xf32, #tpu.memory_space<vmem>>, %arg9: memref<1x16x16x4xf32, #tpu.memory_space<vmem>>, %arg10: memref<256x36xbf16, #tpu.memory_space<vmem>>, %arg11: memref<18x18x4xbf16, #tpu.memory_space<vmem>>, %arg12: memref<256x128xf32, #tpu.memory_space<vmem>>) attributes {dimension_semantics = [#tpu.dimension_semantics<parallel>], iteration_bounds = array<i64: 2>, scalar_prefetch = 0 : i64, scratch_operands = 3 : i64, tpu.core_type = #tpu.core_type<tc>, window_params = [{transform_indices = @transform_0, window_bounds = array<i64: 1, 18, 18, 4>}, {transform_indices = @transform_1, window_bounds = array<i64: 1, 16, 16, 4>}, {pipeline_mode = #tpu.pipeline_mode<synchronous>, transform_indices = @transform_2, window_bounds = array<i64: 36, 128>}, {pipeline_mode = #tpu.pipeline_mode<synchronous>, transform_indices = @transform_3, window_bounds = array<i64: 1, 128>}, {pipeline_mode = #tpu.pipeline_mode<synchronous>, transform_indices = @transform_4, window_bounds = array<i64: 1, 128>}, {pipeline_mode = #tpu.pipeline_mode<synchronous>, transform_indices = @transform_5, window_bounds = array<i64: 36, 128>}, {pipeline_mode = #tpu.pipeline_mode<synchronous>, transform_indices = @transform_6, window_bounds = array<i64: 1, 128>}, {pipeline_mode = #tpu.pipeline_mode<synchronous>, transform_indices = @transform_7, window_bounds = array<i64: 1, 128>}, {transform_indices = @transform_8, window_bounds = array<i64: 1, 16, 16, 4>}]} {
    %c0 = arith.constant 0 : index
    %c0_0 = arith.constant 0 : index
    %c0_1 = arith.constant 0 : index
    %c0_2 = arith.constant 0 : index
    %0 = vector.load %arg1[%c0, %c0_0, %c0_1, %c0_2] : memref<1x18x18x4xbf16, #tpu.memory_space<vmem>>, vector<1x16x16x4xbf16>
    %1 = vector.shape_cast %0 : vector<1x16x16x4xbf16> to vector<16x16x4xbf16>
    %2 = vector.shape_cast %1 : vector<16x16x4xbf16> to vector<256x4xbf16>
    %c0_3 = arith.constant 0 : index
    %c0_4 = arith.constant 0 : index
    %3 = vector.load %arg10[%c0_3, %c0_4] : memref<256x36xbf16, #tpu.memory_space<vmem>>, vector<256x4xbf16>
    tpu.vector_store %arg10[%c0_3, %c0_4], %2 {strides = array<i32>} : memref<256x36xbf16, #tpu.memory_space<vmem>>, vector<256x4xbf16>,
    %c0_5 = arith.constant 0 : index
    %c0_6 = arith.constant 0 : index
    %c1 = arith.constant 1 : index
    %c0_7 = arith.constant 0 : index
    %4 = vector.load %arg1[%c0_5, %c0_6, %c1, %c0_7] : memref<1x18x18x4xbf16, #tpu.memory_space<vmem>>, vector<1x16x16x4xbf16>
    %5 = vector.shape_cast %4 : vector<1x16x16x4xbf16> to vector<16x16x4xbf16>
    %6 = vector.shape_cast %5 : vector<16x16x4xbf16> to vector<256x4xbf16>
    %c0_8 = arith.constant 0 : index
    %c4 = arith.constant 4 : index
    %7 = vector.load %arg10[%c0_8, %c4] : memref<256x36xbf16, #tpu.memory_space<vmem>>, vector<256x4xbf16>
    tpu.vector_store %arg10[%c0_8, %c4], %6 {strides = array<i32>} : memref<256x36xbf16, #tpu.memory_space<vmem>>, vector<256x4xbf16>,
    %c0_9 = arith.constant 0 : index
    %c0_10 = arith.constant 0 : index
    %c2 = arith.constant 2 : index
    %c0_11 = arith.constant 0 : index
    %8 = vector.load %arg1[%c0_9, %c0_10, %c2, %c0_11] : memref<1x18x18x4xbf16, #tpu.memory_space<vmem>>, vector<1x16x16x4xbf16>
    %9 = vector.shape_cast %8 : vector<1x16x16x4xbf16> to vector<16x16x4xbf16>
    %10 = vector.shape_cast %9 : vector<16x16x4xbf16> to vector<256x4xbf16>
    %c0_12 = arith.constant 0 : index
    %c8 = arith.constant 8 : index
    %11 = vector.load %arg10[%c0_12, %c8] : memref<256x36xbf16, #tpu.memory_space<vmem>>, vector<256x4xbf16>
    tpu.vector_store %arg10[%c0_12, %c8], %10 {strides = array<i32>} : memref<256x36xbf16, #tpu.memory_space<vmem>>, vector<256x4xbf16>,
    %c0_13 = arith.constant 0 : index
    %c1_14 = arith.constant 1 : index
    %c0_15 = arith.constant 0 : index
    %c0_16 = arith.constant 0 : index
    %12 = vector.load %arg1[%c0_13, %c1_14, %c0_15, %c0_16] : memref<1x18x18x4xbf16, #tpu.memory_space<vmem>>, vector<1x16x16x4xbf16>
    %13 = vector.shape_cast %12 : vector<1x16x16x4xbf16> to vector<16x16x4xbf16>
    %14 = vector.shape_cast %13 : vector<16x16x4xbf16> to vector<256x4xbf16>
    %c0_17 = arith.constant 0 : index
    %c12 = arith.constant 12 : index
    %15 = vector.load %arg10[%c0_17, %c12] : memref<256x36xbf16, #tpu.memory_space<vmem>>, vector<256x4xbf16>
    tpu.vector_store %arg10[%c0_17, %c12], %14 {strides = array<i32>} : memref<256x36xbf16, #tpu.memory_space<vmem>>, vector<256x4xbf16>,
    %c0_18 = arith.constant 0 : index
    %c1_19 = arith.constant 1 : index
    %c1_20 = arith.constant 1 : index
    %c0_21 = arith.constant 0 : index
    %16 = vector.load %arg1[%c0_18, %c1_19, %c1_20, %c0_21] : memref<1x18x18x4xbf16, #tpu.memory_space<vmem>>, vector<1x16x16x4xbf16>
    %17 = vector.shape_cast %16 : vector<1x16x16x4xbf16> to vector<16x16x4xbf16>
    %18 = vector.shape_cast %17 : vector<16x16x4xbf16> to vector<256x4xbf16>
    %c0_22 = arith.constant 0 : index
    %c16 = arith.constant 16 : index
    %19 = vector.load %arg10[%c0_22, %c16] : memref<256x36xbf16, #tpu.memory_space<vmem>>, vector<256x4xbf16>
    tpu.vector_store %arg10[%c0_22, %c16], %18 {strides = array<i32>} : memref<256x36xbf16, #tpu.memory_space<vmem>>, vector<256x4xbf16>,
    %c0_23 = arith.constant 0 : index
    %c1_24 = arith.constant 1 : index
    %c2_25 = arith.constant 2 : index
    %c0_26 = arith.constant 0 : index
    %20 = vector.load %arg1[%c0_23, %c1_24, %c2_25, %c0_26] : memref<1x18x18x4xbf16, #tpu.memory_space<vmem>>, vector<1x16x16x4xbf16>
    %21 = vector.shape_cast %20 : vector<1x16x16x4xbf16> to vector<16x16x4xbf16>
    %22 = vector.shape_cast %21 : vector<16x16x4xbf16> to vector<256x4xbf16>
    %c0_27 = arith.constant 0 : index
    %c20 = arith.constant 20 : index
    %23 = vector.load %arg10[%c0_27, %c20] : memref<256x36xbf16, #tpu.memory_space<vmem>>, vector<256x4xbf16>
    tpu.vector_store %arg10[%c0_27, %c20], %22 {strides = array<i32>} : memref<256x36xbf16, #tpu.memory_space<vmem>>, vector<256x4xbf16>,
    %c0_28 = arith.constant 0 : index
    %c2_29 = arith.constant 2 : index
    %c0_30 = arith.constant 0 : index
    %c0_31 = arith.constant 0 : index
    %24 = vector.load %arg1[%c0_28, %c2_29, %c0_30, %c0_31] : memref<1x18x18x4xbf16, #tpu.memory_space<vmem>>, vector<1x16x16x4xbf16>
    %25 = vector.shape_cast %24 : vector<1x16x16x4xbf16> to vector<16x16x4xbf16>
    %26 = vector.shape_cast %25 : vector<16x16x4xbf16> to vector<256x4xbf16>
    %c0_32 = arith.constant 0 : index
    %c24 = arith.constant 24 : index
    %27 = vector.load %arg10[%c0_32, %c24] : memref<256x36xbf16, #tpu.memory_space<vmem>>, vector<256x4xbf16>
    tpu.vector_store %arg10[%c0_32, %c24], %26 {strides = array<i32>} : memref<256x36xbf16, #tpu.memory_space<vmem>>, vector<256x4xbf16>,
    %c0_33 = arith.constant 0 : index
    %c2_34 = arith.constant 2 : index
    %c1_35 = arith.constant 1 : index
    %c0_36 = arith.constant 0 : index
    %28 = vector.load %arg1[%c0_33, %c2_34, %c1_35, %c0_36] : memref<1x18x18x4xbf16, #tpu.memory_space<vmem>>, vector<1x16x16x4xbf16>
    %29 = vector.shape_cast %28 : vector<1x16x16x4xbf16> to vector<16x16x4xbf16>
    %30 = vector.shape_cast %29 : vector<16x16x4xbf16> to vector<256x4xbf16>
    %c0_37 = arith.constant 0 : index
    %c28 = arith.constant 28 : index
    %31 = vector.load %arg10[%c0_37, %c28] : memref<256x36xbf16, #tpu.memory_space<vmem>>, vector<256x4xbf16>
    tpu.vector_store %arg10[%c0_37, %c28], %30 {strides = array<i32>} : memref<256x36xbf16, #tpu.memory_space<vmem>>, vector<256x4xbf16>,
    %c0_38 = arith.constant 0 : index
    %c2_39 = arith.constant 2 : index
    %c2_40 = arith.constant 2 : index
    %c0_41 = arith.constant 0 : index
    %32 = vector.load %arg1[%c0_38, %c2_39, %c2_40, %c0_41] : memref<1x18x18x4xbf16, #tpu.memory_space<vmem>>, vector<1x16x16x4xbf16>
    %33 = vector.shape_cast %32 : vector<1x16x16x4xbf16> to vector<16x16x4xbf16>
    %34 = vector.shape_cast %33 : vector<16x16x4xbf16> to vector<256x4xbf16>
    %c0_42 = arith.constant 0 : index
    %c32 = arith.constant 32 : index
    %35 = vector.load %arg10[%c0_42, %c32] : memref<256x36xbf16, #tpu.memory_space<vmem>>, vector<256x4xbf16>
    tpu.vector_store %arg10[%c0_42, %c32], %34 {strides = array<i32>} : memref<256x36xbf16, #tpu.memory_space<vmem>>, vector<256x4xbf16>,
    %c0_43 = arith.constant 0 : index
    %c0_44 = arith.constant 0 : index
    %36 = vector.load %arg10[%c0_43, %c0_44] : memref<256x36xbf16, #tpu.memory_space<vmem>>, vector<256x36xbf16>
    %c0_45 = arith.constant 0 : index
    %c0_46 = arith.constant 0 : index
    %37 = vector.load %arg3[%c0_45, %c0_46] : memref<36x128xbf16, #tpu.memory_space<vmem>>, vector<36x128xbf16>
    %cst = arith.constant dense<0.000000e+00> : vector<256x128xf32>
    %38 = tpu.matmul %36, %37, %cst {dimension_numbers = #tpu.dot_dimension_numbers<[1], [0], [0], [1], [0, 0, 1, 1], [], []>} : vector<256x36xbf16>, vector<36x128xbf16>, vector<256x128xf32> -> vector<256x128xf32>
    %c0_47 = arith.constant 0 : index
    %c0_48 = arith.constant 0 : index
    %39 = vector.load %arg12[%c0_47, %c0_48] : memref<256x128xf32, #tpu.memory_space<vmem>>, vector<256x128xf32>
    tpu.vector_store %arg12[%c0_47, %c0_48], %38 {strides = array<i32>} : memref<256x128xf32, #tpu.memory_space<vmem>>, vector<256x128xf32>,
    %c0_49 = arith.constant 0 : index
    %c0_50 = arith.constant 0 : index
    %40 = vector.load %arg4[%c0_49, %c0_50] : memref<1x128xf32, #tpu.memory_space<vmem>>, vector<1x128xf32>
    %c0_51 = arith.constant 0 : index
    %c0_52 = arith.constant 0 : index
    %41 = vector.load %arg5[%c0_51, %c0_52] : memref<1x128xf32, #tpu.memory_space<vmem>>, vector<1x128xf32>
    %c0_53 = arith.constant 0 : index
    %c0_54 = arith.constant 0 : index
    %42 = vector.load %arg12[%c0_53, %c0_54] : memref<256x128xf32, #tpu.memory_space<vmem>>, vector<256x128xf32>
    %cst_55 = arith.constant dense<0.000000e+00> : vector<128xf32>
    %43 = vector.multi_reduction <add>, %42, %cst_55 [0] : vector<256x128xf32> to vector<128xf32>
    %44 = vector.shape_cast %43 : vector<128xf32> to vector<1x128xf32>
    %cst_56 = arith.constant 3.906250e-03 : f32
    %45 = vector.broadcast %cst_56 : f32 to vector<1x128xf32>
    %46 = arith.mulf %44, %45 : vector<1x128xf32>
    %47 = arith.mulf %42, %42 : vector<256x128xf32>
    %cst_57 = arith.constant dense<0.000000e+00> : vector<128xf32>
    %48 = vector.multi_reduction <add>, %47, %cst_57 [0] : vector<256x128xf32> to vector<128xf32>
    %49 = vector.shape_cast %48 : vector<128xf32> to vector<1x128xf32>
    %cst_58 = arith.constant 3.906250e-03 : f32
    %50 = vector.broadcast %cst_58 : f32 to vector<1x128xf32>
    %51 = arith.mulf %49, %50 : vector<1x128xf32>
    %52 = arith.mulf %46, %46 : vector<1x128xf32>
    %53 = arith.subf %51, %52 : vector<1x128xf32>
    %cst_59 = arith.constant 0.000000e+00 : f32
    %54 = vector.broadcast %cst_59 : f32 to vector<1x128xf32>
    %55 = arith.maximumf %53, %54 : vector<1x128xf32>
    %cst_60 = arith.constant 9.99999974E-6 : f32
    %56 = vector.broadcast %cst_60 : f32 to vector<1x128xf32>
    %57 = arith.addf %55, %56 : vector<1x128xf32>
    %58 = math.rsqrt %57 : vector<1x128xf32>
    %59 = arith.mulf %58, %40 : vector<1x128xf32>
    %60 = arith.mulf %46, %59 : vector<1x128xf32>
    %61 = arith.subf %41, %60 : vector<1x128xf32>
    %c0_61 = arith.constant 0 : index
    %c0_62 = arith.constant 0 : index
    %62 = vector.load %arg12[%c0_61, %c0_62] : memref<256x128xf32, #tpu.memory_space<vmem>>, vector<256x128xf32>
    %63 = vector.broadcast %59 : vector<1x128xf32> to vector<256x128xf32>
    %64 = arith.mulf %62, %63 : vector<256x128xf32>
    %65 = vector.broadcast %61 : vector<1x128xf32> to vector<256x128xf32>
    %66 = arith.addf %64, %65 : vector<256x128xf32>
    %cst_63 = arith.constant 0.000000e+00 : f32
    %67 = vector.broadcast %cst_63 : f32 to vector<256x128xf32>
    %68 = arith.maximumf %66, %67 : vector<256x128xf32>
    %cst_64 = arith.constant 0.000000e+00 : bf16
    %69 = vector.broadcast %cst_64 : bf16 to vector<1x18x4xbf16>
    %c0_65 = arith.constant 0 : index
    %c0_66 = arith.constant 0 : index
    %c0_67 = arith.constant 0 : index
    %70 = vector.load %arg11[%c0_65, %c0_66, %c0_67] : memref<18x18x4xbf16, #tpu.memory_space<vmem>>, vector<1x18x4xbf16>
    tpu.vector_store %arg11[%c0_65, %c0_66, %c0_67], %69 {strides = array<i32>} : memref<18x18x4xbf16, #tpu.memory_space<vmem>>, vector<1x18x4xbf16>,
    %cst_68 = arith.constant 0.000000e+00 : bf16
    %71 = vector.broadcast %cst_68 : bf16 to vector<1x18x4xbf16>
    %c17 = arith.constant 17 : index
    %c0_69 = arith.constant 0 : index
    %c0_70 = arith.constant 0 : index
    %72 = vector.load %arg11[%c17, %c0_69, %c0_70] : memref<18x18x4xbf16, #tpu.memory_space<vmem>>, vector<1x18x4xbf16>
    tpu.vector_store %arg11[%c17, %c0_69, %c0_70], %71 {strides = array<i32>} : memref<18x18x4xbf16, #tpu.memory_space<vmem>>, vector<1x18x4xbf16>,
    %cst_71 = arith.constant 0.000000e+00 : bf16
    %73 = vector.broadcast %cst_71 : bf16 to vector<16x1x4xbf16>
    %c1_72 = arith.constant 1 : index
    %c0_73 = arith.constant 0 : index
    %c0_74 = arith.constant 0 : index
    %74 = vector.load %arg11[%c1_72, %c0_73, %c0_74] : memref<18x18x4xbf16, #tpu.memory_space<vmem>>, vector<16x1x4xbf16>
    tpu.vector_store %arg11[%c1_72, %c0_73, %c0_74], %73 {strides = array<i32>} : memref<18x18x4xbf16, #tpu.memory_space<vmem>>, vector<16x1x4xbf16>,
    %cst_75 = arith.constant 0.000000e+00 : bf16
    %75 = vector.broadcast %cst_75 : bf16 to vector<16x1x4xbf16>
    %c1_76 = arith.constant 1 : index
    %c17_77 = arith.constant 17 : index
    %c0_78 = arith.constant 0 : index
    %76 = vector.load %arg11[%c1_76, %c17_77, %c0_78] : memref<18x18x4xbf16, #tpu.memory_space<vmem>>, vector<16x1x4xbf16>
    tpu.vector_store %arg11[%c1_76, %c17_77, %c0_78], %75 {strides = array<i32>} : memref<18x18x4xbf16, #tpu.memory_space<vmem>>, vector<16x1x4xbf16>,
    %77 = vector.extract_strided_slice %68 {offsets = [0, 0], sizes = [256, 4], strides = [1, 1]} : vector<256x128xf32> to vector<256x4xf32>
    %78 = arith.truncf %77 : vector<256x4xf32> to vector<256x4xbf16>
    %79 = vector.shape_cast %78 : vector<256x4xbf16> to vector<16x16x4xbf16>
    %c1_79 = arith.constant 1 : index
    %c1_80 = arith.constant 1 : index
    %c0_81 = arith.constant 0 : index
    %80 = vector.load %arg11[%c1_79, %c1_80, %c0_81] : memref<18x18x4xbf16, #tpu.memory_space<vmem>>, vector<16x16x4xbf16>
    tpu.vector_store %arg11[%c1_79, %c1_80, %c0_81], %79 {strides = array<i32>} : memref<18x18x4xbf16, #tpu.memory_space<vmem>>, vector<16x16x4xbf16>,
    %c0_82 = arith.constant 0 : index
    %c0_83 = arith.constant 0 : index
    %c0_84 = arith.constant 0 : index
    %81 = vector.load %arg11[%c0_82, %c0_83, %c0_84] : memref<18x18x4xbf16, #tpu.memory_space<vmem>>, vector<16x16x4xbf16>
    %82 = vector.shape_cast %81 : vector<16x16x4xbf16> to vector<256x4xbf16>
    %c0_85 = arith.constant 0 : index
    %c0_86 = arith.constant 0 : index
    %83 = vector.load %arg10[%c0_85, %c0_86] : memref<256x36xbf16, #tpu.memory_space<vmem>>, vector<256x4xbf16>
    tpu.vector_store %arg10[%c0_85, %c0_86], %82 {strides = array<i32>} : memref<256x36xbf16, #tpu.memory_space<vmem>>, vector<256x4xbf16>,
    %c0_87 = arith.constant 0 : index
    %c1_88 = arith.constant 1 : index
    %c0_89 = arith.constant 0 : index
    %84 = vector.load %arg11[%c0_87, %c1_88, %c0_89] : memref<18x18x4xbf16, #tpu.memory_space<vmem>>, vector<16x16x4xbf16>
    %85 = vector.shape_cast %84 : vector<16x16x4xbf16> to vector<256x4xbf16>
    %c0_90 = arith.constant 0 : index
    %c4_91 = arith.constant 4 : index
    %86 = vector.load %arg10[%c0_90, %c4_91] : memref<256x36xbf16, #tpu.memory_space<vmem>>, vector<256x4xbf16>
    tpu.vector_store %arg10[%c0_90, %c4_91], %85 {strides = array<i32>} : memref<256x36xbf16, #tpu.memory_space<vmem>>, vector<256x4xbf16>,
    %c0_92 = arith.constant 0 : index
    %c2_93 = arith.constant 2 : index
    %c0_94 = arith.constant 0 : index
    %87 = vector.load %arg11[%c0_92, %c2_93, %c0_94] : memref<18x18x4xbf16, #tpu.memory_space<vmem>>, vector<16x16x4xbf16>
    %88 = vector.shape_cast %87 : vector<16x16x4xbf16> to vector<256x4xbf16>
    %c0_95 = arith.constant 0 : index
    %c8_96 = arith.constant 8 : index
    %89 = vector.load %arg10[%c0_95, %c8_96] : memref<256x36xbf16, #tpu.memory_space<vmem>>, vector<256x4xbf16>
    tpu.vector_store %arg10[%c0_95, %c8_96], %88 {strides = array<i32>} : memref<256x36xbf16, #tpu.memory_space<vmem>>, vector<256x4xbf16>,
    %c1_97 = arith.constant 1 : index
    %c0_98 = arith.constant 0 : index
    %c0_99 = arith.constant 0 : index
    %90 = vector.load %arg11[%c1_97, %c0_98, %c0_99] : memref<18x18x4xbf16, #tpu.memory_space<vmem>>, vector<16x16x4xbf16>
    %91 = vector.shape_cast %90 : vector<16x16x4xbf16> to vector<256x4xbf16>
    %c0_100 = arith.constant 0 : index
    %c12_101 = arith.constant 12 : index
    %92 = vector.load %arg10[%c0_100, %c12_101] : memref<256x36xbf16, #tpu.memory_space<vmem>>, vector<256x4xbf16>
    tpu.vector_store %arg10[%c0_100, %c12_101], %91 {strides = array<i32>} : memref<256x36xbf16, #tpu.memory_space<vmem>>, vector<256x4xbf16>,
    %c1_102 = arith.constant 1 : index
    %c1_103 = arith.constant 1 : index
    %c0_104 = arith.constant 0 : index
    %93 = vector.load %arg11[%c1_102, %c1_103, %c0_104] : memref<18x18x4xbf16, #tpu.memory_space<vmem>>, vector<16x16x4xbf16>
    %94 = vector.shape_cast %93 : vector<16x16x4xbf16> to vector<256x4xbf16>
    %c0_105 = arith.constant 0 : index
    %c16_106 = arith.constant 16 : index
    %95 = vector.load %arg10[%c0_105, %c16_106] : memref<256x36xbf16, #tpu.memory_space<vmem>>, vector<256x4xbf16>
    tpu.vector_store %arg10[%c0_105, %c16_106], %94 {strides = array<i32>} : memref<256x36xbf16, #tpu.memory_space<vmem>>, vector<256x4xbf16>,
    %c1_107 = arith.constant 1 : index
    %c2_108 = arith.constant 2 : index
    %c0_109 = arith.constant 0 : index
    %96 = vector.load %arg11[%c1_107, %c2_108, %c0_109] : memref<18x18x4xbf16, #tpu.memory_space<vmem>>, vector<16x16x4xbf16>
    %97 = vector.shape_cast %96 : vector<16x16x4xbf16> to vector<256x4xbf16>
    %c0_110 = arith.constant 0 : index
    %c20_111 = arith.constant 20 : index
    %98 = vector.load %arg10[%c0_110, %c20_111] : memref<256x36xbf16, #tpu.memory_space<vmem>>, vector<256x4xbf16>
    tpu.vector_store %arg10[%c0_110, %c20_111], %97 {strides = array<i32>} : memref<256x36xbf16, #tpu.memory_space<vmem>>, vector<256x4xbf16>,
    %c2_112 = arith.constant 2 : index
    %c0_113 = arith.constant 0 : index
    %c0_114 = arith.constant 0 : index
    %99 = vector.load %arg11[%c2_112, %c0_113, %c0_114] : memref<18x18x4xbf16, #tpu.memory_space<vmem>>, vector<16x16x4xbf16>
    %100 = vector.shape_cast %99 : vector<16x16x4xbf16> to vector<256x4xbf16>
    %c0_115 = arith.constant 0 : index
    %c24_116 = arith.constant 24 : index
    %101 = vector.load %arg10[%c0_115, %c24_116] : memref<256x36xbf16, #tpu.memory_space<vmem>>, vector<256x4xbf16>
    tpu.vector_store %arg10[%c0_115, %c24_116], %100 {strides = array<i32>} : memref<256x36xbf16, #tpu.memory_space<vmem>>, vector<256x4xbf16>,
    %c2_117 = arith.constant 2 : index
    %c1_118 = arith.constant 1 : index
    %c0_119 = arith.constant 0 : index
    %102 = vector.load %arg11[%c2_117, %c1_118, %c0_119] : memref<18x18x4xbf16, #tpu.memory_space<vmem>>, vector<16x16x4xbf16>
    %103 = vector.shape_cast %102 : vector<16x16x4xbf16> to vector<256x4xbf16>
    %c0_120 = arith.constant 0 : index
    %c28_121 = arith.constant 28 : index
    %104 = vector.load %arg10[%c0_120, %c28_121] : memref<256x36xbf16, #tpu.memory_space<vmem>>, vector<256x4xbf16>
    tpu.vector_store %arg10[%c0_120, %c28_121], %103 {strides = array<i32>} : memref<256x36xbf16, #tpu.memory_space<vmem>>, vector<256x4xbf16>,
    %c2_122 = arith.constant 2 : index
    %c2_123 = arith.constant 2 : index
    %c0_124 = arith.constant 0 : index
    %105 = vector.load %arg11[%c2_122, %c2_123, %c0_124] : memref<18x18x4xbf16, #tpu.memory_space<vmem>>, vector<16x16x4xbf16>
    %106 = vector.shape_cast %105 : vector<16x16x4xbf16> to vector<256x4xbf16>
    %c0_125 = arith.constant 0 : index
    %c32_126 = arith.constant 32 : index
    %107 = vector.load %arg10[%c0_125, %c32_126] : memref<256x36xbf16, #tpu.memory_space<vmem>>, vector<256x4xbf16>
    tpu.vector_store %arg10[%c0_125, %c32_126], %106 {strides = array<i32>} : memref<256x36xbf16, #tpu.memory_space<vmem>>, vector<256x4xbf16>,
    %c0_127 = arith.constant 0 : index
    %c0_128 = arith.constant 0 : index
    %108 = vector.load %arg10[%c0_127, %c0_128] : memref<256x36xbf16, #tpu.memory_space<vmem>>, vector<256x36xbf16>
    %c0_129 = arith.constant 0 : index
    %c0_130 = arith.constant 0 : index
    %109 = vector.load %arg6[%c0_129, %c0_130] : memref<36x128xbf16, #tpu.memory_space<vmem>>, vector<36x128xbf16>
    %cst_131 = arith.constant dense<0.000000e+00> : vector<256x128xf32>
    %110 = tpu.matmul %108, %109, %cst_131 {dimension_numbers = #tpu.dot_dimension_numbers<[1], [0], [0], [1], [0, 0, 1, 1], [], []>} : vector<256x36xbf16>, vector<36x128xbf16>, vector<256x128xf32> -> vector<256x128xf32>
    %c0_132 = arith.constant 0 : index
    %c0_133 = arith.constant 0 : index
    %111 = vector.load %arg12[%c0_132, %c0_133] : memref<256x128xf32, #tpu.memory_space<vmem>>, vector<256x128xf32>
    tpu.vector_store %arg12[%c0_132, %c0_133], %110 {strides = array<i32>} : memref<256x128xf32, #tpu.memory_space<vmem>>, vector<256x128xf32>,
    %c0_134 = arith.constant 0 : index
    %c0_135 = arith.constant 0 : index
    %112 = vector.load %arg7[%c0_134, %c0_135] : memref<1x128xf32, #tpu.memory_space<vmem>>, vector<1x128xf32>
    %c0_136 = arith.constant 0 : index
    %c0_137 = arith.constant 0 : index
    %113 = vector.load %arg8[%c0_136, %c0_137] : memref<1x128xf32, #tpu.memory_space<vmem>>, vector<1x128xf32>
    %c0_138 = arith.constant 0 : index
    %c0_139 = arith.constant 0 : index
    %114 = vector.load %arg12[%c0_138, %c0_139] : memref<256x128xf32, #tpu.memory_space<vmem>>, vector<256x128xf32>
    %cst_140 = arith.constant dense<0.000000e+00> : vector<128xf32>
    %115 = vector.multi_reduction <add>, %114, %cst_140 [0] : vector<256x128xf32> to vector<128xf32>
    %116 = vector.shape_cast %115 : vector<128xf32> to vector<1x128xf32>
    %cst_141 = arith.constant 3.906250e-03 : f32
    %117 = vector.broadcast %cst_141 : f32 to vector<1x128xf32>
    %118 = arith.mulf %116, %117 : vector<1x128xf32>
    %119 = arith.mulf %114, %114 : vector<256x128xf32>
    %cst_142 = arith.constant dense<0.000000e+00> : vector<128xf32>
    %120 = vector.multi_reduction <add>, %119, %cst_142 [0] : vector<256x128xf32> to vector<128xf32>
    %121 = vector.shape_cast %120 : vector<128xf32> to vector<1x128xf32>
    %cst_143 = arith.constant 3.906250e-03 : f32
    %122 = vector.broadcast %cst_143 : f32 to vector<1x128xf32>
    %123 = arith.mulf %121, %122 : vector<1x128xf32>
    %124 = arith.mulf %118, %118 : vector<1x128xf32>
    %125 = arith.subf %123, %124 : vector<1x128xf32>
    %cst_144 = arith.constant 0.000000e+00 : f32
    %126 = vector.broadcast %cst_144 : f32 to vector<1x128xf32>
    %127 = arith.maximumf %125, %126 : vector<1x128xf32>
    %cst_145 = arith.constant 9.99999974E-6 : f32
    %128 = vector.broadcast %cst_145 : f32 to vector<1x128xf32>
    %129 = arith.addf %127, %128 : vector<1x128xf32>
    %130 = math.rsqrt %129 : vector<1x128xf32>
    %131 = arith.mulf %130, %112 : vector<1x128xf32>
    %132 = arith.mulf %118, %131 : vector<1x128xf32>
    %133 = arith.subf %113, %132 : vector<1x128xf32>
    %c0_146 = arith.constant 0 : index
    %c0_147 = arith.constant 0 : index
    %134 = vector.load %arg12[%c0_146, %c0_147] : memref<256x128xf32, #tpu.memory_space<vmem>>, vector<256x128xf32>
    %135 = vector.broadcast %131 : vector<1x128xf32> to vector<256x128xf32>
    %136 = arith.mulf %134, %135 : vector<256x128xf32>
    %137 = vector.broadcast %133 : vector<1x128xf32> to vector<256x128xf32>
    %138 = arith.addf %136, %137 : vector<256x128xf32>
    %139 = vector.extract_strided_slice %138 {offsets = [0, 0], sizes = [256, 4], strides = [1, 1]} : vector<256x128xf32> to vector<256x4xf32>
    %140 = vector.shape_cast %139 : vector<256x4xf32> to vector<16x16x4xf32>
    %c0_148 = arith.constant 0 : index
    %c0_149 = arith.constant 0 : index
    %c0_150 = arith.constant 0 : index
    %c0_151 = arith.constant 0 : index
    %141 = vector.load %arg2[%c0_148, %c0_149, %c0_150, %c0_151] : memref<1x16x16x4xf32, #tpu.memory_space<vmem>>, vector<1x16x16x4xf32>
    %142 = vector.shape_cast %141 : vector<1x16x16x4xf32> to vector<16x16x4xf32>
    %143 = arith.addf %142, %140 : vector<16x16x4xf32>
    %cst_152 = arith.constant 0.000000e+00 : f32
    %144 = vector.broadcast %cst_152 : f32 to vector<16x16x4xf32>
    %145 = arith.maximumf %143, %144 : vector<16x16x4xf32>
    %c0_153 = arith.constant 0 : index
    %c0_154 = arith.constant 0 : index
    %c0_155 = arith.constant 0 : index
    %c0_156 = arith.constant 0 : index
    %146 = vector.load %arg9[%c0_153, %c0_154, %c0_155, %c0_156] : memref<1x16x16x4xf32, #tpu.memory_space<vmem>>, vector<1x16x16x4xf32>
    %147 = vector.shape_cast %146 : vector<1x16x16x4xf32> to vector<16x16x4xf32>
    %148 = vector.shape_cast %145 : vector<16x16x4xf32> to vector<1x16x16x4xf32>
    tpu.vector_store %arg9[%c0_153, %c0_154, %c0_155, %c0_156], %148 {strides = array<i32>} : memref<1x16x16x4xf32, #tpu.memory_space<vmem>>, vector<1x16x16x4xf32>,
    return
  }
  func.func @transform_0(%arg0: i32) -> (i32, i32, i32, i32) {
    %c0_i32 = arith.constant 0 : i32
    %c0_i32_0 = arith.constant 0 : i32
    %c0_i32_1 = arith.constant 0 : i32
    %c0_i32_2 = arith.constant 0 : i32
    return %arg0, %c0_i32, %c0_i32_0, %c0_i32_1 : i32, i32, i32, i32
  }
  func.func @transform_1(%arg0: i32) -> (i32, i32, i32, i32) {
    %c0_i32 = arith.constant 0 : i32
    %c0_i32_0 = arith.constant 0 : i32
    %c0_i32_1 = arith.constant 0 : i32
    %c0_i32_2 = arith.constant 0 : i32
    return %arg0, %c0_i32, %c0_i32_0, %c0_i32_1 : i32, i32, i32, i32
  }
  func.func @transform_2(%arg0: i32) -> (i32, i32) {
    %c0_i32 = arith.constant 0 : i32
    %c0_i32_0 = arith.constant 0 : i32
    %c0_i32_1 = arith.constant 0 : i32
    return %c0_i32, %c0_i32_0 : i32, i32
  }
  func.func @transform_3(%arg0: i32) -> (i32, i32) {
    %c0_i32 = arith.constant 0 : i32
    %c0_i32_0 = arith.constant 0 : i32
    %c0_i32_1 = arith.constant 0 : i32
    return %c0_i32, %c0_i32_0 : i32, i32
  }
  func.func @transform_4(%arg0: i32) -> (i32, i32) {
    %c0_i32 = arith.constant 0 : i32
    %c0_i32_0 = arith.constant 0 : i32
    %c0_i32_1 = arith.constant 0 : i32
    return %c0_i32, %c0_i32_0 : i32, i32
  }
  func.func @transform_5(%arg0: i32) -> (i32, i32) {
    %c0_i32 = arith.constant 0 : i32
    %c0_i32_0 = arith.constant 0 : i32
    %c0_i32_1 = arith.constant 0 : i32
    return %c0_i32, %c0_i32_0 : i32, i32
  }
  func.func @transform_6(%arg0: i32) -> (i32, i32) {
    %c0_i32 = arith.constant 0 : i32
    %c0_i32_0 = arith.constant 0 : i32
    %c0_i32_1 = arith.constant 0 : i32
    return %c0_i32, %c0_i32_0 : i32, i32
  }
  func.func @transform_7(%arg0: i32) -> (i32, i32) {
    %c0_i32 = arith.constant 0 : i32
    %c0_i32_0 = arith.constant 0 : i32
    %c0_i32_1 = arith.constant 0 : i32
    return %c0_i32, %c0_i32_0 : i32, i32
  }
  func.func @transform_8(%arg0: i32) -> (i32, i32, i32, i32) {
    %c0_i32 = arith.constant 0 : i32
    %c0_i32_0 = arith.constant 0 : i32
    %c0_i32_1 = arith.constant 0 : i32
    %c0_i32_2 = arith.constant 0 : i32
    return %arg0, %c0_i32, %c0_i32_0, %c0_i32_1 : i32, i32, i32, i32
  }
}

</mosaic_0001>

<bundles_post_ra>
// kernel: tpu_custom_call.1
= control target key start
LH: loop header
LB: loop body
LE: loop exit
PB: predicated region body
PF: predicated region fallthrough
CT: control target
= control target key end

     0   :  { %s9426_s27 = smov 0   ;;  %s13246_s0 = inlined_call_operand.vmem [shape: bf16[2,18,18,4], index: 0, kind: input, shape index: {}]   ;;  %s13247_s1 = inlined_call_operand.vmem [shape: f32[2,16,16,4], index: 1, kind: input, shape index: {}]   ;;  %s13248_s2 = inlined_call_operand.vmem [shape: bf16[36,128], index: 2, kind: input, shape index: {}]   ;;  %s13249_s3 = inlined_call_operand.vmem [shape: f32[1,128], index: 3, kind: input, shape index: {}]   ;;  %s13250_s4 = inlined_call_operand.vmem [shape: f32[1,128], index: 4, kind: input, shape index: {}]   ;;  %s13251_s5 = inlined_call_operand.vmem [shape: bf16[36,128], index: 5, kind: input, shape index: {}]   ;;  %s13252_s6 = inlined_call_operand.vmem [shape: f32[1,128], index: 6, kind: input, shape index: {}]   ;;  %s13253_s7 = inlined_call_operand.vmem [shape: f32[1,128], index: 7, kind: input, shape index: {}]   ;;  %s13254_s8 = inlined_call_operand.vmem [shape: f32[2,16,16,4], index: 8, kind: output, shape index: {}]  }
   0x1 LB: > { %s8689_s28 = sadd.s32 4294967295, %s9370_s27   ;;  %p8693_p0 = scmp.ge.s32.totalorder %s9370_s27, 1  ;;  %s9370_s27 = sphi %s9426_s27, %s18_s27  }
   0x2   : > { %p272_p1 = scmp.lt.s32.totalorder %s9370_s27, 3 }
   0x4   : > { %p273_p2 = pnand %p8693_p0, %p272_p1 }
   0x6   : > { %276 = sbr.rel (%p273_p2) target bundleno = 1930 (0x78a), region = 52 }
   0xb   : > { %p311_p3 = scmp.lt.s32.totalorder %s8689_s28, 1  ;;  %vm440_vm0 = vsmask.f32 3328  ;;  %vm441_vm1 = vsmask.f32 7440  ;;  %v13273_v27 = vmov 0 }
   0xc   : > { %vm9451_vm2 = vmor %vm440_vm0, %vm441_vm1  ;;  %s9372_s11 = smov 4   ;;  %vm359_vm3 = vcmask 27648   ;;  %vm1052_vm4 = vcmask 1042432   ;;  %vm1053_vm5 = vcmask 1046532   ;;  %s9373_s12 = smov 8   ;;  %vm923_vm7 = vcmask 60448  }
   0xd   : > { %s13432_s28 = smov (!%p311_p3, %s8689_s28), 1  ;;  %v13274_v27 = vsel %vm9451_vm2, 4294967295, %v13273_v27  ;;  %vm9595_vm6 = vmor %vm1052_vm4, %vm1053_vm5  ;;  %s9374_s13 = smov 12   ;;  %vm13256_vm8 = vcmask 93248   ;;  %vm13255_vm9 = vcmask 126048   ;;  %vm3661_vm10 = vcmask 1041408  }
   0xe   : > { %s9305_s29 = smul.u32 216, %s13432_s28  ;;  %13275 = vst [vmem:[#allocation5_spill] sm:$0xff] %v13274_v27  ;;  %s9375_s14 = smov 16   ;;  %vm2018_vm11 = vcmask 158848   ;;  %vm2355_vm12 = vcmask 191648   ;;  %vm2549_vm13 = vcmask 224448  }
   0xf   : > { %s9376_s15 = smov 20   ;;  %s9377_s16 = smov 24   ;;  %vm3110_vm14 = vcmask 257248   ;;  %vm3447_vm15 = vcmask 290048   ;;  %vm3612_vm0 = vcmask 293888   ;;  %vm4116_vm1 = vcmask 24576  }
  0x10   : > { %s9440_s10 = scalar_lea.vmem %s13246_s0, %s9305_s29  ;;  %s9379_s21 = smov 28   ;;  %vm4124_vm4 = vsmask.f32 256 }
  0x11   : > { %v395_v0 = vld [vmem:[%s9440_s10 + $0xc] sm:$0xf]  ;;  %v396_v1 = vld [vmem:[%s9440_s10 + $0x10] sm:$0xf]  ;;  %v392_v2 = vld [vmem:[%s9440_s10] sm:$0xf] }
  0x12   : > { %v468_v3 = vshrl.u32 %v395_v0, 16  ;;  %v471_v4 = vshll.u32 %v395_v0, 16  ;;  %v477_v5 = vshll.u32 %v396_v1, 16  ;;  %v481_v6 = vshrl.u32 %v396_v1, 16  ;;  %v393_v7 = vld [vmem:[%s9440_s10 + $0x4] sm:$0xf]  ;;  %vm10709_vm5 = vmand %vm4116_vm1, %vm4124_vm4 }
  0x13   : > { %v444_v8 = vshrl.u32 %v392_v2, 16  ;;  %v447_v9 = vshll.u32 %v392_v2, 16  ;;  %v453_v10 = vshll.u32 %v393_v7, 16  ;;  %v457_v11 = vshrl.u32 %v393_v7, 16  ;;  %v397_v12 = vld [vmem:[%s9440_s10 + $0x14] sm:$0x1] }
  0x14   : > { %v470_v13 = vrot.slane %v468_v3, 4  ;;  %v473_v14 = vrot.slane %v471_v4, 5  ;;  %v479_v15 = vrot.slane %v477_v5, 5  ;;  %v483_v16 = vrot.slane %v481_v6, 4  ;;  %v394_v17 = vld [vmem:[%s9440_s10 + $0x8] sm:$0x1] }
  0x15   : > { %v446_v18 = vrot.slane %v444_v8, 4  ;;  %v449_v19 = vrot.slane %v447_v9, 5  ;;  %v455_v20 = vrot.slane %v453_v10, 5  ;;  %v459_v21 = vrot.slane %v457_v11, 4  ;;  %v399_v22 = vld [vmem:[%s9440_s10 + $0x1c] sm:$0xf] }
  0x16   : > { %v474_v23 = vor.u32 %v473_v14, %v470_v13  ;;  %v484_v24 = vor.u32 %v483_v16, %v479_v15  ;;  %v487_v25 = vshll.u32 %v397_v12, 16  ;;  %v463_v26 = vshll.u32 %v394_v17, 16  ;;  %v400_v30 = vld [vmem:[%s9440_s10 + $0x20] sm:$0x1]  ;;  %v398_v33 = vld [vmem:[%s9440_s10 + $0x18] sm:$0xf] }
  0x17   : > { %v450_v28 = vor.u32 %v449_v19, %v446_v18  ;;  %v460_v29 = vor.u32 %v459_v21, %v455_v20  ;;  %v501_v31 = vshll.u32 %v399_v22, 16  ;;  %v505_v32 = vshrl.u32 %v399_v22, 16  ;;  %v402_v42 = vld [vmem:[%s9440_s10 + $0x28] sm:$0xf]  ;;  %v403_v47 = vld [vmem:[%s9440_s10 + $0x2c] sm:$0x1] }
  0x18   : > { %v475_v34 = vrot.slane %v474_v23, 4  ;;  %v485_v35 = vrot.slane %v484_v24, 4  ;;  %v489_v36 = vrot.slane %v487_v25, 5  ;;  %v465_v37 = vrot.slane %v463_v26, 5  ;;  %v401_v48 = vld [vmem:[%s9440_s10 + $0x24] sm:$0xf] }
  0x19   : > { %v451_v38 = vrot.slane %v450_v28, 4  ;;  %v461_v39 = vrot.slane %v460_v29, 4  ;;  %v503_v40 = vrot.slane %v501_v31, 5  ;;  %v507_v41 = vrot.slane %v505_v32, 4  ;;  %v405_v53 = vld [vmem:[%s9440_s10 + $0x34] sm:$0xf] }
  0x1a   : > { %v480_v43 = vsel %vm9451_vm2, %v475_v34, %v479_v15  ;;  %v490_v44 = vsel %vm9451_vm2, %v485_v35, %v489_v36  ;;  %v511_v45 = vshll.u32 %v400_v30, 16  ;;  %v492_v46 = vshrl.u32 %v398_v33, 16  ;;  %v406_v62 = vld [vmem:[%s9440_s10 + $0x38] sm:$0x1]  ;;  %v404_v3 = vld [vmem:[%s9440_s10 + $0x30] sm:$0xf] }
  0x1b   : > { %831 = vrot.lane.b32.xlu1 %v480_v43, %s9372_s11  ;;  %v456_v49 = vsel %vm9451_vm2, %v451_v38, %v455_v20  ;;  %v466_v50 = vsel %vm9451_vm2, %v461_v39, %v465_v37  ;;  %v508_v51 = vor.u32 %v507_v41, %v503_v40  ;;  %v495_v52 = vshll.u32 %v398_v33, 16  ;;  %v408_v8 = vld [vmem:[%s9440_s10 + $0x40] sm:$0xf]  ;;  %v409_v17 = vld [vmem:[%s9440_s10 + $0x44] sm:$0x1]  ;;  %s9380_s24 = smov 32  }
  0x1c   : > { %827 = vrot.lane.b32.xlu0 %v456_v49, %s9372_s11  ;;  %v513_v54 = vrot.slane %v511_v45, 5  ;;  %v494_v55 = vrot.slane %v492_v46, 4  ;;  %v525_v56 = vshll.u32 %v402_v42, 16  ;;  %v529_v57 = vshrl.u32 %v402_v42, 16  ;;  %v407_v22 = vld [vmem:[%s9440_s10 + $0x3c] sm:$0xf] }
  0x1d   : > { %v509_v58 = vrot.slane %v508_v51, 4  ;;  %v497_v59 = vrot.slane %v495_v52, 5  ;;  %v535_v60 = vshll.u32 %v403_v47, 16  ;;  %v516_v61 = vshrl.u32 %v401_v48, 16  ;;  %v411_v28 = vld [vmem:[%s9440_s10 + $0x4c] sm:$0xf] }
  0x1e   : > { %v527_v63 = vrot.slane %v525_v56, 5  ;;  %v531_v0 = vrot.slane %v529_v57, 4  ;;  %v519_v1 = vshll.u32 %v401_v48, 16  ;;  %v549_v2 = vshll.u32 %v405_v53, 16  ;;  %v412_v37 = vld [vmem:[%s9440_s10 + $0x50] sm:$0x1] }
  0x1f   : > { %833 = vrot.lane.b32.xlu1 %v490_v44, %s9372_s11  ;;  %v514_v4 = vsel %vm9451_vm2, %v509_v58, %v513_v54  ;;  %v498_v5 = vor.u32 %v497_v59, %v494_v55  ;;  %v537_v6 = vrot.slane %v535_v60, 5  ;;  %v518_v7 = vrot.slane %v516_v61, 4  ;;  %v410_v42 = vld [vmem:[%s9440_s10 + $0x48] sm:$0xf]  ;;  %v414_v47 = vld [vmem:[%s9440_s10 + $0x58] sm:$0xf] }
  0x20   : > { %829 = vrot.lane.b32.xlu0 %v466_v50, %s9372_s11  ;;  %v532_v9 = vor.u32 %v531_v0, %v527_v63  ;;  %v521_v10 = vrot.slane %v519_v1, 5  ;;  %v551_v11 = vrot.slane %v549_v2, 5  ;;  %v553_v12 = vshrl.u32 %v405_v53, 16  ;;  %v415_v56 = vld [vmem:[%s9440_s10 + $0x5c] sm:$0x1]  ;;  %s9155_s19 = sshll.u32 %s13432_s28, 8 }
  0x21   : > { %v499_v13 = vrot.slane %v498_v5, 4  ;;  %v559_v14 = vshll.u32 %v406_v62, 16  ;;  %v540_v15 = vshrl.u32 %v404_v3, 16  ;;  %v543_v16 = vshll.u32 %v404_v3, 16  ;;  %v413_v61 = vld [vmem:[%s9440_s10 + $0x54] sm:$0xf]  ;;  %s13102_s22 = scalar_lea.vmem %s13247_s1, %s9155_s19  ;;  %s13157_s25 = scalar_lea.vmem %s13254_s8, %s9155_s19 }
  0x22   : > { %v533_v18 = vrot.slane %v532_v9, 4  ;;  %v522_v19 = vor.u32 %v521_v10, %v518_v7  ;;  %v555_v20 = vrot.slane %v553_v12, 4  ;;  %v573_v21 = vshll.u32 %v408_v8, 16 }
  0x23   : > { %837 = vrot.lane.b32.xlu1 %v514_v4, %s9372_s11  ;;  %v504_v23 = vsel %vm9451_vm2, %v499_v13, %v503_v40  ;;  %v561_v24 = vrot.slane %v559_v14, 5  ;;  %v542_v25 = vrot.slane %v540_v15, 4  ;;  %v545_v26 = vrot.slane %v543_v16, 5  ;;  %v418_v15 = vld [vmem:[%s9440_s10 + $0x68] sm:$0x1] }
  0x24   : > { %835 = vrot.lane.b32.xlu0 %v504_v23, %s9372_s11  ;;  %v538_v29 = vsel %vm9451_vm2, %v533_v18, %v537_v6  ;;  %v523_v30 = vrot.slane %v522_v19, 4  ;;  %v556_v31 = vor.u32 %v555_v20, %v551_v11  ;;  %v575_v32 = vrot.slane %v573_v21, 5  ;;  %v417_v6 = vld [vmem:[%s9440_s10 + $0x64] sm:$0xf]  ;;  %v416_v16 = vld [vmem:[%s9440_s10 + $0x60] sm:$0xf] }
  0x25   : > { %v546_v33 = vor.u32 %v545_v26, %v542_v25  ;;  %v577_v34 = vshrl.u32 %v408_v8, 16  ;;  %v583_v35 = vshll.u32 %v409_v17, 16  ;;  %v564_v36 = vshrl.u32 %v407_v22, 16  ;;  %v420_v25 = vld [vmem:[%s9440_s10 + $0x70] sm:$0xf] }
  0x26   : > { %v528_v38 = vsel %vm9451_vm2, %v523_v30, %v527_v63  ;;  %v557_v39 = vrot.slane %v556_v31, 4  ;;  %v567_v40 = vshll.u32 %v407_v22, 16  ;;  %v597_v41 = vshll.u32 %v411_v28, 16 }
  0x27   : > { %841 = vrot.lane.b32.xlu1 %v538_v29, %s9372_s11  ;;  %v547_v43 = vrot.slane %v546_v33, 4  ;;  %v579_v44 = vrot.slane %v577_v34, 4  ;;  %v585_v45 = vrot.slane %v583_v35, 5  ;;  %v566_v46 = vrot.slane %v564_v36, 4  ;;  %v421_v35 = vld [vmem:[%s9440_s10 + $0x74] sm:$0x1] }
  0x28   : > { %839 = vrot.lane.b32.xlu0 %v528_v38, %s9372_s11  ;;  %v562_v48 = vsel %vm9451_vm2, %v557_v39, %v561_v24  ;;  %v569_v49 = vrot.slane %v567_v40, 5  ;;  %v599_v50 = vrot.slane %v597_v41, 5  ;;  %v601_v51 = vshrl.u32 %v411_v28, 16  ;;  %v419_v36 = vld [vmem:[%s9440_s10 + $0x6c] sm:$0xf] }
  0x29   : > { %v552_v52 = vsel %vm9451_vm2, %v547_v43, %v551_v11  ;;  %v580_v53 = vor.u32 %v579_v44, %v575_v32  ;;  %v607_v54 = vshll.u32 %v412_v37, 16  ;;  %v588_v55 = vshrl.u32 %v410_v42, 16 }
  0x2a   : > { %v570_v57 = vor.u32 %v569_v49, %v566_v46  ;;  %v603_v58 = vrot.slane %v601_v51, 4  ;;  %v591_v59 = vshll.u32 %v410_v42, 16  ;;  %v621_v60 = vshll.u32 %v414_v47, 16 }
  0x2b   : > { %845 = vrot.lane.b32.xlu1 %v562_v48, %s9372_s11  ;;  %v581_v62 = vrot.slane %v580_v53, 4  ;;  %v609_v63 = vrot.slane %v607_v54, 5  ;;  %v590_v0 = vrot.slane %v588_v55, 4  ;;  %v625_v1 = vshrl.u32 %v414_v47, 16  ;;  %v424_v54 = vld [vmem:[%s9440_s10 + $0x80] sm:$0x1] }
  0x2c   : > { %843 = vrot.lane.b32.xlu0 %v552_v52, %s9372_s11  ;;  %v571_v2 = vrot.slane %v570_v57, 4  ;;  %v604_v3 = vor.u32 %v603_v58, %v599_v50  ;;  %v593_v4 = vrot.slane %v591_v59, 5  ;;  %v623_v5 = vrot.slane %v621_v60, 5  ;;  %v422_v55 = vld [vmem:[%s9440_s10 + $0x78] sm:$0xf] }
  0x2d   : > { %v586_v7 = vsel %vm9451_vm2, %v581_v62, %v585_v45  ;;  %v627_v8 = vrot.slane %v625_v1, 4  ;;  %v631_v9 = vshll.u32 %v415_v56, 16  ;;  %v612_v10 = vshrl.u32 %v413_v61, 16  ;;  %v423_v45 = vld [vmem:[%s9440_s10 + $0x7c] sm:$0xf] }
  0x2e   : > { %v576_v11 = vsel %vm9451_vm2, %v571_v2, %v575_v32  ;;  %v605_v12 = vrot.slane %v604_v3, 4  ;;  %v594_v13 = vor.u32 %v593_v4, %v590_v0  ;;  %v615_v14 = vshll.u32 %v413_v61, 16  ;;  %v426_v0 = vld [vmem:[%s9440_s10 + $0x88] sm:$0xf] }
  0x2f   : > { %849 = vrot.lane.b32.xlu1 %v586_v7, %s9372_s11  ;;  %v628_v17 = vor.u32 %v627_v8, %v623_v5  ;;  %v633_v18 = vrot.slane %v631_v9, 5  ;;  %v614_v19 = vrot.slane %v612_v10, 4  ;;  %v645_v20 = vshll.u32 %v417_v6, 16  ;;  %v425_v10 = vld [vmem:[%s9440_s10 + $0x84] sm:$0xf] }
  0x30   : > { %847 = vrot.lane.b32.xlu0 %v576_v11, %s9372_s11  ;;  %v610_v21 = vsel %vm9451_vm2, %v605_v12, %v609_v63  ;;  %v595_v22 = vrot.slane %v594_v13, 4  ;;  %v617_v23 = vrot.slane %v615_v14, 5  ;;  %v649_v24 = vshrl.u32 %v417_v6, 16 }
  0x31   : > { %v629_v26 = vrot.slane %v628_v17, 4  ;;  %v647_v28 = vrot.slane %v645_v20, 5  ;;  %v655_v29 = vshll.u32 %v418_v15, 16  ;;  %v636_v30 = vshrl.u32 %v416_v16, 16 }
  0x32   : > { %v600_v31 = vsel %vm9451_vm2, %v595_v22, %v599_v50  ;;  %v618_v32 = vor.u32 %v617_v23, %v614_v19  ;;  %v651_v33 = vrot.slane %v649_v24, 4  ;;  %v639_v34 = vshll.u32 %v416_v16, 16  ;;  %v429_v19 = vld [vmem:[%s9440_s10 + $0x94] sm:$0xf]  ;;  %v430_v24 = vld [vmem:[%s9440_s10 + $0x98] sm:$0x1] }
  0x33   : > { %853 = vrot.lane.b32.xlu1 %v610_v21, %s9372_s11  ;;  %v634_v37 = vsel %vm9451_vm2, %v629_v26, %v633_v18  ;;  %v657_v38 = vrot.slane %v655_v29, 5  ;;  %v638_v39 = vrot.slane %v636_v30, 4  ;;  %v669_v40 = vshll.u32 %v420_v25, 16  ;;  %v428_v30 = vld [vmem:[%s9440_s10 + $0x90] sm:$0xf] }
  0x34   : > { %851 = vrot.lane.b32.xlu0 %v600_v31, %s9372_s11  ;;  %v619_v41 = vrot.slane %v618_v32, 4  ;;  %v652_v42 = vor.u32 %v651_v33, %v647_v28  ;;  %v641_v43 = vrot.slane %v639_v34, 5  ;;  %v673_v44 = vshrl.u32 %v420_v25, 16 }
  0x35   : > { %v671_v46 = vrot.slane %v669_v40, 5  ;;  %v679_v47 = vshll.u32 %v421_v35, 16  ;;  %v660_v48 = vshrl.u32 %v419_v36, 16  ;;  %v663_v49 = vshll.u32 %v419_v36, 16 }
  0x36   : > { %v624_v50 = vsel %vm9451_vm2, %v619_v41, %v623_v5  ;;  %v653_v51 = vrot.slane %v652_v42, 4  ;;  %v642_v52 = vor.u32 %v641_v43, %v638_v39  ;;  %v675_v53 = vrot.slane %v673_v44, 4  ;;  %v427_v5 = vld [vmem:[%s9440_s10 + $0x8c] sm:$0x1]  ;;  %v432_v39 = vld [vmem:[%s9440_s10 + $0xa0] sm:$0xf] }
  0x37   : > { %857 = vrot.lane.b32.xlu1 %v634_v37, %s9372_s11  ;;  %v681_v56 = vrot.slane %v679_v47, 5  ;;  %v662_v57 = vrot.slane %v660_v48, 4  ;;  %v665_v58 = vrot.slane %v663_v49, 5  ;;  %v693_v59 = vshll.u32 %v423_v45, 16  ;;  %v433_v48 = vld [vmem:[%s9440_s10 + $0xa4] sm:$0x1] }
  0x38   : > { %855 = vrot.lane.b32.xlu0 %v624_v50, %s9372_s11  ;;  %v658_v60 = vsel %vm9451_vm2, %v653_v51, %v657_v38  ;;  %v643_v61 = vrot.slane %v642_v52, 4  ;;  %v676_v62 = vor.u32 %v675_v53, %v671_v46  ;;  %v697_v63 = vshrl.u32 %v423_v45, 16  ;;  %v431_v49 = vld [vmem:[%s9440_s10 + $0x9c] sm:$0xf] }
  0x39   : > { %v666_v1 = vor.u32 %v665_v58, %v662_v57  ;;  %v695_v2 = vrot.slane %v693_v59, 5  ;;  %v703_v3 = vshll.u32 %v424_v54, 16  ;;  %v684_v4 = vshrl.u32 %v422_v55, 16  ;;  %v435_v58 = vld [vmem:[%s9440_s10 + $0xac] sm:$0xf] }
  0x3a   : > { %v648_v6 = vsel %vm9451_vm2, %v643_v61, %v647_v28  ;;  %v677_v7 = vrot.slane %v676_v62, 4  ;;  %v699_v8 = vrot.slane %v697_v63, 4  ;;  %v687_v9 = vshll.u32 %v422_v55, 16 }
  0x3b   : > { %861 = vrot.lane.b32.xlu1 %v658_v60, %s9372_s11  ;;  %v667_v11 = vrot.slane %v666_v1, 4  ;;  %v705_v12 = vrot.slane %v703_v3, 5  ;;  %v686_v13 = vrot.slane %v684_v4, 4  ;;  %v717_v14 = vshll.u32 %v426_v0, 16  ;;  %v436_v3 = vld [vmem:[%s9440_s10 + $0xb0] sm:$0x1] }
  0x3c   : > { %859 = vrot.lane.b32.xlu0 %v648_v6, %s9372_s11  ;;  %v682_v15 = vsel %vm9451_vm2, %v677_v7, %v681_v56  ;;  %v700_v16 = vor.u32 %v699_v8, %v695_v2  ;;  %v689_v17 = vrot.slane %v687_v9, 5  ;;  %v721_v18 = vshrl.u32 %v426_v0, 16  ;;  %v434_v4 = vld [vmem:[%s9440_s10 + $0xa8] sm:$0xf] }
  0x3d   : > { %v672_v20 = vsel %vm9451_vm2, %v667_v11, %v671_v46  ;;  %v719_v21 = vrot.slane %v717_v14, 5  ;;  %v727_v22 = vshll.u32 %v427_v5, 16  ;;  %v708_v23 = vshrl.u32 %v425_v10, 16 }
  0x3e   : > { %v701_v25 = vrot.slane %v700_v16, 4  ;;  %v690_v26 = vor.u32 %v689_v17, %v686_v13  ;;  %v723_v28 = vrot.slane %v721_v18, 4  ;;  %v711_v29 = vshll.u32 %v425_v10, 16  ;;  %v438_v13 = vld [vmem:[%s9440_s10 + $0xb8] sm:$0xf] }
  0x3f   : > { %865 = vrot.lane.b32.xlu1 %v682_v15, %s9372_s11  ;;  %v729_v31 = vrot.slane %v727_v22, 5  ;;  %v710_v32 = vrot.slane %v708_v23, 4  ;;  %v741_v33 = vshll.u32 %v429_v19, 16  ;;  %v745_v34 = vshrl.u32 %v429_v19, 16  ;;  %v439_v22 = vld [vmem:[%s9440_s10 + $0xbc] sm:$0x1] }
  0x40   : > { %863 = vrot.lane.b32.xlu0 %v672_v20, %s9372_s11  ;;  %v706_v35 = vsel %vm9451_vm2, %v701_v25, %v705_v12  ;;  %v691_v36 = vrot.slane %v690_v26, 4  ;;  %v724_v37 = vor.u32 %v723_v28, %v719_v21  ;;  %v713_v38 = vrot.slane %v711_v29, 5  ;;  %v437_v23 = vld [vmem:[%s9440_s10 + $0xb4] sm:$0xf] }
  0x41   : > { %v743_v40 = vrot.slane %v741_v33, 5  ;;  %v747_v41 = vrot.slane %v745_v34, 4  ;;  %v751_v42 = vshll.u32 %v430_v24, 16  ;;  %v732_v43 = vshrl.u32 %v428_v30, 16 }
  0x42   : > { %v696_v44 = vsel %vm9451_vm2, %v691_v36, %v695_v2  ;;  %v725_v45 = vrot.slane %v724_v37, 4  ;;  %v714_v46 = vor.u32 %v713_v38, %v710_v32  ;;  %v735_v47 = vshll.u32 %v428_v30, 16  ;;  %v957_v37 = vld [vmem:[%s9440_s10 + $0x4] sm:$0xf] }
  0x43   : > { %869 = vrot.lane.b32.xlu1 %v706_v35, %s9372_s11  ;;  %v748_v50 = vor.u32 %v747_v41, %v743_v40  ;;  %v753_v51 = vrot.slane %v751_v42, 5  ;;  %v734_v52 = vrot.slane %v732_v43, 4  ;;  %v765_v53 = vshll.u32 %v432_v39, 16 }
  0x44   : > { %867 = vrot.lane.b32.xlu0 %v696_v44, %s9372_s11  ;;  %v730_v54 = vsel %vm9451_vm2, %v725_v45, %v729_v31  ;;  %v715_v55 = vrot.slane %v714_v46, 4  ;;  %v737_v56 = vrot.slane %v735_v47, 5  ;;  %v769_v57 = vshrl.u32 %v432_v39, 16 }
  0x45   : > { %v749_v59 = vrot.slane %v748_v50, 4  ;;  %v767_v60 = vrot.slane %v765_v53, 5  ;;  %v775_v61 = vshll.u32 %v433_v48, 16  ;;  %v756_v62 = vshrl.u32 %v431_v49, 16  ;;  %v958_v48 = vld [vmem:[%s9440_s10 + $0x8] sm:$0x1] }
  0x46   : > { %v720_v63 = vsel %vm9451_vm2, %v715_v55, %v719_v21  ;;  %v738_v0 = vor.u32 %v737_v56, %v734_v52  ;;  %v771_v1 = vrot.slane %v769_v57, 4  ;;  %v759_v2 = vshll.u32 %v431_v49, 16  ;;  %v329_v56 = vld [vmem:[%s9440_s10 + $0xc] sm:$0xf] }
  0x47   : > { %873 = vrot.lane.b32.xlu1 %v730_v54, %s9372_s11  ;;  %v754_v5 = vsel %vm9451_vm2, %v749_v59, %v753_v51  ;;  %v777_v6 = vrot.slane %v775_v61, 5  ;;  %v758_v7 = vrot.slane %v756_v62, 4  ;;  %v789_v8 = vshll.u32 %v435_v58, 16  ;;  %v960_v51 = vld [vmem:[%s9440_s10 + $0x10] sm:$0xf] }
  0x48   : > { %871 = vrot.lane.b32.xlu0 %v720_v63, %s9372_s11  ;;  %v739_v9 = vrot.slane %v738_v0, 4  ;;  %v772_v10 = vor.u32 %v771_v1, %v767_v60  ;;  %v761_v11 = vrot.slane %v759_v2, 5  ;;  %v793_v12 = vshrl.u32 %v435_v58, 16  ;;  %v956_v54 = vld [vmem:[%s9440_s10] sm:$0xe] }
  0x49   : > { %v791_v14 = vrot.slane %v789_v8, 5  ;;  %v799_v15 = vshll.u32 %v436_v3, 16  ;;  %v780_v16 = vshrl.u32 %v434_v4, 16  ;;  %v783_v17 = vshll.u32 %v434_v4, 16  ;;  %362 = vst.msk [vmem:[#allocation2 + $0x8] sm:$0xf] %vm359_vm3, %v329_v56 }
  0x4a   : > { %v744_v18 = vsel %vm9451_vm2, %v739_v9, %v743_v40  ;;  %v773_v19 = vrot.slane %v772_v10, 4  ;;  %v762_v20 = vor.u32 %v761_v11, %v758_v7  ;;  %v795_v21 = vrot.slane %v793_v12, 4  ;;  %v327_v61 = vld [vmem:[%s9440_s10] sm:$0xf]  ;;  %v961_v0 = vld [vmem:[%s9440_s10 + $0x14] sm:$0x1] }
  0x4b   : > { %877 = vrot.lane.b32.xlu1 %v754_v5, %s9372_s11  ;;  %v801_v24 = vrot.slane %v799_v15, 5  ;;  %v782_v25 = vrot.slane %v780_v16, 4  ;;  %v785_v26 = vrot.slane %v783_v17, 5  ;;  %v813_v28 = vshll.u32 %v438_v13, 16  ;;  %v963_v1 = vld [vmem:[%s9440_s10 + $0x1c] sm:$0xf] }
  0x4c   : > { %875 = vrot.lane.b32.xlu0 %v744_v18, %s9372_s11  ;;  %v778_v29 = vsel %vm9451_vm2, %v773_v19, %v777_v6  ;;  %v763_v30 = vrot.slane %v762_v20, 4  ;;  %v796_v31 = vor.u32 %v795_v21, %v791_v14  ;;  %v817_v32 = vshrl.u32 %v438_v13, 16  ;;  %360 = vst.msk [vmem:[#allocation2] sm:$0xf] %vm359_vm3, %v327_v61  ;;  %v959_v3 = vld [vmem:[%s9440_s10 + $0xc] sm:$0xe] }
  0x4d   : > { %v786_v33 = vor.u32 %v785_v26, %v782_v25  ;;  %v815_v34 = vrot.slane %v813_v28, 5  ;;  %v823_v35 = vshll.u32 %v439_v22, 16  ;;  %v804_v36 = vshrl.u32 %v437_v23, 16  ;;  %v330_v4 = vld [vmem:[%s9440_s10 + $0x10] sm:$0xf] }
  0x4e   : > { %v768_v38 = vsel %vm9451_vm2, %v763_v30, %v767_v60  ;;  %v797_v39 = vrot.slane %v796_v31, 4  ;;  %v819_v40 = vrot.slane %v817_v32, 4  ;;  %v807_v41 = vshll.u32 %v437_v23, 16  ;;  %v328_v5 = vld [vmem:[%s9440_s10 + $0x4] sm:$0xf] }
  0x4f   : > { %881 = vrot.lane.b32.xlu1 %v778_v29, %s9372_s11  ;;  %v787_v42 = vrot.slane %v786_v33, 4  ;;  %v825_v43 = vrot.slane %v823_v35, 5  ;;  %v806_v44 = vrot.slane %v804_v36, 4  ;;  %v1057_v49 = vrot.slane %v957_v37, 5  ;;  %363 = vst.msk [vmem:[#allocation2 + $0xc] sm:$0xf] %vm359_vm3, %v330_v4 }
  0x50   : > { %879 = vrot.lane.b32.xlu0 %v768_v38, %s9372_s11  ;;  %v802_v45 = vsel %vm9451_vm2, %v797_v39, %v801_v24  ;;  %v820_v46 = vor.u32 %v819_v40, %v815_v34  ;;  %v809_v47 = vrot.slane %v807_v41, 5  ;;  %v1060_v55 = vrot.slane %v958_v48, 5  ;;  %361 = vst.msk [vmem:[#allocation2 + $0x4] sm:$0xf] %vm359_vm3, %v328_v5  ;;  %v964_v12 = vld [vmem:[%s9440_s10 + $0x20] sm:$0x1] }
  0x51   : > { %v792_v50 = vsel %vm9451_vm2, %v787_v42, %v791_v14  ;;  %v1059_v59 = vrot.slane %v1057_v49, 4  ;;  %v1064_v60 = vrot.slane %v960_v51, 5  ;;  %v13276_v62 = vmov 0  ;;  %v966_v13 = vld [vmem:[%s9440_s10 + $0x28] sm:$0xf] }
  0x52   : > { %v821_v52 = vrot.slane %v820_v46, 4  ;;  %v810_v53 = vor.u32 %v809_v47, %v806_v44  ;;  %v13277_v62 = vsel %vm9595_vm6, 4294967295, %v13276_v62  ;;  %v8699_v63 = vrot.slane %v956_v54, 9  ;;  %v962_v14 = vld [vmem:[%s9440_s10 + $0x18] sm:$0xe] }
  0x53   : > { %885 = vrot.lane.b32.xlu1 %v802_v45, %s9372_s11  ;;  %13278 = vst [vmem:[#allocation6_spill] sm:$0xff] %v13277_v62  ;;  %v1061_v6 = vsel %vm9595_vm6, %v1059_v59, %v1060_v55  ;;  %v1066_v7 = vrot.slane %v1064_v60, 4  ;;  %v1067_v8 = vrot.slane %v961_v0, 5  ;;  %v1071_v9 = vrot.slane %v963_v1, 5  ;;  %v332_v15 = vld [vmem:[%s9440_s10 + $0x1c] sm:$0xf] }
  0x54   : > { %883 = vrot.lane.b32.xlu0 %v792_v50, %s9372_s11  ;;  %v826_v57 = vsel %vm9451_vm2, %v821_v52, %v825_v43  ;;  %v811_v58 = vrot.slane %v810_v53, 4  ;;  %v1058_v10 = vsel %vm9595_vm6, %v8699_v63, %v1057_v49  ;;  %v8700_v11 = vrot.slane %v959_v3, 9  ;;  %365 = vst.msk [vmem:[#allocation2 + $0x14] sm:$0xf] %vm359_vm3, %v332_v15  ;;  %v331_v16 = vld [vmem:[%s9440_s10 + $0x18] sm:$0xf] }
  0x55   : > { %v1068_v17 = vsel %vm9595_vm6, %v1066_v7, %v1067_v8  ;;  %v1073_v18 = vrot.slane %v1071_v9, 4  ;;  %v1074_v19 = vrot.slane %v964_v12, 5  ;;  %v1078_v20 = vrot.slane %v966_v13, 5  ;;  %364 = vst.msk [vmem:[#allocation2 + $0x10] sm:$0xf] %vm359_vm3, %v331_v16 }
  0x56   : > { %v816_v2 = vsel %vm9451_vm2, %v811_v58, %v815_v34  ;;  %v1065_v21 = vsel %vm9595_vm6, %v8700_v11, %v1064_v60  ;;  %v8701_v22 = vrot.slane %v962_v14, 9  ;;  %v967_v23 = vld [vmem:[%s9440_s10 + $0x2c] sm:$0x1]  ;;  %v969_v24 = vld [vmem:[%s9440_s10 + $0x34] sm:$0xf] }
  0x57   : > { %889 = vrot.lane.b32.xlu1 %v826_v57, %s9372_s11  ;;  %v965_v25 = vld [vmem:[%s9440_s10 + $0x24] sm:$0xe]  ;;  %v334_v26 = vld [vmem:[%s9440_s10 + $0x28] sm:$0xf]  ;;  %v1075_v29 = vsel %vm9595_vm6, %v1073_v18, %v1074_v19  ;;  %v1080_v30 = vrot.slane %v1078_v20, 4  ;;  %v1081_v31 = vrot.slane %v967_v23, 5 }
  0x58   : > { %887 = vrot.lane.b32.xlu0 %v816_v2, %s9372_s11  ;;  %367 = vst.msk [vmem:[#allocation2 + $0x1c] sm:$0xf] %vm359_vm3, %v334_v26  ;;  %v333_v28 = vld [vmem:[%s9440_s10 + $0x24] sm:$0xf]  ;;  %v970_v32 = vld [vmem:[%s9440_s10 + $0x38] sm:$0x1]  ;;  %v1072_v34 = vsel %vm9595_vm6, %v8701_v22, %v1071_v9 }
  0x59   : > { %v1085_v33 = vrot.slane %v969_v24, 5  ;;  %366 = vst.msk [vmem:[#allocation2 + $0x18] sm:$0xf] %vm359_vm3, %v333_v28  ;;  %v8702_v35 = vrot.slane %v965_v25, 9  ;;  %v972_v36 = vld [vmem:[%s9440_s10 + $0x40] sm:$0xf]  ;;  %v1082_v41 = vsel %vm9595_vm6, %v1080_v30, %v1081_v31 }
  0x5a   : > { %v336_v37 = vld [vmem:[%s9440_s10 + $0x34] sm:$0xf]  ;;  %v968_v38 = vld [vmem:[%s9440_s10 + $0x30] sm:$0xe]  ;;  %v973_v40 = vld [vmem:[%s9440_s10 + $0x44] sm:$0x1] }
  0x5b   : > { %1169 = vrot.lane.b32.xlu1 %v1061_v6, %s9373_s12  ;;  %369 = vst.msk [vmem:[#allocation2 + $0x24] sm:$0xf] %vm359_vm3, %v336_v37  ;;  %v335_v39 = vld [vmem:[%s9440_s10 + $0x30] sm:$0xf]  ;;  %v1087_v42 = vrot.slane %v1085_v33, 4  ;;  %v1088_v43 = vrot.slane %v970_v32, 5  ;;  %v1079_v46 = vsel %vm9595_vm6, %v8702_v35, %v1078_v20 }
  0x5c   : > { %1167 = vrot.lane.b32.xlu0 %v1058_v10, %s9373_s12  ;;  %368 = vst.msk [vmem:[#allocation2 + $0x20] sm:$0xf] %vm359_vm3, %v335_v39  ;;  %v1092_v44 = vrot.slane %v972_v36, 5  ;;  %v338_v45 = vld [vmem:[%s9440_s10 + $0x40] sm:$0xf]  ;;  %v8703_v47 = vrot.slane %v968_v38, 9 }
  0x5d   : > { %v975_v48 = vld [vmem:[%s9440_s10 + $0x4c] sm:$0xf]  ;;  %371 = vst.msk [vmem:[#allocation2 + $0x2c] sm:$0xf] %vm359_vm3, %v338_v45  ;;  %v337_v49 = vld [vmem:[%s9440_s10 + $0x3c] sm:$0xf]  ;;  %v1089_v53 = vsel %vm9595_vm6, %v1087_v42, %v1088_v43 }
  0x5e   : > { %v971_v50 = vld [vmem:[%s9440_s10 + $0x3c] sm:$0xe]  ;;  %370 = vst.msk [vmem:[#allocation2 + $0x28] sm:$0xf] %vm359_vm3, %v337_v49  ;;  %v976_v51 = vld [vmem:[%s9440_s10 + $0x50] sm:$0x1]  ;;  %v1086_v58 = vsel %vm9595_vm6, %v8703_v47, %v1085_v33 }
  0x5f   : > { %1173 = vrot.lane.b32.xlu1 %v1068_v17, %s9373_s12  ;;  %v340_v52 = vld [vmem:[%s9440_s10 + $0x4c] sm:$0xf]  ;;  %v1094_v54 = vrot.slane %v1092_v44, 4  ;;  %v1095_v55 = vrot.slane %v973_v40, 5  ;;  %v1099_v56 = vrot.slane %v975_v48, 5  ;;  %v8704_v59 = vrot.slane %v971_v50, 9 }
  0x60   : > { %1171 = vrot.lane.b32.xlu0 %v1065_v21, %s9373_s12  ;;  %373 = vst.msk [vmem:[#allocation2 + $0x34] sm:$0xf] %vm359_vm3, %v340_v52  ;;  %v339_v57 = vld [vmem:[%s9440_s10 + $0x48] sm:$0xf]  ;;  %v9672_v60 = vld [vmem:[%s9440_s10 + $0x58] sm:$0xf] }
  0x61   : > { %372 = vst.msk [vmem:[#allocation2 + $0x30] sm:$0xf] %vm359_vm3, %v339_v57  ;;  %v342_v61 = vld [vmem:[%s9440_s10 + $0x58] sm:$0xf]  ;;  %v974_v63 = vld [vmem:[%s9440_s10 + $0x48] sm:$0xe]  ;;  %v1096_v5 = vsel %vm9595_vm6, %v1094_v54, %v1095_v55  ;;  %v1093_v10 = vsel %vm9595_vm6, %v8704_v59, %v1092_v44 }
  0x62   : > { %v979_v0 = vld [vmem:[%s9440_s10 + $0x5c] sm:$0x1]  ;;  %375 = vst.msk [vmem:[#allocation2 + $0x3c] sm:$0xf] %vm359_vm3, %v342_v61  ;;  %v341_v1 = vld [vmem:[%s9440_s10 + $0x54] sm:$0xf] }
  0x63   : > { %1177 = vrot.lane.b32.xlu1 %v1075_v29, %s9373_s12  ;;  %v1102_v2 = vrot.slane %v976_v51, 5  ;;  %374 = vst.msk [vmem:[#allocation2 + $0x38] sm:$0xf] %vm359_vm3, %v341_v1  ;;  %v344_v3 = vld [vmem:[%s9440_s10 + $0x64] sm:$0xf]  ;;  %v1101_v6 = vrot.slane %v1099_v56, 4 }
  0x64   : > { %1175 = vrot.lane.b32.xlu0 %v1072_v34, %s9373_s12  ;;  %v343_v4 = vld [vmem:[%s9440_s10 + $0x60] sm:$0xf]  ;;  %v1106_v7 = vrot.slane %v9672_v60, 5  ;;  %377 = vst.msk [vmem:[#allocation2 + $0x44] sm:$0xf] %vm359_vm3, %v344_v3  ;;  %v8705_v11 = vrot.slane %v974_v63, 9 }
  0x65   : > { %376 = vst.msk [vmem:[#allocation2 + $0x40] sm:$0xf] %vm359_vm3, %v343_v4  ;;  %v346_v8 = vld [vmem:[%s9440_s10 + $0x70] sm:$0xf]  ;;  %v345_v9 = vld [vmem:[%s9440_s10 + $0x6c] sm:$0xf]  ;;  %v1103_v20 = vsel %vm9595_vm6, %v1101_v6, %v1102_v2 }
  0x66   : > { %v981_v12 = vld [vmem:[%s9440_s10 + $0x64] sm:$0xf]  ;;  %379 = vst.msk [vmem:[#allocation2 + $0x4c] sm:$0xf] %vm359_vm3, %v346_v8  ;;  %378 = vst.msk [vmem:[#allocation2 + $0x48] sm:$0xf] %vm359_vm3, %v345_v9  ;;  %v1100_v25 = vsel %vm9595_vm6, %v8705_v11, %v1099_v56 }
  0x67   : > { %1181 = vrot.lane.b32.xlu1 %v1082_v41, %s9373_s12  ;;  %v348_v13 = vld [vmem:[%s9440_s10 + $0x7c] sm:$0xf]  ;;  %v977_v14 = vld [vmem:[%s9440_s10 + $0x54] sm:$0xe]  ;;  %v982_v15 = vld [vmem:[%s9440_s10 + $0x68] sm:$0x1] }
  0x68   : > { %1179 = vrot.lane.b32.xlu0 %v1079_v46, %s9373_s12  ;;  %381 = vst.msk [vmem:[#allocation2 + $0x54] sm:$0xf] %vm359_vm3, %v348_v13  ;;  %v347_v16 = vld [vmem:[%s9440_s10 + $0x78] sm:$0xf]  ;;  %v1109_v17 = vrot.slane %v979_v0, 5  ;;  %v1108_v21 = vrot.slane %v1106_v7, 4 }
  0x69   : > { %380 = vst.msk [vmem:[#allocation2 + $0x50] sm:$0xf] %vm359_vm3, %v347_v16  ;;  %v350_v18 = vld [vmem:[%s9440_s10 + $0x88] sm:$0xf]  ;;  %v349_v19 = vld [vmem:[%s9440_s10 + $0x84] sm:$0xf] }
  0x6a   : > { %v1113_v22 = vrot.slane %v981_v12, 5  ;;  %383 = vst.msk [vmem:[#allocation2 + $0x5c] sm:$0xf] %vm359_vm3, %v350_v18  ;;  %382 = vst.msk [vmem:[#allocation2 + $0x58] sm:$0xf] %vm359_vm3, %v349_v19  ;;  %v8706_v26 = vrot.slane %v977_v14, 9  ;;  %v1110_v35 = vsel %vm9595_vm6, %v1108_v21, %v1109_v17 }
  0x6b   : > { %1185 = vrot.lane.b32.xlu1 %v1089_v53, %s9373_s12  ;;  %v352_v23 = vld [vmem:[%s9440_s10 + $0x94] sm:$0xf]  ;;  %v351_v24 = vld [vmem:[%s9440_s10 + $0x90] sm:$0xf]  ;;  %v354_v29 = vld [vmem:[%s9440_s10 + $0xa0] sm:$0xf] }
  0x6c   : > { %1183 = vrot.lane.b32.xlu0 %v1086_v58, %s9373_s12  ;;  %v984_v28 = vld [vmem:[%s9440_s10 + $0x70] sm:$0xf]  ;;  %385 = vst.msk [vmem:[#allocation2 + $0x64] sm:$0xf] %vm359_vm3, %v352_v23  ;;  %384 = vst.msk [vmem:[#allocation2 + $0x60] sm:$0xf] %vm359_vm3, %v351_v24  ;;  %v1107_v40 = vsel %vm9595_vm6, %v8706_v26, %v1106_v7 }
  0x6d   : > { %v980_v30 = vld [vmem:[%s9440_s10 + $0x60] sm:$0xe]  ;;  %387 = vst.msk [vmem:[#allocation2 + $0x6c] sm:$0xf] %vm359_vm3, %v354_v29  ;;  %v353_v31 = vld [vmem:[%s9440_s10 + $0x9c] sm:$0xf] }
  0x6e   : > { %v1116_v32 = vrot.slane %v982_v15, 5  ;;  %386 = vst.msk [vmem:[#allocation2 + $0x68] sm:$0xf] %vm359_vm3, %v353_v31  ;;  %v356_v33 = vld [vmem:[%s9440_s10 + $0xac] sm:$0xf]  ;;  %v1115_v36 = vrot.slane %v1113_v22, 4 }
  0x6f   : > { %1189 = vrot.lane.b32.xlu1 %v1096_v5, %s9373_s12  ;;  %v355_v34 = vld [vmem:[%s9440_s10 + $0xa8] sm:$0xf]  ;;  %v1120_v37 = vrot.slane %v984_v28, 5  ;;  %389 = vst.msk [vmem:[#allocation2 + $0x74] sm:$0xf] %vm359_vm3, %v356_v33  ;;  %v8707_v41 = vrot.slane %v980_v30, 9 }
  0x70   : > { %1187 = vrot.lane.b32.xlu0 %v1093_v10, %s9373_s12  ;;  %388 = vst.msk [vmem:[#allocation2 + $0x70] sm:$0xf] %vm359_vm3, %v355_v34  ;;  %v358_v38 = vld [vmem:[%s9440_s10 + $0xb8] sm:$0xf]  ;;  %v357_v39 = vld [vmem:[%s9440_s10 + $0xb4] sm:$0xf]  ;;  %v1117_v45 = vsel %vm9595_vm6, %v1115_v36, %v1116_v32 }
  0x71   : > { %v985_v42 = vld [vmem:[%s9440_s10 + $0x74] sm:$0x1]  ;;  %v987_v43 = vld [vmem:[%s9440_s10 + $0x7c] sm:$0xf]  ;;  %391 = vst.msk [vmem:[#allocation2 + $0x7c] sm:$0xf] %vm359_vm3, %v358_v38  ;;  %v1114_v49 = vsel %vm9595_vm6, %v8707_v41, %v1113_v22 }
  0x72   : > { %390 = vst.msk [vmem:[#allocation2 + $0x78] sm:$0xf] %vm359_vm3, %v357_v39  ;;  %v983_v44 = vld [vmem:[%s9440_s10 + $0x6c] sm:$0xe]  ;;  %v1122_v46 = vrot.slane %v1120_v37, 4  ;;  %v1123_v47 = vrot.slane %v985_v42, 5 }
  0x73   : > { %1193 = vrot.lane.b32.xlu1 %v1103_v20, %s9373_s12  ;;  %v1127_v48 = vrot.slane %v987_v43, 5  ;;  %v8708_v50 = vrot.slane %v983_v44, 9  ;;  %v988_v51 = vld [vmem:[%s9440_s10 + $0x80] sm:$0x1]  ;;  %v990_v52 = vld [vmem:[%s9440_s10 + $0x88] sm:$0xf] }
  0x74   : > { %1191 = vrot.lane.b32.xlu0 %v1100_v25, %s9373_s12  ;;  %v986_v53 = vld [vmem:[%s9440_s10 + $0x78] sm:$0xe]  ;;  %v1124_v54 = vsel %vm9595_vm6, %v1122_v46, %v1123_v47  ;;  %v1130_v56 = vrot.slane %v988_v51, 5  ;;  %v1134_v57 = vrot.slane %v990_v52, 5  ;;  %v991_v60 = vld [vmem:[%s9440_s10 + $0x8c] sm:$0x1] }
  0x75   : > { %v1129_v55 = vrot.slane %v1127_v48, 4  ;;  %v1121_v58 = vsel %vm9595_vm6, %v8708_v50, %v1120_v37  ;;  %v8709_v59 = vrot.slane %v986_v53, 9  ;;  %v993_v61 = vld [vmem:[%s9440_s10 + $0x94] sm:$0xf]  ;;  %v989_v63 = vld [vmem:[%s9440_s10 + $0x84] sm:$0xe] }
  0x76   : > { %v1136_v1 = vrot.slane %v1134_v57, 4  ;;  %v1137_v2 = vrot.slane %v991_v60, 5  ;;  %v1141_v3 = vrot.slane %v993_v61, 5  ;;  %v8710_v5 = vrot.slane %v989_v63, 9  ;;  %v994_v6 = vld [vmem:[%s9440_s10 + $0x98] sm:$0x1] }
  0x77   : > { %1197 = vrot.lane.b32.xlu1 %v1110_v35, %s9373_s12  ;;  %v1131_v0 = vsel %vm9595_vm6, %v1129_v55, %v1130_v56  ;;  %v1128_v4 = vsel %vm9595_vm6, %v8709_v59, %v1127_v48  ;;  %v996_v7 = vld [vmem:[%s9440_s10 + $0xa0] sm:$0xf]  ;;  %v992_v8 = vld [vmem:[%s9440_s10 + $0x90] sm:$0xe]  ;;  %v1144_v11 = vrot.slane %v994_v6, 5 }
  0x78   : > { %1195 = vrot.lane.b32.xlu0 %v1107_v40, %s9373_s12  ;;  %v1138_v9 = vsel %vm9595_vm6, %v1136_v1, %v1137_v2  ;;  %v1143_v10 = vrot.slane %v1141_v3, 4  ;;  %v1148_v12 = vrot.slane %v996_v7, 5  ;;  %v1135_v13 = vsel %vm9595_vm6, %v8710_v5, %v1134_v57  ;;  %v997_v15 = vld [vmem:[%s9440_s10 + $0xa4] sm:$0x1]  ;;  %v999_v16 = vld [vmem:[%s9440_s10 + $0xac] sm:$0xf] }
  0x79   : > { %v8711_v14 = vrot.slane %v992_v8, 9  ;;  %v995_v17 = vld [vmem:[%s9440_s10 + $0x9c] sm:$0xe]  ;;  %v1151_v20 = vrot.slane %v997_v15, 5  ;;  %v1155_v21 = vrot.slane %v999_v16, 5 }
  0x7a   : > { %v1145_v18 = vsel %vm9595_vm6, %v1143_v10, %v1144_v11  ;;  %v1150_v19 = vrot.slane %v1148_v12, 4  ;;  %v8712_v23 = vrot.slane %v995_v17, 9  ;;  %v1000_v24 = vld [vmem:[%s9440_s10 + $0xb0] sm:$0x1]  ;;  %v1002_v25 = vld [vmem:[%s9440_s10 + $0xb8] sm:$0xf] }
  0x7b   : > { %1201 = vrot.lane.b32.xlu1 %v1117_v45, %s9373_s12  ;;  %v1142_v22 = vsel %vm9595_vm6, %v8711_v14, %v1141_v3  ;;  %v998_v26 = vld [vmem:[%s9440_s10 + $0xa8] sm:$0xe]  ;;  %v1157_v29 = vrot.slane %v1155_v21, 4  ;;  %v1158_v30 = vrot.slane %v1000_v24, 5  ;;  %v1162_v31 = vrot.slane %v1002_v25, 5 }
  0x7c   : > { %1199 = vrot.lane.b32.xlu0 %v1114_v49, %s9373_s12  ;;  %v1152_v28 = vsel %vm9595_vm6, %v1150_v19, %v1151_v20  ;;  %v1149_v33 = vsel %vm9595_vm6, %v8712_v23, %v1148_v12  ;;  %v8713_v34 = vrot.slane %v998_v26, 9  ;;  %v1003_v35 = vld [vmem:[%s9440_s10 + $0xbc] sm:$0x1]  ;;  %v1001_v37 = vld [vmem:[%s9440_s10 + $0xb4] sm:$0xe] }
  0x7d   : > { %v1159_v38 = vsel %vm9595_vm6, %v1157_v29, %v1158_v30  ;;  %v1164_v39 = vrot.slane %v1162_v31, 4  ;;  %v1165_v40 = vrot.slane %v1003_v35, 5  ;;  %v8714_v43 = vrot.slane %v1001_v37, 9  ;;  %v8716_v49 = vld [vmem:[%s9440_s10 + $0x10] sm:$0xf] }
  0x7e   : > { %v1156_v42 = vsel %vm9595_vm6, %v8713_v34, %v1155_v21  ;;  %v8715_v51 = vld [vmem:[%s9440_s10 + $0xc] sm:$0xf]  ;;  %v8718_v53 = vld [vmem:[%s9440_s10 + $0x1c] sm:$0xf]  ;;  %v8717_v55 = vld [vmem:[%s9440_s10 + $0x18] sm:$0xf] }
  0x7f   : > { %1205 = vrot.lane.b32.xlu1 %v1124_v54, %s9373_s12  ;;  %v1166_v45 = vsel %vm9595_vm6, %v1164_v39, %v1165_v40  ;;  %v1163_v47 = vsel %vm9595_vm6, %v8714_v43, %v1162_v31  ;;  %v8720_v57 = vld [vmem:[%s9440_s10 + $0x28] sm:$0xf]  ;;  %v8719_v59 = vld [vmem:[%s9440_s10 + $0x24] sm:$0xf]  ;;  %v8722_v61 = vld [vmem:[%s9440_s10 + $0x34] sm:$0xf] }
  0x80   : > { %1203 = vrot.lane.b32.xlu0 %v1121_v58, %s9373_s12  ;;  %v8724_v2 = vld [vmem:[%s9440_s10 + $0x40] sm:$0xf]  ;;  %v8726_v6 = vld [vmem:[%s9440_s10 + $0x4c] sm:$0xf]  ;;  %v8725_v8 = vld [vmem:[%s9440_s10 + $0x48] sm:$0xf] }
  0x81   : > { %v8728_v10 = vld [vmem:[%s9440_s10 + $0x58] sm:$0xf]  ;;  %v8727_v12 = vld [vmem:[%s9440_s10 + $0x54] sm:$0xf]  ;;  %v8730_v14 = vld [vmem:[%s9440_s10 + $0x64] sm:$0xf] }
  0x82   : > { %v8729_v16 = vld [vmem:[%s9440_s10 + $0x60] sm:$0xf]  ;;  %v8731_v20 = vld [vmem:[%s9440_s10 + $0x6c] sm:$0xf]  ;;  %v8733_v24 = vld [vmem:[%s9440_s10 + $0x78] sm:$0xf] }
  0x83   : > { %1209 = vrot.lane.b32.xlu1 %v1131_v0, %s9373_s12  ;;  %v8721_v0 = vld [vmem:[%s9440_s10 + $0x30] sm:$0xf]  ;;  %v8736_v26 = vld [vmem:[%s9440_s10 + $0x88] sm:$0xf]  ;;  %v8735_v29 = vld [vmem:[%s9440_s10 + $0x84] sm:$0xf] }
  0x84   : > { %1207 = vrot.lane.b32.xlu0 %v1128_v4, %s9373_s12  ;;  %v8723_v4 = vld [vmem:[%s9440_s10 + $0x3c] sm:$0xf]  ;;  %v8748_v30 = vld [vmem:[%s9440_s10 + $0x10] sm:$0xf]  ;;  %v8740_v43 = vld [vmem:[%s9440_s10 + $0xa0] sm:$0xf] }
  0x85   : > { %v1548_v34 = vshll.u32 %v8748_v30, 16  ;;  %v1552_v35 = vshrl.u32 %v8748_v30, 16  ;;  %v8737_v37 = vld [vmem:[%s9440_s10 + $0x90] sm:$0xf] }
  0x87   : > { %1213 = vrot.lane.b32.xlu1 %v1138_v9, %s9373_s12 }
  0x88   : > { %1211 = vrot.lane.b32.xlu0 %v1135_v13, %s9373_s12 }
  0x8b   : > { %1217 = vrot.lane.b32.xlu1 %v1145_v18, %s9373_s12  ;;  %v8732_v18 = vld [vmem:[%s9440_s10 + $0x70] sm:$0xf] }
  0x8c   : > { %1215 = vrot.lane.b32.xlu0 %v1142_v22, %s9373_s12  ;;  %v8734_v22 = vld [vmem:[%s9440_s10 + $0x7c] sm:$0xf] }
  0x8d   : > { %v832_v32 = vpop.permute.xlu1 %831 }
  0x8e   : > { %926 = vst.msk [vmem:[#allocation2 + $0x8] sm:$0xf] %vm923_vm7, %v832_v32  ;;  %v828_v36 = vpop.permute.xlu0 %827  ;;  %v8747_v32 = vld [vmem:[%s9440_s10 + $0xc] sm:$0xf] }
  0x8f   : > { %924 = vst.msk [vmem:[#allocation2] sm:$0xf] %vm923_vm7, %v828_v36  ;;  %1221 = vrot.lane.b32.xlu1 %v1152_v28, %s9373_s12  ;;  %v1542_v39 = vshll.u32 %v8747_v32, 16 }
  0x90   : > { %1219 = vrot.lane.b32.xlu0 %v1149_v33, %s9373_s12  ;;  %v8738_v33 = vld [vmem:[%s9440_s10 + $0x94] sm:$0xf] }
  0x91   : > { %v834_v41 = vpop.permute.xlu1 %833 }
  0x92   : > { %927 = vst.msk [vmem:[#allocation2 + $0xc] sm:$0xf] %vm923_vm7, %v834_v41  ;;  %v830_v44 = vpop.permute.xlu0 %829  ;;  %v8751_v41 = vld [vmem:[%s9440_s10 + $0x1c] sm:$0xf] }
  0x93   : > { %925 = vst.msk [vmem:[#allocation2 + $0x4] sm:$0xf] %vm923_vm7, %v830_v44  ;;  %1225 = vrot.lane.b32.xlu1 %v1159_v38, %s9373_s12  ;;  %v1539_v38 = vshrl.u32 %v8747_v32, 16  ;;  %v8739_v44 = vld [vmem:[%s9440_s10 + $0x9c] sm:$0xf] }
  0x94   : > { %1223 = vrot.lane.b32.xlu0 %v1156_v42, %s9373_s12  ;;  %v8750_v42 = vld [vmem:[%s9440_s10 + $0x18] sm:$0xf]  ;;  %v8746_v32 = vld [vmem:[%s9440_s10 + $0xc4] sm:$0xf] }
  0x95   : > { %v838_v46 = vpop.permute.xlu1 %837 }
  0x96   : > { %929 = vst.msk [vmem:[#allocation2 + $0x14] sm:$0xf] %vm923_vm7, %v838_v46  ;;  %v836_v48 = vpop.permute.xlu0 %835  ;;  %v1554_v46 = vrot.slane %v1552_v35, 4 }
  0x97   : > { %928 = vst.msk [vmem:[#allocation2 + $0x10] sm:$0xf] %vm923_vm7, %v836_v48  ;;  %1229 = vrot.lane.b32.xlu1 %v1166_v45, %s9373_s12  ;;  %v9891_v45 = vrot.slane %v1548_v34, 5  ;;  %v8749_v48 = vld [vmem:[%s9440_s10 + $0x14] sm:$0x1] }
  0x98   : > { %1227 = vrot.lane.b32.xlu0 %v1163_v47, %s9373_s12 }
  0x99   : > { %v842_v50 = vpop.permute.xlu1 %841 }
  0x9a   : > { %931 = vst.msk [vmem:[#allocation2 + $0x1c] sm:$0xf] %vm923_vm7, %v842_v50  ;;  %v840_v52 = vpop.permute.xlu0 %839  ;;  %v1544_v50 = vrot.slane %v1542_v39, 5  ;;  %v8758_v39 = vld [vmem:[%s9440_s10 + $0x38] sm:$0x1] }
  0x9b   : > { %930 = vst.msk [vmem:[#allocation2 + $0x18] sm:$0xf] %vm923_vm7, %v840_v52  ;;  %1363 = vrot.lane.b32.xlu1 %v8716_v49, %s9374_s13  ;;  %v1541_v49 = vrot.slane %v1539_v38, 4  ;;  %v1576_v52 = vshrl.u32 %v8751_v41, 16 }
  0x9c   : > { %1361 = vrot.lane.b32.xlu0 %v8715_v51, %s9374_s13  ;;  %v1572_v51 = vshll.u32 %v8751_v41, 16 }
  0x9d   : > { %v846_v54 = vpop.permute.xlu1 %845 }
  0x9e   : > { %933 = vst.msk [vmem:[#allocation2 + $0x24] sm:$0xf] %vm923_vm7, %v846_v54  ;;  %v844_v56 = vpop.permute.xlu0 %843  ;;  %v1563_v54 = vshrl.u32 %v8750_v42, 16 }
  0x9f   : > { %932 = vst.msk [vmem:[#allocation2 + $0x20] sm:$0xf] %vm923_vm7, %v844_v56  ;;  %1367 = vrot.lane.b32.xlu1 %v8718_v53, %s9374_s13  ;;  %v8754_v56 = vld [vmem:[%s9440_s10 + $0x28] sm:$0xf] }
  0xa0   : > { %1365 = vrot.lane.b32.xlu0 %v8717_v55, %s9374_s13  ;;  %v1566_v55 = vshll.u32 %v8750_v42, 16 }
  0xa1   : > { %v850_v58 = vpop.permute.xlu1 %849 }
  0xa2   : > { %935 = vst.msk [vmem:[#allocation2 + $0x2c] sm:$0xf] %vm923_vm7, %v850_v58  ;;  %v848_v60 = vpop.permute.xlu0 %847  ;;  %v1558_v58 = vshll.u32 %v8749_v48, 16  ;;  %v8763_v48 = vld [vmem:[%s9440_s10 + $0x4c] sm:$0xf] }
  0xa3   : > { %934 = vst.msk [vmem:[#allocation2 + $0x28] sm:$0xf] %vm923_vm7, %v848_v60  ;;  %1371 = vrot.lane.b32.xlu1 %v8720_v57, %s9374_s13  ;;  %v8742_v57 = vld [vmem:[%s9440_s10 + $0xac] sm:$0xf] }
  0xa4   : > { %1369 = vrot.lane.b32.xlu0 %v8719_v59, %s9374_s13  ;;  %v8753_v59 = vld [vmem:[%s9440_s10 + $0x24] sm:$0xf] }
  0xa5   : > { %v854_v63 = vpop.permute.xlu1 %853 }
  0xa6   : > { %937 = vst.msk [vmem:[#allocation2 + $0x34] sm:$0xf] %vm923_vm7, %v854_v63  ;;  %v852_v1 = vpop.permute.xlu0 %851  ;;  %v1555_v63 = vor.u32 %v1554_v46, %v9891_v45 }
  0xa7   : > { %936 = vst.msk [vmem:[#allocation2 + $0x30] sm:$0xf] %vm923_vm7, %v852_v1  ;;  %1375 = vrot.lane.b32.xlu1 %v8722_v61, %s9374_s13  ;;  %v8741_v61 = vld [vmem:[%s9440_s10 + $0xa8] sm:$0xf]  ;;  %v9903_v1 = vrot.slane %v1572_v51, 5 }
  0xa8   : > { %1373 = vrot.lane.b32.xlu0 %v8721_v0, %s9374_s13  ;;  %v1545_v0 = vor.u32 %v1544_v50, %v1541_v49 }
  0xa9   : > { %v858_v3 = vpop.permute.xlu1 %857 }
  0xaa   : > { %939 = vst.msk [vmem:[#allocation2 + $0x3c] sm:$0xf] %vm923_vm7, %v858_v3  ;;  %v856_v5 = vpop.permute.xlu0 %855 }
  0xab   : > { %938 = vst.msk [vmem:[#allocation2 + $0x38] sm:$0xf] %vm923_vm7, %v856_v5  ;;  %1379 = vrot.lane.b32.xlu1 %v8724_v2, %s9374_s13  ;;  %v1578_v2 = vrot.slane %v1576_v52, 4  ;;  %v1565_v5 = vrot.slane %v1563_v54, 4 }
  0xac   : > { %1377 = vrot.lane.b32.xlu0 %v8723_v4, %s9374_s13  ;;  %v8752_v4 = vld [vmem:[%s9440_s10 + $0x20] sm:$0x1] }
  0xad   : > { %v862_v7 = vpop.permute.xlu1 %861 }
  0xae   : > { %941 = vst.msk [vmem:[#allocation2 + $0x44] sm:$0xf] %vm923_vm7, %v862_v7  ;;  %v860_v9 = vpop.permute.xlu0 %859  ;;  %v1596_v7 = vshll.u32 %v8754_v56, 16 }
  0xaf   : > { %940 = vst.msk [vmem:[#allocation2 + $0x40] sm:$0xf] %vm923_vm7, %v860_v9  ;;  %1383 = vrot.lane.b32.xlu1 %v8726_v6, %s9374_s13  ;;  %v1568_v6 = vrot.slane %v1566_v55, 5  ;;  %v8744_v9 = vld [vmem:[%s9440_s10 + $0xb8] sm:$0xf] }
  0xb0   : > { %1381 = vrot.lane.b32.xlu0 %v8725_v8, %s9374_s13  ;;  %v1600_v8 = vshrl.u32 %v8754_v56, 16 }
  0xb1   : > { %v866_v11 = vpop.permute.xlu1 %865 }
  0xb2   : > { %943 = vst.msk [vmem:[#allocation2 + $0x4c] sm:$0xf] %vm923_vm7, %v866_v11  ;;  %v864_v13 = vpop.permute.xlu0 %863  ;;  %v1587_v11 = vshrl.u32 %v8753_v59, 16 }
  0xb3   : > { %942 = vst.msk [vmem:[#allocation2 + $0x48] sm:$0xf] %vm923_vm7, %v864_v13  ;;  %1387 = vrot.lane.b32.xlu1 %v8728_v10, %s9374_s13  ;;  %v8755_v10 = vld [vmem:[%s9440_s10 + $0x2c] sm:$0x1]  ;;  %v8743_v13 = vld [vmem:[%s9440_s10 + $0xb4] sm:$0xf] }
  0xb4   : > { %1385 = vrot.lane.b32.xlu0 %v8727_v12, %s9374_s13  ;;  %v1590_v12 = vshll.u32 %v8753_v59, 16 }
  0xb5   : > { %v870_v15 = vpop.permute.xlu1 %869 }
  0xb6   : > { %945 = vst.msk [vmem:[#allocation2 + $0x54] sm:$0xf] %vm923_vm7, %v870_v15  ;;  %v868_v17 = vpop.permute.xlu0 %867  ;;  %v8757_v15 = vld [vmem:[%s9440_s10 + $0x34] sm:$0xf] }
  0xb7   : > { %944 = vst.msk [vmem:[#allocation2 + $0x50] sm:$0xf] %vm923_vm7, %v868_v17  ;;  %1391 = vrot.lane.b32.xlu1 %v8730_v14, %s9374_s13  ;;  %v9913_v14 = vrot.slane %v1558_v58, 5  ;;  %v1556_v17 = vrot.slane %v1555_v63, 4  ;;  %v1620_v30 = vshll.u32 %v8757_v15, 16  ;;  %v1672_v63 = vshrl.u32 %v8763_v48, 16 }
  0xb8   : > { %1389 = vrot.lane.b32.xlu0 %v8729_v16, %s9374_s13  ;;  %v8761_v58 = vld [vmem:[%s9440_s10 + $0x44] sm:$0x1] }
  0xb9   : > { %v874_v19 = vpop.permute.xlu1 %873  ;;  %v9945_v51 = vrot.slane %v1620_v30, 5 }
  0xba   : > { %947 = vst.msk [vmem:[#allocation2 + $0x5c] sm:$0xf] %vm923_vm7, %v874_v19  ;;  %v872_v21 = vpop.permute.xlu0 %871  ;;  %v1579_v19 = vor.u32 %v1578_v2, %v9903_v1 }
  0xbb   : > { %946 = vst.msk [vmem:[#allocation2 + $0x58] sm:$0xf] %vm923_vm7, %v872_v21  ;;  %1395 = vrot.lane.b32.xlu1 %v8732_v18, %s9374_s13  ;;  %v9916_v18 = vrot.slane %v1545_v0, 4  ;;  %v8756_v21 = vld [vmem:[%s9440_s10 + $0x30] sm:$0xf] }
  0xbc   : > { %1393 = vrot.lane.b32.xlu0 %v8731_v20, %s9374_s13  ;;  %v1582_v20 = vshll.u32 %v8752_v4, 16  ;;  %v1611_v34 = vshrl.u32 %v8756_v21, 16  ;;  %v1614_v35 = vshll.u32 %v8756_v21, 16  ;;  %v8764_v21 = vld [vmem:[%s9440_s10 + $0x50] sm:$0x1] }
  0xbd   : > { %v878_v23 = vpop.permute.xlu1 %877  ;;  %v1551_v42 = vsel %vm9451_vm2, %v9916_v18, %v9891_v45 }
  0xbe   : > { %949 = vst.msk [vmem:[#allocation2 + $0x64] sm:$0xf] %vm923_vm7, %v878_v23  ;;  %v876_v25 = vpop.permute.xlu0 %875  ;;  %v1569_v23 = vor.u32 %v1568_v6, %v1565_v5  ;;  %v1584_v38 = vrot.slane %v1582_v20, 5  ;;  %v1613_v45 = vrot.slane %v1611_v34, 4  ;;  %v1616_v54 = vrot.slane %v1614_v35, 5 }
  0xbf   : > { %948 = vst.msk [vmem:[#allocation2 + $0x60] sm:$0xf] %vm923_vm7, %v876_v25  ;;  %1399 = vrot.lane.b32.xlu1 %v8734_v22, %s9374_s13  ;;  %v1602_v25 = vrot.slane %v1600_v8, 4  ;;  %v8769_v35 = vld [vmem:[%s9440_s10 + $0x64] sm:$0xf] }
  0xc0   : > { %1397 = vrot.lane.b32.xlu0 %v8733_v24, %s9374_s13  ;;  %v9921_v24 = vrot.slane %v1596_v7, 5  ;;  %v1570_v49 = vrot.slane %v1569_v23, 4 }
  0xc1   : > { %v882_v28 = vpop.permute.xlu1 %881 }
  0xc2   : > { %951 = vst.msk [vmem:[#allocation2 + $0x6c] sm:$0xf] %vm923_vm7, %v882_v28  ;;  %v880_v31 = vpop.permute.xlu0 %879  ;;  %v1589_v28 = vrot.slane %v1587_v11, 4  ;;  %v1575_v6 = vsel %vm9451_vm2, %v1570_v49, %v9903_v1  ;;  %v1617_v11 = vor.u32 %v1616_v54, %v1613_v45  ;;  %v1674_v1 = vrot.slane %v1672_v63, 4 }
  0xc3   : > { %950 = vst.msk [vmem:[#allocation2 + $0x68] sm:$0xf] %vm923_vm7, %v880_v31  ;;  %1403 = vrot.lane.b32.xlu1 %v8736_v26, %s9374_s13  ;;  %v1606_v26 = vshll.u32 %v8755_v10, 16  ;;  %v1624_v31 = vshrl.u32 %v8757_v15, 16  ;;  %v8766_v10 = vld [vmem:[%s9440_s10 + $0x58] sm:$0xf] }
  0xc4   : > { %1401 = vrot.lane.b32.xlu0 %v8735_v29, %s9374_s13  ;;  %v1592_v29 = vrot.slane %v1590_v12, 5  ;;  %v8765_v15 = vld [vmem:[%s9440_s10 + $0x54] sm:$0xf] }
  0xc5   : > { %v886_v36 = vpop.permute.xlu1 %885  ;;  %v9939_v46 = vrot.slane %v1606_v26, 5  ;;  %v1626_v52 = vrot.slane %v1624_v31, 4  ;;  %v1696_v26 = vshrl.u32 %v8766_v10, 16  ;;  %v1686_v30 = vshll.u32 %v8765_v15, 16 }
  0xc6   : > { %953 = vst.msk [vmem:[#allocation2 + $0x74] sm:$0xf] %vm923_vm7, %v886_v36  ;;  %v884_v40 = vpop.permute.xlu0 %883  ;;  %v1593_v50 = vor.u32 %v1592_v29, %v1589_v28  ;;  %v1683_v29 = vshrl.u32 %v8765_v15, 16 }
  0xc7   : > { %952 = vst.msk [vmem:[#allocation2 + $0x70] sm:$0xf] %vm923_vm7, %v884_v40  ;;  %1407 = vrot.lane.b32.xlu1 %v8738_v33, %s9374_s13  ;;  %v8745_v33 = vld [vmem:[%s9440_s10 + $0xc0] sm:$0xf]  ;;  %v1688_v49 = vrot.slane %v1686_v30, 5 }
  0xc8   : > { %1405 = vrot.lane.b32.xlu0 %v8737_v37, %s9374_s13  ;;  %v1561_v37 = vsel %vm9451_vm2, %v1556_v17, %v9913_v14  ;;  %v8760_v40 = vld [vmem:[%s9440_s10 + $0x40] sm:$0xf]  ;;  %v1594_v8 = vrot.slane %v1593_v50, 4  ;;  %v1654_v14 = vshll.u32 %v8761_v58, 16  ;;  %v1716_v50 = vshll.u32 %v8769_v35, 16 }
  0xc9   : > { %v890_v47 = vpop.permute.xlu1 %889  ;;  %v1644_v55 = vshll.u32 %v8760_v40, 16  ;;  %v1648_v56 = vshrl.u32 %v8760_v40, 16  ;;  %v1678_v40 = vshll.u32 %v8764_v21, 16 }
  0xca   : > { %955 = vst.msk [vmem:[#allocation2 + $0x7c] sm:$0xf] %vm923_vm7, %v890_v47  ;;  %v888_v53 = vpop.permute.xlu0 %887  ;;  %v8759_v47 = vld [vmem:[%s9440_s10 + $0x3c] sm:$0xf] }
  0xcb   : > { %954 = vst.msk [vmem:[#allocation2 + $0x78] sm:$0xf] %vm923_vm7, %v888_v53  ;;  %1411 = vrot.lane.b32.xlu1 %v8740_v43, %s9374_s13  ;;  %v1580_v43 = vrot.slane %v1579_v19, 4  ;;  %v8762_v53 = vld [vmem:[%s9440_s10 + $0x48] sm:$0xf]  ;;  %v1635_v59 = vshrl.u32 %v8759_v47, 16 }
  0xcc   : > { %1409 = vrot.lane.b32.xlu0 %v8739_v44, %s9374_s13  ;;  %v1603_v44 = vor.u32 %v1602_v25, %v9921_v24  ;;  %v1659_v4 = vshrl.u32 %v8762_v53, 16  ;;  %v1662_v5 = vshll.u32 %v8762_v53, 16  ;;  %v9961_v12 = vrot.slane %v1644_v55, 5 }
  0xcd   : > { %v1170_v60 = vpop.permute.xlu1 %1169  ;;  %v1585_v2 = vsel %vm9451_vm2, %v1580_v43, %v1584_v38  ;;  %v1637_v17 = vrot.slane %v1635_v59, 4  ;;  %v1692_v25 = vshll.u32 %v8766_v10, 16  ;;  %v1656_v38 = vrot.slane %v1654_v14, 5 }
  0xce   : > { %1265 = vst.msk [vmem:[#allocation2 + $0x4] sm:$0xf] %vm13256_vm8, %v1170_v60  ;;  %v1168_v3 = vpop.permute.xlu0 %1167  ;;  %v1638_v60 = vshll.u32 %v8759_v47, 16  ;;  %v1604_v7 = vrot.slane %v1603_v44, 4  ;;  %v1664_v23 = vrot.slane %v1662_v5, 5 }
  0xcf   : > { %1264 = vst.msk [vmem:[#allocation2] sm:$0xf] %vm13256_vm8, %v1168_v3  ;;  %1415 = vrot.lane.b32.xlu1 %v8742_v57, %s9374_s13  ;;  %v1630_v3 = vshll.u32 %v8758_v39, 16  ;;  %v8767_v47 = vld [vmem:[%s9440_s10 + $0x5c] sm:$0x1] }
  0xd0   : > { %1413 = vrot.lane.b32.xlu0 %v8741_v61, %s9374_s13  ;;  %v1668_v61 = vshll.u32 %v8763_v48, 16  ;;  %v1640_v18 = vrot.slane %v1638_v60, 5  ;;  %v1609_v31 = vsel %vm9451_vm2, %v1604_v7, %v9939_v46  ;;  %v9982_v46 = vrot.slane %v1692_v25, 5  ;;  %v8774_v25 = vld [vmem:[%s9440_s10 + $0x78] sm:$0xf] }
  0xd1   : > { %v1174_v16 = vpop.permute.xlu1 %1173  ;;  %v1632_v28 = vrot.slane %v1630_v3, 5  ;;  %v1685_v48 = vrot.slane %v1683_v29, 4  ;;  %v1680_v60 = vrot.slane %v1678_v40, 5  ;;  %v1702_v3 = vshll.u32 %v8767_v47, 16 }
  0xd2   : > { %1267 = vst.msk [vmem:[#allocation2 + $0xc] sm:$0xf] %vm13256_vm8, %v1174_v16  ;;  %v1172_v22 = vpop.permute.xlu0 %1171  ;;  %v9964_v19 = vrot.slane %v1668_v61, 5  ;;  %v1641_v39 = vor.u32 %v1640_v18, %v1637_v17  ;;  %v10000_v7 = vrot.slane %v1716_v50, 5  ;;  %v8775_v18 = vld [vmem:[%s9440_s10 + $0x7c] sm:$0xf] }
  0xd3   : > { %1266 = vst.msk [vmem:[#allocation2 + $0x8] sm:$0xf] %vm13256_vm8, %v1172_v22  ;;  %1419 = vrot.lane.b32.xlu1 %v8744_v9, %s9374_s13  ;;  %v1627_v9 = vor.u32 %v1626_v52, %v9945_v51  ;;  %v1661_v22 = vrot.slane %v1659_v4, 4  ;;  %v1720_v52 = vshrl.u32 %v8769_v35, 16  ;;  %v8771_v4 = vld [vmem:[%s9440_s10 + $0x6c] sm:$0xf]  ;;  %v1689_v5 = vor.u32 %v1688_v49, %v1685_v48 }
  0xd4   : > { %1417 = vrot.lane.b32.xlu0 %v8743_v13, %s9374_s13  ;;  %v1650_v13 = vrot.slane %v1648_v56, 4  ;;  %v1675_v43 = vor.u32 %v1674_v1, %v9964_v19  ;;  %v8772_v56 = vld [vmem:[%s9440_s10 + $0x70] sm:$0xf]  ;;  %v1642_v59 = vrot.slane %v1641_v39, 4  ;;  %v1734_v17 = vshll.u32 %v8771_v4, 16 }
  0xd5   : > { %v1178_v36 = vpop.permute.xlu1 %1177  ;;  %v1665_v44 = vor.u32 %v1664_v23, %v1661_v22  ;;  %v1704_v22 = vrot.slane %v1702_v3, 5  ;;  %v1758_v39 = vshll.u32 %v8774_v25, 16 }
  0xd6   : > { %1269 = vst.msk [vmem:[#allocation2 + $0x14] sm:$0xf] %vm13256_vm8, %v1178_v36  ;;  %v1176_v41 = vpop.permute.xlu0 %1175  ;;  %v1651_v34 = vor.u32 %v1650_v13, %v9961_v12  ;;  %v1676_v63 = vrot.slane %v1675_v43, 4  ;;  %v1744_v13 = vshrl.u32 %v8772_v56, 16  ;;  %v1647_v15 = vsel %vm9451_vm2, %v1642_v59, %v9961_v12 }
  0xd7   : > { %1268 = vst.msk [vmem:[#allocation2 + $0x10] sm:$0xf] %vm13256_vm8, %v1176_v41  ;;  %1423 = vrot.lane.b32.xlu1 %v8746_v32, %s9374_s13  ;;  %v1599_v32 = vsel %vm9451_vm2, %v1594_v8, %v9921_v24  ;;  %v8768_v41 = vld [vmem:[%s9440_s10 + $0x60] sm:$0xf]  ;;  %v1698_v24 = vrot.slane %v1696_v26, 4  ;;  %v1740_v8 = vshll.u32 %v8772_v56, 16 }
  0xd8   : > { %1421 = vrot.lane.b32.xlu0 %v8745_v33, %s9374_s13  ;;  %v1628_v33 = vrot.slane %v1627_v9, 4  ;;  %v1652_v45 = vrot.slane %v1651_v34, 4  ;;  %v1707_v54 = vshrl.u32 %v8768_v41, 16  ;;  %v1710_v55 = vshll.u32 %v8768_v41, 16 }
  0xd9   : > { %v1182_v57 = vpop.permute.xlu1 %1181  ;;  %v1690_v26 = vrot.slane %v1689_v5, 4  ;;  %v10019_v29 = vrot.slane %v1740_v8, 5  ;;  %v1768_v34 = vshrl.u32 %v8775_v18, 16 }
  0xda   : > { %1271 = vst.msk [vmem:[#allocation2 + $0x1c] sm:$0xf] %vm13256_vm8, %v1182_v57  ;;  %v1180_v0 = vpop.permute.xlu0 %1179  ;;  %v1633_v53 = vsel %vm9451_vm2, %v1628_v33, %v1632_v28  ;;  %v1657_v9 = vsel %vm9451_vm2, %v1652_v45, %v1656_v38  ;;  %v1709_v10 = vrot.slane %v1707_v54, 4  ;;  %v1764_v33 = vshll.u32 %v8775_v18, 16 }
  0xdb   : > { %1270 = vst.msk [vmem:[#allocation2 + $0x18] sm:$0xf] %vm13256_vm8, %v1180_v0  ;;  %1924 = vrot.lane.b32.xlu1 %v1561_v37, %s9375_s14  ;;  %v1618_v37 = vrot.slane %v1617_v11, 4  ;;  %v1666_v0 = vrot.slane %v1665_v44, 4  ;;  %v1712_v11 = vrot.slane %v1710_v55, 5  ;;  %v1755_v38 = vshrl.u32 %v8774_v25, 16 }
  0xdc   : > { %1922 = vrot.lane.b32.xlu0 %v1551_v42, %s9375_s14  ;;  %v1695_v44 = vsel %vm9451_vm2, %v1690_v26, %v9982_v46  ;;  %v1766_v47 = vrot.slane %v1764_v33, 5  ;;  %v1770_v48 = vrot.slane %v1768_v34, 4  ;;  %v1760_v54 = vrot.slane %v1758_v39, 5  ;;  %v8892_v25 = vld [vmem:[%s9440_s10 + $0x1c] sm:$0xf] }
  0xdd   : > { %v1186_v16 = vpop.permute.xlu1 %1185  ;;  %v1623_v58 = vsel %vm9451_vm2, %v1618_v37, %v9945_v51  ;;  %v1722_v51 = vrot.slane %v1720_v52, 4  ;;  %v1671_v12 = vsel %vm9451_vm2, %v1666_v0, %v9964_v19  ;;  %v1713_v30 = vor.u32 %v1712_v11, %v1709_v10  ;;  %v8797_v11 = vld [vmem:[%s9440_s10 + $0x14] sm:$0x1]  ;;  %v8891_v26 = vld [vmem:[%s9440_s10 + $0x18] sm:$0xf] }
  0xde   : > { %1273 = vst.msk [vmem:[#allocation2 + $0x24] sm:$0xf] %vm13256_vm8, %v1186_v16  ;;  %v1184_v20 = vpop.permute.xlu0 %1183  ;;  %v1731_v16 = vshrl.u32 %v8771_v4, 16  ;;  %v1736_v37 = vrot.slane %v1734_v17, 5  ;;  %v1757_v45 = vrot.slane %v1755_v38, 4  ;;  %v2152_v18 = vrot.slane %v8797_v11, 5 }
  0xdf   : > { %1272 = vst.msk [vmem:[#allocation2 + $0x20] sm:$0xf] %vm13256_vm8, %v1184_v20  ;;  %1928 = vrot.lane.b32.xlu1 %v1585_v2, %s9375_s14  ;;  %v1699_v2 = vor.u32 %v1698_v24, %v9982_v46  ;;  %v1681_v20 = vsel %vm9451_vm2, %v1676_v63, %v1680_v60  ;;  %v1723_v28 = vor.u32 %v1722_v51, %v10000_v7  ;;  %v1714_v50 = vrot.slane %v1713_v30, 4  ;;  %v8799_v51 = vld [vmem:[%s9440_s10 + $0x1c] sm:$0xf] }
  0xe0   : > { %1926 = vrot.lane.b32.xlu0 %v1575_v6, %s9375_s14  ;;  %v8770_v6 = vld [vmem:[%s9440_s10 + $0x68] sm:$0x1]  ;;  %v1761_v0 = vor.u32 %v1760_v54, %v1757_v45  ;;  %v2644_v33 = vshrl.u32 %v8892_v25, 16  ;;  %v8860_v54 = vld [vmem:[%s9440_s10 + $0x1c] sm:$0xf] }
  0xe1   : > { %v1190_v36 = vpop.permute.xlu1 %1189  ;;  %v1700_v21 = vrot.slane %v1699_v2, 4  ;;  %v1726_v23 = vshll.u32 %v8770_v6, 16  ;;  %v1724_v41 = vrot.slane %v1723_v28, 4  ;;  %v8796_v2 = vld [vmem:[%s9440_s10 + $0x10] sm:$0xf] }
  0xe2   : > { %1275 = vst.msk [vmem:[#allocation2 + $0x2c] sm:$0xf] %vm13256_vm8, %v1190_v36  ;;  %v1188_v42 = vpop.permute.xlu0 %1187  ;;  %v1733_v36 = vrot.slane %v1731_v16, 4  ;;  %v1762_v10 = vrot.slane %v1761_v0, 4  ;;  %v8895_v38 = vld [vmem:[%s9440_s10 + $0x28] sm:$0xf] }
  0xe3   : > { %1274 = vst.msk [vmem:[#allocation2 + $0x28] sm:$0xf] %vm13256_vm8, %v1188_v42  ;;  %1932 = vrot.lane.b32.xlu1 %v1609_v31, %s9375_s14  ;;  %v8773_v31 = vld [vmem:[%s9440_s10 + $0x74] sm:$0x1]  ;;  %v1705_v40 = vsel %vm9451_vm2, %v1700_v21, %v1704_v22  ;;  %v1728_v42 = vrot.slane %v1726_v23, 5 }
  0xe4   : > { %1930 = vrot.lane.b32.xlu0 %v1599_v32, %s9375_s14  ;;  %v1746_v32 = vrot.slane %v1744_v13, 4  ;;  %v1750_v43 = vshll.u32 %v8773_v31, 16  ;;  %v1737_v52 = vor.u32 %v1736_v37, %v1733_v36  ;;  %v1767_v22 = vsel %vm9451_vm2, %v1762_v10, %v1766_v47  ;;  %v8940_v11 = vld [vmem:[%s9440_s10 + $0x1c] sm:$0xf] }
  0xe5   : > { %v1194_v57 = vpop.permute.xlu1 %1193  ;;  %v1729_v46 = vsel %vm9451_vm2, %v1724_v41, %v1728_v42  ;;  %v2631_v36 = vshrl.u32 %v8891_v26, 16  ;;  %v2634_v37 = vshll.u32 %v8891_v26, 16 }
  0xe6   : > { %1277 = vst.msk [vmem:[#allocation2 + $0x34] sm:$0xf] %vm13256_vm8, %v1194_v57  ;;  %v1192_v61 = vpop.permute.xlu0 %1191  ;;  %v1747_v24 = vor.u32 %v1746_v32, %v10019_v29  ;;  %v1752_v56 = vrot.slane %v1750_v43, 5  ;;  %v1738_v63 = vrot.slane %v1737_v52, 4  ;;  %v2640_v32 = vshll.u32 %v8892_v25, 16 }
  0xe7   : > { %1276 = vst.msk [vmem:[#allocation2 + $0x30] sm:$0xf] %vm13256_vm8, %v1192_v61  ;;  %1936 = vrot.lane.b32.xlu1 %v1633_v53, %s9375_s14  ;;  %v8776_v53 = vld [vmem:[%s9440_s10 + $0x80] sm:$0x1]  ;;  %v1719_v61 = vsel %vm9451_vm2, %v1714_v50, %v10000_v7  ;;  %v2149_v7 = vrot.slane %v8796_v2, 5  ;;  %v2646_v43 = vrot.slane %v2644_v33, 4 }
  0xe8   : > { %1934 = vrot.lane.b32.xlu0 %v1623_v58, %s9375_s14  ;;  %v1748_v57 = vrot.slane %v1747_v24, 4  ;;  %v1771_v58 = vor.u32 %v1770_v48, %v1766_v47  ;;  %v1774_v59 = vshll.u32 %v8776_v53, 16  ;;  %v10086_v42 = vrot.slane %v2640_v32, 5  ;;  %v8893_v48 = vld [vmem:[%s9440_s10 + $0x20] sm:$0x1] }
  0xe9   : > { %v1198_v14 = vpop.permute.xlu1 %1197  ;;  %v2151_v17 = vrot.slane %v2149_v7, 4  ;;  %v2668_v24 = vshrl.u32 %v8895_v38, 16  ;;  %v2636_v50 = vrot.slane %v2634_v37, 5  ;;  %v8941_v25 = vld [vmem:[%s9440_s10 + $0x20] sm:$0x1] }
  0xea   : > { %1279 = vst.msk [vmem:[#allocation2 + $0x3c] sm:$0xf] %vm13256_vm8, %v1198_v14  ;;  %v1196_v1 = vpop.permute.xlu0 %1195  ;;  %v1753_v4 = vsel %vm9451_vm2, %v1748_v57, %v1752_v56  ;;  %v1772_v5 = vrot.slane %v1771_v58, 4  ;;  %v1776_v6 = vrot.slane %v1774_v59, 5  ;;  %v8795_v14 = vld [vmem:[%s9440_s10 + $0xc] sm:$0xe] }
  0xeb   : > { %1278 = vst.msk [vmem:[#allocation2 + $0x38] sm:$0xf] %vm13256_vm8, %v1196_v1  ;;  %1940 = vrot.lane.b32.xlu1 %v1657_v9, %s9375_s14  ;;  %v1743_v9 = vsel %vm9451_vm2, %v1738_v63, %v10019_v29  ;;  %v8800_v1 = vld [vmem:[%s9440_s10 + $0x20] sm:$0x1]  ;;  %v8843_v23 = vrot.slane %v8795_v14, 9  ;;  %v2153_v31 = vsel %vm9595_vm6, %v2151_v17, %v2152_v18  ;;  %v2650_v56 = vshll.u32 %v8893_v48, 16 }
  0xec   : > { %1938 = vrot.lane.b32.xlu0 %v1647_v15, %s9375_s14  ;;  %v2156_v15 = vrot.slane %v8799_v51, 5  ;;  %v1777_v16 = vsel %vm9451_vm2, %v1772_v5, %v1776_v6  ;;  %v2159_v29 = vrot.slane %v8800_v1, 5  ;;  %v2670_v58 = vrot.slane %v2668_v24, 4  ;;  %v8944_v37 = vld [vmem:[%s9440_s10 + $0x2c] sm:$0x1] }
  0xed   : > { %v1202_v35 = vpop.permute.xlu1 %1201  ;;  %v2652_v6 = vrot.slane %v2650_v56, 5  ;;  %v3241_v1 = vrot.slane %v8940_v11, 5  ;;  %v3244_v32 = vrot.slane %v8941_v25, 5  ;;  %v8805_v24 = vld [vmem:[%s9440_s10 + $0x34] sm:$0xf] }
  0xee   : > { %1281 = vst.msk [vmem:[#allocation2 + $0x44] sm:$0xf] %vm13256_vm8, %v1202_v35  ;;  %v1200_v19 = vpop.permute.xlu0 %1199  ;;  %v2158_v28 = vrot.slane %v2156_v15, 4  ;;  %v2150_v35 = vsel %vm9595_vm6, %v8843_v23, %v2149_v7  ;;  %v8901_v11 = vld [vmem:[%s9440_s10 + $0x40] sm:$0xf] }
  0xef   : > { %1280 = vst.msk [vmem:[#allocation2 + $0x40] sm:$0xf] %vm13256_vm8, %v1200_v19  ;;  %1944 = vrot.lane.b32.xlu1 %v1681_v20, %s9375_s14  ;;  %v8798_v20 = vld [vmem:[%s9440_s10 + $0x18] sm:$0xe]  ;;  %v8894_v19 = vld [vmem:[%s9440_s10 + $0x24] sm:$0xf] }
  0xf0   : > { %1942 = vrot.lane.b32.xlu0 %v1671_v12, %s9375_s14  ;;  %v8844_v30 = vrot.slane %v8798_v20, 9  ;;  %v2655_v52 = vshrl.u32 %v8894_v19, 16  ;;  %v2658_v53 = vshll.u32 %v8894_v19, 16  ;;  %v8942_v19 = vld [vmem:[%s9440_s10 + $0x24] sm:$0xe] }
  0xf1   : > { %v1206_v49 = vpop.permute.xlu1 %1205 }
  0xf2   : > { %1283 = vst.msk [vmem:[#allocation2 + $0x4c] sm:$0xf] %vm13256_vm8, %v1206_v49  ;;  %v1204_v55 = vpop.permute.xlu0 %1203  ;;  %v2157_v41 = vsel %vm9595_vm6, %v8844_v30, %v2156_v15  ;;  %v2633_v49 = vrot.slane %v2631_v36, 4  ;;  %v2657_v63 = vrot.slane %v2655_v52, 4  ;;  %v2660_v0 = vrot.slane %v2658_v53, 5 }
  0xf3   : > { %1282 = vst.msk [vmem:[#allocation2 + $0x48] sm:$0xf] %vm13256_vm8, %v1204_v55  ;;  %1948 = vrot.lane.b32.xlu1 %v1705_v40, %s9375_s14  ;;  %v2160_v40 = vsel %vm9595_vm6, %v2158_v28, %v2159_v29  ;;  %v2647_v55 = vor.u32 %v2646_v43, %v10086_v42  ;;  %v9323_v15 = vld [vmem:[%s13248_s2 + $0x10] ss:$0 sps:$4 sm:$0x33]   ;;  %v9324_v29 = vld [vmem:[%s13248_s2 + $0x8] sm:$0xff]  }
  0xf4   : > { %1946 = vrot.lane.b32.xlu0 %v1695_v44, %s9375_s14  ;;  %v2664_v44 = vshll.u32 %v8895_v38, 16  ;;  %v2661_v10 = vor.u32 %v2660_v0, %v2657_v63  ;;  %9303 = vmatprep.subr.msk.bf16.mxu0 %vm3661_vm10, %v9323_v15  ;;  %v3663_v20 = vsel %vm3661_vm10, %v9323_v15, 0  ;;  %v8939_v28 = vld [vmem:[%s9440_s10 + $0x18] sm:$0xe]  ;;  %v8802_v38 = vld [vmem:[%s9440_s10 + $0x28] sm:$0xf] }
  0xf5   : > { %v1210_v60 = vpop.permute.xlu1 %1209  ;;  %v2648_v5 = vrot.slane %v2647_v55, 4  ;;  %9228 = vmatpush3.bf16.msra.mxu0 %v3663_v20  ;;  %v8987_v36 = vrot.slane %v8939_v28, 9  ;;  %v3251_v43 = vrot.slane %v8944_v37, 5  ;;  %v8801_v53 = vld [vmem:[%s9440_s10 + $0x24] sm:$0xe]  ;;  %v2712_v20 = vshll.u32 %v8901_v11, 16 }
  0xf6   : > { %1285 = vst.msk [vmem:[#allocation2 + $0x54] sm:$0xf] %vm13256_vm8, %v1210_v60  ;;  %v1208_v3 = vpop.permute.xlu0 %1207  ;;  %v10096_v57 = vrot.slane %v2664_v44, 5  ;;  %v8859_v60 = vld [vmem:[%s9440_s10 + $0x18] sm:$0xf]  ;;  %v2662_v23 = vrot.slane %v2661_v10, 4  ;;  %9229 = vmatprep.subr.bf16.mxu0 %v9324_v29 }
  0xf7   : > { %1284 = vst.msk [vmem:[#allocation2 + $0x50] sm:$0xf] %vm13256_vm8, %v1208_v3  ;;  %1952 = vrot.lane.b32.xlu1 %v1729_v46, %s9375_s14  ;;  %v8896_v46 = vld [vmem:[%s9440_s10 + $0x2c] sm:$0x1]  ;;  %v2653_v17 = vsel %vm9451_vm2, %v2648_v5, %v2652_v6  ;;  %v2163_v44 = vrot.slane %v8802_v38, 5  ;;  %v3242_v48 = vsel %vm9595_vm6, %v8987_v36, %v3241_v1 }
  0xf8   : > { %1950 = vrot.lane.b32.xlu0 %v1719_v61, %s9375_s14  ;;  %v2637_v61 = vor.u32 %v2636_v50, %v2633_v49  ;;  %v2674_v3 = vshll.u32 %v8896_v46, 16  ;;  %v2671_v7 = vor.u32 %v2670_v58, %v10096_v57  ;;  %v8988_v49 = vrot.slane %v8942_v19, 9  ;;  %v8803_v50 = vld [vmem:[%s9440_s10 + $0x2c] sm:$0x1]  ;;  %v8806_v46 = vld [vmem:[%s9440_s10 + $0x38] sm:$0x1] }
  0xf9   : > { %v1214_v8 = vpop.permute.xlu1 %1213  ;;  %9230 = vmatpush3.bf16.msra.mxu0 %v9324_v29  ;;  %v2165_v55 = vrot.slane %v2163_v44, 4  ;;  %v2166_v56 = vrot.slane %v8803_v50, 5  ;;  %v8897_v0 = vld [vmem:[%s9440_s10 + $0x30] sm:$0xf]  ;;  %v8900_v15 = vld [vmem:[%s9440_s10 + $0x3c] sm:$0xf] }
  0xfa   : > { %1287 = vst.msk [vmem:[#allocation2 + $0x5c] sm:$0xf] %vm13256_vm8, %v1214_v8  ;;  %v1212_v13 = vpop.permute.xlu0 %1211  ;;  %v8861_v8 = vld [vmem:[%s9440_s10 + $0x24] sm:$0xf]  ;;  %v2672_v18 = vrot.slane %v2671_v7, 4  ;;  %v2682_v10 = vshll.u32 %v8897_v0, 16 }
  0xfb   : > { %1286 = vst.msk [vmem:[#allocation2 + $0x58] sm:$0xf] %vm13256_vm8, %v1212_v13  ;;  %1956 = vrot.lane.b32.xlu1 %v1753_v4, %s9375_s14  ;;  %v8862_v4 = vld [vmem:[%s9440_s10 + $0x28] sm:$0xf]  ;;  %v9378_v13 = vmov 0   ;;  %v2167_v5 = vsel %vm9595_vm6, %v2165_v55, %v2166_v56  ;;  %v2706_v28 = vshll.u32 %v8900_v15, 16 }
  0xfc   : > { %1954 = vrot.lane.b32.xlu0 %v1743_v9, %s9375_s14  ;;  %v2638_v9 = vrot.slane %v2637_v61, 4  ;;  %4115 = vst.msk [vmem:[#allocation3 + $0x4] sm:$0xf] %vm359_vm3, %v9378_v13  ;;  %4114 = vst.msk [vmem:[#allocation3] sm:$0xf] %vm359_vm3, %v9378_v13 }
  0xfd   : > { %v1218_v21 = vpop.permute.xlu1 %1217  ;;  %4119 = vst.msk [vmem:[#allocation3 + $0xcc] sm:$0xf] %vm359_vm3, %v9378_v13  ;;  %4120 = vst.msk [vmem:[#allocation3 + $0xd0] sm:$0xf] %vm359_vm3, %v9378_v13  ;;  %v8898_v61 = vld [vmem:[%s9440_s10 + $0x34] sm:$0xf] }
  0xfe   : > { %1289 = vst.msk [vmem:[#allocation2 + $0x64] sm:$0xf] %vm13256_vm8, %v1218_v21  ;;  %v1216_v12 = vpop.permute.xlu0 %1215  ;;  %v2688_v6 = vshll.u32 %v8898_v61, 16  ;;  %v2692_v7 = vshrl.u32 %v8898_v61, 16  ;;  %v8863_v36 = vld [vmem:[%s9440_s10 + $0x30] sm:$0xf] }
  0xff   : > { %1288 = vst.msk [vmem:[#allocation2 + $0x60] sm:$0xf] %vm13256_vm8, %v1216_v12  ;;  %1960 = vrot.lane.b32.xlu1 %v1777_v16, %s9375_s14  ;;  %v2676_v16 = vrot.slane %v2674_v3, 5  ;;  %v8943_v12 = vld [vmem:[%s9440_s10 + $0x28] sm:$0xf]  ;;  %v2173_v3 = vrot.slane %v8806_v46, 5 }
 0x100   : > { %1958 = vrot.lane.b32.xlu0 %v1767_v22, %s9375_s14  ;;  %v2643_v22 = vsel %vm9451_vm2, %v2638_v9, %v10086_v42  ;;  %v3248_v33 = vrot.slane %v8943_v12, 5  ;;  %v2679_v9 = vshrl.u32 %v8897_v0, 16  ;;  %v2684_v12 = vrot.slane %v2682_v10, 5  ;;  %v8902_v38 = vld [vmem:[%s9440_s10 + $0x44] sm:$0x1] }
 0x101   : > { %v1222_v34 = vpop.permute.xlu1 %1221  ;;  %v2677_v30 = vsel %vm9451_vm2, %v2672_v18, %v2676_v16  ;;  %v2690_v18 = vrot.slane %v2688_v6, 5  ;;  %v2708_v19 = vrot.slane %v2706_v28, 5  ;;  %v8948_v10 = vld [vmem:[%s9440_s10 + $0x3c] sm:$0xe]  ;;  %4117 = vst.msk [vmem:[#allocation3 + $0x8] sm:$0x1] %vm4116_vm1, %v9378_v13 }
 0x102   : > { %1291 = vst.msk [vmem:[#allocation2 + $0x6c] sm:$0xf] %vm13256_vm8, %v1222_v34  ;;  %v1220_v39 = vpop.permute.xlu0 %1219  ;;  %v3250_v42 = vrot.slane %v3248_v33, 4  ;;  %v2681_v25 = vrot.slane %v2679_v9, 4 }
 0x103   : > { %1290 = vst.msk [vmem:[#allocation2 + $0x68] sm:$0xf] %vm13256_vm8, %v1220_v39  ;;  %2261 = vrot.lane.b32.xlu1 %v2153_v31, %s9376_s15  ;;  %v3243_v31 = vrot.slane %v3241_v1, 4  ;;  %v2694_v1 = vrot.slane %v2692_v7, 4 }
 0x104   : > { %2259 = vrot.lane.b32.xlu0 %v2150_v35, %s9376_s15  ;;  %v2667_v35 = vsel %vm9451_vm2, %v2662_v23, %v10096_v57  ;;  %v8804_v57 = vld [vmem:[%s9440_s10 + $0x30] sm:$0xe]  ;;  %v8899_v23 = vld [vmem:[%s9440_s10 + $0x38] sm:$0x1]  ;;  %v2685_v37 = vor.u32 %v2684_v12, %v2681_v25  ;;  %4121 = vst.msk [vmem:[#allocation3 + $0xd4] sm:$0x1] %vm4116_vm1, %v9378_v13 }
 0x105   : > { %v1226_v47 = vpop.permute.xlu1 %1225 }
 0x106   : > { %1293 = vst.msk [vmem:[#allocation2 + $0x74] sm:$0xf] %vm13256_vm8, %v1226_v47  ;;  %v1224_v45 = vpop.permute.xlu0 %1223 }
 0x107   : > { %1292 = vst.msk [vmem:[#allocation2 + $0x70] sm:$0xf] %vm13256_vm8, %v1224_v45  ;;  %2265 = vrot.lane.b32.xlu1 %v2160_v40, %s9376_s15  ;;  %v9325_v40 = vld [vmem:[%s13248_s2] sm:$0xff]   ;;  %v2170_v45 = vrot.slane %v8805_v24, 5  ;;  %v2722_v24 = vshll.u32 %v8902_v38, 16 }
 0x108   : > { %2263 = vrot.lane.b32.xlu0 %v2157_v41, %s9376_s15  ;;  %v3245_v41 = vsel %vm9595_vm6, %v3243_v31, %v3244_v32  ;;  %9231 = vmatprep.subr.bf16.mxu0 %v9325_v40  ;;  %v2695_v31 = vor.u32 %v2694_v1, %v2690_v18  ;;  %v2698_v32 = vshll.u32 %v8899_v23, 16  ;;  %v8807_v23 = vld [vmem:[%s9440_s10 + $0x3c] sm:$0xe] }
 0x109   : > { %v1230_v59 = vpop.permute.xlu1 %1229  ;;  %9232 = vmatpush3.bf16.msra.mxu0 %v9325_v40  ;;  %v2724_v55 = vrot.slane %v2722_v24, 5 }
 0x10a   : > { %1295 = vst.msk [vmem:[#allocation2 + $0x7c] sm:$0xf] %vm13256_vm8, %v1230_v59  ;;  %v1228_v2 = vpop.permute.xlu0 %1227  ;;  %v3249_v59 = vsel %vm9595_vm6, %v8988_v49, %v3248_v33  ;;  %v2714_v33 = vrot.slane %v2712_v20, 5  ;;  %v2686_v49 = vrot.slane %v2685_v37, 4  ;;  %v8990_v20 = vrot.slane %v8948_v10, 9 }
 0x10b   : > { %1294 = vst.msk [vmem:[#allocation2 + $0x78] sm:$0xf] %vm13256_vm8, %v1228_v2  ;;  %2455 = vrot.lane.b32.xlu1 %v8860_v54, %s9377_s16  ;;  %v3252_v54 = vsel %vm9595_vm6, %v3250_v42, %v3251_v43  ;;  %v2172_v2 = vrot.slane %v2170_v45, 4  ;;  %v2696_v42 = vrot.slane %v2695_v31, 4  ;;  %v2700_v43 = vrot.slane %v2698_v32, 5 }
 0x10c   : > { %2453 = vrot.lane.b32.xlu0 %v8859_v60, %s9377_s16  ;;  %v8845_v60 = vrot.slane %v8801_v53, 9 }
 0x10d   : > { %v1364_v51 = vpop.permute.xlu1 %1363  ;;  %v2174_v16 = vsel %vm9595_vm6, %v2172_v2, %v2173_v3 }
 0x10e   : > { %1459 = vst.msk [vmem:[#allocation2 + $0x4] sm:$0xf] %vm13255_vm9, %v1364_v51  ;;  %v1362_v14 = vpop.permute.xlu0 %1361 }
 0x10f   : > { %1458 = vst.msk [vmem:[#allocation2] sm:$0xf] %vm13255_vm9, %v1362_v14  ;;  %2459 = vrot.lane.b32.xlu1 %v8862_v4, %s9377_s16  ;;  %v8846_v4 = vrot.slane %v8804_v57, 9  ;;  %v2691_v57 = vsel %vm9451_vm2, %v2686_v49, %v2690_v18  ;;  %v8906_v49 = vld [vmem:[%s9440_s10 + $0x54] sm:$0xf] }
 0x110   : > { %2457 = vrot.lane.b32.xlu0 %v8861_v8, %s9377_s16  ;;  %v2164_v8 = vsel %vm9595_vm6, %v8845_v60, %v2163_v44  ;;  %v8949_v60 = vld [vmem:[%s9440_s10 + $0x40] sm:$0xf] }
 0x111   : > { %v1368_v21 = vpop.permute.xlu1 %1367 }
 0x112   : > { %1461 = vst.msk [vmem:[#allocation2 + $0xc] sm:$0xf] %vm13255_vm9, %v1368_v21  ;;  %v1366_v26 = vpop.permute.xlu0 %1365  ;;  %v2716_v21 = vshrl.u32 %v8901_v11, 16 }
 0x113   : > { %1460 = vst.msk [vmem:[#allocation2 + $0x8] sm:$0xf] %vm13255_vm9, %v1366_v26  ;;  %3016 = vrot.lane.b32.xlu1 %v2653_v17, %s9379_s21  ;;  %v2171_v17 = vsel %vm9595_vm6, %v8846_v4, %v2170_v45  ;;  %v2703_v26 = vshrl.u32 %v8900_v15, 16  ;;  %v2701_v45 = vsel %vm9451_vm2, %v2696_v42, %v2700_v43  ;;  %v3262_v4 = vrot.slane %v8949_v60, 5 }
 0x114   : > { %3014 = vrot.lane.b32.xlu0 %v2643_v22, %s9379_s21  ;;  %v2754_v60 = vshll.u32 %v8906_v49, 16 }
 0x115   : > { %v1372_v34 = vpop.permute.xlu1 %1371  ;;  %v3263_v32 = vsel %vm9595_vm6, %v8990_v20, %v3262_v4 }
 0x116   : > { %1463 = vst.msk [vmem:[#allocation2 + $0x14] sm:$0xf] %vm13255_vm9, %v1372_v34  ;;  %v1370_v39 = vpop.permute.xlu0 %1369  ;;  %v2718_v34 = vrot.slane %v2716_v21, 4  ;;  %v8809_v21 = vld [vmem:[%s9440_s10 + $0x44] sm:$0x1] }
 0x117   : > { %1462 = vst.msk [vmem:[#allocation2 + $0x10] sm:$0xf] %vm13255_vm9, %v1370_v39  ;;  %3020 = vrot.lane.b32.xlu1 %v2677_v30, %s9379_s21  ;;  %v8864_v30 = vld [vmem:[%s9440_s10 + $0x34] sm:$0xf]  ;;  %v2705_v39 = vrot.slane %v2703_v26, 4  ;;  %v2180_v28 = vrot.slane %v8809_v21, 5 }
 0x118   : > { %3018 = vrot.lane.b32.xlu0 %v2667_v35, %s9379_s21  ;;  %v2719_v44 = vor.u32 %v2718_v34, %v2714_v33  ;;  %v8904_v34 = vld [vmem:[%s9440_s10 + $0x4c] sm:$0xf] }
 0x119   : > { %v1376_v47 = vpop.permute.xlu1 %1375  ;;  %v2709_v50 = vor.u32 %v2708_v19, %v2705_v39 }
 0x11a   : > { %1465 = vst.msk [vmem:[#allocation2 + $0x1c] sm:$0xf] %vm13255_vm9, %v1376_v47  ;;  %v1374_v52 = vpop.permute.xlu0 %1373 }
 0x11b   : > { %1464 = vst.msk [vmem:[#allocation2 + $0x18] sm:$0xf] %vm13255_vm9, %v1374_v52  ;;  %3353 = vrot.lane.b32.xlu1 %v3245_v41, %s9380_s24  ;;  %v8866_v41 = vld [vmem:[%s9440_s10 + $0x40] sm:$0xf]  ;;  %v8946_v52 = vld [vmem:[%s9440_s10 + $0x34] sm:$0xf] }
 0x11c   : > { %3351 = vrot.lane.b32.xlu0 %v3242_v48, %s9380_s24  ;;  %v8865_v48 = vld [vmem:[%s9440_s10 + $0x3c] sm:$0xf]  ;;  %v3255_v56 = vrot.slane %v8946_v52, 5 }
 0x11d   : > { %v1380_v58 = vpop.permute.xlu1 %1379 }
 0x11e   : > { %1467 = vst.msk [vmem:[#allocation2 + $0x24] sm:$0xf] %vm13255_vm9, %v1380_v58  ;;  %v1378_v63 = vpop.permute.xlu0 %1377  ;;  %v2710_v58 = vrot.slane %v2709_v50, 4  ;;  %v3257_v2 = vrot.slane %v3255_v56, 4 }
 0x11f   : > { %1466 = vst.msk [vmem:[#allocation2 + $0x20] sm:$0xf] %vm13255_vm9, %v1378_v63  ;;  %3357 = vrot.lane.b32.xlu1 %v3252_v54, %s9380_s24  ;;  %v2720_v54 = vrot.slane %v2719_v44, 4  ;;  %v8945_v63 = vld [vmem:[%s9440_s10 + $0x30] sm:$0xe] }
 0x120   : > { %3355 = vrot.lane.b32.xlu0 %v3249_v59, %s9380_s24  ;;  %v8947_v59 = vld [vmem:[%s9440_s10 + $0x38] sm:$0x1]  ;;  %v2715_v6 = vsel %vm9451_vm2, %v2710_v58, %v2714_v33  ;;  %v8989_v7 = vrot.slane %v8945_v63, 9  ;;  %v8847_v33 = vrot.slane %v8807_v23, 9  ;;  %v8868_v63 = vld [vmem:[%s9440_s10 + $0x4c] sm:$0xf] }
 0x121   : > { %v1384_v51 = vpop.permute.xlu1 %1383  ;;  %v2725_v0 = vsel %vm9451_vm2, %v2720_v54, %v2724_v55  ;;  %v3258_v3 = vrot.slane %v8947_v59, 5  ;;  %v2751_v59 = vshrl.u32 %v8906_v49, 16 }
 0x122   : > { %1469 = vst.msk [vmem:[#allocation2 + $0x2c] sm:$0xf] %vm13255_vm9, %v1384_v51  ;;  %v1382_v14 = vpop.permute.xlu0 %1381  ;;  %v8950_v51 = vld [vmem:[%s9440_s10 + $0x44] sm:$0x1]  ;;  %v3256_v1 = vsel %vm9595_vm6, %v8989_v7, %v3255_v56 }
 0x123   : > { %1468 = vst.msk [vmem:[#allocation2 + $0x28] sm:$0xf] %vm13255_vm9, %v1382_v14  ;;  %2269 = vrot.lane.b32.xlu1 %v2167_v5, %s9376_s15  ;;  %v3259_v11 = vsel %vm9595_vm6, %v3257_v2, %v3258_v3  ;;  %v3264_v14 = vrot.slane %v3262_v4, 4  ;;  %v3265_v15 = vrot.slane %v8950_v51, 5  ;;  %v8908_v51 = vld [vmem:[%s9440_s10 + $0x5c] sm:$0x1] }
 0x124   : > { %2267 = vrot.lane.b32.xlu0 %v2164_v8, %s9376_s15  ;;  %v8808_v8 = vld [vmem:[%s9440_s10 + $0x40] sm:$0xf] }
 0x125   : > { %v1388_v22 = vpop.permute.xlu1 %1387  ;;  %v3266_v12 = vsel %vm9595_vm6, %v3264_v14, %v3265_v15 }
 0x126   : > { %1471 = vst.msk [vmem:[#allocation2 + $0x34] sm:$0xf] %vm13255_vm9, %v1388_v22  ;;  %v1386_v29 = vpop.permute.xlu0 %1385 }
 0x127   : > { %1470 = vst.msk [vmem:[#allocation2 + $0x30] sm:$0xf] %vm13255_vm9, %v1386_v29  ;;  %2273 = vrot.lane.b32.xlu1 %v2174_v16, %s9376_s15  ;;  %v2177_v16 = vrot.slane %v8808_v8, 5  ;;  %v8812_v29 = vld [vmem:[%s9440_s10 + $0x50] sm:$0x1]  ;;  %v2753_v8 = vrot.slane %v2751_v59, 4 }
 0x128   : > { %2271 = vrot.lane.b32.xlu0 %v2171_v17, %s9376_s15  ;;  %v8811_v17 = vld [vmem:[%s9440_s10 + $0x4c] sm:$0xf]  ;;  %v2187_v38 = vrot.slane %v8812_v29, 5 }
 0x129   : > { %v1392_v35 = vpop.permute.xlu1 %1391  ;;  %v2184_v25 = vrot.slane %v8811_v17, 5  ;;  %v2179_v26 = vrot.slane %v2177_v16, 4  ;;  %v2178_v43 = vsel %vm9595_vm6, %v8847_v33, %v2177_v16  ;;  %v2770_v17 = vshll.u32 %v8908_v51, 16  ;;  %v8955_v33 = vld [vmem:[%s9440_s10 + $0x58] sm:$0xf] }
 0x12a   : > { %1473 = vst.msk [vmem:[#allocation2 + $0x3c] sm:$0xf] %vm13255_vm9, %v1392_v35  ;;  %v1390_v40 = vpop.permute.xlu0 %1389 }
 0x12b   : > { %1472 = vst.msk [vmem:[#allocation2 + $0x38] sm:$0xf] %vm13255_vm9, %v1390_v40  ;;  %2463 = vrot.lane.b32.xlu1 %v8864_v30, %s9377_s16  ;;  %v8810_v30 = vld [vmem:[%s9440_s10 + $0x48] sm:$0xe]  ;;  %v2186_v37 = vrot.slane %v2184_v25, 4  ;;  %v2181_v19 = vsel %vm9595_vm6, %v2179_v26, %v2180_v28  ;;  %v2736_v40 = vshll.u32 %v8904_v34, 16 }
 0x12c   : > { %2461 = vrot.lane.b32.xlu0 %v8863_v36, %s9377_s16  ;;  %v8903_v36 = vld [vmem:[%s9440_s10 + $0x48] sm:$0xf]  ;;  %v8848_v39 = vrot.slane %v8810_v30, 9  ;;  %v2772_v26 = vrot.slane %v2770_v17, 5 }
 0x12d   : > { %v1396_v47 = vpop.permute.xlu1 %1395  ;;  %v2727_v44 = vshrl.u32 %v8903_v36, 16  ;;  %v2730_v24 = vshll.u32 %v8903_v36, 16  ;;  %v2188_v50 = vsel %vm9595_vm6, %v2186_v37, %v2187_v38 }
 0x12e   : > { %1475 = vst.msk [vmem:[#allocation2 + $0x44] sm:$0xf] %vm13255_vm9, %v1396_v47  ;;  %v1394_v53 = vpop.permute.xlu0 %1393  ;;  %v8907_v47 = vld [vmem:[%s9440_s10 + $0x58] sm:$0xf]  ;;  %v2185_v52 = vsel %vm9595_vm6, %v8848_v39, %v2184_v25  ;;  %v3276_v39 = vrot.slane %v8955_v33, 5 }
 0x12f   : > { %1474 = vst.msk [vmem:[#allocation2 + $0x40] sm:$0xf] %vm13255_vm9, %v1394_v53  ;;  %2467 = vrot.lane.b32.xlu1 %v8866_v41, %s9377_s16  ;;  %v2740_v41 = vshrl.u32 %v8904_v34, 16  ;;  %v2738_v53 = vrot.slane %v2736_v40, 5  ;;  %v2760_v54 = vshll.u32 %v8907_v47, 16  ;;  %v2764_v55 = vshrl.u32 %v8907_v47, 16 }
 0x130   : > { %2465 = vrot.lane.b32.xlu0 %v8865_v48, %s9377_s16  ;;  %v2732_v58 = vrot.slane %v2730_v24, 5  ;;  %v8954_v24 = vld [vmem:[%s9440_s10 + $0x54] sm:$0xe] }
 0x131   : > { %v1400_v46 = vpop.permute.xlu1 %1399  ;;  %v2762_v3 = vrot.slane %v2760_v54, 5  ;;  %v2766_v4 = vrot.slane %v2764_v55, 4  ;;  %v8992_v54 = vrot.slane %v8954_v24, 9  ;;  %v8815_v55 = vld [vmem:[%s9440_s10 + $0x5c] sm:$0x1] }
 0x132   : > { %1477 = vst.msk [vmem:[#allocation2 + $0x4c] sm:$0xf] %vm13255_vm9, %v1400_v46  ;;  %v1398_v61 = vpop.permute.xlu0 %1397  ;;  %v8905_v46 = vld [vmem:[%s9440_s10 + $0x50] sm:$0x1] }
 0x133   : > { %1476 = vst.msk [vmem:[#allocation2 + $0x48] sm:$0xf] %vm13255_vm9, %v1398_v61  ;;  %3024 = vrot.lane.b32.xlu1 %v2701_v45, %s9379_s21  ;;  %v2742_v45 = vrot.slane %v2740_v41, 4  ;;  %v2746_v2 = vshll.u32 %v8905_v46, 16  ;;  %v2767_v16 = vor.u32 %v2766_v4, %v2762_v3  ;;  %v8813_v46 = vld [vmem:[%s9440_s10 + $0x54] sm:$0xe] }
 0x134   : > { %3022 = vrot.lane.b32.xlu0 %v2691_v57, %s9379_s21  ;;  %v2729_v57 = vrot.slane %v2727_v44, 4  ;;  %v8910_v4 = vld [vmem:[%s9440_s10 + $0x64] sm:$0xf] }
 0x135   : > { %v1404_v5 = vpop.permute.xlu1 %1403  ;;  %v2748_v15 = vrot.slane %v2746_v2, 5  ;;  %v3277_v2 = vsel %vm9595_vm6, %v8992_v54, %v3276_v39 }
 0x136   : > { %1479 = vst.msk [vmem:[#allocation2 + $0x54] sm:$0xf] %vm13255_vm9, %v1404_v5  ;;  %v1402_v9 = vpop.permute.xlu0 %1401  ;;  %v2733_v7 = vor.u32 %v2732_v58, %v2729_v57 }
 0x137   : > { %1478 = vst.msk [vmem:[#allocation2 + $0x50] sm:$0xf] %vm13255_vm9, %v1402_v9  ;;  %3028 = vrot.lane.b32.xlu1 %v2725_v0, %s9379_s21  ;;  %v2743_v0 = vor.u32 %v2742_v45, %v2738_v53  ;;  %v2756_v9 = vrot.slane %v2754_v60, 5  ;;  %v2194_v60 = vrot.slane %v8815_v55, 5 }
 0x138   : > { %3026 = vrot.lane.b32.xlu0 %v2715_v6, %s9379_s21  ;;  %v8867_v6 = vld [vmem:[%s9440_s10 + $0x48] sm:$0xf]  ;;  %v2734_v20 = vrot.slane %v2733_v7, 4 }
 0x139   : > { %v1408_v18 = vpop.permute.xlu1 %1407  ;;  %v2744_v14 = vrot.slane %v2743_v0, 4  ;;  %v2757_v21 = vor.u32 %v2756_v9, %v2753_v8 }
 0x13a   : > { %1481 = vst.msk [vmem:[#allocation2 + $0x5c] sm:$0xf] %vm13255_vm9, %v1408_v18  ;;  %v1406_v22 = vpop.permute.xlu0 %1405  ;;  %v2739_v30 = vsel %vm9451_vm2, %v2734_v20, %v2738_v53  ;;  %v8912_v20 = vld [vmem:[%s9440_s10 + $0x6c] sm:$0xf] }
 0x13b   : > { %1480 = vst.msk [vmem:[#allocation2 + $0x58] sm:$0xf] %vm13255_vm9, %v1406_v22  ;;  %3361 = vrot.lane.b32.xlu1 %v3259_v11, %s9380_s24  ;;  %v8870_v11 = vld [vmem:[%s9440_s10 + $0x58] sm:$0xf]  ;;  %v8952_v22 = vld [vmem:[%s9440_s10 + $0x4c] sm:$0xf]  ;;  %v2749_v25 = vsel %vm9451_vm2, %v2744_v14, %v2748_v15 }
 0x13c   : > { %3359 = vrot.lane.b32.xlu0 %v3256_v1, %s9380_s24  ;;  %v8869_v1 = vld [vmem:[%s9440_s10 + $0x54] sm:$0xf]  ;;  %v3269_v28 = vrot.slane %v8952_v22, 5  ;;  %v2802_v33 = vshll.u32 %v8912_v20, 16 }
 0x13d   : > { %v1412_v31 = vpop.permute.xlu1 %1411 }
 0x13e   : > { %1483 = vst.msk [vmem:[#allocation2 + $0x64] sm:$0xf] %vm13255_vm9, %v1412_v31  ;;  %v1410_v35 = vpop.permute.xlu0 %1409  ;;  %v2758_v31 = vrot.slane %v2757_v21, 4  ;;  %v3271_v37 = vrot.slane %v3269_v28, 4 }
 0x13f   : > { %1482 = vst.msk [vmem:[#allocation2 + $0x60] sm:$0xf] %vm13255_vm9, %v1410_v35  ;;  %3365 = vrot.lane.b32.xlu1 %v3266_v12, %s9380_s24  ;;  %v2768_v12 = vrot.slane %v2767_v16, 4  ;;  %v8951_v35 = vld [vmem:[%s9440_s10 + $0x48] sm:$0xe] }
 0x140   : > { %3363 = vrot.lane.b32.xlu0 %v3263_v32, %s9380_s24  ;;  %v8953_v32 = vld [vmem:[%s9440_s10 + $0x50] sm:$0x1]  ;;  %v2763_v40 = vsel %vm9451_vm2, %v2758_v31, %v2762_v3  ;;  %v8991_v41 = vrot.slane %v8951_v35, 9  ;;  %v8849_v3 = vrot.slane %v8813_v46, 9  ;;  %v8872_v35 = vld [vmem:[%s9440_s10 + $0x64] sm:$0xf] }
 0x141   : > { %v1416_v42 = vpop.permute.xlu1 %1415  ;;  %v2773_v36 = vsel %vm9451_vm2, %v2768_v12, %v2772_v26  ;;  %v3272_v38 = vrot.slane %v8953_v32, 5  ;;  %v2799_v32 = vshrl.u32 %v8912_v20, 16 }
 0x142   : > { %1485 = vst.msk [vmem:[#allocation2 + $0x6c] sm:$0xf] %vm13255_vm9, %v1416_v42  ;;  %v1414_v48 = vpop.permute.xlu0 %1413  ;;  %v8956_v42 = vld [vmem:[%s9440_s10 + $0x5c] sm:$0x1]  ;;  %v3270_v45 = vsel %vm9595_vm6, %v8991_v41, %v3269_v28 }
 0x143   : > { %1484 = vst.msk [vmem:[#allocation2 + $0x68] sm:$0xf] %vm13255_vm9, %v1414_v48  ;;  %2277 = vrot.lane.b32.xlu1 %v2181_v19, %s9376_s15  ;;  %v3273_v47 = vsel %vm9595_vm6, %v3271_v37, %v3272_v38  ;;  %v3278_v48 = vrot.slane %v3276_v39, 4  ;;  %v3279_v49 = vrot.slane %v8956_v42, 5  ;;  %v8914_v42 = vld [vmem:[%s9440_s10 + $0x74] sm:$0x1] }
 0x144   : > { %2275 = vrot.lane.b32.xlu0 %v2178_v43, %s9376_s15  ;;  %v8814_v43 = vld [vmem:[%s9440_s10 + $0x58] sm:$0xf] }
 0x145   : > { %v1420_v56 = vpop.permute.xlu1 %1419  ;;  %v3280_v58 = vsel %vm9595_vm6, %v3278_v48, %v3279_v49 }
 0x146   : > { %1487 = vst.msk [vmem:[#allocation2 + $0x74] sm:$0xf] %vm13255_vm9, %v1420_v56  ;;  %v1418_v61 = vpop.permute.xlu0 %1417 }
 0x147   : > { %1486 = vst.msk [vmem:[#allocation2 + $0x70] sm:$0xf] %vm13255_vm9, %v1418_v61  ;;  %2281 = vrot.lane.b32.xlu1 %v2188_v50, %s9376_s15  ;;  %v2191_v50 = vrot.slane %v8814_v43, 5  ;;  %v8818_v61 = vld [vmem:[%s9440_s10 + $0x68] sm:$0x1]  ;;  %v2801_v43 = vrot.slane %v2799_v32, 4 }
 0x148   : > { %2279 = vrot.lane.b32.xlu0 %v2185_v52, %s9376_s15  ;;  %v8817_v52 = vld [vmem:[%s9440_s10 + $0x64] sm:$0xf]  ;;  %v2201_v51 = vrot.slane %v8818_v61, 5 }
 0x149   : > { %v1424_v5 = vpop.permute.xlu1 %1423  ;;  %v2198_v57 = vrot.slane %v8817_v52, 5  ;;  %v2193_v59 = vrot.slane %v2191_v50, 4  ;;  %v2192_v15 = vsel %vm9595_vm6, %v8849_v3, %v2191_v50  ;;  %v2818_v52 = vshll.u32 %v8914_v42, 16  ;;  %v8961_v3 = vld [vmem:[%s9440_s10 + $0x70] sm:$0xf] }
 0x14a   : > { %1489 = vst.msk [vmem:[#allocation2 + $0x7c] sm:$0xf] %vm13255_vm9, %v1424_v5  ;;  %v1422_v10 = vpop.permute.xlu0 %1421 }
 0x14b   : > { %1488 = vst.msk [vmem:[#allocation2 + $0x78] sm:$0xf] %vm13255_vm9, %v1422_v10  ;;  %2471 = vrot.lane.b32.xlu1 %v8868_v63, %s9377_s16  ;;  %v8816_v63 = vld [vmem:[%s9440_s10 + $0x60] sm:$0xe]  ;;  %v2200_v7 = vrot.slane %v2198_v57, 4  ;;  %v2195_v9 = vsel %vm9595_vm6, %v2193_v59, %v2194_v60  ;;  %v2784_v10 = vshll.u32 %v8910_v4, 16 }
 0x14c   : > { %2469 = vrot.lane.b32.xlu0 %v8867_v6, %s9377_s16  ;;  %v8909_v6 = vld [vmem:[%s9440_s10 + $0x60] sm:$0xf]  ;;  %v8850_v8 = vrot.slane %v8816_v63, 9  ;;  %v2820_v59 = vrot.slane %v2818_v52, 5  ;;  %vm4174_vm9 = vsmask.f32 7938 }
 0x14d   : > { %v1925_v18 = vpop.permute.xlu1 %1924  ;;  %v2775_v16 = vshrl.u32 %v8909_v6, 16  ;;  %v2778_v17 = vshll.u32 %v8909_v6, 16  ;;  %v2202_v21 = vsel %vm9595_vm6, %v2200_v7, %v2201_v51  ;;  %vm10736_vm8 = vmand %vm4116_vm1, %vm4174_vm9 }
 0x14e   : > { %2020 = vst.msk [vmem:[#allocation2 + $0x4] sm:$0xf] %vm2018_vm11, %v1925_v18  ;;  %v1923_v23 = vpop.permute.xlu0 %1922  ;;  %v8913_v18 = vld [vmem:[%s9440_s10 + $0x70] sm:$0xf]  ;;  %v2199_v22 = vsel %vm9595_vm6, %v8850_v8, %v2198_v57  ;;  %v3290_v8 = vrot.slane %v8961_v3, 5 }
 0x14f   : > { %2019 = vst.msk [vmem:[#allocation2] sm:$0xf] %vm2018_vm11, %v1923_v23  ;;  %2475 = vrot.lane.b32.xlu1 %v8870_v11, %s9377_s16  ;;  %v2788_v11 = vshrl.u32 %v8910_v4, 16  ;;  %v2786_v23 = vrot.slane %v2784_v10, 5  ;;  %v2808_v12 = vshll.u32 %v8913_v18, 16  ;;  %v2812_v26 = vshrl.u32 %v8913_v18, 16 }
 0x150   : > { %2473 = vrot.lane.b32.xlu0 %v8869_v1, %s9377_s16  ;;  %v2780_v31 = vrot.slane %v2778_v17, 5  ;;  %v8960_v17 = vld [vmem:[%s9440_s10 + $0x6c] sm:$0xe] }
 0x151   : > { %v1929_v29 = vpop.permute.xlu1 %1928  ;;  %v2810_v38 = vrot.slane %v2808_v12, 5  ;;  %v2814_v39 = vrot.slane %v2812_v26, 4  ;;  %v8994_v12 = vrot.slane %v8960_v17, 9  ;;  %v8821_v26 = vld [vmem:[%s9440_s10 + $0x74] sm:$0x1] }
 0x152   : > { %2022 = vst.msk [vmem:[#allocation2 + $0xc] sm:$0xf] %vm2018_vm11, %v1929_v29  ;;  %v1927_v34 = vpop.permute.xlu0 %1926  ;;  %v8911_v29 = vld [vmem:[%s9440_s10 + $0x68] sm:$0x1] }
 0x153   : > { %2021 = vst.msk [vmem:[#allocation2 + $0x8] sm:$0xf] %vm2018_vm11, %v1927_v34  ;;  %3032 = vrot.lane.b32.xlu1 %v2749_v25, %s9379_s21  ;;  %v2790_v25 = vrot.slane %v2788_v11, 4  ;;  %v2794_v37 = vshll.u32 %v8911_v29, 16  ;;  %v2815_v50 = vor.u32 %v2814_v39, %v2810_v38  ;;  %v8819_v29 = vld [vmem:[%s9440_s10 + $0x6c] sm:$0xe] }
 0x154   : > { %3030 = vrot.lane.b32.xlu0 %v2739_v30, %s9379_s21  ;;  %v2777_v30 = vrot.slane %v2775_v16, 4 }
 0x155   : > { %v1933_v19 = vpop.permute.xlu1 %1932  ;;  %v2796_v49 = vrot.slane %v2794_v37, 5  ;;  %v8851_v37 = vrot.slane %v8819_v29, 9  ;;  %v8778_v29 = vld [vmem:[%s9440_s10 + $0x88] sm:$0xf] }
 0x156   : > { %2024 = vst.msk [vmem:[#allocation2 + $0x14] sm:$0xf] %vm2018_vm11, %v1933_v19  ;;  %v1931_v44 = vpop.permute.xlu0 %1930  ;;  %v2781_v41 = vor.u32 %v2780_v31, %v2777_v30 }
 0x157   : > { %2023 = vst.msk [vmem:[#allocation2 + $0x10] sm:$0xf] %vm2018_vm11, %v1931_v44  ;;  %3036 = vrot.lane.b32.xlu1 %v2773_v36, %s9379_s21  ;;  %v2791_v36 = vor.u32 %v2790_v25, %v2786_v23  ;;  %v2804_v44 = vrot.slane %v2802_v33, 5  ;;  %v2208_v33 = vrot.slane %v8821_v26, 5  ;;  %v8877_v26 = vld [vmem:[%s9440_s10 + $0x84] sm:$0xf] }
 0x158   : > { %3034 = vrot.lane.b32.xlu0 %v2763_v40, %s9379_s21  ;;  %v8871_v40 = vld [vmem:[%s9440_s10 + $0x60] sm:$0xf]  ;;  %v2782_v54 = vrot.slane %v2781_v41, 4 }
 0x159   : > { %v1937_v53 = vpop.permute.xlu1 %1936  ;;  %v2792_v48 = vrot.slane %v2791_v36, 4  ;;  %v2805_v55 = vor.u32 %v2804_v44, %v2801_v43  ;;  %v3291_v36 = vsel %vm9595_vm6, %v8994_v12, %v3290_v8 }
 0x15a   : > { %2026 = vst.msk [vmem:[#allocation2 + $0x1c] sm:$0xf] %vm2018_vm11, %v1937_v53  ;;  %v1935_v56 = vpop.permute.xlu0 %1934  ;;  %v2787_v63 = vsel %vm9451_vm2, %v2782_v54, %v2786_v23 }
 0x15b   : > { %2025 = vst.msk [vmem:[#allocation2 + $0x18] sm:$0xf] %vm2018_vm11, %v1935_v56  ;;  %3369 = vrot.lane.b32.xlu1 %v3273_v47, %s9380_s24  ;;  %v8874_v47 = vld [vmem:[%s9440_s10 + $0x70] sm:$0xf]  ;;  %v8958_v56 = vld [vmem:[%s9440_s10 + $0x64] sm:$0xf]  ;;  %v2797_v57 = vsel %vm9451_vm2, %v2792_v48, %v2796_v49 }
 0x15c   : > { %3367 = vrot.lane.b32.xlu0 %v3270_v45, %s9380_s24  ;;  %v8873_v45 = vld [vmem:[%s9440_s10 + $0x6c] sm:$0xf]  ;;  %v3283_v60 = vrot.slane %v8958_v56, 5  ;;  %v8918_v48 = vld [vmem:[%s9440_s10 + $0x84] sm:$0xf] }
 0x15d   : > { %v1941_v0 = vpop.permute.xlu1 %1940 }
 0x15e   : > { %2028 = vst.msk [vmem:[#allocation2 + $0x24] sm:$0xf] %vm2018_vm11, %v1941_v0  ;;  %v1939_v5 = vpop.permute.xlu0 %1938  ;;  %v2806_v0 = vrot.slane %v2805_v55, 4  ;;  %v3285_v7 = vrot.slane %v3283_v60, 4 }
 0x15f   : > { %2027 = vst.msk [vmem:[#allocation2 + $0x20] sm:$0xf] %vm2018_vm11, %v1939_v5  ;;  %3373 = vrot.lane.b32.xlu1 %v3280_v58, %s9380_s24  ;;  %v2816_v58 = vrot.slane %v2815_v50, 4  ;;  %v8957_v5 = vld [vmem:[%s9440_s10 + $0x60] sm:$0xe] }
 0x160   : > { %3371 = vrot.lane.b32.xlu0 %v3277_v2, %s9380_s24  ;;  %v8959_v2 = vld [vmem:[%s9440_s10 + $0x68] sm:$0x1]  ;;  %v2811_v10 = vsel %vm9451_vm2, %v2806_v0, %v2810_v38  ;;  %v8993_v11 = vrot.slane %v8957_v5, 9  ;;  %v8916_v38 = vld [vmem:[%s9440_s10 + $0x7c] sm:$0xf] }
 0x161   : > { %v1945_v14 = vpop.permute.xlu1 %1944  ;;  %v2821_v6 = vsel %vm9451_vm2, %v2816_v58, %v2820_v59  ;;  %v3286_v51 = vrot.slane %v8959_v2, 5  ;;  %v2832_v44 = vshll.u32 %v8916_v38, 16  ;;  %v8917_v0 = vld [vmem:[%s9440_s10 + $0x80] sm:$0x1] }
 0x162   : > { %2030 = vst.msk [vmem:[#allocation2 + $0x2c] sm:$0xf] %vm2018_vm11, %v1945_v14  ;;  %v1943_v1 = vpop.permute.xlu0 %1942  ;;  %v8962_v14 = vld [vmem:[%s9440_s10 + $0x74] sm:$0x1]  ;;  %v3284_v25 = vsel %vm9595_vm6, %v8993_v11, %v3283_v60  ;;  %v8920_v11 = vld [vmem:[%s9440_s10 + $0x8c] sm:$0x1] }
 0x163   : > { %2029 = vst.msk [vmem:[#allocation2 + $0x28] sm:$0xf] %vm2018_vm11, %v1943_v1  ;;  %2285 = vrot.lane.b32.xlu1 %v2195_v9, %s9376_s15  ;;  %v3287_v18 = vsel %vm9595_vm6, %v3285_v7, %v3286_v51  ;;  %v3292_v1 = vrot.slane %v3290_v8, 4  ;;  %v3293_v20 = vrot.slane %v8962_v14, 5  ;;  %v10423_v59 = vrot.slane %v2832_v44, 5 }
 0x164   : > { %2283 = vrot.lane.b32.xlu0 %v2192_v15, %s9376_s15  ;;  %v8820_v15 = vld [vmem:[%s9440_s10 + $0x70] sm:$0xf]  ;;  %v8876_v8 = vld [vmem:[%s9440_s10 + $0x7c] sm:$0xf] }
 0x165   : > { %v1949_v28 = vpop.permute.xlu1 %1948  ;;  %v3294_v31 = vsel %vm9595_vm6, %v3292_v1, %v3293_v20  ;;  %v2866_v1 = vshll.u32 %v8920_v11, 16 }
 0x166   : > { %2032 = vst.msk [vmem:[#allocation2 + $0x34] sm:$0xf] %vm2018_vm11, %v1949_v28  ;;  %v1947_v34 = vpop.permute.xlu0 %1946 }
 0x167   : > { %2031 = vst.msk [vmem:[#allocation2 + $0x30] sm:$0xf] %vm2018_vm11, %v1947_v34  ;;  %2289 = vrot.lane.b32.xlu1 %v2202_v21, %s9376_s15  ;;  %v2205_v21 = vrot.slane %v8820_v15, 5  ;;  %v8824_v34 = vld [vmem:[%s9440_s10 + $0x80] sm:$0x1] }
 0x168   : > { %2287 = vrot.lane.b32.xlu0 %v2199_v22, %s9376_s15  ;;  %v8823_v22 = vld [vmem:[%s9440_s10 + $0x7c] sm:$0xf]  ;;  %v2215_v42 = vrot.slane %v8824_v34, 5  ;;  %v8875_v15 = vld [vmem:[%s9440_s10 + $0x78] sm:$0xf]  ;;  %v2868_v34 = vrot.slane %v2866_v1, 5 }
 0x169   : > { %v1953_v19 = vpop.permute.xlu1 %1952  ;;  %v2212_v30 = vrot.slane %v8823_v22, 5  ;;  %v2207_v32 = vrot.slane %v2205_v21, 4  ;;  %v2206_v50 = vsel %vm9595_vm6, %v8851_v37, %v2205_v21  ;;  %v10443_v21 = vld [vmem:[%s9440_s10 + $0x7c] sm:$0xf]  ;;  %v8878_v22 = vld [vmem:[%s9440_s10 + $0x88] sm:$0xf] }
 0x16a   : > { %2034 = vst.msk [vmem:[#allocation2 + $0x3c] sm:$0xf] %vm2018_vm11, %v1953_v19  ;;  %v1951_v24 = vpop.permute.xlu0 %1950  ;;  %v8822_v19 = vld [vmem:[%s9440_s10 + $0x78] sm:$0xe] }
 0x16b   : > { %2033 = vst.msk [vmem:[#allocation2 + $0x38] sm:$0xf] %vm2018_vm11, %v1951_v24  ;;  %2479 = vrot.lane.b32.xlu1 %v8872_v35, %s9377_s16  ;;  %v2214_v41 = vrot.slane %v2212_v30, 4  ;;  %v2209_v43 = vsel %vm9595_vm6, %v2207_v32, %v2208_v33  ;;  %v2836_v24 = vshrl.u32 %v8916_v38, 16  ;;  %v8852_v52 = vrot.slane %v8822_v19, 9 }
 0x16c   : > { %2477 = vrot.lane.b32.xlu0 %v8871_v40, %s9377_s16  ;;  %v8915_v40 = vld [vmem:[%s9440_s10 + $0x78] sm:$0xf]  ;;  %v8777_v32 = vld [vmem:[%s9440_s10 + $0x84] sm:$0xf]  ;;  %v1788_v19 = vshll.u32 %v8778_v29, 16 }
 0x16d   : > { %v1957_v53 = vpop.permute.xlu1 %1956  ;;  %v2216_v58 = vsel %vm9595_vm6, %v2214_v41, %v2215_v42  ;;  %v2838_v60 = vrot.slane %v2836_v24, 4  ;;  %v8963_v38 = vld [vmem:[%s9440_s10 + $0x78] sm:$0xe]  ;;  %v4757_v41 = vld [vmem:[#allocation3 + $0x4] sm:$0xf]  ;;  %v1779_v44 = vshrl.u32 %v8777_v32, 16 }
 0x16e   : > { %2036 = vst.msk [vmem:[#allocation2 + $0x44] sm:$0xf] %vm2018_vm11, %v1957_v53  ;;  %v1955_v46 = vpop.permute.xlu0 %1954  ;;  %v2823_v53 = vshrl.u32 %v8915_v40, 16  ;;  %v1782_v24 = vshll.u32 %v8777_v32, 16 }
 0x16f   : > { %2035 = vst.msk [vmem:[#allocation2 + $0x40] sm:$0xf] %vm2018_vm11, %v1955_v46  ;;  %2483 = vrot.lane.b32.xlu1 %v8874_v47, %s9377_s16  ;;  %v8919_v47 = vld [vmem:[%s9440_s10 + $0x88] sm:$0xf]  ;;  %v2847_v46 = vshrl.u32 %v8918_v48, 16 }
 0x170   : > { %2481 = vrot.lane.b32.xlu0 %v8873_v45, %s9377_s16  ;;  %v2826_v45 = vshll.u32 %v8915_v40, 16  ;;  %v2856_v55 = vshll.u32 %v8919_v47, 16  ;;  %v2860_v56 = vshrl.u32 %v8919_v47, 16  ;;  %v2825_v2 = vrot.slane %v2823_v53, 4  ;;  %v8781_v47 = vld [vmem:[%s9440_s10 + $0x94] sm:$0xf] }
 0x171   : > { %v1961_v61 = vpop.permute.xlu1 %1960  ;;  %v2849_v7 = vrot.slane %v2847_v46, 4  ;;  %v1792_v40 = vshrl.u32 %v8778_v29, 16  ;;  %v8780_v53 = vld [vmem:[%s9440_s10 + $0x90] sm:$0xf] }
 0x172   : > { %2038 = vst.msk [vmem:[#allocation2 + $0x4c] sm:$0xf] %vm2018_vm11, %v1961_v61  ;;  %v1959_v4 = vpop.permute.xlu0 %1958  ;;  %v2828_v3 = vrot.slane %v2826_v45, 5  ;;  %v10431_v5 = vrot.slane %v2856_v55, 5  ;;  %v8995_v55 = vrot.slane %v8963_v38, 9 }
 0x173   : > { %2037 = vst.msk [vmem:[#allocation2 + $0x48] sm:$0xf] %vm2018_vm11, %v1959_v4  ;;  %3040 = vrot.lane.b32.xlu1 %v2797_v57, %s9379_s21  ;;  %v2850_v57 = vshll.u32 %v8918_v48, 16  ;;  %v4756_v48 = vld [vmem:[#allocation3] sm:$0xf] }
 0x174   : > { %3038 = vrot.lane.b32.xlu0 %v2787_v63, %s9379_s21  ;;  %v2213_v63 = vsel %vm9595_vm6, %v8852_v52, %v2212_v30 }
 0x175   : > { %v2262_v9 = vpop.permute.xlu1 %2261  ;;  %v2852_v51 = vrot.slane %v2850_v57, 5  ;;  %v8966_v57 = vld [vmem:[%s9440_s10 + $0x84] sm:$0xe] }
 0x176   : > { %2357 = vst.msk [vmem:[#allocation2 + $0x4] sm:$0xf] %vm2355_vm12, %v2262_v9  ;;  %v2260_v16 = vpop.permute.xlu0 %2259  ;;  %v2839_v9 = vor.u32 %v2838_v60, %v10423_v59  ;;  %v1794_v60 = vrot.slane %v1792_v40, 4 }
 0x177   : > { %2356 = vst.msk [vmem:[#allocation2] sm:$0xf] %vm2355_vm12, %v2260_v16  ;;  %3044 = vrot.lane.b32.xlu1 %v2821_v6, %s9379_s21  ;;  %v2862_v6 = vrot.slane %v2860_v56, 4  ;;  %v2829_v16 = vor.u32 %v2828_v3, %v2825_v2  ;;  %v2853_v20 = vor.u32 %v2852_v51, %v2849_v7  ;;  %v8968_v56 = vld [vmem:[%s9440_s10 + $0x8c] sm:$0x1]  ;;  %v1781_v3 = vrot.slane %v1779_v44, 4 }
 0x178   : > { %3042 = vrot.lane.b32.xlu0 %v2811_v10, %s9379_s21  ;;  %v2842_v10 = vshll.u32 %v8917_v0, 16  ;;  %v1806_v7 = vshll.u32 %v8780_v53, 16  ;;  %v3307_v11 = vrot.slane %v8968_v56, 5 }
 0x179   : > { %v2266_v23 = vpop.permute.xlu1 %2265 }
 0x17a   : > { %2359 = vst.msk [vmem:[#allocation2 + $0xc] sm:$0xf] %vm2355_vm12, %v2266_v23  ;;  %v2264_v28 = vpop.permute.xlu0 %2263  ;;  %v2840_v23 = vrot.slane %v2839_v9, 4 }
 0x17b   : > { %2358 = vst.msk [vmem:[#allocation2 + $0x8] sm:$0xf] %vm2355_vm12, %v2264_v28  ;;  %3377 = vrot.lane.b32.xlu1 %v3287_v18, %s9380_s24  ;;  %v2863_v18 = vor.u32 %v2862_v6, %v10431_v5  ;;  %v2830_v28 = vrot.slane %v2829_v16, 4  ;;  %v1803_v6 = vshrl.u32 %v8780_v53, 16 }
 0x17c   : > { %3375 = vrot.lane.b32.xlu0 %v3284_v25, %s9380_s24  ;;  %v2844_v25 = vrot.slane %v2842_v10, 5 }
 0x17d   : > { %v2456_v35 = vpop.permute.xlu1 %2455  ;;  %v2864_v33 = vrot.slane %v2863_v18, 4 }
 0x17e   : > { %2551 = vst.msk [vmem:[#allocation2 + $0x4] sm:$0xf] %vm2549_vm13, %v2456_v35  ;;  %v2454_v39 = vpop.permute.xlu0 %2453  ;;  %v2854_v35 = vrot.slane %v2853_v20, 4  ;;  %v2845_v37 = vsel %vm9451_vm2, %v2840_v23, %v2844_v25  ;;  %v8782_v23 = vld [vmem:[%s9440_s10 + $0x98] sm:$0x1]  ;;  %v1805_v25 = vrot.slane %v1803_v6, 4 }
 0x17f   : > { %2550 = vst.msk [vmem:[#allocation2] sm:$0xf] %vm2549_vm13, %v2454_v39  ;;  %3381 = vrot.lane.b32.xlu1 %v3294_v31, %s9380_s24  ;;  %v3297_v31 = vrot.slane %v10443_v21, 5  ;;  %v10460_v39 = vld [vmem:[%s9440_s10 + $0x88] sm:$0xf]  ;;  %v2869_v45 = vsel %vm9451_vm2, %v2864_v33, %v2868_v34  ;;  %v1822_v32 = vshll.u32 %v8782_v23, 16 }
 0x180   : > { %3379 = vrot.lane.b32.xlu0 %v3291_v36, %s9380_s24  ;;  %v8965_v36 = vld [vmem:[%s9440_s10 + $0x80] sm:$0x1]  ;;  %v3304_v46 = vrot.slane %v10460_v39, 5  ;;  %v8826_v33 = vld [vmem:[%s9440_s10 + $0x88] sm:$0xf] }
 0x181   : > { %v2460_v49 = vpop.permute.xlu1 %2459  ;;  %v3300_v52 = vrot.slane %v8965_v36, 5  ;;  %v3298_v20 = vsel %vm9595_vm6, %v8995_v55, %v3297_v31  ;;  %v2219_v39 = vrot.slane %v8826_v33, 5 }
 0x182   : > { %2553 = vst.msk [vmem:[#allocation2 + $0xc] sm:$0xf] %vm2549_vm13, %v2460_v49  ;;  %v2458_v54 = vpop.permute.xlu0 %2457  ;;  %v3306_v10 = vrot.slane %v3304_v46, 4 }
 0x183   : > { %2552 = vst.msk [vmem:[#allocation2 + $0x8] sm:$0xf] %vm2549_vm13, %v2458_v54  ;;  %2293 = vrot.lane.b32.xlu1 %v2209_v43, %s9376_s15  ;;  %v2835_v43 = vsel %vm9451_vm2, %v2830_v28, %v10423_v59  ;;  %v2859_v54 = vsel %vm9451_vm2, %v2854_v35, %v10431_v5  ;;  %v10482_v59 = vrot.slane %v1788_v19, 5 }
 0x184   : > { %2291 = vrot.lane.b32.xlu0 %v2206_v50, %s9376_s15  ;;  %v3299_v50 = vrot.slane %v3297_v31, 4  ;;  %v3308_v29 = vsel %vm9595_vm6, %v3306_v10, %v3307_v11 }
 0x185   : > { %v3017_v61 = vpop.permute.xlu1 %3016 }
 0x186   : > { %3112 = vst.msk [vmem:[#allocation2 + $0x4] sm:$0xf] %vm3110_vm14, %v3017_v61  ;;  %v3015_v4 = vpop.permute.xlu0 %3014  ;;  %v1812_v61 = vshll.u32 %v8781_v47, 16 }
 0x187   : > { %3111 = vst.msk [vmem:[#allocation2] sm:$0xf] %vm3110_vm14, %v3015_v4  ;;  %2297 = vrot.lane.b32.xlu1 %v2216_v58, %s9376_s15  ;;  %v8779_v58 = vld [vmem:[%s9440_s10 + $0x8c] sm:$0x1]  ;;  %v1784_v4 = vrot.slane %v1782_v24, 5 }
 0x188   : > { %2295 = vrot.lane.b32.xlu0 %v2213_v63, %s9376_s15  ;;  %v1816_v63 = vshrl.u32 %v8781_v47, 16  ;;  %v1798_v16 = vshll.u32 %v8779_v58, 16  ;;  %v8921_v58 = vld [vmem:[%s9440_s10 + $0x90] sm:$0xf] }
 0x189   : > { %v3021_v14 = vpop.permute.xlu1 %3020  ;;  %v2871_v6 = vshrl.u32 %v8921_v58, 16 }
 0x18a   : > { %3114 = vst.msk [vmem:[#allocation2 + $0xc] sm:$0xf] %vm3110_vm14, %v3021_v14  ;;  %v3019_v17 = vpop.permute.xlu0 %3018  ;;  %v8996_v14 = vrot.slane %v8966_v57, 9  ;;  %v1818_v18 = vrot.slane %v1816_v63, 4  ;;  %v8922_v57 = vld [vmem:[%s9440_s10 + $0x94] sm:$0xf] }
 0x18b   : > { %3113 = vst.msk [vmem:[#allocation2 + $0x8] sm:$0xf] %vm3110_vm14, %v3019_v17  ;;  %2487 = vrot.lane.b32.xlu1 %v8876_v8, %s9377_s16  ;;  %v3301_v8 = vsel %vm9595_vm6, %v3299_v50, %v3300_v52  ;;  %v10493_v17 = vrot.slane %v1812_v61, 5  ;;  %v2221_v50 = vrot.slane %v2219_v39, 4  ;;  %v8925_v61 = vld [vmem:[%s9440_s10 + $0xa0] sm:$0xf] }
 0x18c   : > { %2485 = vrot.lane.b32.xlu0 %v8875_v15, %s9377_s16  ;;  %v1795_v15 = vor.u32 %v1794_v60, %v10482_v59  ;;  %v3305_v35 = vsel %vm9595_vm6, %v8996_v14, %v3304_v46  ;;  %v8828_v60 = vld [vmem:[%s9440_s10 + $0x90] sm:$0xe]  ;;  %v2904_v10 = vshll.u32 %v8925_v61, 16  ;;  %v2908_v11 = vshrl.u32 %v8925_v61, 16 }
 0x18d   : > { %v3354_v12 = vpop.permute.xlu1 %3353  ;;  %v1819_v31 = vor.u32 %v1818_v18, %v10493_v17 }
 0x18e   : > { %3449 = vst.msk [vmem:[#allocation2 + $0x4] sm:$0xf] %vm3447_vm15, %v3354_v12  ;;  %v3352_v30 = vpop.permute.xlu0 %3351  ;;  %v1808_v12 = vrot.slane %v1806_v7, 5  ;;  %v1796_v21 = vrot.slane %v1795_v15, 4  ;;  %v2874_v7 = vshll.u32 %v8921_v58, 16 }
 0x18f   : > { %3448 = vst.msk [vmem:[#allocation2] sm:$0xf] %vm3447_vm15, %v3352_v30  ;;  %2491 = vrot.lane.b32.xlu1 %v8878_v22, %s9377_s16  ;;  %v1785_v22 = vor.u32 %v1784_v4, %v1781_v3  ;;  %v1800_v30 = vrot.slane %v1798_v16, 5  ;;  %v1820_v40 = vrot.slane %v1819_v31, 4  ;;  %v2880_v3 = vshll.u32 %v8922_v57, 16 }
 0x190   : > { %2489 = vrot.lane.b32.xlu0 %v8877_v26, %s9377_s16  ;;  %v2884_v4 = vshrl.u32 %v8922_v57, 16  ;;  %v8969_v58 = vld [vmem:[%s9440_s10 + $0x90] sm:$0xe] }
 0x191   : > { %v3358_v42 = vpop.permute.xlu1 %3357  ;;  %v1786_v36 = vrot.slane %v1785_v22, 4  ;;  %v1801_v19 = vsel %vm9451_vm2, %v1796_v21, %v1800_v30  ;;  %v10553_v18 = vrot.slane %v2880_v3, 5  ;;  %v2876_v22 = vrot.slane %v2874_v7, 5  ;;  %v8926_v21 = vld [vmem:[%s9440_s10 + $0xa4] sm:$0x1] }
 0x192   : > { %3451 = vst.msk [vmem:[#allocation2 + $0xc] sm:$0xf] %vm3447_vm15, %v3358_v42  ;;  %v3356_v49 = vpop.permute.xlu0 %3355  ;;  %v8827_v42 = vld [vmem:[%s9440_s10 + $0x8c] sm:$0x1] }
 0x193   : > { %3450 = vst.msk [vmem:[#allocation2 + $0x8] sm:$0xf] %vm3447_vm15, %v3356_v49  ;;  %3048 = vrot.lane.b32.xlu1 %v2845_v37, %s9379_s21  ;;  %v1809_v37 = vor.u32 %v1808_v12, %v1805_v25  ;;  %v1791_v24 = vsel %vm9451_vm2, %v1786_v36, %v10482_v59  ;;  %v8825_v49 = vld [vmem:[%s9440_s10 + $0x84] sm:$0xe]  ;;  %v2222_v52 = vrot.slane %v8827_v42, 5 }
 0x194   : > { %3046 = vrot.lane.b32.xlu0 %v2835_v43, %s9379_s21  ;;  %v8829_v43 = vld [vmem:[%s9440_s10 + $0x94] sm:$0xf]  ;;  %v8853_v46 = vrot.slane %v8825_v49, 9  ;;  %v8923_v12 = vld [vmem:[%s9440_s10 + $0x98] sm:$0x1] }
 0x195   : > { %v3481_v0 = vld [vmem:[#allocation2 + $0x4] sm:$0xf]  ;;  %v2270_v2 = vpop.permute.xlu1 %2269  ;;  %v1810_v47 = vrot.slane %v1809_v37, 4  ;;  %v2226_v53 = vrot.slane %v8829_v43, 5  ;;  %v2223_v63 = vsel %vm9595_vm6, %v2221_v50, %v2222_v52  ;;  %v8879_v37 = vld [vmem:[%s9440_s10 + $0x90] sm:$0xf] }
 0x196   : > { %4789 = vst.msk [vmem:[#allocation2 + $0x4] sm:$0xf] %vm359_vm3, %v4757_v41  ;;  %v3480_v5 = vld [vmem:[#allocation2] sm:$0xf]  ;;  %v2268_v51 = vpop.permute.xlu0 %2267  ;;  %v1824_v41 = vrot.slane %v1822_v32, 5 }
 0x197   : > { %2361 = vst.msk [vmem:[#allocation2 + $0x14] sm:$0xf] %vm2355_vm12, %v2270_v2  ;;  %2360 = vst.msk [vmem:[#allocation2 + $0x10] sm:$0xf] %vm2355_vm12, %v2268_v51  ;;  %3052 = vrot.lane.b32.xlu1 %v2869_v45, %s9379_s21  ;;  %v9003_v9 = vcombine.low %v3480_v5, %v3481_v0  ;;  %v1815_v56 = vsel %vm9451_vm2, %v1810_v47, %v10493_v17  ;;  %v2228_v0 = vrot.slane %v2226_v53, 4 }
 0x198   : > { %4788 = vst.msk [vmem:[#allocation2] sm:$0xf] %vm359_vm3, %v4756_v48  ;;  %3050 = vrot.lane.b32.xlu0 %v2859_v54, %s9379_s21  ;;  %v1825_v45 = vsel %vm9451_vm2, %v1820_v40, %v1824_v41  ;;  %v8830_v54 = vld [vmem:[%s9440_s10 + $0x98] sm:$0x1]  ;;  %v8924_v5 = vld [vmem:[%s9440_s10 + $0x9c] sm:$0xf] }
 0x199   : > { %9233 = vmatprep.mubr.msk.bf16.mxu0 %vm3612_vm0, %v9003_v9  ;;  %v2274_v1 = vpop.permute.xlu1 %2273  ;;  %v2229_v2 = vrot.slane %v8830_v54, 5  ;;  %v8854_v9 = vrot.slane %v8828_v60, 9  ;;  %v2895_v16 = vshrl.u32 %v8924_v5, 16  ;;  %v2898_v17 = vshll.u32 %v8924_v5, 16  ;;  %v8880_v32 = vld [vmem:[%s9440_s10 + $0x94] sm:$0xf] }
 0x19a   : > { %2363 = vst.msk [vmem:[#allocation2 + $0x1c] sm:$0xf] %vm2355_vm12, %v2274_v1  ;;  %v2272_v26 = vpop.permute.xlu0 %2271  ;;  %v9326_v28 = vld [vmem:[#allocation2 + $0x8] sm:$0xff]   ;;  %v2886_v1 = vrot.slane %v2884_v4, 4  ;;  %v8882_v40 = vld [vmem:[%s9440_s10 + $0xa0] sm:$0xf] }
 0x19b   : > { %2362 = vst.msk [vmem:[#allocation2 + $0x18] sm:$0xf] %vm2355_vm12, %v2272_v26  ;;  %3385 = vrot.lane.b32.xlu1 %v3301_v8, %s9380_s24  ;;  %9234 = vmatmul.mubr.msk.bf16.vlgmr.msra.gmra.mxu0 %vm3612_vm0, %v9326_v28  ;;  %v2220_v8 = vsel %vm9595_vm6, %v8853_v46, %v2219_v39  ;;  %v2230_v15 = vsel %vm9595_vm6, %v2228_v0, %v2229_v2  ;;  %v10558_v26 = vrot.slane %v2904_v10, 5  ;;  %v2910_v28 = vrot.slane %v2908_v11, 4  ;;  %v10574_v42 = vld [vmem:[%s9440_s10 + $0x94] sm:$0xf] }
 0x19c   : > { %3383 = vrot.lane.b32.xlu0 %v3298_v20, %s9380_s24  ;;  %v2873_v20 = vrot.slane %v2871_v6, 4  ;;  %v2227_v25 = vsel %vm9595_vm6, %v8854_v9, %v2226_v53  ;;  %v2897_v30 = vrot.slane %v2895_v16, 4  ;;  %v2900_v31 = vrot.slane %v2898_v17, 5  ;;  %v8881_v43 = vld [vmem:[%s9440_s10 + $0x9c] sm:$0xf] }
 0x19d   : > { %v2464_v34 = vpop.permute.xlu1 %2463  ;;  %v2887_v33 = vor.u32 %v2886_v1, %v10553_v18  ;;  %v2914_v39 = vshll.u32 %v8926_v21, 16  ;;  %v8784_v52 = vld [vmem:[%s9440_s10 + $0xa0] sm:$0xf]  ;;  %v3311_v54 = vrot.slane %v10574_v42, 5  ;;  %v8971_v46 = vld [vmem:[%s9440_s10 + $0x98] sm:$0x1] }
 0x19e   : > { %2555 = vst.msk [vmem:[#allocation2 + $0x14] sm:$0xf] %vm2549_vm13, %v2464_v34  ;;  %v2462_v38 = vpop.permute.xlu0 %2461  ;;  %v2890_v34 = vshll.u32 %v8923_v12, 16  ;;  %v2901_v41 = vor.u32 %v2900_v31, %v2897_v30  ;;  %v1836_v60 = vshll.u32 %v8784_v52, 16  ;;  %v1840_v61 = vshrl.u32 %v8784_v52, 16 }
 0x19f   : > { %2554 = vst.msk [vmem:[#allocation2 + $0x10] sm:$0xf] %vm2549_vm13, %v2462_v38  ;;  %3389 = vrot.lane.b32.xlu1 %v3308_v29, %s9380_s24  ;;  %v2911_v38 = vor.u32 %v2910_v28, %v10558_v26  ;;  %v2916_v50 = vrot.slane %v2914_v39, 5  ;;  %v8787_v4 = vld [vmem:[%s9440_s10 + $0xac] sm:$0xf]  ;;  %v3314_v10 = vrot.slane %v8971_v46, 5 }
 0x1a0   : > { %3387 = vrot.lane.b32.xlu0 %v3305_v35, %s9380_s24  ;;  %v2877_v35 = vor.u32 %v2876_v22, %v2873_v20  ;;  %v8997_v11 = vrot.slane %v8969_v58, 9  ;;  %v10610_v16 = vrot.slane %v1836_v60, 5  ;;  %v1842_v17 = vrot.slane %v1840_v61, 4  ;;  %v8785_v22 = vld [vmem:[%s9440_s10 + $0xa4] sm:$0x1] }
 0x1a1   : > { %v2468_v44 = vpop.permute.xlu1 %2467  ;;  %v2912_v49 = vrot.slane %v2911_v38, 4  ;;  %v1864_v1 = vshrl.u32 %v8787_v4, 16 }
 0x1a2   : > { %2557 = vst.msk [vmem:[#allocation2 + $0x1c] sm:$0xf] %vm2549_vm13, %v2468_v44  ;;  %v2466_v48 = vpop.permute.xlu0 %2465  ;;  %v2888_v44 = vrot.slane %v2887_v33, 4  ;;  %v2878_v47 = vrot.slane %v2877_v35, 4  ;;  %v3312_v30 = vsel %vm9595_vm6, %v8997_v11, %v3311_v54  ;;  %v1843_v33 = vor.u32 %v1842_v17, %v10610_v16  ;;  %v8927_v11 = vld [vmem:[%s9440_s10 + $0xa8] sm:$0xf] }
 0x1a3   : > { %2556 = vst.msk [vmem:[#allocation2 + $0x18] sm:$0xf] %vm2549_vm13, %v2466_v48  ;;  %1964 = vrot.lane.b32.xlu1 %v1801_v19, %s9375_s14  ;;  %v2917_v5 = vsel %vm9451_vm2, %v2912_v49, %v2916_v50  ;;  %v8834_v17 = vld [vmem:[%s9440_s10 + $0xa8] sm:$0xe] }
 0x1a4   : > { %1962 = vrot.lane.b32.xlu0 %v1791_v24, %s9375_s14  ;;  %v2892_v24 = vrot.slane %v2890_v34, 5  ;;  %v2883_v0 = vsel %vm9451_vm2, %v2878_v47, %v10553_v18  ;;  %v1860_v18 = vshll.u32 %v8787_v4, 16  ;;  %v1846_v34 = vshll.u32 %v8785_v22, 16  ;;  %v8836_v4 = vld [vmem:[%s9440_s10 + $0xb0] sm:$0x1] }
 0x1a5   : > { %v3025_v55 = vpop.permute.xlu1 %3024  ;;  %v2919_v22 = vshrl.u32 %v8927_v11, 16 }
 0x1a6   : > { %3116 = vst.msk [vmem:[#allocation2 + $0x14] sm:$0xf] %vm3110_vm14, %v3025_v55  ;;  %v3023_v59 = vpop.permute.xlu0 %3022  ;;  %v8783_v55 = vld [vmem:[%s9440_s10 + $0x9c] sm:$0xf]  ;;  %v2893_v57 = vsel %vm9451_vm2, %v2888_v44, %v2892_v24  ;;  %v1862_v35 = vrot.slane %v1860_v18, 5  ;;  %v1844_v44 = vrot.slane %v1843_v33, 4 }
 0x1a7   : > { %3115 = vst.msk [vmem:[#allocation2 + $0x10] sm:$0xf] %vm3110_vm14, %v3023_v59  ;;  %1968 = vrot.lane.b32.xlu1 %v1825_v45, %s9375_s14  ;;  %v10591_v59 = vld [vmem:[%s9440_s10 + $0xa0] sm:$0xf]  ;;  %v1827_v2 = vshrl.u32 %v8783_v55, 16  ;;  %v1830_v3 = vshll.u32 %v8783_v55, 16 }
 0x1a8   : > { %1966 = vrot.lane.b32.xlu0 %v1815_v56, %s9375_s14  ;;  %v2902_v56 = vrot.slane %v2901_v41, 4  ;;  %v1848_v24 = vrot.slane %v1846_v34, 5  ;;  %v8835_v55 = vld [vmem:[%s9440_s10 + $0xac] sm:$0xf] }
 0x1a9   : > { %v3029_v51 = vpop.permute.xlu1 %3028 }
 0x1aa   : > { %3118 = vst.msk [vmem:[#allocation2 + $0x1c] sm:$0xf] %vm3110_vm14, %v3029_v51  ;;  %v3027_v14 = vpop.permute.xlu0 %3026  ;;  %v3313_v51 = vrot.slane %v3311_v54, 4  ;;  %v2907_v9 = vsel %vm9451_vm2, %v2902_v56, %v10558_v26  ;;  %v1849_v56 = vsel %vm9451_vm2, %v1844_v44, %v1848_v24 }
 0x1ab   : > { %3117 = vst.msk [vmem:[#allocation2 + $0x18] sm:$0xf] %vm3110_vm14, %v3027_v14  ;;  %2301 = vrot.lane.b32.xlu1 %v2223_v63, %s9376_s15  ;;  %v3318_v14 = vrot.slane %v10591_v59, 5 }
 0x1ac   : > { %2299 = vrot.lane.b32.xlu0 %v2220_v8, %s9376_s15  ;;  %v8786_v8 = vld [vmem:[%s9440_s10 + $0xa8] sm:$0xf]  ;;  %v3315_v21 = vsel %vm9595_vm6, %v3313_v51, %v3314_v10  ;;  %v8928_v51 = vld [vmem:[%s9440_s10 + $0xac] sm:$0xf] }
 0x1ad   : > { %v3362_v23 = vpop.permute.xlu1 %3361  ;;  %v1851_v12 = vshrl.u32 %v8786_v8, 16  ;;  %v1854_v26 = vshll.u32 %v8786_v8, 16  ;;  %v3320_v31 = vrot.slane %v3318_v14, 4  ;;  %v2928_v18 = vshll.u32 %v8928_v51, 16 }
 0x1ae   : > { %3453 = vst.msk [vmem:[#allocation2 + $0x14] sm:$0xf] %vm3447_vm15, %v3362_v23  ;;  %v3360_v29 = vpop.permute.xlu0 %3359  ;;  %v1829_v23 = vrot.slane %v1827_v2, 4  ;;  %v8831_v2 = vld [vmem:[%s9440_s10 + $0x9c] sm:$0xe] }
 0x1af   : > { %3452 = vst.msk [vmem:[#allocation2 + $0x10] sm:$0xf] %vm3447_vm15, %v3360_v29  ;;  %2305 = vrot.lane.b32.xlu1 %v2230_v15, %s9376_s15  ;;  %v8974_v15 = vld [vmem:[%s9440_s10 + $0xa4] sm:$0x1]  ;;  %v8972_v29 = vld [vmem:[%s9440_s10 + $0x9c] sm:$0xe] }
 0x1b0   : > { %2303 = vrot.lane.b32.xlu0 %v2227_v25, %s9376_s15  ;;  %v1832_v25 = vrot.slane %v1830_v3, 5  ;;  %v8998_v38 = vrot.slane %v8972_v29, 9  ;;  %v1856_v41 = vrot.slane %v1854_v26, 5  ;;  %v2240_v3 = vrot.slane %v8835_v55, 5  ;;  %v8930_v29 = vld [vmem:[%s9440_s10 + $0xb4] sm:$0xf] }
 0x1b1   : > { %v3366_v36 = vpop.permute.xlu1 %3365  ;;  %v8855_v10 = vrot.slane %v8831_v2, 9  ;;  %v8883_v55 = vld [vmem:[%s9440_s10 + $0xa8] sm:$0xf] }
 0x1b2   : > { %3455 = vst.msk [vmem:[#allocation2 + $0x1c] sm:$0xf] %vm3447_vm15, %v3366_v36  ;;  %v3364_v19 = vpop.permute.xlu0 %3363  ;;  %v1866_v36 = vrot.slane %v1864_v1, 4  ;;  %v1833_v39 = vor.u32 %v1832_v25, %v1829_v23  ;;  %v3319_v50 = vsel %vm9595_vm6, %v8998_v38, %v3318_v14  ;;  %v2932_v1 = vshrl.u32 %v8928_v51, 16  ;;  %v8931_v25 = vld [vmem:[%s9440_s10 + $0xb8] sm:$0xf] }
 0x1b3   : > { %3454 = vst.msk [vmem:[#allocation2 + $0x18] sm:$0xf] %vm3447_vm15, %v3364_v19  ;;  %2495 = vrot.lane.b32.xlu1 %v8880_v32, %s9377_s16  ;;  %v3321_v32 = vrot.slane %v8974_v15, 5  ;;  %v8788_v19 = vld [vmem:[%s9440_s10 + $0xb0] sm:$0x1]  ;;  %v2242_v15 = vrot.slane %v2240_v3, 4 }
 0x1b4   : > { %2493 = vrot.lane.b32.xlu0 %v8879_v37, %s9377_s16  ;;  %v1867_v47 = vor.u32 %v1866_v36, %v1862_v35  ;;  %v1834_v52 = vrot.slane %v1833_v39, 4  ;;  %v2922_v23 = vshll.u32 %v8927_v11, 16  ;;  %v2952_v33 = vshll.u32 %v8931_v25, 16 }
 0x1b5   : > { %v2278_v48 = vpop.permute.xlu1 %2277  ;;  %v2956_v34 = vshrl.u32 %v8931_v25, 16  ;;  %v2921_v36 = vrot.slane %v2919_v22, 4  ;;  %v2943_v38 = vshrl.u32 %v8930_v29, 16  ;;  %v2946_v39 = vshll.u32 %v8930_v29, 16 }
 0x1b6   : > { %2365 = vst.msk [vmem:[#allocation2 + $0x24] sm:$0xf] %vm2355_vm12, %v2278_v48  ;;  %v2276_v53 = vpop.permute.xlu0 %2275  ;;  %v9327_v45 = vld [vmem:[#allocation2 + $0x10] sm:$0xff]   ;;  %v1870_v48 = vshll.u32 %v8788_v19, 16  ;;  %v1868_v46 = vrot.slane %v1867_v47, 4  ;;  %v1839_v60 = vsel %vm9451_vm2, %v1834_v52, %v10610_v16  ;;  %v2243_v16 = vrot.slane %v8836_v4, 5 }
 0x1b7   : > { %2364 = vst.msk [vmem:[#allocation2 + $0x20] sm:$0xf] %vm2355_vm12, %v2276_v53  ;;  %2499 = vrot.lane.b32.xlu1 %v8882_v40, %s9377_s16  ;;  %9237 = vmatprep.mubr.msk.bf16.mxu0 %vm3612_vm0, %v9327_v45  ;;  %v1853_v40 = vrot.slane %v1851_v12, 4  ;;  %v8832_v45 = vld [vmem:[%s9440_s10 + $0xa0] sm:$0xf]  ;;  %v10683_v47 = vrot.slane %v2952_v33, 5 }
 0x1b8   : > { %2497 = vrot.lane.b32.xlu0 %v8881_v43, %s9377_s16  ;;  %v3322_v43 = vsel %vm9595_vm6, %v3320_v31, %v3321_v32  ;;  %v2233_v58 = vrot.slane %v8832_v45, 5  ;;  %v10672_v31 = vrot.slane %v2928_v18, 5  ;;  %v2934_v32 = vrot.slane %v2932_v1, 4  ;;  %v8790_v4 = vld [vmem:[%s9440_s10 + $0xb8] sm:$0xf] }
 0x1b9   : > { %v2282_v63 = vpop.permute.xlu1 %2281  ;;  %v1857_v53 = vor.u32 %v1856_v41, %v1853_v40  ;;  %v8932_v41 = vld [vmem:[%s9440_s10 + $0xbc] sm:$0x1]  ;;  %v2948_v45 = vrot.slane %v2946_v39, 5  ;;  %v1884_v1 = vshll.u32 %v8790_v4, 16  ;;  %v1888_v13 = vshrl.u32 %v8790_v4, 16 }
 0x1ba   : > { %2367 = vst.msk [vmem:[#allocation2 + $0x2c] sm:$0xf] %vm2355_vm12, %v2282_v63  ;;  %v2280_v6 = vpop.permute.xlu0 %2279  ;;  %v9328_v7 = vld [vmem:[#allocation2 + $0x18] sm:$0xff]   ;;  %v8833_v63 = vld [vmem:[%s9440_s10 + $0xa4] sm:$0x1]  ;;  %v2234_v26 = vsel %vm9595_vm6, %v8855_v10, %v2233_v58  ;;  %v2935_v44 = vor.u32 %v2934_v32, %v10672_v31  ;;  %v2962_v52 = vshll.u32 %v8932_v41, 16 }
 0x1bb   : > { %2366 = vst.msk [vmem:[#allocation2 + $0x28] sm:$0xf] %vm2355_vm12, %v2280_v6  ;;  %3056 = vrot.lane.b32.xlu1 %v2893_v57, %s9379_s21  ;;  %9238 = vmatmul.mubr.msk.bf16.gmra.mxu0 %vm3612_vm0, %v9328_v7  ;;  %v1872_v57 = vrot.slane %v1870_v48, 5  ;;  %v1858_v61 = vrot.slane %v1857_v53, 4  ;;  %v2235_v7 = vrot.slane %v2233_v58, 4  ;;  %v2958_v48 = vrot.slane %v2956_v34, 4 }
 0x1bc   : > { %3054 = vrot.lane.b32.xlu0 %v2883_v0, %s9379_s21  ;;  %v2945_v53 = vrot.slane %v2943_v38, 4  ;;  %v8886_v58 = vld [vmem:[%s9440_s10 + $0xb8] sm:$0xf]  ;;  %v10700_v2 = vrot.slane %v2962_v52, 5  ;;  %v13279_v10 = vmov 0  ;;  %v1890_v41 = vrot.slane %v1888_v13, 4 }
 0x1bd   : > { %v2472_v20 = vpop.permute.xlu1 %2471  ;;  %v1873_v6 = vsel %vm9451_vm2, %v1868_v46, %v1872_v57  ;;  %v10691_v57 = vld [vmem:[%s9440_s10 + $0xac] sm:$0xf]  ;;  %v13280_v10 = vsel %vm10709_vm5, 4294967295, %v13279_v10  ;;  %v8975_v33 = vld [vmem:[%s9440_s10 + $0xa8] sm:$0xe] }
 0x1be   : > { %2559 = vst.msk [vmem:[#allocation2 + $0x24] sm:$0xf] %vm2549_vm13, %v2472_v20  ;;  %v2470_v28 = vpop.permute.xlu0 %2469  ;;  %13281 = vst [vmem:[#allocation7_spill] sm:$0xff] %v13280_v10 }
 0x1bf   : > { %2558 = vst.msk [vmem:[#allocation2 + $0x20] sm:$0xf] %vm2549_vm13, %v2470_v28  ;;  %3060 = vrot.lane.b32.xlu1 %v2917_v5, %s9379_s21  ;;  %v2236_v5 = vrot.slane %v8833_v63, 5  ;;  %v8856_v28 = vrot.slane %v8834_v17, 9  ;;  %v8885_v63 = vld [vmem:[%s9440_s10 + $0xb4] sm:$0xf] }
 0x1c0   : > { %3058 = vrot.lane.b32.xlu0 %v2907_v9, %s9379_s21  ;;  %v1863_v9 = vsel %vm9451_vm2, %v1858_v61, %v1862_v35  ;;  %v8929_v35 = vld [vmem:[%s9440_s10 + $0xb0] sm:$0x1]  ;;  %v2959_v61 = vor.u32 %v2958_v48, %v10683_v47  ;;  %v4126_v17 = vld [vmem:[#allocation3 + $0xc] sm:$0x1]  ;;  %v8999_v48 = vrot.slane %v8975_v33, 9 }
 0x1c1   : > { %v2476_v37 = vpop.permute.xlu1 %2475  ;;  %v2237_v20 = vsel %vm9595_vm6, %v2235_v7, %v2236_v5  ;;  %v2241_v40 = vsel %vm9595_vm6, %v8856_v28, %v2240_v3  ;;  %v2938_v24 = vshll.u32 %v8929_v35, 16  ;;  %v2949_v3 = vor.u32 %v2948_v45, %v2945_v53  ;;  %v4129_v5 = vld [vmem:[#allocation3 + $0x18] sm:$0x1]  ;;  %v8792_v28 = vld [vmem:[%s9440_s10 + $0xc0] sm:$0xf] }
 0x1c2   : > { %2561 = vst.msk [vmem:[#allocation2 + $0x2c] sm:$0xf] %vm2549_vm13, %v2476_v37  ;;  %v2474_v42 = vpop.permute.xlu0 %2473  ;;  %v2924_v37 = vrot.slane %v2922_v23, 5  ;;  %v3325_v7 = vrot.slane %v10691_v57, 5  ;;  %v4127_v22 = vsel %vm10709_vm5, 0, %v4126_v17 }
 0x1c3   : > { %2560 = vst.msk [vmem:[#allocation2 + $0x28] sm:$0xf] %vm2549_vm13, %v2474_v42  ;;  %3393 = vrot.lane.b32.xlu1 %v3315_v21, %s9380_s24  ;;  %v2950_v18 = vrot.slane %v2949_v3, 4  ;;  %4128 = vst [vmem:[#allocation3 + $0xc] sm:$0x1] %v4127_v22 }
 0x1c4   : > { %3391 = vrot.lane.b32.xlu0 %v3312_v30, %s9380_s24  ;;  %v2244_v30 = vsel %vm9595_vm6, %v2242_v15, %v2243_v16  ;;  %v10722_v15 = vld [vmem:[%s9440_s10 + $0xb8] sm:$0xf]  ;;  %v4130_v16 = vsel %vm10709_vm5, 0, %v4129_v5  ;;  %v3327_v32 = vrot.slane %v3325_v7, 4  ;;  %v3326_v3 = vsel %vm9595_vm6, %v8999_v48, %v3325_v7 }
 0x1c5   : > { %v3033_v49 = vpop.permute.xlu1 %3032  ;;  %4131 = vst [vmem:[#allocation3 + $0x18] sm:$0x1] %v4130_v16  ;;  %v3332_v34 = vrot.slane %v10722_v15, 5  ;;  %v8838_v17 = vld [vmem:[%s9440_s10 + $0xb8] sm:$0xf] }
 0x1c6   : > { %3120 = vst.msk [vmem:[#allocation2 + $0x24] sm:$0xf] %vm3110_vm14, %v3033_v49  ;;  %v3031_v54 = vpop.permute.xlu0 %3030  ;;  %v8884_v49 = vld [vmem:[%s9440_s10 + $0xac] sm:$0xf] }
 0x1c7   : > { %3119 = vst.msk [vmem:[#allocation2 + $0x20] sm:$0xf] %vm3110_vm14, %v3031_v54  ;;  %3397 = vrot.lane.b32.xlu1 %v3322_v43, %s9380_s24  ;;  %v3334_v45 = vrot.slane %v3332_v34, 4 }
 0x1c8   : > { %3395 = vrot.lane.b32.xlu0 %v3319_v50, %s9380_s24  ;;  %v2925_v50 = vor.u32 %v2924_v37, %v2921_v36  ;;  %v8980_v37 = vld [vmem:[%s9440_s10 + $0xbc] sm:$0x1] }
 0x1c9   : > { %v3037_v59 = vpop.permute.xlu1 %3036 }
 0x1ca   : > { %3122 = vst.msk [vmem:[#allocation2 + $0x2c] sm:$0xf] %vm3110_vm14, %v3037_v59  ;;  %v3035_v0 = vpop.permute.xlu0 %3034  ;;  %v2936_v59 = vrot.slane %v2935_v44, 4 }
 0x1cb   : > { %3121 = vst.msk [vmem:[#allocation2 + $0x28] sm:$0xf] %vm3110_vm14, %v3035_v0  ;;  %1972 = vrot.lane.b32.xlu1 %v1849_v56, %s9375_s14  ;;  %v2926_v0 = vrot.slane %v2925_v50, 4 }
 0x1cc   : > { %1970 = vrot.lane.b32.xlu0 %v1839_v60, %s9375_s14  ;;  %v2940_v60 = vrot.slane %v2938_v24, 5  ;;  %v2955_v24 = vsel %vm9451_vm2, %v2950_v18, %v10683_v47 }
 0x1cd   : > { %v3370_v8 = vpop.permute.xlu1 %3369  ;;  %v2931_v25 = vsel %vm9451_vm2, %v2926_v0, %v10672_v31 }
 0x1ce   : > { %3457 = vst.msk [vmem:[#allocation2 + $0x24] sm:$0xf] %vm3447_vm15, %v3370_v8  ;;  %v3368_v14 = vpop.permute.xlu0 %3367  ;;  %v8977_v8 = vld [vmem:[%s9440_s10 + $0xb0] sm:$0x1]  ;;  %v2941_v11 = vsel %vm9451_vm2, %v2936_v59, %v2940_v60  ;;  %v8794_v60 = vld [vmem:[%s9440_s10 + $0xc8] sm:$0x1] }
 0x1cf   : > { %3456 = vst.msk [vmem:[#allocation2 + $0x20] sm:$0xf] %vm3447_vm15, %v3368_v14  ;;  %1976 = vrot.lane.b32.xlu1 %v1873_v6, %s9375_s14  ;;  %v2960_v14 = vrot.slane %v2959_v61, 4  ;;  %v3328_v31 = vrot.slane %v8977_v8, 5  ;;  %v1918_v8 = vshll.u32 %v8794_v60, 16 }
 0x1d0   : > { %1974 = vrot.lane.b32.xlu0 %v1863_v9, %s9375_s14  ;;  %v8789_v9 = vld [vmem:[%s9440_s10 + $0xb4] sm:$0xf] }
 0x1d1   : > { %v3374_v12 = vpop.permute.xlu1 %3373  ;;  %v2965_v36 = vsel %vm9451_vm2, %v2960_v14, %v10700_v2  ;;  %v3329_v53 = vsel %vm9595_vm6, %v3327_v32, %v3328_v31  ;;  %v1920_v13 = vrot.slane %v1918_v8, 5  ;;  %v4135_v8 = vld [vmem:[#allocation3 + $0x30] sm:$0x1] }
 0x1d2   : > { %3459 = vst.msk [vmem:[#allocation2 + $0x2c] sm:$0xf] %vm3447_vm15, %v3374_v12  ;;  %v3372_v21 = vpop.permute.xlu0 %3371  ;;  %v1875_v12 = vshrl.u32 %v8789_v9, 16 }
 0x1d3   : > { %3458 = vst.msk [vmem:[#allocation2 + $0x28] sm:$0xf] %vm3447_vm15, %v3372_v21  ;;  %2309 = vrot.lane.b32.xlu1 %v2237_v20, %s9376_s15  ;;  %v8793_v20 = vld [vmem:[%s9440_s10 + $0xc4] sm:$0xf]  ;;  %v4179_v21 = vld [vmem:[#allocation3 + $0x20] sm:$0x1] }
 0x1d4   : > { %2307 = vrot.lane.b32.xlu0 %v2234_v26, %s9376_s15  ;;  %v1878_v26 = vshll.u32 %v8789_v9, 16  ;;  %v4180_v35 = vsel %vm10736_vm8, 0, %v4179_v21  ;;  %v1908_v38 = vshll.u32 %v8793_v20, 16  ;;  %v1912_v39 = vshrl.u32 %v8793_v20, 16  ;;  %v8841_v21 = vld [vmem:[%s9440_s10 + $0xc4] sm:$0xf] }
 0x1d5   : > { %v2286_v19 = vpop.permute.xlu1 %2285  ;;  %4181 = vst [vmem:[#allocation3 + $0x20] sm:$0x1] %v4180_v35  ;;  %v2254_v35 = vrot.slane %v8841_v21, 5 }
 0x1d6   : > { %2369 = vst.msk [vmem:[#allocation2 + $0x34] sm:$0xf] %vm2355_vm12, %v2286_v19  ;;  %v2284_v42 = vpop.permute.xlu0 %2283  ;;  %v9329_v43 = vld [vmem:[#allocation2 + $0x20] sm:$0xff]   ;;  %v8791_v19 = vld [vmem:[%s9440_s10 + $0xbc] sm:$0x1]  ;;  %v1880_v50 = vrot.slane %v1878_v26, 5 }
 0x1d7   : > { %2368 = vst.msk [vmem:[#allocation2 + $0x30] sm:$0xf] %vm2355_vm12, %v2284_v42  ;;  %2313 = vrot.lane.b32.xlu1 %v2244_v30, %s9376_s15  ;;  %9241 = vmatprep.mubr.msk.bf16.mxu0 %vm3612_vm0, %v9329_v43  ;;  %v1899_v42 = vshrl.u32 %v8792_v28, 16  ;;  %v1902_v43 = vshll.u32 %v8792_v28, 16  ;;  %v1914_v47 = vrot.slane %v1912_v39, 4  ;;  %v2256_v48 = vrot.slane %v2254_v35, 4 }
 0x1d8   : > { %2311 = vrot.lane.b32.xlu0 %v2241_v40, %s9376_s15  ;;  %v10755_v40 = vrot.slane %v1884_v1, 5  ;;  %v8839_v26 = vld [vmem:[%s9440_s10 + $0xbc] sm:$0x1]  ;;  %v8837_v28 = vld [vmem:[%s9440_s10 + $0xb4] sm:$0xe] }
 0x1d9   : > { %v2290_v54 = vpop.permute.xlu1 %2289  ;;  %v1901_v61 = vrot.slane %v1899_v42, 4  ;;  %v2250_v33 = vrot.slane %v8839_v26, 5  ;;  %v8842_v39 = vld [vmem:[%s9440_s10 + $0xc8] sm:$0x1]  ;;  %v8933_v42 = vld [vmem:[%s9440_s10 + $0xc0] sm:$0xf] }
 0x1da   : > { %2371 = vst.msk [vmem:[#allocation2 + $0x3c] sm:$0xf] %vm2355_vm12, %v2290_v54  ;;  %v2288_v56 = vpop.permute.xlu0 %2287  ;;  %v9330_v46 = vld [vmem:[#allocation2 + $0x28] sm:$0xff]   ;;  %v8978_v54 = vld [vmem:[%s9440_s10 + $0xb4] sm:$0xe]  ;;  %v1891_v59 = vor.u32 %v1890_v41, %v10755_v40 }
 0x1db   : > { %2370 = vst.msk [vmem:[#allocation2 + $0x38] sm:$0xf] %vm2355_vm12, %v2288_v56  ;;  %2503 = vrot.lane.b32.xlu1 %v8884_v49, %s9377_s16  ;;  %9242 = vmatmul.mubr.msk.bf16.gmra.mxu0 %vm3612_vm0, %v9330_v46  ;;  %v1877_v49 = vrot.slane %v1875_v12, 4  ;;  %v1894_v56 = vshll.u32 %v8791_v19, 16  ;;  %v10766_v46 = vrot.slane %v1908_v38, 5  ;;  %v9000_v4 = vrot.slane %v8978_v54, 9 }
 0x1dc   : > { %2501 = vrot.lane.b32.xlu0 %v8883_v55, %s9377_s16  ;;  %v3335_v55 = vrot.slane %v8980_v37, 5  ;;  %v1892_v7 = vrot.slane %v1891_v59, 4  ;;  %v8840_v19 = vld [vmem:[%s9440_s10 + $0xc0] sm:$0xe]  ;;  %v2970_v54 = vshll.u32 %v8933_v42, 16 }
 0x1dd   : > { %v2480_v6 = vpop.permute.xlu1 %2479  ;;  %v1896_v9 = vrot.slane %v1894_v56, 5  ;;  %v3333_v15 = vsel %vm9595_vm6, %v9000_v4, %v3332_v34  ;;  %v8857_v34 = vrot.slane %v8837_v28, 9 }
 0x1de   : > { %2563 = vst.msk [vmem:[#allocation2 + $0x34] sm:$0xf] %vm2549_vm13, %v2480_v6  ;;  %v2478_v51 = vpop.permute.xlu0 %2477  ;;  %v1881_v6 = vor.u32 %v1880_v50, %v1877_v49  ;;  %v3336_v57 = vsel %vm9595_vm6, %v3334_v45, %v3335_v55  ;;  %v2257_v49 = vrot.slane %v8842_v39, 5  ;;  %v8858_v50 = vrot.slane %v8840_v19, 9  ;;  %v8937_v55 = vld [vmem:[%s9440_s10 + $0xd0] sm:$0xf] }
 0x1df   : > { %2562 = vst.msk [vmem:[#allocation2 + $0x30] sm:$0xf] %vm2549_vm13, %v2478_v51  ;;  %2507 = vrot.lane.b32.xlu1 %v8886_v58, %s9377_s16  ;;  %v4176_v58 = vld [vmem:[#allocation3 + $0x14] sm:$0x1]  ;;  %v1915_v51 = vor.u32 %v1914_v47, %v10766_v46  ;;  %v1897_v20 = vsel %vm9451_vm2, %v1892_v7, %v1896_v9  ;;  %v2967_v45 = vshrl.u32 %v8933_v42, 16  ;;  %v4136_v7 = vsel %vm10709_vm5, 0, %v4135_v8 }
 0x1e0   : > { %2505 = vrot.lane.b32.xlu0 %v8885_v63, %s9377_s16  ;;  %v1904_v63 = vrot.slane %v1902_v43, 5  ;;  %v4177_v0 = vsel %vm10736_vm8, 0, %v4176_v58  ;;  %v1882_v16 = vrot.slane %v1881_v6, 4  ;;  %v8936_v47 = vld [vmem:[%s9440_s10 + $0xcc] sm:$0xf]  ;;  %v2258_v60 = vsel %vm9595_vm6, %v2256_v48, %v2257_v49 }
 0x1e1   : > { %v2484_v23 = vpop.permute.xlu1 %2483  ;;  %4178 = vst [vmem:[#allocation3 + $0x14] sm:$0x1] %v4177_v0  ;;  %v1916_v1 = vrot.slane %v1915_v51, 4  ;;  %v3000_v0 = vshll.u32 %v8937_v55, 16  ;;  %v2969_v4 = vrot.slane %v2967_v45, 4  ;;  %v2972_v6 = vrot.slane %v2970_v54, 5 }
 0x1e2   : > { %2565 = vst.msk [vmem:[#allocation2 + $0x3c] sm:$0xf] %vm2549_vm13, %v2484_v23  ;;  %v2482_v30 = vpop.permute.xlu0 %2481  ;;  %v2247_v23 = vrot.slane %v8838_v17, 5  ;;  %v1887_v12 = vsel %vm9451_vm2, %v1882_v16, %v10755_v40  ;;  %v2994_v51 = vshll.u32 %v8936_v47, 16  ;;  %v8888_v9 = vld [vmem:[%s9440_s10 + $0xc4] sm:$0xf] }
 0x1e3   : > { %2564 = vst.msk [vmem:[#allocation2 + $0x38] sm:$0xf] %vm2549_vm13, %v2482_v30  ;;  %3064 = vrot.lane.b32.xlu1 %v2941_v11, %s9379_s21  ;;  %v1905_v11 = vor.u32 %v1904_v63, %v1901_v61  ;;  %v1921_v32 = vsel %vm9451_vm2, %v1916_v1, %v1920_v13  ;;  %v2255_v61 = vsel %vm9595_vm6, %v8858_v50, %v2254_v35  ;;  %v8935_v63 = vld [vmem:[%s9440_s10 + $0xc8] sm:$0x1]  ;;  %4137 = vst [vmem:[#allocation3 + $0x30] sm:$0x1] %v4136_v7 }
 0x1e4   : > { %3062 = vrot.lane.b32.xlu0 %v2931_v25, %s9379_s21  ;;  %v2249_v31 = vrot.slane %v2247_v23, 4  ;;  %v8938_v16 = vld [vmem:[%s9440_s10 + $0xd4] sm:$0x1]  ;;  %v10845_v17 = vrot.slane %v3000_v0, 5  ;;  %v2973_v13 = vor.u32 %v2972_v6, %v2969_v4  ;;  %v8889_v35 = vld [vmem:[%s9440_s10 + $0xcc] sm:$0xf] }
 0x1e5   : > { %v3041_v44 = vpop.permute.xlu1 %3040  ;;  %v1906_v22 = vrot.slane %v1905_v11, 4  ;;  %v8983_v50 = vld [vmem:[%s9440_s10 + $0xc8] sm:$0x1]  ;;  %v8981_v45 = vld [vmem:[%s9440_s10 + $0xc0] sm:$0xe] }
 0x1e6   : > { %3124 = vst.msk [vmem:[#allocation2 + $0x34] sm:$0xf] %vm3110_vm14, %v3041_v44  ;;  %v3039_v52 = vpop.permute.xlu0 %3038 }
 0x1e7   : > { %3123 = vst.msk [vmem:[#allocation2 + $0x30] sm:$0xf] %vm3110_vm14, %v3039_v52  ;;  %3068 = vrot.lane.b32.xlu1 %v2965_v36, %s9379_s21  ;;  %v8934_v36 = vld [vmem:[%s9440_s10 + $0xc4] sm:$0xf]  ;;  %v1911_v38 = vsel %vm9451_vm2, %v1906_v22, %v10766_v46  ;;  %v2996_v22 = vrot.slane %v2994_v51, 5 }
 0x1e8   : > { %3066 = vrot.lane.b32.xlu0 %v2955_v24, %s9379_s21  ;;  %v2976_v43 = vshll.u32 %v8934_v36, 16  ;;  %v2980_v44 = vshrl.u32 %v8934_v36, 16  ;;  %v2251_v24 = vsel %vm9595_vm6, %v2249_v31, %v2250_v33  ;;  %v3010_v33 = vshll.u32 %v8938_v16, 16 }
 0x1e9   : > { %v3045_v2 = vpop.permute.xlu1 %3044  ;;  %v2974_v36 = vrot.slane %v2973_v13, 4 }
 0x1ea   : > { %3126 = vst.msk [vmem:[#allocation2 + $0x3c] sm:$0xf] %vm3110_vm14, %v3045_v2  ;;  %v3043_v5 = vpop.permute.xlu0 %3042  ;;  %v10826_v58 = vrot.slane %v2976_v43, 5  ;;  %v2982_v59 = vrot.slane %v2980_v44, 4  ;;  %v3004_v2 = vshrl.u32 %v8937_v55, 16  ;;  %v3012_v42 = vrot.slane %v3010_v33, 5 }
 0x1eb   : > { %3125 = vst.msk [vmem:[#allocation2 + $0x38] sm:$0xf] %vm3110_vm14, %v3043_v5  ;;  %3401 = vrot.lane.b32.xlu1 %v3329_v53, %s9380_s24  ;;  %v2248_v53 = vsel %vm9595_vm6, %v8857_v34, %v2247_v23  ;;  %v2991_v5 = vshrl.u32 %v8936_v47, 16  ;;  %v4132_v23 = vld [vmem:[#allocation3 + $0x24] sm:$0x1] }
 0x1ec   : > { %3399 = vrot.lane.b32.xlu0 %v3326_v3, %s9380_s24  ;;  %v2983_v11 = vor.u32 %v2982_v59, %v10826_v58  ;;  %v4133_v26 = vsel %vm10709_vm5, 0, %v4132_v23  ;;  %v2979_v48 = vsel %vm9451_vm2, %v2974_v36, %v10826_v58  ;;  %v9001_v59 = vrot.slane %v8981_v45, 9  ;;  %v4191_v23 = vld [vmem:[#allocation3 + $0x50] sm:$0x1] }
 0x1ed   : > { %v3378_v14 = vpop.permute.xlu1 %3377  ;;  %4134 = vst [vmem:[#allocation3 + $0x24] sm:$0x1] %v4133_v26  ;;  %v4192_v26 = vsel %vm10736_vm8, 0, %v4191_v23 }
 0x1ee   : > { %3461 = vst.msk [vmem:[#allocation2 + $0x34] sm:$0xf] %vm3447_vm15, %v3378_v14  ;;  %v3376_v18 = vpop.permute.xlu0 %3375  ;;  %v2986_v14 = vshll.u32 %v8935_v63, 16  ;;  %v2984_v21 = vrot.slane %v2983_v11, 4  ;;  %v8984_v63 = vld [vmem:[%s9440_s10 + $0xcc] sm:$0xe] }
 0x1ef   : > { %3460 = vst.msk [vmem:[#allocation2 + $0x30] sm:$0xf] %vm3447_vm15, %v3376_v18  ;;  %3405 = vrot.lane.b32.xlu1 %v3336_v57, %s9380_s24  ;;  %v3006_v18 = vrot.slane %v3004_v2, 4  ;;  %4193 = vst [vmem:[#allocation3 + $0x50] sm:$0x1] %v4192_v26 }
 0x1f0   : > { %3403 = vrot.lane.b32.xlu0 %v3333_v15, %s9380_s24  ;;  %v8887_v15 = vld [vmem:[%s9440_s10 + $0xc0] sm:$0xf] }
 0x1f1   : > { %v3382_v25 = vpop.permute.xlu1 %3381  ;;  %v3007_v31 = vor.u32 %v3006_v18, %v10845_v17  ;;  %v4141_v18 = vld [vmem:[#allocation3 + $0x48] sm:$0x1] }
 0x1f2   : > { %3463 = vst.msk [vmem:[#allocation2 + $0x3c] sm:$0xf] %vm3447_vm15, %v3382_v25  ;;  %v3380_v30 = vpop.permute.xlu0 %3379  ;;  %v4185_v25 = vld [vmem:[#allocation3 + $0x38] sm:$0x1]  ;;  %v4142_v13 = vsel %vm10709_vm5, 0, %v4141_v18 }
 0x1f3   : > { %3462 = vst.msk [vmem:[#allocation2 + $0x38] sm:$0xf] %vm3447_vm15, %v3380_v30  ;;  %1980 = vrot.lane.b32.xlu1 %v1897_v20, %s9375_s14  ;;  %v2993_v20 = vrot.slane %v2991_v5, 4  ;;  %v4186_v28 = vsel %vm10736_vm8, 0, %v4185_v25  ;;  %v2988_v30 = vrot.slane %v2986_v14, 5  ;;  %v9002_v5 = vrot.slane %v8984_v63, 9 }
 0x1f4   : > { %1978 = vrot.lane.b32.xlu0 %v1887_v12, %s9375_s14  ;;  %4187 = vst [vmem:[#allocation3 + $0x38] sm:$0x1] %v4186_v28  ;;  %4143 = vst [vmem:[#allocation3 + $0x48] sm:$0x1] %v4142_v13  ;;  %v4200_v13 = vld [vmem:[#allocation3 + $0x74] sm:$0x1] }
 0x1f5   : > { %v2294_v37 = vpop.permute.xlu1 %2293  ;;  %v2989_v19 = vsel %vm9451_vm2, %v2984_v21, %v2988_v30  ;;  %v4188_v30 = vld [vmem:[#allocation3 + $0x44] sm:$0x1] }
 0x1f6   : > { %2373 = vst.msk [vmem:[#allocation2 + $0x44] sm:$0xf] %vm2355_vm12, %v2294_v37  ;;  %v2292_v40 = vpop.permute.xlu0 %2291  ;;  %v9331_v41 = vld [vmem:[#allocation2 + $0x30] sm:$0xff]   ;;  %v2997_v37 = vor.u32 %v2996_v22, %v2993_v20  ;;  %v4138_v22 = vld [vmem:[#allocation3 + $0x3c] sm:$0x1] }
 0x1f7   : > { %2372 = vst.msk [vmem:[#allocation2 + $0x40] sm:$0xf] %vm2355_vm12, %v2292_v40  ;;  %1984 = vrot.lane.b32.xlu1 %v1921_v32, %s9375_s14  ;;  %9245 = vmatprep.mubr.msk.bf16.mxu0 %vm3612_vm0, %v9331_v41  ;;  %v8890_v32 = vld [vmem:[%s9440_s10 + $0xd0] sm:$0xf]  ;;  %v4182_v40 = vld [vmem:[#allocation3 + $0x2c] sm:$0x1] }
 0x1f8   : > { %1982 = vrot.lane.b32.xlu0 %v1911_v38, %s9375_s14  ;;  %v8982_v38 = vld [vmem:[%s9440_s10 + $0xc4] sm:$0xf]  ;;  %v3008_v41 = vrot.slane %v3007_v31, 4  ;;  %v4183_v44 = vsel %vm10736_vm8, 0, %v4182_v40  ;;  %v2998_v49 = vrot.slane %v2997_v37, 4 }
 0x1f9   : > { %v2298_v52 = vpop.permute.xlu1 %2297  ;;  %v3339_v43 = vrot.slane %v8982_v38, 5  ;;  %4184 = vst [vmem:[#allocation3 + $0x2c] sm:$0x1] %v4183_v44 }
 0x1fa   : > { %2375 = vst.msk [vmem:[#allocation2 + $0x4c] sm:$0xf] %vm2355_vm12, %v2298_v52  ;;  %v2296_v56 = vpop.permute.xlu0 %2295  ;;  %v9332_v46 = vld [vmem:[#allocation2 + $0x38] sm:$0xff]   ;;  %v8985_v52 = vld [vmem:[%s9440_s10 + $0xd0] sm:$0xf]  ;;  %v3013_v54 = vsel %vm9451_vm2, %v3008_v41, %v3012_v42  ;;  %v3003_v58 = vsel %vm9451_vm2, %v2998_v49, %v10845_v17 }
 0x1fb   : > { %2374 = vst.msk [vmem:[#allocation2 + $0x48] sm:$0xf] %vm2355_vm12, %v2296_v56  ;;  %2317 = vrot.lane.b32.xlu1 %v2251_v24, %s9376_s15  ;;  %9246 = vmatmul.mubr.msk.bf16.gmra.mxu0 %vm3612_vm0, %v9332_v46  ;;  %v3341_v55 = vrot.slane %v3339_v43, 4  ;;  %v3342_v56 = vrot.slane %v8983_v50, 5  ;;  %v3346_v46 = vrot.slane %v8985_v52, 5  ;;  %v3340_v6 = vsel %vm9595_vm6, %v9001_v59, %v3339_v43 }
 0x1fc   : > { %2315 = vrot.lane.b32.xlu0 %v2248_v53, %s9376_s15  ;;  %v4147_v42 = vld [vmem:[#allocation3 + $0x60] sm:$0x1]  ;;  %v4144_v49 = vld [vmem:[#allocation3 + $0x54] sm:$0x1]  ;;  %v4197_v50 = vld [vmem:[#allocation3 + $0x68] sm:$0x1] }
 0x1fd   : > { %v2488_v3 = vpop.permute.xlu1 %2487  ;;  %v3343_v0 = vsel %vm9595_vm6, %v3341_v55, %v3342_v56  ;;  %v3348_v2 = vrot.slane %v3346_v46, 4  ;;  %v3347_v7 = vsel %vm9595_vm6, %v9002_v5, %v3346_v46  ;;  %v4145_v45 = vsel %vm10709_vm5, 0, %v4144_v49  ;;  %v4194_v46 = vld [vmem:[#allocation3 + $0x5c] sm:$0x1] }
 0x1fe   : > { %2567 = vst.msk [vmem:[#allocation2 + $0x44] sm:$0xf] %vm2549_vm13, %v2488_v3  ;;  %v2486_v57 = vpop.permute.xlu0 %2485  ;;  %4146 = vst [vmem:[#allocation3 + $0x54] sm:$0x1] %v4145_v45  ;;  %v4165_v45 = vld [vmem:[#allocation3 + $0xa8] sm:$0x1] }
 0x1ff   : > { %2566 = vst.msk [vmem:[#allocation2 + $0x40] sm:$0xf] %vm2549_vm13, %v2486_v57  ;;  %2321 = vrot.lane.b32.xlu1 %v2258_v60, %s9376_s15  ;;  %v8986_v60 = vld [vmem:[%s9440_s10 + $0xd4] sm:$0x1] }
 0x200   : > { %2319 = vrot.lane.b32.xlu0 %v2255_v61, %s9376_s15  ;;  %v3349_v3 = vrot.slane %v8986_v60, 5 }
 0x201   : > { %v2492_v1 = vpop.permute.xlu1 %2491 }
 0x202   : > { %2569 = vst.msk [vmem:[#allocation2 + $0x4c] sm:$0xf] %vm2549_vm13, %v2492_v1  ;;  %v2490_v12 = vpop.permute.xlu0 %2489  ;;  %v3350_v8 = vsel %vm9595_vm6, %v3348_v2, %v3349_v3 }
 0x203   : > { %2568 = vst.msk [vmem:[#allocation2 + $0x48] sm:$0xf] %vm2549_vm13, %v2490_v12  ;;  %2511 = vrot.lane.b32.xlu1 %v8888_v9, %s9377_s16  ;;  %v4139_v12 = vsel %vm10709_vm5, 0, %v4138_v22 }
 0x204   : > { %2509 = vrot.lane.b32.xlu0 %v8887_v15, %s9377_s16  ;;  %4140 = vst [vmem:[#allocation3 + $0x3c] sm:$0x1] %v4139_v12 }
 0x205   : > { %v3049_v34 = vpop.permute.xlu1 %3048 }
 0x206   : > { %3128 = vst.msk [vmem:[#allocation2 + $0x44] sm:$0xf] %vm3110_vm14, %v3049_v34  ;;  %v3047_v39 = vpop.permute.xlu0 %3046 }
 0x207   : > { %3127 = vst.msk [vmem:[#allocation2 + $0x40] sm:$0xf] %vm3110_vm14, %v3047_v39  ;;  %2515 = vrot.lane.b32.xlu1 %v8890_v32, %s9377_s16  ;;  %v4189_v32 = vsel %vm10736_vm8, 0, %v4188_v30 }
 0x208   : > { %2513 = vrot.lane.b32.xlu0 %v8889_v35, %s9377_s16  ;;  %4190 = vst [vmem:[#allocation3 + $0x44] sm:$0x1] %v4189_v32 }
 0x209   : > { %v3053_v24 = vpop.permute.xlu1 %3052 }
 0x20a   : > { %3130 = vst.msk [vmem:[#allocation2 + $0x4c] sm:$0xf] %vm3110_vm14, %v3053_v24  ;;  %v3051_v53 = vpop.permute.xlu0 %3050  ;;  %v4148_v24 = vsel %vm10709_vm5, 0, %v4147_v42  ;;  %v4156_v42 = vld [vmem:[#allocation3 + $0x84] sm:$0x1] }
 0x20b   : > { %3129 = vst.msk [vmem:[#allocation2 + $0x48] sm:$0xf] %vm3110_vm14, %v3051_v53  ;;  %3072 = vrot.lane.b32.xlu1 %v2989_v19, %s9379_s21  ;;  %4149 = vst [vmem:[#allocation3 + $0x60] sm:$0x1] %v4148_v24  ;;  %v4157_v24 = vsel %vm10709_vm5, 0, %v4156_v42 }
 0x20c   : > { %3070 = vrot.lane.b32.xlu0 %v2979_v48, %s9379_s21  ;;  %4158 = vst [vmem:[#allocation3 + $0x84] sm:$0x1] %v4157_v24  ;;  %v4822_v42 = vld [vmem:[#allocation3 + $0x8] sm:$0x1] }
 0x20d   : > { %v3386_v47 = vpop.permute.xlu1 %3385 }
 0x20e   : > { %3465 = vst.msk [vmem:[#allocation2 + $0x44] sm:$0xf] %vm3447_vm15, %v3386_v47  ;;  %v3384_v61 = vpop.permute.xlu0 %3383  ;;  %v4195_v47 = vsel %vm10736_vm8, 0, %v4194_v46 }
 0x20f   : > { %3464 = vst.msk [vmem:[#allocation2 + $0x40] sm:$0xf] %vm3447_vm15, %v3384_v61  ;;  %3076 = vrot.lane.b32.xlu1 %v3013_v54, %s9379_s21  ;;  %v4198_v54 = vsel %vm10736_vm8, 0, %v4197_v50  ;;  %4196 = vst [vmem:[#allocation3 + $0x5c] sm:$0x1] %v4195_v47 }
 0x210   : > { %3074 = vrot.lane.b32.xlu0 %v3003_v58, %s9379_s21  ;;  %4199 = vst [vmem:[#allocation3 + $0x68] sm:$0x1] %v4198_v54  ;;  %v4206_v50 = vld [vmem:[#allocation3 + $0x8c] sm:$0x1]  ;;  %v4166_v54 = vsel %vm10709_vm5, 0, %v4165_v45 }
 0x211   : > { %v3390_v4 = vpop.permute.xlu1 %3389  ;;  %4167 = vst [vmem:[#allocation3 + $0xa8] sm:$0x1] %v4166_v54 }
 0x212   : > { %3467 = vst.msk [vmem:[#allocation2 + $0x4c] sm:$0xf] %vm3447_vm15, %v3390_v4  ;;  %v3388_v51 = vpop.permute.xlu0 %3387  ;;  %v11770_v27 = vld [vmem:[#allocation3 + $0x60] sm:$0xf] }
 0x213   : > { %3466 = vst.msk [vmem:[#allocation2 + $0x48] sm:$0xf] %vm3447_vm15, %v3388_v51  ;;  %3409 = vrot.lane.b32.xlu1 %v3343_v0, %s9380_s24  ;;  %v4153_v51 = vld [vmem:[#allocation3 + $0x78] sm:$0x1] }
 0x214   : > { %3407 = vrot.lane.b32.xlu0 %v3340_v6, %s9380_s24 }
 0x215   : > { %v1965_v57 = vpop.permute.xlu1 %1964 }
 0x216   : > { %2040 = vst.msk [vmem:[#allocation2 + $0x54] sm:$0xf] %vm2018_vm11, %v1965_v57  ;;  %v1963_v9 = vpop.permute.xlu0 %1962  ;;  %v9333_v11 = vld [vmem:[#allocation2 + $0x40] sm:$0xff]   ;;  %v4154_v57 = vsel %vm10709_vm5, 0, %v4153_v51 }
 0x217   : > { %2039 = vst.msk [vmem:[#allocation2 + $0x50] sm:$0xf] %vm2018_vm11, %v1963_v9  ;;  %3413 = vrot.lane.b32.xlu1 %v3350_v8, %s9380_s24  ;;  %9249 = vmatprep.mubr.msk.bf16.mxu0 %vm3612_vm0, %v9333_v11  ;;  %4155 = vst [vmem:[#allocation3 + $0x78] sm:$0x1] %v4154_v57  ;;  %v4150_v9 = vld [vmem:[#allocation3 + $0x6c] sm:$0x1] }
 0x218   : > { %3411 = vrot.lane.b32.xlu0 %v3347_v7, %s9380_s24  ;;  %v4203_v11 = vld [vmem:[#allocation3 + $0x80] sm:$0x1] }
 0x219   : > { %v1969_v14 = vpop.permute.xlu1 %1968 }
 0x21a   : > { %2042 = vst.msk [vmem:[#allocation2 + $0x5c] sm:$0xf] %vm2018_vm11, %v1969_v14  ;;  %v1967_v15 = vpop.permute.xlu0 %1966  ;;  %v9334_v16 = vld [vmem:[#allocation2 + $0x48] sm:$0xff]  }
 0x21b   : > { %2041 = vst.msk [vmem:[#allocation2 + $0x58] sm:$0xf] %vm2018_vm11, %v1967_v15  ;;  %9250 = vmatmul.mubr.msk.bf16.gmra.mxu0 %vm3612_vm0, %v9334_v16  ;;  %v4151_v15 = vsel %vm10709_vm5, 0, %v4150_v9  ;;  %v4204_v16 = vsel %vm10736_vm8, 0, %v4203_v11 }
 0x21c   : > { %4152 = vst [vmem:[#allocation3 + $0x6c] sm:$0x1] %v4151_v15  ;;  %4205 = vst [vmem:[#allocation3 + $0x80] sm:$0x1] %v4204_v16 }
 0x21d   : > { %v2302_v17 = vpop.permute.xlu1 %2301 }
 0x21e   : > { %2377 = vst.msk [vmem:[#allocation2 + $0x54] sm:$0xf] %vm2355_vm12, %v2302_v17  ;;  %v2300_v1 = vpop.permute.xlu0 %2299 }
 0x21f   : > { %2376 = vst.msk [vmem:[#allocation2 + $0x50] sm:$0xf] %vm2355_vm12, %v2300_v1 }
 0x221   : > { %v2306_v20 = vpop.permute.xlu1 %2305 }
 0x222   : > { %2379 = vst.msk [vmem:[#allocation2 + $0x5c] sm:$0xf] %vm2355_vm12, %v2306_v20  ;;  %v2304_v25 = vpop.permute.xlu0 %2303  ;;  %v4201_v20 = vsel %vm10736_vm8, 0, %v4200_v13 }
 0x223   : > { %2378 = vst.msk [vmem:[#allocation2 + $0x58] sm:$0xf] %vm2355_vm12, %v2304_v25  ;;  %4202 = vst [vmem:[#allocation3 + $0x74] sm:$0x1] %v4201_v20 }
 0x225   : > { %v2496_v28 = vpop.permute.xlu1 %2495 }
 0x226   : > { %2571 = vst.msk [vmem:[#allocation2 + $0x54] sm:$0xf] %vm2549_vm13, %v2496_v28  ;;  %v2494_v21 = vpop.permute.xlu0 %2493 }
 0x227   : > { %2570 = vst.msk [vmem:[#allocation2 + $0x50] sm:$0xf] %vm2549_vm13, %v2494_v21 }
 0x229   : > { %v2500_v31 = vpop.permute.xlu1 %2499 }
 0x22a   : > { %2573 = vst.msk [vmem:[#allocation2 + $0x5c] sm:$0xf] %vm2549_vm13, %v2500_v31  ;;  %v2498_v33 = vpop.permute.xlu0 %2497 }
 0x22b   : > { %2572 = vst.msk [vmem:[#allocation2 + $0x58] sm:$0xf] %vm2549_vm13, %v2498_v33 }
 0x22d   : > { %v3057_v34 = vpop.permute.xlu1 %3056 }
 0x22e   : > { %3132 = vst.msk [vmem:[#allocation2 + $0x54] sm:$0xf] %vm3110_vm14, %v3057_v34  ;;  %v3055_v35 = vpop.permute.xlu0 %3054 }
 0x22f   : > { %3131 = vst.msk [vmem:[#allocation2 + $0x50] sm:$0xf] %vm3110_vm14, %v3055_v35 }
 0x231   : > { %v3061_v36 = vpop.permute.xlu1 %3060 }
 0x232   : > { %3134 = vst.msk [vmem:[#allocation2 + $0x5c] sm:$0xf] %vm3110_vm14, %v3061_v36  ;;  %v3059_v37 = vpop.permute.xlu0 %3058 }
 0x233   : > { %3133 = vst.msk [vmem:[#allocation2 + $0x58] sm:$0xf] %vm3110_vm14, %v3059_v37 }
 0x235   : > { %v3394_v38 = vpop.permute.xlu1 %3393 }
 0x236   : > { %3469 = vst.msk [vmem:[#allocation2 + $0x54] sm:$0xf] %vm3447_vm15, %v3394_v38  ;;  %v3392_v39 = vpop.permute.xlu0 %3391 }
 0x237   : > { %3468 = vst.msk [vmem:[#allocation2 + $0x50] sm:$0xf] %vm3447_vm15, %v3392_v39  ;;  %v4159_v39 = vld [vmem:[#allocation3 + $0x90] sm:$0x1] }
 0x239   : > { %v3398_v19 = vpop.permute.xlu1 %3397 }
 0x23a   : > { %3471 = vst.msk [vmem:[#allocation2 + $0x5c] sm:$0xf] %vm3447_vm15, %v3398_v19  ;;  %v3396_v40 = vpop.permute.xlu0 %3395 }
 0x23b   : > { %3470 = vst.msk [vmem:[#allocation2 + $0x58] sm:$0xf] %vm3447_vm15, %v3396_v40  ;;  %v4160_v40 = vsel %vm10709_vm5, 0, %v4159_v39 }
 0x23c   : > { %4161 = vst [vmem:[#allocation3 + $0x90] sm:$0x1] %v4160_v40 }
 0x23d   : > { %v1973_v41 = vpop.permute.xlu1 %1972 }
 0x23e   : > { %2044 = vst.msk [vmem:[#allocation2 + $0x64] sm:$0xf] %vm2018_vm11, %v1973_v41  ;;  %v1971_v43 = vpop.permute.xlu0 %1970  ;;  %v9335_v44 = vld [vmem:[#allocation2 + $0x50] sm:$0xff]  }
 0x23f   : > { %2043 = vst.msk [vmem:[#allocation2 + $0x60] sm:$0xf] %vm2018_vm11, %v1971_v43  ;;  %9253 = vmatprep.mubr.msk.bf16.mxu0 %vm3612_vm0, %v9335_v44  ;;  %v4209_v43 = vld [vmem:[#allocation3 + $0x98] sm:$0x1] }
 0x241   : > { %v1977_v48 = vpop.permute.xlu1 %1976 }
 0x242   : > { %2046 = vst.msk [vmem:[#allocation2 + $0x6c] sm:$0xf] %vm2018_vm11, %v1977_v48  ;;  %v1975_v52 = vpop.permute.xlu0 %1974  ;;  %v9336_v53 = vld [vmem:[#allocation2 + $0x58] sm:$0xff]   ;;  %v4210_v48 = vsel %vm10736_vm8, 0, %v4209_v43 }
 0x243   : > { %2045 = vst.msk [vmem:[#allocation2 + $0x68] sm:$0xf] %vm2018_vm11, %v1975_v52  ;;  %9254 = vmatmul.mubr.msk.bf16.gmra.mxu0 %vm3612_vm0, %v9336_v53  ;;  %4211 = vst [vmem:[#allocation3 + $0x98] sm:$0x1] %v4210_v48  ;;  %v4207_v52 = vsel %vm10736_vm8, 0, %v4206_v50  ;;  %v4888_v48 = vshll.u32 %v4822_v42, 16 }
 0x244   : > { %4208 = vst [vmem:[#allocation3 + $0x8c] sm:$0x1] %v4207_v52 }
 0x245   : > { %v2310_v55 = vpop.permute.xlu1 %2309 }
 0x246   : > { %2381 = vst.msk [vmem:[#allocation2 + $0x64] sm:$0xf] %vm2355_vm12, %v2310_v55  ;;  %v2308_v56 = vpop.permute.xlu0 %2307  ;;  %v4162_v55 = vld [vmem:[#allocation3 + $0x9c] sm:$0x1] }
 0x247   : > { %2380 = vst.msk [vmem:[#allocation2 + $0x60] sm:$0xf] %vm2355_vm12, %v2308_v56  ;;  %v4215_v56 = vld [vmem:[#allocation3 + $0xb0] sm:$0x1]  ;;  %v4163_v46 = vsel %vm10709_vm5, 0, %v4162_v55 }
 0x248   : > { %v4216_v47 = vsel %vm10736_vm8, 0, %v4215_v56  ;;  %4164 = vst [vmem:[#allocation3 + $0x9c] sm:$0x1] %v4163_v46  ;;  %v4820_v55 = vld [vmem:[#allocation3] sm:$0xf] }
 0x249   : > { %v2314_v58 = vpop.permute.xlu1 %2313  ;;  %4217 = vst [vmem:[#allocation3 + $0xb0] sm:$0x1] %v4216_v47  ;;  %v4869_v56 = vshrl.u32 %v4820_v55, 16  ;;  %v4872_v46 = vshll.u32 %v4820_v55, 16 }
 0x24a   : > { %2383 = vst.msk [vmem:[#allocation2 + $0x6c] sm:$0xf] %vm2355_vm12, %v2314_v58  ;;  %v2312_v59 = vpop.permute.xlu0 %2311  ;;  %v4212_v58 = vld [vmem:[#allocation3 + $0xa4] sm:$0x1] }
 0x24b   : > { %2382 = vst.msk [vmem:[#allocation2 + $0x68] sm:$0xf] %vm2355_vm12, %v2312_v59  ;;  %v4213_v59 = vsel %vm10736_vm8, 0, %v4212_v58 }
 0x24c   : > { %4214 = vst [vmem:[#allocation3 + $0xa4] sm:$0x1] %v4213_v59 }
 0x24d   : > { %v2504_v60 = vpop.permute.xlu1 %2503 }
 0x24e   : > { %2575 = vst.msk [vmem:[#allocation2 + $0x64] sm:$0xf] %vm2549_vm13, %v2504_v60  ;;  %v2502_v61 = vpop.permute.xlu0 %2501  ;;  %v4171_v60 = vld [vmem:[#allocation3 + $0xc0] sm:$0x1] }
 0x24f   : > { %2574 = vst.msk [vmem:[#allocation2 + $0x60] sm:$0xf] %vm2549_vm13, %v2502_v61  ;;  %v4172_v61 = vsel %vm10709_vm5, 0, %v4171_v60  ;;  %v4890_v60 = vrot.slane %v4888_v48, 5 }
 0x250   : > { %4173 = vst [vmem:[#allocation3 + $0xc0] sm:$0x1] %v4172_v61 }
 0x251   : > { %v2508_v63 = vpop.permute.xlu1 %2507 }
 0x252   : > { %2577 = vst.msk [vmem:[#allocation2 + $0x6c] sm:$0xf] %vm2549_vm13, %v2508_v63  ;;  %v2506_v0 = vpop.permute.xlu0 %2505  ;;  %v4168_v63 = vld [vmem:[#allocation3 + $0xb4] sm:$0x1] }
 0x253   : > { %2576 = vst.msk [vmem:[#allocation2 + $0x68] sm:$0xf] %vm2549_vm13, %v2506_v0  ;;  %v4221_v0 = vld [vmem:[#allocation3 + $0xc8] sm:$0x1] }
 0x255   : > { %v3065_v2 = vpop.permute.xlu1 %3064 }
 0x256   : > { %3136 = vst.msk [vmem:[#allocation2 + $0x64] sm:$0xf] %vm3110_vm14, %v3065_v2  ;;  %v3063_v3 = vpop.permute.xlu0 %3062  ;;  %v4169_v2 = vsel %vm10709_vm5, 0, %v4168_v63  ;;  %v4871_v63 = vrot.slane %v4869_v56, 4 }
 0x257   : > { %3135 = vst.msk [vmem:[#allocation2 + $0x60] sm:$0xf] %vm3110_vm14, %v3063_v3  ;;  %v4222_v3 = vsel %vm10736_vm8, 0, %v4221_v0  ;;  %4170 = vst [vmem:[#allocation3 + $0xb4] sm:$0x1] %v4169_v2  ;;  %v4874_v0 = vrot.slane %v4872_v46, 5 }
 0x258   : > { %4223 = vst [vmem:[#allocation3 + $0xc8] sm:$0x1] %v4222_v3 }
 0x259   : > { %v3069_v4 = vpop.permute.xlu1 %3068 }
 0x25a   : > { %3138 = vst.msk [vmem:[#allocation2 + $0x6c] sm:$0xf] %vm3110_vm14, %v3069_v4  ;;  %v3067_v6 = vpop.permute.xlu0 %3066 }
 0x25b   : > { %3137 = vst.msk [vmem:[#allocation2 + $0x68] sm:$0xf] %vm3110_vm14, %v3067_v6  ;;  %v11016_v4 = vpop.f32.mrf.mxu0 }
 0x25d   : > { %v3402_v5 = vpop.permute.xlu1 %3401  ;;  %v11018_v6 = vpop.f32.mrf.mxu0 }
 0x25e   : > { %3473 = vst.msk [vmem:[#allocation2 + $0x64] sm:$0xf] %vm3447_vm15, %v3402_v5  ;;  %v3400_v8 = vpop.permute.xlu0 %3399 }
 0x25f   : > { %3472 = vst.msk [vmem:[#allocation2 + $0x60] sm:$0xf] %vm3447_vm15, %v3400_v8  ;;  %v11020_v5 = vpop.f32.mrf.mxu0 }
 0x261   : > { %v3406_v7 = vpop.permute.xlu1 %3405  ;;  %v11022_v51 = vpop.f32.mrf.mxu0 }
 0x262   : > { %3475 = vst.msk [vmem:[#allocation2 + $0x6c] sm:$0xf] %vm3447_vm15, %v3406_v7  ;;  %v3404_v14 = vpop.permute.xlu0 %3403  ;;  %v3931_v9 = vmul.f32 %v11022_v51, %v11022_v51  ;;  %v3892_v15 = vadd.f32 %v11022_v51, %v11018_v6 }
 0x263   : > { %3474 = vst.msk [vmem:[#allocation2 + $0x68] sm:$0xf] %vm3447_vm15, %v3404_v14  ;;  %v3930_v14 = vmul.f32 %v11018_v6, %v11018_v6 }
 0x265   : > { %v1981_v17 = vpop.permute.xlu1 %1980 }
 0x266   : > { %2048 = vst.msk [vmem:[#allocation2 + $0x74] sm:$0xf] %vm2018_vm11, %v1981_v17  ;;  %v1979_v18 = vpop.permute.xlu0 %1978  ;;  %v9337_v1 = vld [vmem:[#allocation2 + $0x60] sm:$0xff]   ;;  %v3962_v17 = vadd.f32 %v3931_v9, %v3930_v14  ;;  %v4875_v14 = vor.u32 %v4874_v0, %v4871_v63 }
 0x267   : > { %2047 = vst.msk [vmem:[#allocation2 + $0x70] sm:$0xf] %vm2018_vm11, %v1979_v18  ;;  %9257 = vmatprep.mubr.msk.bf16.mxu0 %vm3612_vm0, %v9337_v1  ;;  %v3932_v18 = vmul.f32 %v11016_v4, %v11016_v4  ;;  %v3893_v1 = vadd.f32 %v11016_v4, %v3892_v15 }
 0x269   : > { %v1985_v22 = vpop.permute.xlu1 %1984  ;;  %v3963_v20 = vadd.f32 %v3962_v17, %v3932_v18 }
 0x26a   : > { %2050 = vst.msk [vmem:[#allocation2 + $0x7c] sm:$0xf] %vm2018_vm11, %v1985_v22  ;;  %v1983_v23 = vpop.permute.xlu0 %1982  ;;  %v9338_v25 = vld [vmem:[#allocation2 + $0x68] sm:$0xff]   ;;  %v3933_v22 = vmul.f32 %v11020_v5, %v11020_v5 }
 0x26b   : > { %2049 = vst.msk [vmem:[#allocation2 + $0x78] sm:$0xf] %vm2018_vm11, %v1983_v23  ;;  %9258 = vmatmul.mubr.msk.bf16.gmra.mxu0 %vm3612_vm0, %v9338_v25  ;;  %v3894_v23 = vadd.f32 %v11020_v5, %v3893_v1  ;;  %v4876_v1 = vrot.slane %v4875_v14, 4 }
 0x26d   : > { %v2318_v12 = vpop.permute.xlu1 %2317 }
 0x26e   : > { %2385 = vst.msk [vmem:[#allocation2 + $0x74] sm:$0xf] %vm2355_vm12, %v2318_v12  ;;  %v2316_v26 = vpop.permute.xlu0 %2315 }
 0x26f   : > { %2384 = vst.msk [vmem:[#allocation2 + $0x70] sm:$0xf] %vm2355_vm12, %v2316_v26  ;;  %v4218_v26 = vld [vmem:[#allocation3 + $0xbc] sm:$0x1] }
 0x271   : > { %v2322_v28 = vpop.permute.xlu1 %2321 }
 0x272   : > { %2387 = vst.msk [vmem:[#allocation2 + $0x7c] sm:$0xf] %vm2355_vm12, %v2322_v28  ;;  %v2320_v21 = vpop.permute.xlu0 %2319 }
 0x273   : > { %2386 = vst.msk [vmem:[#allocation2 + $0x78] sm:$0xf] %vm2355_vm12, %v2320_v21  ;;  %v3964_v21 = vadd.f32 %v3963_v20, %v3933_v22 }
 0x275   : > { %v2512_v30 = vpop.permute.xlu1 %2511 }
 0x276   : > { %2579 = vst.msk [vmem:[#allocation2 + $0x74] sm:$0xf] %vm2549_vm13, %v2512_v30  ;;  %v2510_v32 = vpop.permute.xlu0 %2509 }
 0x277   : > { %2578 = vst.msk [vmem:[#allocation2 + $0x70] sm:$0xf] %vm2549_vm13, %v2510_v32  ;;  %v4219_v32 = vsel %vm10736_vm8, 0, %v4218_v26  ;;  %vm4320_vm8 = vsmask.f32 4368 }
 0x278   : > { %4220 = vst [vmem:[#allocation3 + $0xbc] sm:$0x1] %v4219_v32  ;;  %vm11238_vm1 = vmor %vm4124_vm4, %vm4320_vm8 }
 0x279   : > { %v2516_v31 = vpop.permute.xlu1 %2515  ;;  %vm11337_vm4 = vmand %vm359_vm3, %vm4174_vm9 }
 0x27a   : > { %2581 = vst.msk [vmem:[#allocation2 + $0x7c] sm:$0xf] %vm2549_vm13, %v2516_v31  ;;  %v2514_v33 = vpop.permute.xlu0 %2513 }
 0x27b   : > { %2580 = vst.msk [vmem:[#allocation2 + $0x78] sm:$0xf] %vm2549_vm13, %v2514_v33  ;;  %v11024_v8 = vpop.f32.mrf.mxu0 }
 0x27d   : > { %v3073_v34 = vpop.permute.xlu1 %3072  ;;  %v11026_v57 = vpop.f32.mrf.mxu0 }
 0x27e   : > { %3140 = vst.msk [vmem:[#allocation2 + $0x74] sm:$0xf] %vm3110_vm14, %v3073_v34  ;;  %v3071_v35 = vpop.permute.xlu0 %3070  ;;  %v3934_v25 = vmul.f32 %v11026_v57, %v11026_v57  ;;  %v3895_v28 = vadd.f32 %v3894_v23, %v11026_v57 }
 0x27f   : > { %3139 = vst.msk [vmem:[#allocation2 + $0x70] sm:$0xf] %vm3110_vm14, %v3071_v35  ;;  %v11028_v7 = vpop.f32.mrf.mxu0 }
 0x280   : > { %v3965_v31 = vadd.f32 %v3964_v21, %v3934_v25  ;;  %v3937_v29 = vmul.f32 %v11028_v7, %v11028_v7 }
 0x281   : > { %v3077_v36 = vpop.permute.xlu1 %3076  ;;  %v11032_v11 = vpop.f32.mrf.mxu0 }
 0x282   : > { %3142 = vst.msk [vmem:[#allocation2 + $0x7c] sm:$0xf] %vm3110_vm14, %v3077_v36  ;;  %v3075_v37 = vpop.permute.xlu0 %3074  ;;  %v3935_v30 = vmul.f32 %v11032_v11, %v11032_v11  ;;  %v3896_v33 = vadd.f32 %v3895_v28, %v11032_v11 }
 0x283   : > { %3141 = vst.msk [vmem:[#allocation2 + $0x78] sm:$0xf] %vm3110_vm14, %v3075_v37  ;;  %v3936_v37 = vmul.f32 %v11024_v8, %v11024_v8 }
 0x284   : > { %v3966_v35 = vadd.f32 %v3965_v31, %v3935_v30 }
 0x285   : > { %v3410_v38 = vpop.permute.xlu1 %3409 }
 0x286   : > { %3477 = vst.msk [vmem:[#allocation2 + $0x74] sm:$0xf] %vm3447_vm15, %v3410_v38  ;;  %v3408_v19 = vpop.permute.xlu0 %3407  ;;  %v3897_v38 = vadd.f32 %v11024_v8, %v3896_v33  ;;  %v3967_v39 = vadd.f32 %v3966_v35, %v3936_v37 }
 0x287   : > { %3476 = vst.msk [vmem:[#allocation2 + $0x70] sm:$0xf] %vm3447_vm15, %v3408_v19 }
 0x288   : > { %v3898_v40 = vadd.f32 %v11028_v7, %v3897_v38 }
 0x289   : > { %v3414_v41 = vpop.permute.xlu1 %3413 }
 0x28a   : > { %3479 = vst.msk [vmem:[#allocation2 + $0x7c] sm:$0xf] %vm3447_vm15, %v3414_v41  ;;  %v3412_v44 = vpop.permute.xlu0 %3411  ;;  %v4821_v41 = vld [vmem:[#allocation3 + $0x4] sm:$0xf] }
 0x28b   : > { %3478 = vst.msk [vmem:[#allocation2 + $0x78] sm:$0xf] %vm3447_vm15, %v3412_v44  ;;  %v4878_v44 = vshll.u32 %v4821_v41, 16  ;;  %v4882_v24 = vshrl.u32 %v4821_v41, 16 }
 0x28d   : > { %v4880_v45 = vrot.slane %v4878_v44, 5  ;;  %v4884_v54 = vrot.slane %v4882_v24, 4 }
 0x28e   : > { %v9339_v49 = vld [vmem:[#allocation2 + $0x70] sm:$0xff]  }
 0x28f   : > { %9261 = vmatprep.mubr.msk.bf16.mxu0 %vm3612_vm0, %v9339_v49  ;;  %v3968_v49 = vadd.f32 %v3967_v39, %v3937_v29  ;;  %v4885_v59 = vor.u32 %v4884_v54, %v4880_v45  ;;  %v4881_v23 = vsel %vm9451_vm2, %v4876_v1, %v4880_v45 }
 0x290   : > { %5252 = vrot.lane.b32.xlu0 %v4881_v23, %s9372_s11 }
 0x291   : > { %v4886_v3 = vrot.slane %v4885_v59, 4 }
 0x292   : > { %v9340_v53 = vld [vmem:[#allocation2 + $0x78] sm:$0xff]  }
 0x293   : > { %9262 = vmatmul.mubr.msk.bf16.gmra.mxu0 %vm3612_vm0, %v9340_v53  ;;  %v4891_v18 = vsel %vm9451_vm2, %v4886_v3, %v4890_v60 }
 0x294   : > { %5254 = vrot.lane.b32.xlu1 %v4891_v18, %s9372_s11 }
 0x29b   : > { %v11038_v16 = vpop.f32.mrf.mxu0 }
 0x29c   : > { %v3940_v15 = vmul.f32 %v11038_v16, %v11038_v16 }
 0x29d   : > { %v11043_v13 = vpop.f32.mrf.mxu0 }
 0x29e   : > { %v3938_v43 = vmul.f32 %v11043_v13, %v11043_v13  ;;  %v3899_v52 = vadd.f32 %v3898_v40, %v11043_v13 }
 0x29f   : > { %v11050_v12 = vpop.f32.mrf.mxu0 }
 0x2a0   : > { %v3969_v47 = vadd.f32 %v3968_v49, %v3938_v43  ;;  %v3941_v25 = vmul.f32 %v11050_v12, %v11050_v12 }
 0x2a1   : > { %v11058_v34 = vpop.f32.mrf.mxu0 }
 0x2a2   : > { %v3939_v53 = vmul.f32 %v11058_v34, %v11058_v34  ;;  %v3900_v58 = vadd.f32 %v3899_v52, %v11058_v34 }
 0x2a4   : > { %v3970_v2 = vadd.f32 %v3969_v47, %v3939_v53  ;;  %v3901_v17 = vadd.f32 %v11038_v16, %v3900_v58 }
 0x2a6   : > { %v3971_v20 = vadd.f32 %v3970_v2, %v3940_v15  ;;  %v3902_v26 = vadd.f32 %v11050_v12, %v3901_v17 }
 0x2a8   : > { %v3972_v30 = vadd.f32 %v3971_v20, %v3941_v25 }
 0x2bb   : > { %v11060_v36 = vpop.f32.mrf.mxu0 }
 0x2bc   : > { %v3944_v39 = vmul.f32 %v11060_v36, %v11060_v36 }
 0x2bd   : > { %v11065_v19 = vpop.f32.mrf.mxu0 }
 0x2be   : > { %v3942_v28 = vmul.f32 %v11065_v19, %v11065_v19  ;;  %v3903_v21 = vadd.f32 %v3902_v26, %v11065_v19 }
 0x2bf   : > { %v11072_v50 = vpop.f32.mrf.mxu0 }
 0x2c0   : > { %v3973_v33 = vadd.f32 %v3972_v30, %v3942_v28  ;;  %v3945_v42 = vmul.f32 %v11072_v50, %v11072_v50 }
 0x2c1   : > { %v11078_v61 = vpop.f32.mrf.mxu0 }
 0x2c2   : > { %v3943_v32 = vmul.f32 %v11078_v61, %v11078_v61  ;;  %v3904_v35 = vadd.f32 %v3903_v21, %v11078_v61 }
 0x2c4   : > { %v3974_v37 = vadd.f32 %v3973_v33, %v3943_v32  ;;  %v3905_v29 = vadd.f32 %v11060_v36, %v3904_v35 }
 0x2c6   : > { %v3975_v41 = vadd.f32 %v3974_v37, %v3944_v39  ;;  %v3906_v43 = vadd.f32 %v11072_v50, %v3905_v29 }
 0x2c8   : > { %v3976_v49 = vadd.f32 %v3975_v41, %v3945_v42 }
 0x2db   : > { %v11080_v9 = vpop.f32.mrf.mxu0 }
 0x2dc   : > { %v3948_v56 = vmul.f32 %v11080_v9, %v11080_v9 }
 0x2dd   : > { %v11088_v22 = vpop.f32.mrf.mxu0 }
 0x2de   : > { %v3946_v44 = vmul.f32 %v11088_v22, %v11088_v22  ;;  %v3907_v48 = vadd.f32 %v3906_v43, %v11088_v22 }
 0x2df   : > { %v11101_v31 = vpop.f32.mrf.mxu0 }
 0x2e0   : > { %v3977_v53 = vadd.f32 %v3976_v49, %v3946_v44  ;;  %v3949_v60 = vmul.f32 %v11101_v31, %v11101_v31 }
 0x2e1   : > { %v11104_v38 = vpop.f32.mrf.mxu0 }
 0x2e2   : > { %v3947_v52 = vmul.f32 %v11104_v38, %v11104_v38  ;;  %v3908_v45 = vadd.f32 %v3907_v48, %v11104_v38 }
 0x2e4   : > { %v3978_v55 = vadd.f32 %v3977_v53, %v3947_v52  ;;  %v3909_v46 = vadd.f32 %v11080_v9, %v3908_v45 }
 0x2e6   : > { %v3979_v58 = vadd.f32 %v3978_v55, %v3948_v56  ;;  %v3910_v63 = vadd.f32 %v11101_v31, %v3909_v46 }
 0x2e8   : > { %v3980_v3 = vadd.f32 %v3979_v58, %v3949_v60 }
 0x303   : > { %v11109_v40 = vpop.f32.mrf.mxu0 }
 0x304   : > { %v3952_v23 = vmul.f32 %v11109_v40, %v11109_v40 }
 0x305   : > { %v11116_v24 = vpop.f32.mrf.mxu0 }
 0x306   : > { %v3950_v0 = vmul.f32 %v11116_v24, %v11116_v24  ;;  %v3911_v2 = vadd.f32 %v3910_v63, %v11116_v24 }
 0x307   : > { %v11122_v54 = vpop.f32.mrf.mxu0 }
 0x308   : > { %v3981_v17 = vadd.f32 %v3980_v3, %v3950_v0  ;;  %v3953_v21 = vmul.f32 %v11122_v54, %v11122_v54 }
 0x309   : > { %v11127_v47 = vpop.f32.mrf.mxu0 }
 0x30a   : > { %v3951_v14 = vmul.f32 %v11127_v47, %v11127_v47  ;;  %v3912_v18 = vadd.f32 %v3911_v2, %v11127_v47 }
 0x30c   : > { %v3982_v1 = vadd.f32 %v3981_v17, %v3951_v14  ;;  %v3913_v25 = vadd.f32 %v11109_v40, %v3912_v18 }
 0x30e   : > { %v3983_v26 = vadd.f32 %v3982_v1, %v3952_v23  ;;  %v3914_v30 = vadd.f32 %v11122_v54, %v3913_v25 }
 0x310   : > { %v3984_v35 = vadd.f32 %v3983_v26, %v3953_v21 }
 0x32b   : > { %v11129_v59 = vpop.f32.mrf.mxu0 }
 0x32c   : > { %v3956_v42 = vmul.f32 %v11129_v59, %v11129_v59 }
 0x32d   : > { %v11139_v15 = vpop.f32.mrf.mxu0 }
 0x32e   : > { %v3954_v32 = vmul.f32 %v11139_v15, %v11139_v15  ;;  %v3915_v33 = vadd.f32 %v3914_v30, %v11139_v15 }
 0x32f   : > { %v11142_v20 = vpop.f32.mrf.mxu0 }
 0x330   : > { %v3985_v39 = vadd.f32 %v3984_v35, %v3954_v32  ;;  %v3957_v52 = vmul.f32 %v11142_v20, %v11142_v20 }
 0x331   : > { %v11147_v28 = vpop.f32.mrf.mxu0 }
 0x332   : > { %v3955_v37 = vmul.f32 %v11147_v28, %v11147_v28  ;;  %v3916_v29 = vadd.f32 %v3915_v33, %v11147_v28 }
 0x334   : > { %v3986_v41 = vadd.f32 %v3985_v39, %v3955_v37  ;;  %v3917_v43 = vadd.f32 %v11129_v59, %v3916_v29 }
 0x336   : > { %v3987_v48 = vadd.f32 %v3986_v41, %v3956_v42  ;;  %v3918_v53 = vadd.f32 %v11142_v20, %v3917_v43 }
 0x338   : > { %v3988_v46 = vadd.f32 %v3987_v48, %v3957_v52 }
 0x353   : > { %v11161_v44 = vpop.f32.mrf.mxu0 }
 0x354   : > { %v3960_v2 = vmul.f32 %v11161_v44, %v11161_v44 }
 0x355   : > { %v3811_v49 = vpop.f32.mrf.mxu0 }
 0x356   : > { %v3958_v45 = vmul.f32 %v3811_v49, %v3811_v49  ;;  %v3919_v56 = vadd.f32 %v3918_v53, %v3811_v49 }
 0x357   : > { %v11166_v55 = vpop.f32.mrf.mxu0 }
 0x358   : > { %v3989_v60 = vadd.f32 %v3988_v46, %v3958_v45  ;;  %v3961_v17 = vmul.f32 %v11166_v55, %v11166_v55  ;;  %v4008_v46 = vlaneseq }
 0x359   : > { %v3814_v58 = vpop.f32.mrf.mxu0 }
 0x35a   : > { %v3920_v63 = vadd.f32 %v3919_v56, %v3814_v58  ;;  %v3959_v0 = vmul.f32 %v3814_v58, %v3814_v58 }
 0x35c   : > { %v3921_v3 = vadd.f32 %v11161_v44, %v3920_v63  ;;  %v3990_v14 = vadd.f32 %v3989_v60, %v3959_v0  ;;  %v4009_v60 = vshrl.u32 %v4008_v46, 7  ;;  %v3858_v63 = vld [vmem:[%s13249_s3] sm:$0x1]  ;;  %v13285_v46 = vmov 0 }
 0x35d   : > { %v13286_v46 = vsel %vm11238_vm1, 4294967295, %v13285_v46 }
 0x35e   : > { %v3922_v18 = vadd.f32 %v11166_v55, %v3921_v3  ;;  %v3991_v1 = vadd.f32 %v3990_v14, %v3960_v2  ;;  %v11177_v0 = vsub.s32 0, %v4009_v60  ;;  %v3859_v14 = vld [vmem:[%s13250_s4] sm:$0x1]  ;;  %13287 = vst [vmem:[#allocation9_spill] sm:$0xff] %v13286_v46  ;;  %v4746_v60 = vld [vmem:[#allocation3 + $0xbc] sm:$0x1] }
 0x360   : > { %v3923_v23 = vrot.slane %v3922_v18, 4  ;;  %v3992_v25 = vadd.f32 %v3991_v1, %v3961_v17  ;;  %13284 = vst [vmem:[#allocation8_spill] sm:$0xff] %v11177_v0 }
 0x362   : > { %v3924_v26 = vadd.f32 %v3923_v23, %v3922_v18  ;;  %v3993_v21 = vrot.slane %v3992_v25, 4 }
 0x364   : > { %v3925_v30 = vrot.slane %v3924_v26, 2  ;;  %v3994_v32 = vadd.f32 %v3993_v21, %v3992_v25 }
 0x366   : > { %v3926_v33 = vadd.f32 %v3925_v30, %v3924_v26  ;;  %v3995_v35 = vrot.slane %v3994_v32, 2 }
 0x368   : > { %v3927_v37 = vrot.slane %v3926_v33, 1  ;;  %v3996_v39 = vadd.f32 %v3995_v35, %v3994_v32 }
 0x36a   : > { %v3928_v29 = vadd.f32 %v3927_v37, %v3926_v33  ;;  %v3997_v41 = vrot.slane %v3996_v39, 1 }
 0x36c   : > { %v3929_v42 = vmul.f32 0.00390625, %v3928_v29  ;;  %v3998_v43 = vadd.f32 %v3997_v41, %v3996_v39 }
 0x36e   : > { %v3999_v48 = vmul.f32 0.00390625, %v3998_v43  ;;  %v4000_v52 = vmul.f32 %v3929_v42, %v3929_v42 }
 0x370   : > { %v4001_v53 = vsub.f32 %v3999_v48, %v4000_v52 }
 0x372   : > { %v4002_v45 = vmax.f32 %v4001_v53, 0.0 }
 0x374   : > { %v4003_v56 = vadd.f32 1e-05, %v4002_v45 }
 0x376   : > { %9360 = vrsqrt.f32 %v4003_v56 }
 0x383   : > { %v9361_v2 = vpop.eup %9360 }
 0x384   : > { %v4005_v3 = vmul.f32 %v9361_v2, %v3858_v63 }
 0x386   : > { %v4006_v17 = vmul.f32 %v4005_v3, %v3929_v42  ;;  %v4011_v18 = vrot.slane %v4005_v3, %v11177_v0 }
 0x388   : > { %v4007_v1 = vsub.f32 %v3859_v14, %v4006_v17  ;;  %v4040_v23 = vmul.f32 %v4011_v18, %v3811_v49  ;;  %v4041_v25 = vmul.f32 %v4011_v18, %v3814_v58  ;;  %v4012_v26 = vmul.f32 %v4011_v18, %v11018_v6 }
 0x389   : > { %v4013_v21 = vmul.f32 %v4011_v18, %v11022_v51  ;;  %v4014_v30 = vmul.f32 %v11016_v4, %v4011_v18  ;;  %v4015_v32 = vmul.f32 %v11020_v5, %v4011_v18  ;;  %v4016_v33 = vmul.f32 %v4011_v18, %v11026_v57 }
 0x38a   : > { %v11189_v35 = vrot.slane %v4007_v1, %v11177_v0  ;;  %v4017_v37 = vmul.f32 %v4011_v18, %v11032_v11  ;;  %v4018_v39 = vmul.f32 %v11024_v8, %v4011_v18  ;;  %v4019_v49 = vmul.f32 %v11028_v7, %v4011_v18 }
 0x38b   : > { %v4020_v6 = vmul.f32 %v4011_v18, %v11043_v13  ;;  %v4021_v51 = vmul.f32 %v4011_v18, %v11058_v34  ;;  %v4022_v4 = vmul.f32 %v11038_v16, %v4011_v18  ;;  %v4023_v5 = vmul.f32 %v11050_v12, %v4011_v18 }
 0x38c   : > { %v4078_v57 = vadd.f32 %v11189_v35, %v4040_v23  ;;  %v4079_v58 = vadd.f32 %v11189_v35, %v4041_v25  ;;  %v4024_v29 = vmul.f32 %v4011_v18, %v11065_v19  ;;  %v4025_v11 = vmul.f32 %v4011_v18, %v11078_v61 }
 0x38d   : > { %v4026_v8 = vmul.f32 %v11060_v36, %v4011_v18  ;;  %v4027_v7 = vmul.f32 %v11072_v50, %v4011_v18  ;;  %v4028_v13 = vmul.f32 %v4011_v18, %v11088_v22  ;;  %v4029_v34 = vmul.f32 %v4011_v18, %v11104_v38 }
 0x38e   : > { %v4110_v41 = vmax.f32 %v4078_v57, 0.0  ;;  %v4111_v16 = vmax.f32 %v4079_v58, 0.0  ;;  %v4030_v12 = vmul.f32 %v11080_v9, %v4011_v18  ;;  %v4031_v42 = vmul.f32 %v11101_v31, %v4011_v18 }
 0x38f   : > { %v4032_v43 = vmul.f32 %v4011_v18, %v11116_v24  ;;  %v4033_v19 = vmul.f32 %v4011_v18, %v11127_v47  ;;  %v4034_v61 = vmul.f32 %v11109_v40, %v4011_v18  ;;  %v4035_v36 = vmul.f32 %v11122_v54, %v4011_v18 }
 0x390   : > { %v9185_v48 = vpack.c.bf16 %v4110_v41, %v4110_v41  ;;  %v9186_v50 = vpack.c.bf16 %v4111_v16, %v4111_v16  ;;  %v4036_v22 = vmul.f32 %v4011_v18, %v11139_v15  ;;  %v4037_v38 = vmul.f32 %v4011_v18, %v11147_v28 }
 0x391   : > { %v4038_v52 = vmul.f32 %v11129_v59, %v4011_v18  ;;  %v4039_v9 = vmul.f32 %v11142_v20, %v4011_v18  ;;  %v4042_v31 = vmul.f32 %v11161_v44, %v4011_v18  ;;  %v4043_v24 = vmul.f32 %v11166_v55, %v4011_v18 }
 0x392   : > { %v4561_v53 = vshrl.u32 %v9185_v48, 16  ;;  %v4569_v47 = vshrl.u32 %v9186_v50, 16  ;;  %v4572_v45 = vshll.u32 %v9186_v50, 16  ;;  %v4564_v40 = vshll.u32 %v9185_v48, 16 }
 0x393   : > { %v11219_v54 = vadd.f32 %v11189_v35, %v4012_v26  ;;  %v11222_v56 = vadd.f32 %v11189_v35, %v4013_v21  ;;  %v11225_v15 = vadd.f32 %v11189_v35, %v4014_v30  ;;  %v11228_v59 = vadd.f32 %v11189_v35, %v4015_v32 }
 0x394   : > { %v4563_v20 = vrot.slane %v4561_v53, 7  ;;  %v4571_v28 = vrot.slane %v4569_v47, 7  ;;  %v11231_v44 = vadd.f32 %v11189_v35, %v4016_v33  ;;  %v11234_v55 = vadd.f32 %v11189_v35, %v4017_v37  ;;  %v4742_v47 = vld [vmem:[#allocation3 + $0xb4] sm:$0xf] }
 0x395   : > { %v11243_v63 = vadd.f32 %v11189_v35, %v4018_v39  ;;  %v11246_v2 = vadd.f32 %v11189_v35, %v4019_v49  ;;  %v11249_v3 = vadd.f32 %v11189_v35, %v4020_v6  ;;  %v11252_v14 = vadd.f32 %v11189_v35, %v4021_v51 }
 0x396   : > { %v4567_v17 = vrot.slane %v4563_v20, 4  ;;  %v4574_v18 = vor.u32 %v4572_v45, %v4571_v28  ;;  %v4576_v1 = vrot.slane %v4571_v28, 4  ;;  %v11255_v23 = vadd.f32 %v11189_v35, %v4022_v4 }
 0x397   : > { %v11258_v25 = vadd.f32 %v11189_v35, %v4023_v5  ;;  %v11261_v26 = vadd.f32 %v11189_v35, %v4024_v29  ;;  %v11264_v21 = vadd.f32 %v11189_v35, %v4025_v11  ;;  %v11267_v30 = vadd.f32 %v11189_v35, %v4026_v8 }
 0x398   : > { %v4575_v32 = vsel %vm11238_vm1, %v4567_v17, %v4574_v18  ;;  %v4747_v33 = vsel %vm10709_vm5, %v4576_v1, %v4746_v60  ;;  %v11274_v37 = vadd.f32 %v11189_v35, %v4027_v7  ;;  %v11277_v39 = vadd.f32 %v11189_v35, %v4028_v13 }
 0x399   : > { %4745 = vst.msk [vmem:[#allocation3 + $0xb8] sm:$0xf] %vm359_vm3, %v4575_v32  ;;  %4748 = vst [vmem:[#allocation3 + $0xbc] sm:$0x1] %v4747_v33  ;;  %v11281_v49 = vadd.f32 %v11189_v35, %v4029_v34  ;;  %v11284_v6 = vadd.f32 %v11189_v35, %v4030_v12  ;;  %v11287_v51 = vadd.f32 %v11189_v35, %v4031_v42  ;;  %v4082_v16 = vmax.f32 %v11219_v54, 0.0 }
 0x39a   : > { %v11290_v4 = vadd.f32 %v11189_v35, %v4032_v43  ;;  %v11293_v5 = vadd.f32 %v11189_v35, %v4033_v19  ;;  %v11296_v57 = vadd.f32 %v11189_v35, %v4034_v61  ;;  %v11299_v58 = vadd.f32 %v11189_v35, %v4035_v36 }
 0x39b   : > { %v11302_v29 = vadd.f32 %v11189_v35, %v4036_v22  ;;  %v11305_v11 = vadd.f32 %v11189_v35, %v4037_v38  ;;  %v11308_v8 = vadd.f32 %v11189_v35, %v4038_v52  ;;  %v11311_v7 = vadd.f32 %v11189_v35, %v4039_v9 }
 0x39c   : > { %v11314_v13 = vadd.f32 %v11189_v35, %v4042_v31  ;;  %v11317_v34 = vadd.f32 %v11189_v35, %v4043_v24  ;;  %v4566_v41 = vor.u32 %v4564_v40, %v4563_v20  ;;  %v4083_v12 = vmax.f32 %v11222_v56, 0.0 }
 0x39d   : > { %v4084_v42 = vmax.f32 %v11225_v15, 0.0  ;;  %v4085_v43 = vmax.f32 %v11228_v59, 0.0  ;;  %v4086_v19 = vmax.f32 %v11231_v44, 0.0  ;;  %v4087_v61 = vmax.f32 %v11234_v55, 0.0 }
 0x39e   : > { %v4088_v36 = vmax.f32 %v11243_v63, 0.0  ;;  %v4089_v48 = vmax.f32 %v11246_v2, 0.0  ;;  %v4090_v35 = vmax.f32 %v11249_v3, 0.0  ;;  %v4091_v50 = vmax.f32 %v11252_v14, 0.0 }
 0x39f   : > { %v4092_v22 = vmax.f32 %v11255_v23, 0.0  ;;  %v4093_v38 = vmax.f32 %v11258_v25, 0.0  ;;  %v4094_v52 = vmax.f32 %v11261_v26, 0.0  ;;  %v4095_v9 = vmax.f32 %v11264_v21, 0.0 }
 0x3a0   : > { %v4096_v31 = vmax.f32 %v11267_v30, 0.0  ;;  %v4097_v24 = vmax.f32 %v11274_v37, 0.0  ;;  %v4098_v45 = vmax.f32 %v11277_v39, 0.0  ;;  %v4099_v40 = vmax.f32 %v11281_v49, 0.0 }
 0x3a1   : > { %v4100_v54 = vmax.f32 %v11284_v6, 0.0  ;;  %v4101_v56 = vmax.f32 %v11287_v51, 0.0  ;;  %v4102_v15 = vmax.f32 %v11290_v4, 0.0  ;;  %v4103_v59 = vmax.f32 %v11293_v5, 0.0 }
 0x3a2   : > { %v4104_v20 = vmax.f32 %v11296_v57, 0.0  ;;  %v4105_v28 = vmax.f32 %v11299_v58, 0.0  ;;  %v4106_v44 = vmax.f32 %v11302_v29, 0.0  ;;  %v4107_v55 = vmax.f32 %v11305_v11, 0.0  ;;  %v4648_v57 = vld [vmem:[#allocation3 + $0x14] sm:$0x1] }
 0x3a3   : > { %v4108_v60 = vmax.f32 %v11308_v8, 0.0  ;;  %v4109_v63 = vmax.f32 %v11311_v7, 0.0  ;;  %v4112_v2 = vmax.f32 %v11314_v13, 0.0  ;;  %v4743_v3 = vsel %vm11337_vm4, %v4566_v41, %v4742_v47 }
 0x3a4   : > { %v9157_v14 = vpack.c.bf16 %v4082_v16, %v4082_v16  ;;  %v9158_v17 = vpack.c.bf16 %v4083_v12, %v4083_v12  ;;  %v4113_v18 = vmax.f32 %v11317_v34, 0.0  ;;  %v11357_v1 = vpack.c.bf16 %v4084_v42, %v4084_v42  ;;  %4744 = vst [vmem:[#allocation3 + $0xb4] sm:$0xf] %v4743_v3 }
 0x3a5   : > { %v11359_v23 = vpack.c.bf16 %v4085_v43, %v4085_v43  ;;  %v11361_v25 = vpack.c.bf16 %v4086_v19, %v4086_v19  ;;  %v11363_v30 = vpack.c.bf16 %v4087_v61, %v4087_v61  ;;  %v11365_v32 = vpack.c.bf16 %v4088_v36, %v4088_v36 }
 0x3a6   : > { %v4323_v26 = vshrl.u32 %v9157_v14, 16  ;;  %v4331_v21 = vshrl.u32 %v9158_v17, 16  ;;  %v4334_v33 = vshll.u32 %v9158_v17, 16  ;;  %v11367_v37 = vpack.c.bf16 %v4089_v48, %v4089_v48 }
 0x3a7   : > { %v11369_v39 = vpack.c.bf16 %v4090_v35, %v4090_v35  ;;  %v11371_v49 = vpack.c.bf16 %v4091_v50, %v4091_v50  ;;  %v11373_v4 = vpack.c.bf16 %v4092_v22, %v4092_v22  ;;  %v11375_v5 = vpack.c.bf16 %v4093_v38, %v4093_v38 }
 0x3a8   : > { %v4325_v6 = vrot.slane %v4323_v26, 7  ;;  %v4333_v51 = vrot.slane %v4331_v21, 7  ;;  %v11377_v58 = vpack.c.bf16 %v4094_v52, %v4094_v52  ;;  %v11379_v29 = vpack.c.bf16 %v4095_v9, %v4095_v9 }
 0x3a9   : > { %v11381_v11 = vpack.c.bf16 %v4096_v31, %v4096_v31  ;;  %v11383_v8 = vpack.c.bf16 %v4097_v24, %v4097_v24  ;;  %v11385_v12 = vpack.c.bf16 %v4098_v45, %v4098_v45  ;;  %v11387_v42 = vpack.c.bf16 %v4099_v40, %v4099_v40  ;;  %v4644_v40 = vld [vmem:[#allocation3 + $0xc] sm:$0xf] }
 0x3aa   : > { %v4329_v7 = vrot.slane %v4325_v6, 4  ;;  %v4336_v41 = vor.u32 %v4334_v33, %v4333_v51  ;;  %v4338_v16 = vrot.slane %v4333_v51, 4  ;;  %v11389_v43 = vpack.c.bf16 %v4100_v54, %v4100_v54 }
 0x3ab   : > { %v11391_v19 = vpack.c.bf16 %v4101_v56, %v4101_v56  ;;  %v11393_v61 = vpack.c.bf16 %v4102_v15, %v4102_v15  ;;  %v11399_v35 = vpack.c.bf16 %v4103_v59, %v4103_v59  ;;  %v11401_v50 = vpack.c.bf16 %v4104_v20, %v4104_v20 }
 0x3ac   : > { %v4337_v36 = vsel %vm11238_vm1, %v4329_v7, %v4336_v41  ;;  %v4649_v48 = vsel %vm10709_vm5, %v4338_v16, %v4648_v57  ;;  %v11404_v22 = vpack.c.bf16 %v4105_v28, %v4105_v28  ;;  %v11406_v38 = vpack.c.bf16 %v4106_v44, %v4106_v44 }
 0x3ad   : > { %4647 = vst.msk [vmem:[#allocation3 + $0x10] sm:$0xf] %vm359_vm3, %v4337_v36  ;;  %4650 = vst [vmem:[#allocation3 + $0x14] sm:$0x1] %v4649_v48  ;;  %v11408_v52 = vpack.c.bf16 %v4107_v55, %v4107_v55  ;;  %v11410_v9 = vpack.c.bf16 %v4108_v60, %v4108_v60  ;;  %v11412_v31 = vpack.c.bf16 %v4109_v63, %v4109_v63  ;;  %v4326_v24 = vshll.u32 %v9157_v14, 16 }
 0x3ae   : > { %v4340_v47 = vshrl.u32 %v11357_v1, 16  ;;  %v4343_v45 = vshll.u32 %v11357_v1, 16  ;;  %v4348_v54 = vshrl.u32 %v11359_v23, 16  ;;  %v4351_v56 = vshll.u32 %v11359_v23, 16  ;;  %v4787_v23 = vld [vmem:[#allocation3 + $0xb8] sm:$0xf] }
 0x3af   : > { %v4357_v15 = vshrl.u32 %v11361_v25, 16  ;;  %v4328_v20 = vor.u32 %v4326_v24, %v4325_v6  ;;  %v4365_v28 = vshrl.u32 %v11363_v30, 16  ;;  %v4374_v55 = vshrl.u32 %v11365_v32, 16  ;;  %4819 = vst.msk [vmem:[#allocation2 + $0x7c] sm:$0xf] %vm359_vm3, %v4787_v23 }
 0x3b0   : > { %v4382_v63 = vshrl.u32 %v11367_v37, 16  ;;  %v4391_v14 = vshrl.u32 %v11369_v39, 16  ;;  %v4399_v21 = vshrl.u32 %v11371_v49, 16  ;;  %v4408_v6 = vshrl.u32 %v11373_v4, 16  ;;  %v4651_v23 = vld [vmem:[#allocation3 + $0x18] sm:$0xf] }
 0x3b1   : > { %v4645_v17 = vsel %vm11337_vm4, %v4328_v20, %v4644_v40  ;;  %v4416_v57 = vshrl.u32 %v11375_v5, 16  ;;  %v11439_v36 = vpack.c.bf16 %v4112_v2, %v4112_v2  ;;  %v11444_v48 = vpack.c.bf16 %v4113_v18, %v4113_v18 }
 0x3b2   : > { %4646 = vst [vmem:[#allocation3 + $0xc] sm:$0xf] %v4645_v17  ;;  %v4544_v2 = vshrl.u32 %v11410_v9, 16  ;;  %v11497_v24 = vrot.slane %v4365_v28, 7 }
 0x3b3   : > { %13290 = vst [vmem:[#allocation10_spill] sm:$0xff] %v11444_v48 }
 0x3b4   : > { %v4824_v41 = vld [vmem:[#allocation3 + $0x10] sm:$0xf]  ;;  %v4825_v16 = vld [vmem:[#allocation3 + $0x14] sm:$0x1]  ;;  %v11585_v46 = vrot.slane %v4544_v2, 7  ;;  %v13307_v2 = vshll.u32 %v11363_v30, 16 }
 0x3b5   : > { %v4902_v20 = vshll.u32 %v4824_v41, 16  ;;  %v4906_v17 = vshrl.u32 %v4824_v41, 16  ;;  %v4912_v51 = vshll.u32 %v4825_v16, 16  ;;  %v4759_v44 = vld [vmem:[#allocation3 + $0x10] sm:$0xf]  ;;  %v13310_v30 = vshll.u32 %v11369_v39, 16 }
 0x3b6   : > { %4791 = vst.msk [vmem:[#allocation2 + $0xc] sm:$0xf] %vm359_vm3, %v4759_v44  ;;  %v4342_v44 = vrot.slane %v4340_v47, 7  ;;  %v11509_v47 = vrot.slane %v4391_v14, 7  ;;  %v11524_v14 = vrot.slane %v4408_v6, 7 }
 0x3b7   : > { %v4904_v26 = vrot.slane %v4902_v20, 5  ;;  %v4908_v18 = vrot.slane %v4906_v17, 4  ;;  %v4914_v3 = vrot.slane %v4912_v51, 5  ;;  %v4518_v51 = vshrl.u32 %v11404_v22, 16  ;;  %v4786_v6 = vld [vmem:[#allocation3 + $0xb4] sm:$0xf] }
 0x3b8   : > { %v4535_v20 = vshrl.u32 %v11408_v52, 16  ;;  %4818 = vst.msk [vmem:[#allocation2 + $0x78] sm:$0xf] %vm359_vm3, %v4786_v6 }
 0x3b9   : > { %v4909_v59 = vor.u32 %v4908_v18, %v4904_v26  ;;  %v4823_v17 = vld [vmem:[#allocation3 + $0xc] sm:$0xf]  ;;  %v4510_v18 = vshrl.u32 %v11401_v50, 16  ;;  %v11579_v6 = vrot.slane %v4518_v51, 7 }
 0x3ba   : > { %v4893_v33 = vshrl.u32 %v4823_v17, 16  ;;  %v4896_v13 = vshll.u32 %v4823_v17, 16  ;;  %v4758_v60 = vld [vmem:[#allocation3 + $0xc] sm:$0xf] }
 0x3bb   : > { %v4910_v34 = vrot.slane %v4909_v59, 4  ;;  %v4527_v59 = vshrl.u32 %v11406_v38, 16  ;;  %4790 = vst.msk [vmem:[#allocation2 + $0x8] sm:$0xf] %vm359_vm3, %v4758_v60  ;;  %v11501_v60 = vrot.slane %v4374_v55, 7  ;;  %v4345_v55 = vor.u32 %v4343_v45, %v4342_v44 }
 0x3bc   : > { %v4895_v41 = vrot.slane %v4893_v33, 4  ;;  %v4898_v7 = vrot.slane %v4896_v13, 5  ;;  %v4578_v13 = vshrl.u32 %v11439_v36, 16  ;;  %v4655_v33 = vld [vmem:[#allocation3 + $0x20] sm:$0x1]  ;;  %v13292_v45 = vshrl.u32 %v11377_v58, 16 }
 0x3bd   : > { %v4915_v40 = vsel %vm9451_vm2, %v4910_v34, %v4914_v3  ;;  %v4552_v3 = vshrl.u32 %v11412_v31, 16  ;;  %v11581_v10 = vrot.slane %v4527_v59, 7 }
 0x3be   : > { %5258 = vrot.lane.b32.xlu1 %v4915_v40, %s9372_s11  ;;  %v4899_v16 = vor.u32 %v4898_v7, %v4895_v41  ;;  %v4586_v40 = vshrl.u32 %v11444_v48, 16  ;;  %v4350_v7 = vrot.slane %v4348_v54, 7  ;;  %v11493_v41 = vrot.slane %v4357_v15, 7 }
 0x3bf   : > { %v4346_v15 = vrot.slane %v4342_v44, 4  ;;  %v11536_v44 = vrot.slane %v13292_v45, 7  ;;  %v11589_v48 = vrot.slane %v4578_v13, 7  ;;  %v13308_v13 = vshll.u32 %v11365_v32, 16 }
 0x3c0   : > { %v4900_v17 = vrot.slane %v4899_v16, 4  ;;  %v11505_v16 = vrot.slane %v4382_v63, 7  ;;  %v4353_v28 = vor.u32 %v4351_v56, %v4350_v7  ;;  %v4355_v34 = vrot.slane %v4350_v7, 4 }
 0x3c1   : > { %v11520_v63 = vrot.slane %v4399_v21, 7  ;;  %v13293_v21 = vshrl.u32 %v11379_v29, 16  ;;  %v13312_v32 = vshll.u32 %v11371_v49, 16 }
 0x3c2   : > { %v4905_v54 = vsel %vm9451_vm2, %v4900_v17, %v4904_v26  ;;  %v11528_v26 = vrot.slane %v4416_v57, 7  ;;  %v4354_v56 = vsel %vm11238_vm1, %v4346_v15, %v4353_v28  ;;  %v4656_v1 = vsel %vm10709_vm5, %v4355_v34, %v4655_v33 }
 0x3c3   : > { %5256 = vrot.lane.b32.xlu0 %v4905_v54, %s9372_s11  ;;  %13291 = vst [vmem:[#allocation11_spill] sm:$0xff] %v11520_v63  ;;  %v11540_v17 = vrot.slane %v13293_v21, 7  ;;  %4654 = vst.msk [vmem:[#allocation3 + $0x1c] sm:$0xf] %vm359_vm3, %v4354_v56  ;;  %v13294_v57 = vshrl.u32 %v11381_v11, 16  ;;  %v13295_v33 = vshrl.u32 %v11383_v8, 16 }
 0x3c4   : > { %4657 = vst [vmem:[#allocation3 + $0x20] sm:$0x1] %v4656_v1  ;;  %v13297_v54 = vshrl.u32 %v11385_v12, 16  ;;  %v13298_v28 = vshrl.u32 %v11387_v42, 16  ;;  %v13300_v56 = vshrl.u32 %v11389_v43, 16  ;;  %v13301_v21 = vshrl.u32 %v11391_v19, 16 }
 0x3c5   : > { %v11546_v7 = vrot.slane %v13294_v57, 7  ;;  %v11550_v34 = vrot.slane %v13295_v33, 7  ;;  %v13302_v33 = vshrl.u32 %v11393_v61, 16 }
 0x3c6   : > { %v11554_v15 = vrot.slane %v13297_v54, 7  ;;  %v11558_v45 = vrot.slane %v13298_v28, 7  ;;  %v11563_v1 = vrot.slane %v13300_v56, 7  ;;  %v11567_v57 = vrot.slane %v13301_v21, 7 }
 0x3c7   : > { %13296 = vst [vmem:[#allocation12_spill] sm:$0xff] %v11550_v34  ;;  %v11571_v0 = vrot.slane %v13302_v33, 7  ;;  %v13303_v54 = vshrl.u32 %v11399_v35, 16  ;;  %v11577_v28 = vrot.slane %v4510_v18, 7  ;;  %v11583_v56 = vrot.slane %v4535_v20, 7 }
 0x3c8   : > { %13299 = vst [vmem:[#allocation13_spill] sm:$0xff] %v11558_v45  ;;  %v11587_v21 = vrot.slane %v4552_v3, 7  ;;  %v11591_v33 = vrot.slane %v4586_v40, 7  ;;  %v13306_v18 = vshll.u32 %v11361_v25, 16  ;;  %v11604_v20 = vor.u32 %v13307_v2, %v11497_v24 }
 0x3c9   : > { %v11575_v62 = vrot.slane %v13303_v54, 7  ;;  %v4652_v54 = vsel %vm11337_vm4, %v4345_v55, %v4651_v23  ;;  %v11610_v40 = vor.u32 %v13308_v13, %v11501_v60  ;;  %v13309_v25 = vshll.u32 %v11367_v37, 16 }
 0x3ca   : > { %13304 = vst [vmem:[#allocation14_spill] sm:$0xff] %v11587_v21  ;;  %13305 = vst [vmem:[#allocation15_spill] sm:$0xff] %v11591_v33  ;;  %v11598_v51 = vor.u32 %v13306_v18, %v11493_v41  ;;  %v11628_v13 = vor.u32 %v13312_v32, %v11520_v63  ;;  %v4827_v55 = vld [vmem:[#allocation3 + $0x1c] sm:$0xf]  ;;  %v13316_v37 = vshll.u32 %v11377_v58, 16 }
 0x3cb   : > { %4653 = vst [vmem:[#allocation3 + $0x18] sm:$0xf] %v4652_v54  ;;  %v11616_v23 = vor.u32 %v13309_v25, %v11505_v16  ;;  %v11622_v54 = vor.u32 %v13310_v30, %v11509_v47  ;;  %v4828_v3 = vld [vmem:[#allocation3 + $0x20] sm:$0x1]  ;;  %v13313_v25 = vshll.u32 %v11373_v4, 16  ;;  %v13315_v30 = vshll.u32 %v11375_v5, 16 }
 0x3cc   : > { %v4926_v59 = vshll.u32 %v4827_v55, 16  ;;  %v4930_v49 = vshrl.u32 %v4827_v55, 16  ;;  %v4936_v32 = vshll.u32 %v4828_v3, 16  ;;  %v11646_v63 = vor.u32 %v13316_v37, %v11536_v44 }
 0x3cd   : > { %13311 = vst [vmem:[#allocation16_spill] sm:$0xff] %v11622_v54  ;;  %v11634_v18 = vor.u32 %v13313_v25, %v11524_v14  ;;  %v11640_v2 = vor.u32 %v13315_v30, %v11528_v26  ;;  %v13317_v25 = vshll.u32 %v11379_v29, 16  ;;  %v4761_v30 = vld [vmem:[#allocation3 + $0x1c] sm:$0xf]  ;;  %v13318_v54 = vshll.u32 %v11381_v11, 16 }
 0x3ce   : > { %v4932_v3 = vrot.slane %v4930_v49, 4  ;;  %v4938_v55 = vrot.slane %v4936_v32, 5  ;;  %4793 = vst.msk [vmem:[#allocation2 + $0x14] sm:$0xf] %vm359_vm3, %v4761_v30  ;;  %v13319_v29 = vshll.u32 %v11383_v8, 16  ;;  %v13322_v30 = vshll.u32 %v11387_v42, 16 }
 0x3cf   : > { %13314 = vst [vmem:[#allocation17_spill] sm:$0xff] %v11634_v18  ;;  %v11652_v39 = vor.u32 %v13317_v25, %v11540_v17  ;;  %v11655_v18 = vrot.slane %v4926_v59, 5  ;;  %v11660_v58 = vor.u32 %v13318_v54, %v11546_v7  ;;  %v13320_v59 = vshll.u32 %v11385_v12, 16 }
 0x3d0   : > { %v11667_v25 = vor.u32 %v13319_v29, %v11550_v34  ;;  %v11680_v37 = vor.u32 %v13322_v30, %v11558_v45  ;;  %v13323_v5 = vshll.u32 %v11389_v43, 16  ;;  %v13324_v32 = vshll.u32 %v11391_v19, 16  ;;  %v5253_v45 = vpop.permute.xlu0 %5252 }
 0x3d1   : > { %v11673_v49 = vor.u32 %v13320_v59, %v11554_v15  ;;  %v4933_v11 = vor.u32 %v4932_v3, %v11655_v18  ;;  %v13325_v30 = vshll.u32 %v11393_v61, 16  ;;  %v4499_v59 = vrot.slane %v11571_v0, 4  ;;  %5348 = vst.msk [vmem:[#allocation2] sm:$0xf] %vm923_vm7, %v5253_v45 }
 0x3d2   : > { %v4826_v54 = vld [vmem:[#allocation3 + $0x18] sm:$0xf]  ;;  %v11686_v12 = vor.u32 %v13323_v5, %v11563_v1  ;;  %v4489_v34 = vor.u32 %v13324_v32, %v11567_v57  ;;  %v4683_v32 = vld [vmem:[#allocation3 + $0x50] sm:$0x1] }
 0x3d3   : > { %13321 = vst [vmem:[#allocation18_spill] sm:$0xff] %v11673_v49  ;;  %v4917_v29 = vshrl.u32 %v4826_v54, 16  ;;  %v4920_v4 = vshll.u32 %v4826_v54, 16  ;;  %v4760_v3 = vld [vmem:[#allocation3 + $0x18] sm:$0xf]  ;;  %v4934_v49 = vrot.slane %v4933_v11, 4  ;;  %v11696_v8 = vor.u32 %v13325_v30, %v11571_v0  ;;  %v5255_v54 = vpop.permute.xlu1 %5254 }
 0x3d4   : > { %4792 = vst.msk [vmem:[#allocation2 + $0x10] sm:$0xf] %vm359_vm3, %v4760_v3  ;;  %v13326_v11 = vshll.u32 %v11399_v35, 16  ;;  %v13327_v3 = vshll.u32 %v11401_v50, 16  ;;  %v4516_v0 = vrot.slane %v11577_v28, 4  ;;  %v4533_v50 = vrot.slane %v11581_v10, 4 }
 0x3d5   : > { %v4919_v43 = vrot.slane %v4917_v29, 4  ;;  %v4922_v5 = vrot.slane %v4920_v4, 5  ;;  %5349 = vst.msk [vmem:[#allocation2 + $0x4] sm:$0xf] %vm923_vm7, %v5255_v54  ;;  %v4939_v61 = vsel %vm9451_vm2, %v4934_v49, %v4938_v55  ;;  %v13328_v4 = vshll.u32 %v11404_v22, 16 }
 0x3d6   : > { %v4506_v19 = vor.u32 %v13326_v11, %v11575_v62  ;;  %v11711_v29 = vor.u32 %v13327_v3, %v11577_v28  ;;  %5262 = vrot.lane.b32.xlu1 %v4939_v61, %s9372_s11  ;;  %v13329_v55 = vshll.u32 %v11406_v38, 16  ;;  %v4662_v54 = vld [vmem:[#allocation3 + $0x2c] sm:$0x1]  ;;  %v13330_v28 = vshll.u32 %v11408_v52, 16  ;;  %v4658_v52 = vld [vmem:[#allocation3 + $0x24] sm:$0xf] }
 0x3d7   : > { %v4923_v35 = vor.u32 %v4922_v5, %v4919_v43  ;;  %v4523_v30 = vor.u32 %v13328_v4, %v11579_v6  ;;  %v13331_v22 = vshll.u32 %v11410_v9, 16  ;;  %v4550_v3 = vrot.slane %v11585_v46, 4 }
 0x3d8   : > { %v11722_v49 = vor.u32 %v13329_v55, %v11581_v10  ;;  %v4540_v11 = vor.u32 %v13330_v28, %v11583_v56  ;;  %v13332_v38 = vshll.u32 %v11412_v31, 16  ;;  %v11739_v55 = vld [vmem:[#allocation3 + $0x30] sm:$0xf]  ;;  %v4669_v28 = vld [vmem:[#allocation3 + $0x38] sm:$0x1]  ;;  %v13333_v43 = vshll.u32 %v11439_v36, 16 }
 0x3d9   : > { %v11732_v5 = vor.u32 %v13331_v22, %v11585_v46  ;;  %v4924_v61 = vrot.slane %v4923_v35, 4  ;;  %v4584_v9 = vrot.slane %v11589_v48, 4  ;;  %v13335_v35 = vld [vmem:[#allocation10_spill] sm:$0xff]  ;;  %v4672_v10 = vld [vmem:[#allocation3 + $0x3c] sm:$0xf]  ;;  %v13337_v36 = vrot.slane %v11493_v41, 4 }
 0x3da   : > { %v4557_v4 = vor.u32 %v13332_v38, %v11587_v21  ;;  %v11744_v45 = vor.u32 %v13333_v43, %v11589_v48  ;;  %v13336_v46 = vshll.u32 %v13335_v35, 16  ;;  %v11751_v38 = vld [vmem:[#allocation3 + $0x48] sm:$0xf]  ;;  %v13341_v31 = vrot.slane %v11501_v60, 4  ;;  %v4676_v21 = vld [vmem:[#allocation3 + $0x44] sm:$0x1] }
 0x3db   : > { %v4929_v42 = vsel %vm9451_vm2, %v4924_v61, %v11655_v18  ;;  %v4371_v48 = vsel %vm11238_vm1, %v13337_v36, %v11604_v20  ;;  %v4686_v18 = vld [vmem:[#allocation3 + $0x54] sm:$0xf]  ;;  %v13343_v60 = vrot.slane %v11524_v14, 4  ;;  %v11795_v14 = vld [vmem:[#allocation3 + $0x78] sm:$0xf]  ;;  %v4666_v61 = vsel %vm11337_vm4, %v11610_v40, %v11739_v55 }
 0x3dc   : > { %13334 = vst [vmem:[#allocation19_spill] sm:$0xff] %v11744_v45  ;;  %v4591_v22 = vor.u32 %v13336_v46, %v11591_v33  ;;  %v13339_v45 = vrot.slane %v11497_v24, 4  ;;  %v4388_v33 = vsel %vm11238_vm1, %v13341_v31, %v11616_v23  ;;  %5260 = vrot.lane.b32.xlu0 %v4929_v42, %s9372_s11  ;;  %4661 = vst.msk [vmem:[#allocation3 + $0x28] sm:$0xf] %vm359_vm3, %v4371_v48  ;;  %v13342_v24 = vrot.slane %v11509_v47, 4 }
 0x3dd   : > { %v4422_v20 = vsel %vm11238_vm1, %v13343_v60, %v11640_v2  ;;  %v13344_v23 = vrot.slane %v11536_v44, 4  ;;  %4668 = vst.msk [vmem:[#allocation3 + $0x34] sm:$0xf] %vm359_vm3, %v4388_v33  ;;  %v13346_v2 = vrot.slane %v11554_v15, 4  ;;  %v4524_v33 = vsel %vm11238_vm1, %v4516_v0, %v4523_v30  ;;  %v4700_v15 = vld [vmem:[#allocation3 + $0x6c] sm:$0xf] }
 0x3de   : > { %v4663_v46 = vsel %vm10709_vm5, %v13339_v45, %v4662_v54  ;;  %v4405_v41 = vsel %vm11238_vm1, %v13342_v24, %v11628_v13  ;;  %v13345_v45 = vrot.slane %v11546_v7, 4  ;;  %v4697_v13 = vld [vmem:[#allocation3 + $0x68] sm:$0x1]  ;;  %v4690_v54 = vld [vmem:[#allocation3 + $0x5c] sm:$0x1]  ;;  %v4659_v0 = vsel %vm11337_vm4, %v11598_v51, %v4658_v52 }
 0x3df   : > { %4664 = vst [vmem:[#allocation3 + $0x2c] sm:$0x1] %v4663_v46  ;;  %v4439_v42 = vsel %vm11238_vm1, %v13344_v23, %v11652_v39  ;;  %v4473_v44 = vsel %vm11238_vm1, %v13346_v2, %v11680_v37  ;;  %v13347_v39 = vrot.slane %v11563_v1, 4  ;;  %4675 = vst.msk [vmem:[#allocation3 + $0x40] sm:$0xf] %vm359_vm3, %v4405_v41  ;;  %v13353_v36 = vrot.slane %v11528_v26, 4 }
 0x3e0   : > { %v4456_v47 = vsel %vm11238_vm1, %v13345_v45, %v11667_v25  ;;  %v4507_v25 = vsel %vm11238_vm1, %v4499_v59, %v4506_v19  ;;  %4682 = vst.msk [vmem:[#allocation3 + $0x4c] sm:$0xf] %vm359_vm3, %v4422_v20  ;;  %4689 = vst.msk [vmem:[#allocation3 + $0x58] sm:$0xf] %vm359_vm3, %v4439_v42  ;;  %v4711_v37 = vld [vmem:[#allocation3 + $0x80] sm:$0x1]  ;;  %v4558_v59 = vsel %vm11238_vm1, %v4550_v3, %v4557_v4 }
 0x3e1   : > { %v4490_v7 = vsel %vm11238_vm1, %v13347_v39, %v4489_v34  ;;  %4696 = vst.msk [vmem:[#allocation3 + $0x64] sm:$0xf] %vm359_vm3, %v4456_v47  ;;  %v4704_v1 = vld [vmem:[#allocation3 + $0x74] sm:$0x1]  ;;  %v4541_v34 = vsel %vm11238_vm1, %v4533_v50, %v4540_v11  ;;  %v4592_v19 = vsel %vm11238_vm1, %v4584_v9, %v4591_v22  ;;  %4703 = vst.msk [vmem:[#allocation3 + $0x70] sm:$0xf] %vm359_vm3, %v4473_v44 }
 0x3e2   : > { %4710 = vst.msk [vmem:[#allocation3 + $0x7c] sm:$0xf] %vm359_vm3, %v4490_v7  ;;  %4717 = vst.msk [vmem:[#allocation3 + $0x88] sm:$0xf] %vm359_vm3, %v4507_v25  ;;  %v4721_v30 = vld [vmem:[#allocation3 + $0x90] sm:$0xf]  ;;  %v4687_v43 = vsel %vm11337_vm4, %v11646_v63, %v4686_v18  ;;  %v4694_v26 = vsel %vm11337_vm4, %v11660_v58, %v11770_v27  ;;  %v4708_v42 = vsel %vm11337_vm4, %v11686_v12, %v11795_v14 }
 0x3e3   : > { %4724 = vst.msk [vmem:[#allocation3 + $0x94] sm:$0xf] %vm359_vm3, %v4524_v33  ;;  %v4714_v50 = vld [vmem:[#allocation3 + $0x84] sm:$0xf]  ;;  %v4718_v11 = vld [vmem:[#allocation3 + $0x8c] sm:$0x1] }
 0x3e4   : > { %v13348_v3 = vrot.slane %v11505_v16, 4  ;;  %v13349_v4 = vld [vmem:[#allocation16_spill] sm:$0xff]  ;;  %v13350_v9 = vld [vmem:[#allocation11_spill] sm:$0xff]  ;;  %4660 = vst [vmem:[#allocation3 + $0x24] sm:$0xf] %v4659_v0  ;;  %v13354_v48 = vrot.slane %v11540_v17, 4 }
 0x3e5   : > { %v4673_v52 = vsel %vm11337_vm4, %v13349_v4, %v4672_v10  ;;  %v13351_v22 = vrot.slane %v13350_v9, 4  ;;  %4731 = vst.msk [vmem:[#allocation3 + $0xa0] sm:$0xf] %vm359_vm3, %v4541_v34  ;;  %4738 = vst.msk [vmem:[#allocation3 + $0xac] sm:$0xf] %vm359_vm3, %v4558_v59  ;;  %v13357_v18 = vld [vmem:[#allocation18_spill] sm:$0xff] }
 0x3e6   : > { %v4670_v51 = vsel %vm10709_vm5, %v13348_v3, %v4669_v28  ;;  %4752 = vst.msk [vmem:[#allocation3 + $0xc4] sm:$0xf] %vm359_vm3, %v4592_v19  ;;  %v4725_v16 = vld [vmem:[#allocation3 + $0x98] sm:$0x1]  ;;  %v4728_v40 = vld [vmem:[#allocation3 + $0x9c] sm:$0xf]  ;;  %v4691_v46 = vsel %vm10709_vm5, %v13354_v48, %v4690_v54  ;;  %v4701_v17 = vsel %vm11337_vm4, %v13357_v18, %v4700_v15 }
 0x3e7   : > { %v4677_v31 = vsel %vm10709_vm5, %v13351_v22, %v4676_v21  ;;  %v4732_v55 = vld [vmem:[#allocation3 + $0xa4] sm:$0x1]  ;;  %v13352_v28 = vld [vmem:[#allocation17_spill] sm:$0xff]  ;;  %v4684_v21 = vsel %vm10709_vm5, %v13353_v36, %v4683_v32  ;;  %4667 = vst [vmem:[#allocation3 + $0x30] sm:$0xf] %v4666_v61  ;;  %v13355_v32 = vld [vmem:[#allocation12_spill] sm:$0xff] }
 0x3e8   : > { %v4680_v10 = vsel %vm11337_vm4, %v13352_v28, %v11751_v38  ;;  %4671 = vst [vmem:[#allocation3 + $0x38] sm:$0x1] %v4670_v51  ;;  %4674 = vst [vmem:[#allocation3 + $0x3c] sm:$0xf] %v4673_v52  ;;  %v4735_v24 = vld [vmem:[#allocation3 + $0xa8] sm:$0xf] }
 0x3e9   : > { %4678 = vst [vmem:[#allocation3 + $0x44] sm:$0x1] %v4677_v31  ;;  %v13356_v38 = vrot.slane %v13355_v32, 4  ;;  %v13358_v41 = vld [vmem:[#allocation13_spill] sm:$0xff]  ;;  %4681 = vst [vmem:[#allocation3 + $0x48] sm:$0xf] %v4680_v10  ;;  %v4736_v15 = vsel %vm11337_vm4, %v11732_v5, %v4735_v24 }
 0x3ea   : > { %v13359_v60 = vrot.slane %v13358_v41, 4  ;;  %4685 = vst [vmem:[#allocation3 + $0x50] sm:$0x1] %v4684_v21  ;;  %4688 = vst [vmem:[#allocation3 + $0x54] sm:$0xf] %v4687_v43  ;;  %v13360_v45 = vrot.slane %v11567_v57, 4  ;;  %v4722_v57 = vsel %vm11337_vm4, %v11711_v29, %v4721_v30 }
 0x3eb   : > { %v4698_v63 = vsel %vm10709_vm5, %v13356_v38, %v4697_v13  ;;  %4692 = vst [vmem:[#allocation3 + $0x5c] sm:$0x1] %v4691_v46  ;;  %v4739_v23 = vld [vmem:[#allocation3 + $0xb0] sm:$0x1]  ;;  %v4749_v27 = vld [vmem:[#allocation3 + $0xc0] sm:$0xf]  ;;  %v4715_v13 = vsel %vm11337_vm4, %v11696_v8, %v4714_v50 }
 0x3ec   : > { %v4705_v20 = vsel %vm10709_vm5, %v13359_v60, %v4704_v1  ;;  %v4753_v58 = vld [vmem:[#allocation3 + $0xc8] sm:$0x1]  ;;  %v4712_v47 = vsel %vm10709_vm5, %v13360_v45, %v4711_v37  ;;  %v13361_v54 = vrot.slane %v11575_v62, 4  ;;  %4695 = vst [vmem:[#allocation3 + $0x60] sm:$0xf] %v4694_v26  ;;  %v13362_v14 = vrot.slane %v11579_v6, 4 }
 0x3ed   : > { %4699 = vst [vmem:[#allocation3 + $0x68] sm:$0x1] %v4698_v63  ;;  %4702 = vst [vmem:[#allocation3 + $0x6c] sm:$0xf] %v4701_v17  ;;  %v4830_v44 = vld [vmem:[#allocation3 + $0x28] sm:$0xf]  ;;  %v4729_v62 = vsel %vm11337_vm4, %v11722_v49, %v4728_v40 }
 0x3ee   : > { %v4719_v2 = vsel %vm10709_vm5, %v13361_v54, %v4718_v11  ;;  %4706 = vst [vmem:[#allocation3 + $0x74] sm:$0x1] %v4705_v20  ;;  %v4831_v12 = vld [vmem:[#allocation3 + $0x2c] sm:$0x1]  ;;  %v4726_v8 = vsel %vm10709_vm5, %v13362_v14, %v4725_v16  ;;  %v13363_v39 = vrot.slane %v11583_v56, 4  ;;  %v4950_v29 = vshll.u32 %v4830_v44, 16 }
 0x3ef   : > { %4709 = vst [vmem:[#allocation3 + $0x78] sm:$0xf] %v4708_v42  ;;  %4713 = vst [vmem:[#allocation3 + $0x80] sm:$0x1] %v4712_v47  ;;  %v4833_v25 = vld [vmem:[#allocation3 + $0x34] sm:$0xf] }
 0x3f0   : > { %v4733_v7 = vsel %vm10709_vm5, %v13363_v39, %v4732_v55  ;;  %4716 = vst [vmem:[#allocation3 + $0x84] sm:$0xf] %v4715_v13  ;;  %4720 = vst [vmem:[#allocation3 + $0x8c] sm:$0x1] %v4719_v2  ;;  %v4954_v33 = vshrl.u32 %v4830_v44, 16  ;;  %v4960_v6 = vshll.u32 %v4831_v12, 16 }
 0x3f1   : > { %4723 = vst [vmem:[#allocation3 + $0x90] sm:$0xf] %v4722_v57  ;;  %4727 = vst [vmem:[#allocation3 + $0x98] sm:$0x1] %v4726_v8  ;;  %v4836_v56 = vld [vmem:[#allocation3 + $0x40] sm:$0xf] }
 0x3f2   : > { %4730 = vst [vmem:[#allocation3 + $0x9c] sm:$0xf] %v4729_v62  ;;  %4734 = vst [vmem:[#allocation3 + $0xa4] sm:$0x1] %v4733_v7  ;;  %v13364_v49 = vld [vmem:[#allocation14_spill] sm:$0xff]  ;;  %v13366_v34 = vld [vmem:[#allocation19_spill] sm:$0xff] }
 0x3f3   : > { %v13365_v37 = vrot.slane %v13364_v49, 4  ;;  %v4750_v59 = vsel %vm11337_vm4, %v13366_v34, %v4749_v27  ;;  %v13367_v19 = vld [vmem:[#allocation15_spill] sm:$0xff]  ;;  %4737 = vst [vmem:[#allocation3 + $0xa8] sm:$0xf] %v4736_v15  ;;  %v4974_v5 = vshll.u32 %v4833_v25, 16  ;;  %v4952_v50 = vrot.slane %v4950_v29, 5 }
 0x3f4   : > { %v13368_v0 = vrot.slane %v13367_v19, 4  ;;  %v4956_v11 = vrot.slane %v4954_v33, 4  ;;  %v4962_v61 = vrot.slane %v4960_v6, 5  ;;  %v4829_v3 = vld [vmem:[#allocation3 + $0x24] sm:$0xf]  ;;  %v4978_v51 = vshrl.u32 %v4833_v25, 16 }
 0x3f5   : > { %v4740_v1 = vsel %vm10709_vm5, %v13365_v37, %v4739_v23  ;;  %4751 = vst [vmem:[#allocation3 + $0xc0] sm:$0xf] %v4750_v59  ;;  %v4941_v4 = vshrl.u32 %v4829_v3, 16  ;;  %v4944_v52 = vshll.u32 %v4829_v3, 16  ;;  %v4834_v9 = vld [vmem:[#allocation3 + $0x38] sm:$0x1] }
 0x3f6   : > { %v4754_v30 = vsel %vm10709_vm5, %v13368_v0, %v4753_v58  ;;  %4741 = vst [vmem:[#allocation3 + $0xb0] sm:$0x1] %v4740_v1  ;;  %v4976_v53 = vrot.slane %v4974_v5, 5  ;;  %v4998_v22 = vshll.u32 %v4836_v56, 16  ;;  %v4957_v31 = vor.u32 %v4956_v11, %v4952_v50  ;;  %v4832_v35 = vld [vmem:[#allocation3 + $0x30] sm:$0xf] }
 0x3f7   : > { %4755 = vst [vmem:[#allocation3 + $0xc8] sm:$0x1] %v4754_v30  ;;  %v4980_v16 = vrot.slane %v4978_v51, 4  ;;  %v4984_v40 = vshll.u32 %v4834_v9, 16  ;;  %v4837_v55 = vld [vmem:[#allocation3 + $0x44] sm:$0x1] }
 0x3f8   : > { %v4943_v28 = vrot.slane %v4941_v4, 4  ;;  %v4946_v10 = vrot.slane %v4944_v52, 5  ;;  %v4965_v36 = vshrl.u32 %v4832_v35, 16  ;;  %v4968_v21 = vshll.u32 %v4832_v35, 16  ;;  %v4835_v43 = vld [vmem:[#allocation3 + $0x3c] sm:$0xf] }
 0x3f9   : > { %v4958_v48 = vrot.slane %v4957_v31, 4  ;;  %v4981_v46 = vor.u32 %v4980_v16, %v4976_v53  ;;  %v4986_v24 = vrot.slane %v4984_v40, 5  ;;  %v11918_v26 = vrot.slane %v4998_v22, 5  ;;  %v4839_v17 = vld [vmem:[#allocation3 + $0x4c] sm:$0xf] }
 0x3fa   : > { %v4947_v32 = vor.u32 %v4946_v10, %v4943_v28  ;;  %v4967_v38 = vrot.slane %v4965_v36, 4  ;;  %v4970_v63 = vrot.slane %v4968_v21, 5  ;;  %v5002_v18 = vshrl.u32 %v4836_v56, 16  ;;  %v4840_v58 = vld [vmem:[#allocation3 + $0x50] sm:$0x1] }
 0x3fb   : > { %v4963_v60 = vsel %vm9451_vm2, %v4958_v48, %v4962_v61  ;;  %v4982_v20 = vrot.slane %v4981_v46, 4  ;;  %v5008_v23 = vshll.u32 %v4837_v55, 16  ;;  %v4989_v27 = vshrl.u32 %v4835_v43, 16  ;;  %v4838_v54 = vld [vmem:[#allocation3 + $0x48] sm:$0xf] }
 0x3fc   : > { %5266 = vrot.lane.b32.xlu1 %v4963_v60, %s9372_s11  ;;  %v4948_v42 = vrot.slane %v4947_v32, 4  ;;  %v4971_v45 = vor.u32 %v4970_v63, %v4967_v38  ;;  %v5004_v47 = vrot.slane %v5002_v18, 4  ;;  %v4992_v13 = vshll.u32 %v4835_v43, 16  ;;  %v4842_v7 = vld [vmem:[#allocation3 + $0x58] sm:$0xf] }
 0x3fd   : > { %v4987_v2 = vsel %vm9451_vm2, %v4982_v20, %v4986_v24  ;;  %v5010_v44 = vrot.slane %v5008_v23, 5  ;;  %v4991_v12 = vrot.slane %v4989_v27, 4  ;;  %v5022_v57 = vshll.u32 %v4839_v17, 16  ;;  %v4843_v1 = vld [vmem:[#allocation3 + $0x5c] sm:$0x1] }
 0x3fe   : > { %v4953_v14 = vsel %vm9451_vm2, %v4948_v42, %v4952_v50  ;;  %v4972_v8 = vrot.slane %v4971_v45, 4  ;;  %v5005_v62 = vor.u32 %v5004_v47, %v11918_v26  ;;  %v4994_v39 = vrot.slane %v4992_v13, 5  ;;  %v4841_v34 = vld [vmem:[#allocation3 + $0x54] sm:$0xf]  ;;  %v4845_v3 = vld [vmem:[#allocation3 + $0x64] sm:$0xf] }
 0x3ff   : > { %5264 = vrot.lane.b32.xlu0 %v4953_v14, %s9372_s11  ;;  %v5024_v25 = vrot.slane %v5022_v57, 5  ;;  %v5026_v29 = vshrl.u32 %v4839_v17, 16  ;;  %v5032_v33 = vshll.u32 %v4840_v58, 16  ;;  %v5013_v6 = vshrl.u32 %v4838_v54, 16  ;;  %v4846_v40 = vld [vmem:[#allocation3 + $0x68] sm:$0x1] }
 0x400   : > { %5270 = vrot.lane.b32.xlu1 %v4987_v2, %s9372_s11  ;;  %v4977_v15 = vsel %vm9451_vm2, %v4972_v8, %v4976_v53  ;;  %v5006_v56 = vrot.slane %v5005_v62, 4  ;;  %v4995_v49 = vor.u32 %v4994_v39, %v4991_v12  ;;  %v5016_v37 = vshll.u32 %v4838_v54, 16  ;;  %v4844_v35 = vld [vmem:[#allocation3 + $0x60] sm:$0xf]  ;;  %v4848_v24 = vld [vmem:[#allocation3 + $0x70] sm:$0xf] }
 0x401   : > { %v5028_v59 = vrot.slane %v5026_v29, 4  ;;  %v5034_v19 = vrot.slane %v5032_v33, 5  ;;  %v5015_v0 = vrot.slane %v5013_v6, 4  ;;  %v5046_v30 = vshll.u32 %v4842_v7, 16  ;;  %v4849_v23 = vld [vmem:[#allocation3 + $0x74] sm:$0x1] }
 0x402   : > { %v5011_v5 = vsel %vm9451_vm2, %v5006_v56, %v5010_v44  ;;  %v4996_v50 = vrot.slane %v4995_v49, 4  ;;  %v5018_v11 = vrot.slane %v5016_v37, 5  ;;  %v5050_v61 = vshrl.u32 %v4842_v7, 16  ;;  %v4847_v27 = vld [vmem:[#allocation3 + $0x6c] sm:$0xf] }
 0x403   : > { %5268 = vrot.lane.b32.xlu0 %v4977_v15, %s9372_s11  ;;  %v5029_v51 = vor.u32 %v5028_v59, %v5024_v25  ;;  %v5048_v4 = vrot.slane %v5046_v30, 5  ;;  %v5056_v52 = vshll.u32 %v4843_v1, 16  ;;  %v5037_v9 = vshrl.u32 %v4841_v34, 16  ;;  %v4851_v12 = vld [vmem:[#allocation3 + $0x7c] sm:$0xf] }
 0x404   : > { %5274 = vrot.lane.b32.xlu1 %v5011_v5, %s9372_s11  ;;  %v5001_v53 = vsel %vm9451_vm2, %v4996_v50, %v11918_v26  ;;  %v5019_v22 = vor.u32 %v5018_v11, %v5015_v0  ;;  %v5052_v31 = vrot.slane %v5050_v61, 4  ;;  %v5040_v16 = vshll.u32 %v4841_v34, 16  ;;  %v4852_v39 = vld [vmem:[#allocation3 + $0x80] sm:$0x1]  ;;  %v4850_v6 = vld [vmem:[#allocation3 + $0x78] sm:$0xf] }
 0x405   : > { %v5030_v55 = vrot.slane %v5029_v51, 4  ;;  %v5058_v28 = vrot.slane %v5056_v52, 5  ;;  %v5039_v10 = vrot.slane %v5037_v9, 4  ;;  %v5070_v36 = vshll.u32 %v4845_v3, 16  ;;  %v4854_v0 = vld [vmem:[#allocation3 + $0x88] sm:$0xf] }
 0x406   : > { %v5020_v21 = vrot.slane %v5019_v22, 4  ;;  %v5053_v43 = vor.u32 %v5052_v31, %v5048_v4  ;;  %v5042_v48 = vrot.slane %v5040_v16, 5  ;;  %v5074_v46 = vshrl.u32 %v4845_v3, 16  ;;  %v4855_v61 = vld [vmem:[#allocation3 + $0x8c] sm:$0x1] }
 0x407   : > { %5272 = vrot.lane.b32.xlu0 %v5001_v53, %s9372_s11  ;;  %v5035_v32 = vsel %vm9451_vm2, %v5030_v55, %v5034_v19  ;;  %v5072_v26 = vrot.slane %v5070_v36, 5  ;;  %v5080_v38 = vshll.u32 %v4846_v40, 16  ;;  %v5061_v63 = vshrl.u32 %v4844_v35, 16  ;;  %v4853_v9 = vld [vmem:[#allocation3 + $0x84] sm:$0xf] }
 0x408   : > { %5278 = vrot.lane.b32.xlu1 %v5035_v32, %s9372_s11  ;;  %v5025_v18 = vsel %vm9451_vm2, %v5020_v21, %v5024_v25  ;;  %v5054_v17 = vrot.slane %v5053_v43, 4  ;;  %v5043_v60 = vor.u32 %v5042_v48, %v5039_v10  ;;  %v5076_v20 = vrot.slane %v5074_v46, 4 }
 0x409   : > { %v5082_v58 = vrot.slane %v5080_v38, 5  ;;  %v5063_v42 = vrot.slane %v5061_v63, 4  ;;  %v5064_v45 = vshll.u32 %v4844_v35, 16  ;;  %v5094_v47 = vshll.u32 %v4848_v24, 16 }
 0x40a   : > { %v5059_v13 = vsel %vm9451_vm2, %v5054_v17, %v5058_v28  ;;  %v5044_v54 = vrot.slane %v5043_v60, 4  ;;  %v5077_v2 = vor.u32 %v5076_v20, %v5072_v26  ;;  %v5098_v44 = vshrl.u32 %v4848_v24, 16  ;;  %v4857_v28 = vld [vmem:[#allocation3 + $0x94] sm:$0xf]  ;;  %v4858_v17 = vld [vmem:[#allocation3 + $0x98] sm:$0x1] }
 0x40b   : > { %5276 = vrot.lane.b32.xlu0 %v5025_v18, %s9372_s11  ;;  %v5066_v57 = vrot.slane %v5064_v45, 5  ;;  %v5096_v14 = vrot.slane %v5094_v47, 5  ;;  %v5104_v8 = vshll.u32 %v4849_v23, 16  ;;  %v5085_v62 = vshrl.u32 %v4847_v27, 16 }
 0x40c   : > { %5282 = vrot.lane.b32.xlu1 %v5059_v13, %s9372_s11  ;;  %v5049_v7 = vsel %vm9451_vm2, %v5044_v54, %v5048_v4  ;;  %v5078_v25 = vrot.slane %v5077_v2, 4  ;;  %v5100_v29 = vrot.slane %v5098_v44, 4  ;;  %v5088_v33 = vshll.u32 %v4847_v27, 16  ;;  %v4861_v2 = vld [vmem:[#allocation3 + $0xa4] sm:$0x1] }
 0x40d   : > { %v5067_v15 = vor.u32 %v5066_v57, %v5063_v42  ;;  %v5106_v56 = vrot.slane %v5104_v8, 5  ;;  %v5087_v49 = vrot.slane %v5085_v62, 4  ;;  %v5118_v37 = vshll.u32 %v4851_v12, 16  ;;  %v4860_v42 = vld [vmem:[#allocation3 + $0xa0] sm:$0xf] }
 0x40e   : > { %v5083_v1 = vsel %vm9451_vm2, %v5078_v25, %v5082_v58  ;;  %v5101_v34 = vor.u32 %v5100_v29, %v5096_v14  ;;  %v5090_v59 = vrot.slane %v5088_v33, 5  ;;  %v5122_v19 = vshrl.u32 %v4851_v12, 16  ;;  %v4859_v8 = vld [vmem:[#allocation3 + $0x9c] sm:$0xf] }
 0x40f   : > { %5280 = vrot.lane.b32.xlu0 %v5049_v7, %s9372_s11  ;;  %v5068_v30 = vrot.slane %v5067_v15, 4  ;;  %v5120_v5 = vrot.slane %v5118_v37, 5  ;;  %v5128_v50 = vshll.u32 %v4852_v39, 16  ;;  %v5109_v11 = vshrl.u32 %v4850_v6, 16 }
 0x410   : > { %5286 = vrot.lane.b32.xlu1 %v5083_v1, %s9372_s11  ;;  %v5102_v3 = vrot.slane %v5101_v34, 4  ;;  %v5091_v51 = vor.u32 %v5090_v59, %v5087_v49  ;;  %v5124_v4 = vrot.slane %v5122_v19, 4  ;;  %v5112_v52 = vshll.u32 %v4850_v6, 16 }
 0x411   : > { %v5073_v53 = vsel %vm9451_vm2, %v5068_v30, %v5072_v26  ;;  %v5111_v22 = vrot.slane %v5109_v11, 4  ;;  %v5142_v31 = vshll.u32 %v4854_v0, 16  ;;  %v5146_v36 = vshrl.u32 %v4854_v0, 16  ;;  %v4856_v26 = vld [vmem:[#allocation3 + $0x90] sm:$0xf] }
 0x412   : > { %v5107_v16 = vsel %vm9451_vm2, %v5102_v3, %v5106_v56  ;;  %v5092_v40 = vrot.slane %v5091_v51, 4  ;;  %v5125_v35 = vor.u32 %v5124_v4, %v5120_v5  ;;  %v5114_v55 = vrot.slane %v5112_v52, 5  ;;  %v4863_v56 = vld [vmem:[#allocation3 + $0xac] sm:$0xf]  ;;  %v4864_v3 = vld [vmem:[#allocation3 + $0xb0] sm:$0x1] }
 0x413   : > { %5284 = vrot.lane.b32.xlu0 %v5073_v53, %s9372_s11  ;;  %v5144_v10 = vrot.slane %v5142_v31, 5  ;;  %v5152_v21 = vshll.u32 %v4855_v61, 16  ;;  %v5133_v43 = vshrl.u32 %v4853_v9, 16  ;;  %v5130_v46 = vrot.slane %v5128_v50, 5 }
 0x414   : > { %5290 = vrot.lane.b32.xlu1 %v5107_v16, %s9372_s11  ;;  %v5126_v48 = vrot.slane %v5125_v35, 4  ;;  %v5115_v24 = vor.u32 %v5114_v55, %v5111_v22  ;;  %v5136_v32 = vshll.u32 %v4853_v9, 16  ;;  %v5097_v38 = vsel %vm9451_vm2, %v5092_v40, %v5096_v14  ;;  %v4866_v22 = vld [vmem:[#allocation3 + $0xb8] sm:$0xf]  ;;  %v4867_v55 = vld [vmem:[#allocation3 + $0xbc] sm:$0x1] }
 0x415   : > { %v5148_v63 = vrot.slane %v5146_v36, 4  ;;  %v5135_v18 = vrot.slane %v5133_v43, 4  ;;  %v5166_v60 = vshll.u32 %v4857_v28, 16  ;;  %v5154_v23 = vrot.slane %v5152_v21, 5  ;;  %v4865_v43 = vld [vmem:[#allocation3 + $0xb4] sm:$0xf] }
 0x416   : > { %v5116_v20 = vrot.slane %v5115_v24, 4  ;;  %v5138_v27 = vrot.slane %v5136_v32, 5  ;;  %v5170_v58 = vshrl.u32 %v4857_v28, 16  ;;  %v5131_v45 = vsel %vm9451_vm2, %v5126_v48, %v5130_v46 }
 0x417   : > { %5288 = vrot.lane.b32.xlu0 %v5097_v38, %s9372_s11  ;;  %v5149_v47 = vor.u32 %v5148_v63, %v5144_v10  ;;  %v5168_v13 = vrot.slane %v5166_v60, 5  ;;  %v5157_v54 = vshrl.u32 %v4856_v26, 16  ;;  %v5176_v57 = vshll.u32 %v4858_v17, 16  ;;  %v11983_v17 = vld [vmem:[#allocation3 + $0x4] sm:$0xf] }
 0x418   : > { %5294 = vrot.lane.b32.xlu1 %v5131_v45, %s9372_s11  ;;  %v5139_v44 = vor.u32 %v5138_v27, %v5135_v18  ;;  %v5172_v12 = vrot.slane %v5170_v58, 4  ;;  %v5160_v14 = vshll.u32 %v4856_v26, 16  ;;  %v5121_v62 = vsel %vm9451_vm2, %v5116_v20, %v5120_v5  ;;  %v4862_v5 = vld [vmem:[#allocation3 + $0xa8] sm:$0xf] }
 0x419   : > { %v5150_v39 = vrot.slane %v5149_v47, 4  ;;  %v5159_v7 = vrot.slane %v5157_v54, 4  ;;  %v5190_v25 = vshll.u32 %v4860_v42, 16  ;;  %v5194_v15 = vshrl.u32 %v4860_v42, 16 }
 0x41a   : > { %v5140_v29 = vrot.slane %v5139_v44, 4  ;;  %v5173_v33 = vor.u32 %v5172_v12, %v5168_v13  ;;  %v5162_v6 = vrot.slane %v5160_v14, 5  ;;  %v5200_v1 = vshll.u32 %v4861_v2, 16 }
 0x41b   : > { %5292 = vrot.lane.b32.xlu0 %v5121_v62, %s9372_s11  ;;  %v5155_v49 = vsel %vm9451_vm2, %v5150_v39, %v5154_v23  ;;  %v5192_v37 = vrot.slane %v5190_v25, 5  ;;  %v5181_v34 = vshrl.u32 %v4859_v8, 16  ;;  %v5178_v19 = vrot.slane %v5176_v57, 5  ;;  %v5380_v39 = vld [vmem:[#allocation3] sm:$0xe] }
 0x41c   : > { %5298 = vrot.lane.b32.xlu1 %v5155_v49, %s9372_s11  ;;  %v5174_v59 = vrot.slane %v5173_v33, 4  ;;  %v5163_v0 = vor.u32 %v5162_v6, %v5159_v7  ;;  %v5196_v30 = vrot.slane %v5194_v15, 4  ;;  %v5145_v50 = vsel %vm9451_vm2, %v5140_v29, %v5144_v10  ;;  %v11994_v33 = vld [vmem:[#allocation3 + $0x10] sm:$0xf]  ;;  %v4763_v6 = vld [vmem:[#allocation3 + $0x28] sm:$0xf] }
 0x41d   : > { %v5183_v11 = vrot.slane %v5181_v34, 4  ;;  %v5184_v61 = vshll.u32 %v4859_v8, 16  ;;  %v5214_v51 = vshll.u32 %v4863_v56, 16  ;;  %v5202_v9 = vrot.slane %v5200_v1, 5  ;;  %v5382_v8 = vld [vmem:[#allocation3 + $0x8] sm:$0x1] }
 0x41e   : > { %v5164_v4 = vrot.slane %v5163_v0, 4  ;;  %v5197_v52 = vor.u32 %v5196_v30, %v5192_v37  ;;  %v5218_v53 = vshrl.u32 %v4863_v56, 16  ;;  %v5179_v31 = vsel %vm9451_vm2, %v5174_v59, %v5178_v19  ;;  %4795 = vst.msk [vmem:[#allocation2 + $0x1c] sm:$0xf] %vm359_vm3, %v4763_v6  ;;  %v4762_v49 = vld [vmem:[#allocation3 + $0x24] sm:$0xf] }
 0x41f   : > { %5296 = vrot.lane.b32.xlu0 %v5145_v50, %s9372_s11  ;;  %v5186_v16 = vrot.slane %v5184_v61, 5  ;;  %v5216_v40 = vrot.slane %v5214_v51, 5  ;;  %v5205_v35 = vshrl.u32 %v4862_v5, 16  ;;  %v5224_v36 = vshll.u32 %v4864_v3, 16  ;;  %4794 = vst.msk [vmem:[#allocation2 + $0x18] sm:$0xf] %vm359_vm3, %v4762_v49 }
 0x420   : > { %5302 = vrot.lane.b32.xlu1 %v5179_v31, %s9372_s11  ;;  %v5198_v28 = vrot.slane %v5197_v52, 4  ;;  %v5220_v10 = vrot.slane %v5218_v53, 4  ;;  %v5208_v21 = vshll.u32 %v4862_v5, 16  ;;  %v5169_v48 = vsel %vm9451_vm2, %v5164_v4, %v5168_v13  ;;  %v4764_v59 = vld [vmem:[#allocation3 + $0x30] sm:$0xf] }
 0x421   : > { %v5187_v46 = vor.u32 %v5186_v16, %v5183_v11  ;;  %v5207_v24 = vrot.slane %v5205_v35, 4  ;;  %v5238_v32 = vshll.u32 %v4866_v22, 16  ;;  %v5242_v18 = vshrl.u32 %v4866_v22, 16  ;;  %4796 = vst.msk [vmem:[#allocation2 + $0x20] sm:$0xf] %vm359_vm3, %v4764_v59 }
 0x422   : > { %v5203_v26 = vsel %vm9451_vm2, %v5198_v28, %v5202_v9  ;;  %v5221_v38 = vor.u32 %v5220_v10, %v5216_v40  ;;  %v5210_v63 = vrot.slane %v5208_v21, 5  ;;  %v5248_v23 = vshll.u32 %v4867_v55, 16  ;;  %v4767_v30 = vld [vmem:[#allocation3 + $0x40] sm:$0xf]  ;;  %v4766_v5 = vld [vmem:[#allocation3 + $0x3c] sm:$0xf] }
 0x423   : > { %5300 = vrot.lane.b32.xlu0 %v5169_v48, %s9372_s11  ;;  %v5188_v60 = vrot.slane %v5187_v46, 4  ;;  %v5240_v20 = vrot.slane %v5238_v32, 5  ;;  %v5229_v27 = vshrl.u32 %v4865_v43, 16  ;;  %v5244_v45 = vrot.slane %v5242_v18, 4  ;;  %v12007_v11 = vld [vmem:[#allocation3 + $0x1c] sm:$0xf] }
 0x424   : > { %5306 = vrot.lane.b32.xlu1 %v5203_v26, %s9372_s11  ;;  %v5222_v58 = vrot.slane %v5221_v38, 4  ;;  %v5211_v42 = vor.u32 %v5210_v63, %v5207_v24  ;;  %v5232_v47 = vshll.u32 %v4865_v43, 16  ;;  %v5226_v13 = vrot.slane %v5224_v36, 5  ;;  %4799 = vst.msk [vmem:[#allocation2 + $0x2c] sm:$0xf] %vm359_vm3, %v4767_v30 }
 0x425   : > { %v5231_v54 = vrot.slane %v5229_v27, 4  ;;  %v5478_v2 = vrot.slane %v11983_v17, 5  ;;  %v5193_v44 = vsel %vm9451_vm2, %v5188_v60, %v5192_v37  ;;  %v5245_v57 = vor.u32 %v5244_v45, %v5240_v20  ;;  %v4765_v37 = vld [vmem:[#allocation3 + $0x34] sm:$0xf]  ;;  %4798 = vst.msk [vmem:[#allocation2 + $0x28] sm:$0xf] %vm359_vm3, %v4766_v5 }
 0x426   : > { %v5212_v12 = vrot.slane %v5211_v42, 4  ;;  %v5234_v14 = vrot.slane %v5232_v47, 5  ;;  %v5227_v62 = vsel %vm9451_vm2, %v5222_v58, %v5226_v13  ;;  %v5250_v25 = vrot.slane %v5248_v23, 5  ;;  %4797 = vst.msk [vmem:[#allocation2 + $0x24] sm:$0xf] %vm359_vm3, %v4765_v37 }
 0x427   : > { %5304 = vrot.lane.b32.xlu0 %v5193_v44, %s9372_s11  ;;  %v5246_v7 = vrot.slane %v5245_v57, 4  ;;  %v5480_v15 = vrot.slane %v5478_v2, 4  ;;  %v5481_v56 = vrot.slane %v5382_v8, 5  ;;  %v5485_v0 = vrot.slane %v11994_v33, 5  ;;  %v4769_v61 = vld [vmem:[#allocation3 + $0x4c] sm:$0xf] }
 0x428   : > { %5310 = vrot.lane.b32.xlu1 %v5227_v62, %s9372_s11  ;;  %v5235_v29 = vor.u32 %v5234_v14, %v5231_v54  ;;  %v5217_v1 = vsel %vm9451_vm2, %v5212_v12, %v5216_v40  ;;  %v9070_v50 = vrot.slane %v5380_v39, 9  ;;  %4801 = vst.msk [vmem:[#allocation2 + $0x34] sm:$0xf] %vm359_vm3, %v4769_v61  ;;  %v4768_v4 = vld [vmem:[#allocation3 + $0x48] sm:$0xf]  ;;  %v5492_v40 = vrot.slane %v12007_v11, 5 }
 0x429   : > { %v5251_v19 = vsel %vm9451_vm2, %v5246_v7, %v5250_v25  ;;  %v5482_v51 = vsel %vm9595_vm6, %v5480_v15, %v5481_v56  ;;  %v5385_v9 = vld [vmem:[#allocation3 + $0x14] sm:$0x1]  ;;  %4800 = vst.msk [vmem:[#allocation2 + $0x30] sm:$0xf] %vm359_vm3, %v4768_v4  ;;  %v4771_v53 = vld [vmem:[#allocation3 + $0x58] sm:$0xf] }
 0x42a   : > { %v5236_v34 = vrot.slane %v5235_v29, 4  ;;  %v4770_v22 = vld [vmem:[#allocation3 + $0x54] sm:$0xf]  ;;  %v5487_v31 = vrot.slane %v5485_v0, 4  ;;  %v5383_v16 = vld [vmem:[#allocation3 + $0xc] sm:$0xe]  ;;  %v5479_v55 = vsel %vm9595_vm6, %v9070_v50, %v5478_v2 }
 0x42b   : > { %5308 = vrot.lane.b32.xlu0 %v5217_v1, %s9372_s11  ;;  %4803 = vst.msk [vmem:[#allocation2 + $0x3c] sm:$0xf] %vm359_vm3, %v4771_v53  ;;  %4802 = vst.msk [vmem:[#allocation2 + $0x38] sm:$0xf] %vm359_vm3, %v4770_v22  ;;  %v4773_v35 = vld [vmem:[#allocation3 + $0x64] sm:$0xf] }
 0x42c   : > { %5314 = vrot.lane.b32.xlu1 %v5251_v19, %s9372_s11  ;;  %v5241_v52 = vsel %vm9451_vm2, %v5236_v34, %v5240_v20  ;;  %v5390_v28 = vld [vmem:[#allocation3 + $0x28] sm:$0xf]  ;;  %4805 = vst.msk [vmem:[#allocation2 + $0x44] sm:$0xf] %vm359_vm3, %v4773_v35  ;;  %v4772_v10 = vld [vmem:[#allocation3 + $0x60] sm:$0xf] }
 0x42d   : > { %v5488_v36 = vrot.slane %v5385_v9, 5  ;;  %4804 = vst.msk [vmem:[#allocation2 + $0x40] sm:$0xf] %vm359_vm3, %v4772_v10  ;;  %v4775_v21 = vld [vmem:[#allocation3 + $0x70] sm:$0xf]  ;;  %v9071_v48 = vrot.slane %v5383_v16, 9 }
 0x42e   : > { %v4774_v43 = vld [vmem:[#allocation3 + $0x6c] sm:$0xf]  ;;  %v5388_v46 = vld [vmem:[#allocation3 + $0x20] sm:$0x1]  ;;  %4807 = vst.msk [vmem:[#allocation2 + $0x4c] sm:$0xf] %vm359_vm3, %v4775_v21 }
 0x42f   : > { %5312 = vrot.lane.b32.xlu0 %v5241_v52, %s9372_s11  ;;  %4806 = vst.msk [vmem:[#allocation2 + $0x48] sm:$0xf] %vm359_vm3, %v4774_v43  ;;  %v4777_v24 = vld [vmem:[#allocation3 + $0x7c] sm:$0xf]  ;;  %v5489_v32 = vsel %vm9595_vm6, %v5487_v31, %v5488_v36  ;;  %v5494_v26 = vrot.slane %v5492_v40, 4  ;;  %v5499_v63 = vrot.slane %v5390_v28, 5  ;;  %v5486_v27 = vsel %vm9595_vm6, %v9071_v48, %v5485_v0 }
 0x430   : > { %5590 = vrot.lane.b32.xlu1 %v5482_v51, %s9373_s12  ;;  %v5386_v38 = vld [vmem:[#allocation3 + $0x18] sm:$0xe]  ;;  %4809 = vst.msk [vmem:[#allocation2 + $0x54] sm:$0xf] %vm359_vm3, %v4777_v24  ;;  %v5393_v17 = vld [vmem:[#allocation3 + $0x34] sm:$0xf]  ;;  %v5259_v50 = vpop.permute.xlu1 %5258 }
 0x431   : > { %v4776_v18 = vld [vmem:[#allocation3 + $0x78] sm:$0xf]  ;;  %v5495_v60 = vrot.slane %v5388_v46, 5  ;;  %v5391_v20 = vld [vmem:[#allocation3 + $0x2c] sm:$0x1]  ;;  %v9072_v58 = vrot.slane %v5386_v38, 9 }
 0x432   : > { %4808 = vst.msk [vmem:[#allocation2 + $0x50] sm:$0xf] %vm359_vm3, %v4776_v18  ;;  %v4779_v23 = vld [vmem:[#allocation3 + $0x88] sm:$0xf]  ;;  %v5389_v42 = vld [vmem:[#allocation3 + $0x24] sm:$0xe] }
 0x433   : > { %5588 = vrot.lane.b32.xlu0 %v5479_v55, %s9373_s12  ;;  %4811 = vst.msk [vmem:[#allocation2 + $0x5c] sm:$0xf] %vm359_vm3, %v4779_v23  ;;  %v4778_v45 = vld [vmem:[#allocation3 + $0x84] sm:$0xf]  ;;  %v5496_v47 = vsel %vm9595_vm6, %v5494_v26, %v5495_v60  ;;  %v5501_v13 = vrot.slane %v5499_v63, 4  ;;  %v5506_v54 = vrot.slane %v5393_v17, 5  ;;  %v5493_v14 = vsel %vm9595_vm6, %v9072_v58, %v5492_v40 }
 0x434   : > { %5594 = vrot.lane.b32.xlu1 %v5489_v32, %s9373_s12  ;;  %4810 = vst.msk [vmem:[#allocation2 + $0x58] sm:$0xf] %vm359_vm3, %v4778_v45  ;;  %v4781_v2 = vld [vmem:[#allocation3 + $0x94] sm:$0xf]  ;;  %v4780_v44 = vld [vmem:[#allocation3 + $0x90] sm:$0xf] }
 0x435   : > { %v5396_v12 = vld [vmem:[#allocation3 + $0x40] sm:$0xf]  ;;  %4813 = vst.msk [vmem:[#allocation2 + $0x64] sm:$0xf] %vm359_vm3, %v4781_v2  ;;  %4812 = vst.msk [vmem:[#allocation2 + $0x60] sm:$0xf] %vm359_vm3, %v4780_v44  ;;  %v5257_v35 = vpop.permute.xlu0 %5256 }
 0x436   : > { %v5502_v57 = vrot.slane %v5391_v20, 5  ;;  %v9073_v8 = vrot.slane %v5389_v42, 9  ;;  %v5394_v62 = vld [vmem:[#allocation3 + $0x38] sm:$0x1]  ;;  %v4783_v39 = vld [vmem:[#allocation3 + $0xa0] sm:$0xf] }
 0x437   : > { %5592 = vrot.lane.b32.xlu0 %v5486_v27, %s9373_s12  ;;  %v5508_v25 = vrot.slane %v5506_v54, 4  ;;  %v5392_v29 = vld [vmem:[#allocation3 + $0x30] sm:$0xe]  ;;  %v5513_v33 = vrot.slane %v5396_v12, 5  ;;  %4815 = vst.msk [vmem:[#allocation2 + $0x6c] sm:$0xf] %vm359_vm3, %v4783_v39 }
 0x438   : > { %5598 = vrot.lane.b32.xlu1 %v5496_v47, %s9373_s12  ;;  %v5503_v7 = vsel %vm9595_vm6, %v5501_v13, %v5502_v57  ;;  %v4782_v6 = vld [vmem:[#allocation3 + $0x9c] sm:$0xf]  ;;  %v5399_v15 = vld [vmem:[#allocation3 + $0x4c] sm:$0xf]  ;;  %v5509_v49 = vrot.slane %v5394_v62, 5  ;;  %v5500_v1 = vsel %vm9595_vm6, %v9073_v8, %v5499_v63  ;;  %v9074_v34 = vrot.slane %v5392_v29, 9 }
 0x439   : > { %4814 = vst.msk [vmem:[#allocation2 + $0x68] sm:$0xf] %vm359_vm3, %v4782_v6  ;;  %v4785_v56 = vld [vmem:[#allocation3 + $0xac] sm:$0xf]  ;;  %v4784_v37 = vld [vmem:[#allocation3 + $0xa8] sm:$0xf] }
 0x43a   : > { %4817 = vst.msk [vmem:[#allocation2 + $0x74] sm:$0xf] %vm359_vm3, %v4785_v56  ;;  %v5397_v59 = vld [vmem:[#allocation3 + $0x44] sm:$0x1]  ;;  %4816 = vst.msk [vmem:[#allocation2 + $0x70] sm:$0xf] %vm359_vm3, %v4784_v37  ;;  %v5510_v19 = vsel %vm9595_vm6, %v5508_v25, %v5509_v49  ;;  %v5507_v51 = vsel %vm9595_vm6, %v9074_v34, %v5506_v54 }
 0x43b   : > { %5596 = vrot.lane.b32.xlu0 %v5493_v14, %s9373_s12  ;;  %v5515_v0 = vrot.slane %v5513_v33, 4  ;;  %v5395_v30 = vld [vmem:[#allocation3 + $0x3c] sm:$0xe]  ;;  %v5520_v5 = vrot.slane %v5399_v15, 5  ;;  %v5402_v11 = vld [vmem:[#allocation3 + $0x58] sm:$0xf] }
 0x43c   : > { %5602 = vrot.lane.b32.xlu1 %v5503_v7, %s9373_s12  ;;  %5351 = vst.msk [vmem:[#allocation2 + $0xc] sm:$0xf] %vm923_vm7, %v5259_v50  ;;  %v5516_v61 = vrot.slane %v5397_v59, 5  ;;  %v9075_v4 = vrot.slane %v5395_v30, 9  ;;  %v5400_v52 = vld [vmem:[#allocation3 + $0x50] sm:$0x1] }
 0x43d   : > { %v5522_v53 = vrot.slane %v5520_v5, 4  ;;  %v5398_v22 = vld [vmem:[#allocation3 + $0x48] sm:$0xe]  ;;  %v5527_v31 = vrot.slane %v5402_v11, 5  ;;  %v5405_v16 = vld [vmem:[#allocation3 + $0x64] sm:$0xf] }
 0x43e   : > { %v5517_v9 = vsel %vm9595_vm6, %v5515_v0, %v5516_v61  ;;  %v5523_v40 = vrot.slane %v5400_v52, 5  ;;  %v5514_v55 = vsel %vm9595_vm6, %v9075_v4, %v5513_v33  ;;  %v9076_v28 = vrot.slane %v5398_v22, 9  ;;  %v5403_v10 = vld [vmem:[#allocation3 + $0x5c] sm:$0x1]  ;;  %5350 = vst.msk [vmem:[#allocation2 + $0x8] sm:$0xf] %vm923_vm7, %v5257_v35 }
 0x43f   : > { %5600 = vrot.lane.b32.xlu0 %v5500_v1, %s9373_s12  ;;  %v5529_v21 = vrot.slane %v5527_v31, 4  ;;  %v5401_v43 = vld [vmem:[#allocation3 + $0x54] sm:$0xe]  ;;  %v5534_v48 = vrot.slane %v5405_v16, 5  ;;  %v5408_v46 = vld [vmem:[#allocation3 + $0x70] sm:$0xf] }
 0x440   : > { %5606 = vrot.lane.b32.xlu1 %v5510_v19, %s9373_s12  ;;  %v5524_v36 = vsel %vm9595_vm6, %v5522_v53, %v5523_v40  ;;  %v5530_v24 = vrot.slane %v5403_v10, 5  ;;  %v5521_v32 = vsel %vm9595_vm6, %v9076_v28, %v5520_v5  ;;  %v9077_v26 = vrot.slane %v5401_v43, 9  ;;  %v5406_v38 = vld [vmem:[#allocation3 + $0x68] sm:$0x1]  ;;  %v5404_v17 = vld [vmem:[#allocation3 + $0x60] sm:$0xe] }
 0x441   : > { %v5536_v18 = vrot.slane %v5534_v48, 4  ;;  %v5541_v60 = vrot.slane %v5408_v46, 5  ;;  %v5411_v20 = vld [vmem:[#allocation3 + $0x7c] sm:$0xf]  ;;  %v5537_v23 = vrot.slane %v5406_v38, 5  ;;  %v9078_v58 = vrot.slane %v5404_v17, 9 }
 0x442   : > { %v5531_v63 = vsel %vm9595_vm6, %v5529_v21, %v5530_v24  ;;  %v5528_v27 = vsel %vm9595_vm6, %v9077_v26, %v5527_v31  ;;  %v5409_v42 = vld [vmem:[#allocation3 + $0x74] sm:$0x1]  ;;  %v5407_v13 = vld [vmem:[#allocation3 + $0x6c] sm:$0xe]  ;;  %v5548_v54 = vrot.slane %v5411_v20, 5  ;;  %vm13371_vm3 = vcmask 93248  }
 0x443   : > { %5604 = vrot.lane.b32.xlu0 %v5507_v51, %s9373_s12  ;;  %v5538_v45 = vsel %vm9595_vm6, %v5536_v18, %v5537_v23  ;;  %v5543_v47 = vrot.slane %v5541_v60, 4  ;;  %v5414_v2 = vld [vmem:[#allocation3 + $0x88] sm:$0xf]  ;;  %v5544_v44 = vrot.slane %v5409_v42, 5  ;;  %v5535_v12 = vsel %vm9595_vm6, %v9078_v58, %v5534_v48  ;;  %v5412_v14 = vld [vmem:[#allocation3 + $0x80] sm:$0x1]  ;;  %vm13373_vm9 = vmmov %vm13371_vm3 }
 0x444   : > { %5610 = vrot.lane.b32.xlu1 %v5517_v9, %s9373_s12  ;;  %v9079_v57 = vrot.slane %v5407_v13, 9  ;;  %v5550_v62 = vrot.slane %v5548_v54, 4  ;;  %v5410_v39 = vld [vmem:[#allocation3 + $0x78] sm:$0xe]  ;;  %v5555_v7 = vrot.slane %v5414_v2, 5  ;;  %v5551_v29 = vrot.slane %v5412_v14, 5  ;;  %vm13375_vm5 = vmmov %vm13371_vm3 }
 0x445   : > { %v5545_v8 = vsel %vm9595_vm6, %v5543_v47, %v5544_v44  ;;  %v5417_v25 = vld [vmem:[#allocation3 + $0x94] sm:$0xf]  ;;  %v9080_v6 = vrot.slane %v5410_v39, 9  ;;  %v5415_v15 = vld [vmem:[#allocation3 + $0x8c] sm:$0x1]  ;;  %vm13376_vm8 = vmmov %vm13371_vm3 }
 0x446   : > { %v5542_v33 = vsel %vm9595_vm6, %v9079_v57, %v5541_v60  ;;  %v5552_v56 = vsel %vm9595_vm6, %v5550_v62, %v5551_v29  ;;  %v5557_v49 = vrot.slane %v5555_v7, 4  ;;  %v5413_v37 = vld [vmem:[#allocation3 + $0x84] sm:$0xe]  ;;  %v5562_v1 = vrot.slane %v5417_v25, 5  ;;  %v5420_v34 = vld [vmem:[#allocation3 + $0xa0] sm:$0xf]  ;;  %vm13377_vm1 = vmmov %vm13371_vm3 }
 0x447   : > { %5608 = vrot.lane.b32.xlu0 %v5514_v55, %s9373_s12  ;;  %v5558_v19 = vrot.slane %v5415_v15, 5  ;;  %v5549_v0 = vsel %vm9595_vm6, %v9080_v6, %v5548_v54  ;;  %v9081_v30 = vrot.slane %v5413_v37, 9  ;;  %v5418_v5 = vld [vmem:[#allocation3 + $0x98] sm:$0x1]  ;;  %v5416_v61 = vld [vmem:[#allocation3 + $0x90] sm:$0xe]  ;;  %vm13378_vm4 = vmmov %vm13377_vm1 }
 0x448   : > { %5614 = vrot.lane.b32.xlu1 %v5524_v36, %s9373_s12  ;;  %v5263_v59 = vpop.permute.xlu1 %5262  ;;  %v5564_v11 = vrot.slane %v5562_v1, 4  ;;  %v5569_v51 = vrot.slane %v5420_v34, 5  ;;  %v5423_v4 = vld [vmem:[#allocation3 + $0xac] sm:$0xf]  ;;  %v5565_v52 = vrot.slane %v5418_v5, 5  ;;  %v9082_v22 = vrot.slane %v5416_v61, 9 }
 0x449   : > { %5353 = vst.msk [vmem:[#allocation2 + $0x14] sm:$0xf] %vm923_vm7, %v5263_v59  ;;  %v5559_v50 = vsel %vm9595_vm6, %v5557_v49, %v5558_v19  ;;  %v5556_v53 = vsel %vm9595_vm6, %v9081_v30, %v5555_v7  ;;  %v5421_v31 = vld [vmem:[#allocation3 + $0xa4] sm:$0x1]  ;;  %v5419_v35 = vld [vmem:[#allocation3 + $0x9c] sm:$0xe] }
 0x44a   : > { %v5566_v16 = vsel %vm9595_vm6, %v5564_v11, %v5565_v52  ;;  %v5571_v40 = vrot.slane %v5569_v51, 4  ;;  %v5576_v55 = vrot.slane %v5423_v4, 5  ;;  %v5426_v28 = vld [vmem:[#allocation3 + $0xb8] sm:$0xf]  ;;  %v5572_v10 = vrot.slane %v5421_v31, 5 }
 0x44b   : > { %5612 = vrot.lane.b32.xlu0 %v5521_v32, %s9373_s12  ;;  %v5563_v36 = vsel %vm9595_vm6, %v9082_v22, %v5562_v1  ;;  %v9083_v21 = vrot.slane %v5419_v35, 9  ;;  %v5424_v43 = vld [vmem:[#allocation3 + $0xb0] sm:$0x1]  ;;  %v5583_v48 = vrot.slane %v5426_v28, 5  ;;  %v5422_v32 = vld [vmem:[#allocation3 + $0xa8] sm:$0xe] }
 0x44c   : > { %5618 = vrot.lane.b32.xlu1 %v5531_v63, %s9373_s12  ;;  %v5573_v46 = vsel %vm9595_vm6, %v5571_v40, %v5572_v10  ;;  %v5578_v24 = vrot.slane %v5576_v55, 4  ;;  %v5909_v26 = vld [vmem:[#allocation3 + $0x10] sm:$0xf]  ;;  %v5579_v38 = vrot.slane %v5424_v43, 5  ;;  %v5427_v63 = vld [vmem:[#allocation3 + $0xbc] sm:$0x1] }
 0x44d   : > { %v5570_v18 = vsel %vm9595_vm6, %v9083_v21, %v5569_v51  ;;  %v9084_v17 = vrot.slane %v5422_v32, 9  ;;  %v5585_v60 = vrot.slane %v5583_v48, 4  ;;  %v5425_v20 = vld [vmem:[#allocation3 + $0xb4] sm:$0xe]  ;;  %v5970_v58 = vshrl.u32 %v5909_v26, 16 }
 0x44e   : > { %v5261_v9 = vpop.permute.xlu0 %5260  ;;  %v5580_v23 = vsel %vm9595_vm6, %v5578_v24, %v5579_v38  ;;  %v5908_v42 = vld [vmem:[#allocation3 + $0xc] sm:$0xf]  ;;  %v5912_v47 = vld [vmem:[#allocation3 + $0x1c] sm:$0xf]  ;;  %v9085_v13 = vrot.slane %v5425_v20, 9 }
 0x44f   : > { %5616 = vrot.lane.b32.xlu0 %v5528_v27, %s9373_s12  ;;  %5352 = vst.msk [vmem:[#allocation2 + $0x10] sm:$0xf] %vm923_vm7, %v5261_v9  ;;  %v5966_v27 = vshll.u32 %v5909_v26, 16  ;;  %v5577_v54 = vsel %vm9595_vm6, %v9084_v17, %v5576_v55  ;;  %v5957_v44 = vshrl.u32 %v5908_v42, 16  ;;  %v5972_v14 = vrot.slane %v5970_v58, 4 }
 0x450   : > { %5622 = vrot.lane.b32.xlu1 %v5538_v45, %s9373_s12  ;;  %v5586_v45 = vrot.slane %v5427_v63, 5  ;;  %v5994_v62 = vshrl.u32 %v5912_v47, 16  ;;  %v5911_v39 = vld [vmem:[#allocation3 + $0x18] sm:$0xf]  ;;  %v5584_v7 = vsel %vm9595_vm6, %v9085_v13, %v5583_v48  ;;  %v5910_v29 = vld [vmem:[#allocation3 + $0x14] sm:$0x1] }
 0x451   : > { %v5968_v57 = vrot.slane %v5966_v27, 5  ;;  %v5981_v15 = vshrl.u32 %v5911_v39, 16  ;;  %v5717_v49 = vld [vmem:[#allocation3 + $0x10] sm:$0xf]  ;;  %v5976_v19 = vshll.u32 %v5910_v29, 16 }
 0x452   : > { %v5587_v2 = vsel %vm9595_vm6, %v5585_v60, %v5586_v45  ;;  %v5996_v34 = vrot.slane %v5994_v62, 4  ;;  %v5719_v51 = vld [vmem:[#allocation3 + $0x1c] sm:$0xf]  ;;  %v6469_v9 = vld [vmem:[#allocation3 + $0x10] sm:$0xf] }
 0x453   : > { %5620 = vrot.lane.b32.xlu0 %v5535_v12, %s9373_s12  ;;  %v5960_v12 = vshll.u32 %v5908_v42, 16  ;;  %v5973_v37 = vor.u32 %v5972_v14, %v5968_v57  ;;  %v5983_v11 = vrot.slane %v5981_v15, 4  ;;  %v5978_v22 = vrot.slane %v5976_v19, 5  ;;  %v6472_v21 = vld [vmem:[#allocation3 + $0x1c] sm:$0xf] }
 0x454   : > { %5626 = vrot.lane.b32.xlu1 %v5545_v8, %s9373_s12  ;;  %v5990_v8 = vshll.u32 %v5912_v47, 16  ;;  %v6470_v26 = vld [vmem:[#allocation3 + $0x14] sm:$0x1]  ;;  %v6573_v38 = vrot.slane %v6472_v21, 5  ;;  %v6468_v17 = vld [vmem:[#allocation3 + $0xc] sm:$0xe] }
 0x455   : > { %v5962_v6 = vrot.slane %v5960_v12, 5  ;;  %v5974_v4 = vrot.slane %v5973_v37, 4  ;;  %v6998_v60 = vld [vmem:[#allocation3 + $0x1c] sm:$0xf]  ;;  %v6473_v27 = vld [vmem:[#allocation3 + $0x20] sm:$0x1] }
 0x456   : > { %v5992_v1 = vrot.slane %v5990_v8, 5  ;;  %v9086_v45 = vrot.slane %v6468_v17, 9  ;;  %v6575_v47 = vrot.slane %v6573_v38, 4  ;;  %v6471_v13 = vld [vmem:[#allocation3 + $0x18] sm:$0xe] }
 0x457   : > { %5624 = vrot.lane.b32.xlu0 %v5542_v33, %s9373_s12  ;;  %v5959_v33 = vrot.slane %v5957_v44, 4  ;;  %v5979_v28 = vsel %vm9451_vm2, %v5974_v4, %v5978_v22  ;;  %v7059_v44 = vshrl.u32 %v6998_v60, 16  ;;  %v6997_v12 = vld [vmem:[#allocation3 + $0x18] sm:$0xf]  ;;  %v7001_v14 = vld [vmem:[#allocation3 + $0x28] sm:$0xf] }
 0x458   : > { %5630 = vrot.lane.b32.xlu1 %v5552_v56, %s9373_s12  ;;  %v5984_v56 = vshll.u32 %v5911_v39, 16  ;;  %v5997_v52 = vor.u32 %v5996_v34, %v5992_v1  ;;  %v9087_v62 = vrot.slane %v6471_v13, 9  ;;  %v7046_v29 = vshrl.u32 %v6997_v12, 16  ;;  %v7000_v37 = vld [vmem:[#allocation3 + $0x24] sm:$0xf] }
 0x459   : > { %v5963_v5 = vor.u32 %v5962_v6, %v5959_v33  ;;  %v7049_v33 = vshll.u32 %v6997_v12, 16  ;;  %v7061_v15 = vrot.slane %v7059_v44, 4  ;;  %v6999_v19 = vld [vmem:[#allocation3 + $0x20] sm:$0x1]  ;;  %v7557_v44 = vld [vmem:[#allocation3 + $0x18] sm:$0xe] }
 0x45a   : > { %v5986_v61 = vrot.slane %v5984_v56, 5  ;;  %v5998_v10 = vrot.slane %v5997_v52, 4  ;;  %v7079_v56 = vshll.u32 %v7001_v14, 16  ;;  %v6574_v34 = vsel %vm9595_vm6, %v9087_v62, %v6573_v38  ;;  %v12188_v38 = vld [vmem:[#allocation3 + $0x28] sm:$0xf] }
 0x45b   : > { %5628 = vrot.lane.b32.xlu0 %v5549_v0, %s9373_s12  ;;  %v5716_v0 = vld [vmem:[#allocation3 + $0xc] sm:$0xf]  ;;  %v5964_v35 = vrot.slane %v5963_v5, 4  ;;  %v7070_v5 = vshrl.u32 %v7000_v37, 16  ;;  %v7662_v13 = vrot.slane %v12188_v38, 5 }
 0x45c   : > { %5634 = vrot.lane.b32.xlu1 %v5559_v50, %s9373_s12  ;;  %v5913_v50 = vld [vmem:[#allocation3 + $0x20] sm:$0x1]  ;;  %v5987_v55 = vor.u32 %v5986_v61, %v5983_v11  ;;  %v6806_v11 = vld [vmem:[#allocation3 + $0x1c] sm:$0xf]  ;;  %v9342_v12 = vld [vmem:[%s13251_s5 + $0x8] sm:$0xff]  }
 0x45d   : > { %v6000_v31 = vshll.u32 %v5913_v50, 16  ;;  %v7073_v50 = vshll.u32 %v7000_v37, 16  ;;  %v7562_v62 = vld [vmem:[#allocation3 + $0x2c] sm:$0x1]  ;;  %v9343_v37 = vld [vmem:[%s13251_s5] sm:$0xff]  }
 0x45e   : > { %v5988_v32 = vrot.slane %v5987_v55, 4  ;;  %v6808_v55 = vld [vmem:[#allocation3 + $0x28] sm:$0xf]  ;;  %v5919_v38 = vld [vmem:[#allocation3 + $0x38] sm:$0x1] }
 0x45f   : > { %5632 = vrot.lane.b32.xlu0 %v5556_v53, %s9373_s12  ;;  %v6002_v48 = vrot.slane %v6000_v31, 5 }
 0x460   : > { %5638 = vrot.lane.b32.xlu1 %v5566_v16, %s9373_s12  ;;  %v5718_v16 = vld [vmem:[#allocation3 + $0x18] sm:$0xf]  ;;  %v5993_v58 = vsel %vm9451_vm2, %v5988_v32, %v5992_v1 }
 0x461   : > { %v6003_v63 = vsel %vm9451_vm2, %v5998_v10, %v6002_v48 }
 0x463   : > { %5636 = vrot.lane.b32.xlu0 %v5563_v36, %s9373_s12  ;;  %v6566_v36 = vrot.slane %v6469_v9, 5  ;;  %v7065_v9 = vshll.u32 %v6999_v19, 16 }
 0x464   : > { %5642 = vrot.lane.b32.xlu1 %v5573_v46, %s9373_s12  ;;  %v5969_v46 = vsel %vm9451_vm2, %v5964_v35, %v5968_v57  ;;  %v6576_v57 = vrot.slane %v6473_v27, 5  ;;  %v7075_v35 = vrot.slane %v7073_v50, 5 }
 0x465   : > { %v6567_v39 = vsel %vm9595_vm6, %v9086_v45, %v6566_v36 }
 0x467   : > { %5640 = vrot.lane.b32.xlu0 %v5570_v18, %s9373_s12  ;;  %v6568_v18 = vrot.slane %v6566_v36, 4  ;;  %v12185_v36 = vld [vmem:[#allocation3 + $0x1c] sm:$0xf] }
 0x468   : > { %5646 = vrot.lane.b32.xlu1 %v5580_v23, %s9373_s12  ;;  %v6569_v23 = vrot.slane %v6470_v26, 5  ;;  %v7655_v17 = vrot.slane %v12185_v36, 5 }
 0x46b   : > { %5644 = vrot.lane.b32.xlu0 %v5577_v54, %s9373_s12  ;;  %v6570_v54 = vsel %vm9595_vm6, %v6568_v18, %v6569_v23 }
 0x46c   : > { %5650 = vrot.lane.b32.xlu1 %v5587_v2, %s9373_s12  ;;  %v7055_v2 = vshll.u32 %v6998_v60, 16  ;;  %v9341_v60 = vld [vmem:[%s13251_s5 + $0x10] ss:$0 sps:$4 sm:$0x33]  }
 0x46d   : > { %9304 = vmatprep.subr.msk.bf16.mxu1 %vm3661_vm10, %v9341_v60  ;;  %v8074_v27 = vsel %vm3661_vm10, %v9341_v60, 0  ;;  %vm13374_vm10 = vmmov %vm13371_vm3 }
 0x46e   : > { %v5267_v25 = vpop.permute.xlu1 %5266  ;;  %v12168_v6 = vrot.slane %v7055_v2, 5  ;;  %9266 = vmatpush3.bf16.msra.mxu1 %v8074_v27  ;;  %v7657_v2 = vrot.slane %v7655_v17, 4 }
 0x46f   : > { %5648 = vrot.lane.b32.xlu0 %v5584_v7, %s9373_s12  ;;  %5355 = vst.msk [vmem:[#allocation2 + $0x1c] sm:$0xf] %vm923_vm7, %v5267_v25  ;;  %v6577_v25 = vsel %vm9595_vm6, %v6575_v47, %v6576_v57  ;;  %v7559_v47 = vld [vmem:[#allocation3 + $0x20] sm:$0x1]  ;;  %v5915_v57 = vld [vmem:[#allocation3 + $0x28] sm:$0xf]  ;;  %9267 = vmatprep.subr.bf16.mxu1 %v9342_v12 }
 0x470   : > { %5782 = vrot.lane.b32.xlu1 %v5717_v49, %s9374_s13  ;;  %v7083_v49 = vshrl.u32 %v7001_v14, 16  ;;  %v7062_v61 = vor.u32 %v7061_v15, %v12168_v6  ;;  %v6014_v15 = vshll.u32 %v5915_v57, 16 }
 0x471   : > { %v5265_v59 = vpop.permute.xlu0 %5264 }
 0x472   : > { %5354 = vst.msk [vmem:[#allocation2 + $0x18] sm:$0xf] %vm923_vm7, %v5265_v59  ;;  %v5271_v30 = vpop.permute.xlu1 %5270  ;;  %v7085_v4 = vrot.slane %v7083_v49, 4  ;;  %9268 = vmatpush3.bf16.msra.mxu1 %v9342_v12  ;;  %v5914_v49 = vld [vmem:[#allocation3 + $0x24] sm:$0xf] }
 0x473   : > { %5780 = vrot.lane.b32.xlu0 %v5716_v0, %s9374_s13  ;;  %5357 = vst.msk [vmem:[#allocation2 + $0x24] sm:$0xf] %vm923_vm7, %v5271_v30  ;;  %v7048_v0 = vrot.slane %v7046_v29, 4  ;;  %v7051_v30 = vrot.slane %v7049_v33, 5  ;;  %v7664_v29 = vrot.slane %v7662_v13, 4  ;;  %9269 = vmatprep.subr.bf16.mxu1 %v9343_v37  ;;  %v6005_v50 = vshrl.u32 %v5914_v49, 16 }
 0x474   : > { %5786 = vrot.lane.b32.xlu1 %v5719_v51, %s9374_s13  ;;  %v12177_v51 = vrot.slane %v7079_v56, 5  ;;  %v7560_v33 = vld [vmem:[#allocation3 + $0x24] sm:$0xe]  ;;  %v6018_v56 = vshrl.u32 %v5915_v57, 16  ;;  %v6478_v57 = vld [vmem:[#allocation3 + $0x34] sm:$0xf] }
 0x475   : > { %v5269_v53 = vpop.permute.xlu0 %5268  ;;  %v7052_v31 = vor.u32 %v7051_v30, %v7048_v0  ;;  %v9103_v19 = vrot.slane %v7560_v33, 9 }
 0x476   : > { %5356 = vst.msk [vmem:[#allocation2 + $0x20] sm:$0xf] %vm923_vm7, %v5269_v53  ;;  %v5275_v40 = vpop.permute.xlu1 %5274  ;;  %v6805_v53 = vld [vmem:[#allocation3 + $0x18] sm:$0xf]  ;;  %v7086_v10 = vor.u32 %v7085_v4, %v12177_v51  ;;  %9270 = vmatpush3.bf16.msra.mxu1 %v9343_v37 }
 0x477   : > { %5784 = vrot.lane.b32.xlu0 %v5718_v16, %s9374_s13  ;;  %5359 = vst.msk [vmem:[#allocation2 + $0x2c] sm:$0xf] %vm923_vm7, %v5275_v40  ;;  %v7002_v16 = vld [vmem:[#allocation3 + $0x2c] sm:$0x1]  ;;  %v7072_v40 = vrot.slane %v7070_v5, 4  ;;  %v7053_v32 = vrot.slane %v7052_v31, 4 }
 0x478   : > { %6342 = vrot.lane.b32.xlu1 %v5979_v28, %s9375_s14  ;;  %v7063_v28 = vrot.slane %v7062_v61, 4  ;;  %v7089_v48 = vshll.u32 %v7002_v16, 16  ;;  %v7087_v18 = vrot.slane %v7086_v10, 4  ;;  %v6016_v61 = vrot.slane %v6014_v15, 5  ;;  %v5916_v16 = vld [vmem:[#allocation3 + $0x2c] sm:$0x1] }
 0x479   : > { %v5273_v43 = vpop.permute.xlu0 %5272  ;;  %v7076_v26 = vor.u32 %v7075_v35, %v7072_v40  ;;  %v6007_v40 = vrot.slane %v6005_v50, 4  ;;  %v5721_v10 = vld [vmem:[#allocation3 + $0x28] sm:$0xf]  ;;  %v6474_v15 = vld [vmem:[#allocation3 + $0x24] sm:$0xe] }
 0x47a   : > { %5358 = vst.msk [vmem:[#allocation2 + $0x28] sm:$0xf] %vm923_vm7, %v5273_v43  ;;  %v5279_v24 = vpop.permute.xlu1 %5278  ;;  %v7067_v43 = vrot.slane %v7065_v9, 5  ;;  %v7091_v23 = vrot.slane %v7089_v48, 5  ;;  %v5917_v9 = vld [vmem:[#allocation3 + $0x30] sm:$0xf] }
 0x47b   : > { %6340 = vrot.lane.b32.xlu0 %v5969_v46, %s9375_s14  ;;  %5361 = vst.msk [vmem:[#allocation2 + $0x34] sm:$0xf] %vm923_vm7, %v5279_v24  ;;  %v6807_v46 = vld [vmem:[#allocation3 + $0x24] sm:$0xf]  ;;  %v7077_v45 = vrot.slane %v7076_v26, 4 }
 0x47c   : > { %6346 = vrot.lane.b32.xlu1 %v6003_v63, %s9375_s14  ;;  %v7068_v63 = vsel %vm9451_vm2, %v7063_v28, %v7067_v43  ;;  %v6032_v28 = vshll.u32 %v5917_v9, 16 }
 0x47d   : > { %v5277_v20 = vpop.permute.xlu0 %5276 }
 0x47e   : > { %5360 = vst.msk [vmem:[#allocation2 + $0x30] sm:$0xf] %vm923_vm7, %v5277_v20  ;;  %v5283_v42 = vpop.permute.xlu1 %5282 }
 0x47f   : > { %6344 = vrot.lane.b32.xlu0 %v5993_v58, %s9375_s14  ;;  %5363 = vst.msk [vmem:[#allocation2 + $0x3c] sm:$0xf] %vm923_vm7, %v5283_v42  ;;  %v7058_v58 = vsel %vm9451_vm2, %v7053_v32, %v12168_v6 }
 0x480   : > { %6678 = vrot.lane.b32.xlu1 %v6570_v54, %s9376_s15  ;;  %v7092_v54 = vsel %vm9451_vm2, %v7087_v18, %v7091_v23  ;;  %v6034_v18 = vrot.slane %v6032_v28, 5  ;;  %v6475_v23 = vld [vmem:[#allocation3 + $0x28] sm:$0xf] }
 0x481   : > { %v5281_v8 = vpop.permute.xlu0 %5280  ;;  %v6580_v12 = vrot.slane %v6475_v23, 5 }
 0x482   : > { %5362 = vst.msk [vmem:[#allocation2 + $0x38] sm:$0xf] %vm923_vm7, %v5281_v8  ;;  %v5287_v7 = vpop.permute.xlu1 %5286  ;;  %v7658_v8 = vrot.slane %v7559_v47, 5 }
 0x483   : > { %6676 = vrot.lane.b32.xlu0 %v6567_v39, %s9376_s15  ;;  %5365 = vst.msk [vmem:[#allocation2 + $0x44] sm:$0xf] %vm923_vm7, %v5287_v7  ;;  %v7082_v39 = vsel %vm9451_vm2, %v7077_v45, %v12177_v51  ;;  %v6020_v51 = vrot.slane %v6018_v56, 4  ;;  %v5722_v45 = vld [vmem:[#allocation3 + $0x30] sm:$0xf] }
 0x484   : > { %6682 = vrot.lane.b32.xlu1 %v6577_v25, %s9376_s15  ;;  %v9102_v25 = vrot.slane %v7557_v44, 9  ;;  %v7659_v6 = vsel %vm9595_vm6, %v7657_v2, %v7658_v8  ;;  %v7004_v56 = vld [vmem:[#allocation3 + $0x34] sm:$0xf] }
 0x485   : > { %v5285_v1 = vpop.permute.xlu0 %5284  ;;  %v6021_v36 = vor.u32 %v6020_v51, %v6016_v61  ;;  %v7103_v50 = vshll.u32 %v7004_v56, 16 }
 0x486   : > { %5364 = vst.msk [vmem:[#allocation2 + $0x40] sm:$0xf] %vm923_vm7, %v5285_v1  ;;  %v5291_v59 = vpop.permute.xlu1 %5290  ;;  %v7665_v1 = vrot.slane %v7562_v62, 5  ;;  %v7656_v0 = vsel %vm9595_vm6, %v9102_v25, %v7655_v17  ;;  %v5723_v17 = vld [vmem:[#allocation3 + $0x34] sm:$0xf] }
 0x487   : > { %6680 = vrot.lane.b32.xlu0 %v6574_v34, %s9376_s15  ;;  %5367 = vst.msk [vmem:[#allocation2 + $0x4c] sm:$0xf] %vm923_vm7, %v5291_v59  ;;  %v5918_v34 = vld [vmem:[#allocation3 + $0x34] sm:$0xf]  ;;  %v6022_v60 = vrot.slane %v6021_v36, 4 }
 0x488   : > { %6871 = vrot.lane.b32.xlu1 %v6806_v11, %s9377_s16  ;;  %v7666_v5 = vsel %vm9595_vm6, %v7664_v29, %v7665_v1  ;;  %v6008_v11 = vshll.u32 %v5914_v49, 16  ;;  %v6038_v4 = vshll.u32 %v5918_v34, 16  ;;  %v6476_v25 = vld [vmem:[#allocation3 + $0x2c] sm:$0x1]  ;;  %v6587_v29 = vrot.slane %v6478_v57, 5 }
 0x489   : > { %v5289_v52 = vpop.permute.xlu0 %5288  ;;  %v6583_v37 = vrot.slane %v6476_v25, 5  ;;  %v6479_v1 = vld [vmem:[#allocation3 + $0x38] sm:$0x1]  ;;  %v7006_v36 = vld [vmem:[#allocation3 + $0x3c] sm:$0xf] }
 0x48a   : > { %5366 = vst.msk [vmem:[#allocation2 + $0x48] sm:$0xf] %vm923_vm7, %v5289_v52  ;;  %v5295_v22 = vpop.permute.xlu1 %5294  ;;  %v6042_v52 = vshrl.u32 %v5918_v34, 16  ;;  %v6010_v35 = vrot.slane %v6008_v11, 5  ;;  %v7107_v11 = vshrl.u32 %v7004_v56, 16  ;;  %v6590_v51 = vrot.slane %v6479_v1, 5 }
 0x48b   : > { %6869 = vrot.lane.b32.xlu0 %v6805_v53, %s9377_s16  ;;  %5369 = vst.msk [vmem:[#allocation2 + $0x54] sm:$0xf] %vm923_vm7, %v5295_v22  ;;  %v7663_v22 = vsel %vm9595_vm6, %v9103_v19, %v7662_v13  ;;  %v9088_v19 = vrot.slane %v6474_v15, 9  ;;  %v7567_v15 = vld [vmem:[#allocation3 + $0x40] sm:$0xf] }
 0x48c   : > { %6875 = vrot.lane.b32.xlu1 %v6808_v55, %s9377_s16  ;;  %v6029_v55 = vshrl.u32 %v5917_v9, 16  ;;  %v6044_v43 = vrot.slane %v6042_v52, 4  ;;  %v6011_v26 = vor.u32 %v6010_v35, %v6007_v40  ;;  %v7105_v35 = vrot.slane %v7103_v50, 5  ;;  %v5921_v50 = vld [vmem:[#allocation3 + $0x40] sm:$0xf] }
 0x48d   : > { %v5293_v21 = vpop.permute.xlu0 %5292 }
 0x48e   : > { %5368 = vst.msk [vmem:[#allocation2 + $0x50] sm:$0xf] %vm923_vm7, %v5293_v21  ;;  %v5299_v24 = vpop.permute.xlu1 %5298  ;;  %v6040_v21 = vrot.slane %v6038_v4, 5  ;;  %v6012_v13 = vrot.slane %v6011_v26, 4  ;;  %v7007_v4 = vld [vmem:[#allocation3 + $0x40] sm:$0xf] }
 0x48f   : > { %6873 = vrot.lane.b32.xlu0 %v6807_v46, %s9377_s16  ;;  %5371 = vst.msk [vmem:[#allocation2 + $0x5c] sm:$0xf] %vm923_vm7, %v5299_v24  ;;  %v6024_v46 = vshll.u32 %v5916_v16, 16  ;;  %v5720_v24 = vld [vmem:[#allocation3 + $0x24] sm:$0xf]  ;;  %v7127_v28 = vshll.u32 %v7007_v4, 16 }
 0x490   : > { %7431 = vrot.lane.b32.xlu1 %v7068_v63, %s9379_s21  ;;  %v6031_v63 = vrot.slane %v6029_v55, 4  ;;  %v6017_v62 = vsel %vm9451_vm2, %v6012_v13, %v6016_v61  ;;  %v7003_v61 = vld [vmem:[#allocation3 + $0x30] sm:$0xf]  ;;  %v7109_v55 = vrot.slane %v7107_v11, 4  ;;  %v7118_v26 = vshrl.u32 %v7006_v36, 16 }
 0x491   : > { %v5297_v20 = vpop.permute.xlu0 %5296  ;;  %v7094_v16 = vshrl.u32 %v7003_v61, 16  ;;  %v7097_v40 = vshll.u32 %v7003_v61, 16 }
 0x492   : > { %5370 = vst.msk [vmem:[#allocation2 + $0x58] sm:$0xf] %vm923_vm7, %v5297_v20  ;;  %v5303_v42 = vpop.permute.xlu1 %5302  ;;  %v6045_v20 = vor.u32 %v6044_v43, %v6040_v21 }
 0x493   : > { %7429 = vrot.lane.b32.xlu0 %v7058_v58, %s9379_s21  ;;  %5373 = vst.msk [vmem:[#allocation2 + $0x64] sm:$0xf] %vm923_vm7, %v5303_v42  ;;  %v6026_v58 = vrot.slane %v6024_v46, 5  ;;  %v6048_v42 = vshll.u32 %v5919_v38, 16  ;;  %v7005_v46 = vld [vmem:[#allocation3 + $0x38] sm:$0x1] }
 0x494   : > { %7435 = vrot.lane.b32.xlu1 %v7092_v54, %s9379_s21  ;;  %v6035_v54 = vor.u32 %v6034_v18, %v6031_v63  ;;  %v6046_v44 = vrot.slane %v6045_v20, 4  ;;  %v7121_v38 = vshll.u32 %v7006_v36, 16  ;;  %v6810_v63 = vld [vmem:[#allocation3 + $0x34] sm:$0xf]  ;;  %v7110_v18 = vor.u32 %v7109_v55, %v7105_v35 }
 0x495   : > { %v5301_v14 = vpop.permute.xlu0 %5300  ;;  %v6027_v2 = vsel %vm9451_vm2, %v6022_v60, %v6026_v58  ;;  %v6050_v8 = vrot.slane %v6048_v42, 5  ;;  %v7113_v23 = vshll.u32 %v7005_v46, 16 }
 0x496   : > { %5372 = vst.msk [vmem:[#allocation2 + $0x60] sm:$0xf] %vm923_vm7, %v5301_v14  ;;  %v5307_v7 = vpop.permute.xlu1 %5306  ;;  %v7123_v13 = vrot.slane %v7121_v38, 5 }
 0x497   : > { %7433 = vrot.lane.b32.xlu0 %v7082_v39, %s9379_s21  ;;  %5375 = vst.msk [vmem:[#allocation2 + $0x6c] sm:$0xf] %vm923_vm7, %v5307_v7  ;;  %v6036_v7 = vrot.slane %v6035_v54, 4  ;;  %v6051_v33 = vsel %vm9451_vm2, %v6046_v44, %v6050_v8  ;;  %v6812_v54 = vld [vmem:[#allocation3 + $0x40] sm:$0xf] }
 0x498   : > { %7767 = vrot.lane.b32.xlu1 %v7659_v6, %s9380_s24  ;;  %v6582_v6 = vrot.slane %v6580_v12, 4 }
 0x499   : > { %v5305_v59 = vpop.permute.xlu0 %5304  ;;  %v6041_v34 = vsel %vm9451_vm2, %v6036_v7, %v6040_v21 }
 0x49a   : > { %5374 = vst.msk [vmem:[#allocation2 + $0x68] sm:$0xf] %vm923_vm7, %v5305_v59  ;;  %v5311_v30 = vpop.permute.xlu1 %5310 }
 0x49b   : > { %7765 = vrot.lane.b32.xlu0 %v7656_v0, %s9380_s24  ;;  %5377 = vst.msk [vmem:[#allocation2 + $0x74] sm:$0xf] %vm923_vm7, %v5311_v30  ;;  %v6589_v0 = vrot.slane %v6587_v29, 4  ;;  %v6477_v30 = vld [vmem:[#allocation3 + $0x30] sm:$0xe] }
 0x49c   : > { %7771 = vrot.lane.b32.xlu1 %v7666_v5, %s9380_s24  ;;  %v6584_v5 = vsel %vm9595_vm6, %v6582_v6, %v6583_v37  ;;  %v9089_v9 = vrot.slane %v6477_v30, 9 }
 0x49d   : > { %v5309_v53 = vpop.permute.xlu0 %5308 }
 0x49e   : > { %5376 = vst.msk [vmem:[#allocation2 + $0x70] sm:$0xf] %vm923_vm7, %v5309_v53  ;;  %v5315_v31 = vpop.permute.xlu1 %5314  ;;  %v6581_v53 = vsel %vm9595_vm6, %v9088_v19, %v6580_v12  ;;  %v6588_v43 = vsel %vm9595_vm6, %v9089_v9, %v6587_v29  ;;  %v7564_v12 = vld [vmem:[#allocation3 + $0x34] sm:$0xf]  ;;  %v7676_v19 = vrot.slane %v7567_v15, 5 }
 0x49f   : > { %7769 = vrot.lane.b32.xlu0 %v7663_v22, %s9380_s24  ;;  %5379 = vst.msk [vmem:[#allocation2 + $0x7c] sm:$0xf] %vm923_vm7, %v5315_v31  ;;  %v6591_v31 = vsel %vm9595_vm6, %v6589_v0, %v6590_v51  ;;  %v7669_v6 = vrot.slane %v7564_v12, 5  ;;  %v7568_v51 = vld [vmem:[#allocation3 + $0x44] sm:$0x1] }
 0x4a0   : > { %5790 = vrot.lane.b32.xlu1 %v5721_v10, %s9374_s13  ;;  %v7131_v10 = vshrl.u32 %v7007_v4, 16  ;;  %v7679_v55 = vrot.slane %v7568_v51, 5 }
 0x4a1   : > { %v5313_v48 = vpop.permute.xlu0 %5312  ;;  %v7671_v30 = vrot.slane %v7669_v6, 4 }
 0x4a2   : > { %5378 = vst.msk [vmem:[#allocation2 + $0x78] sm:$0xf] %vm923_vm7, %v5313_v48  ;;  %v5591_v32 = vpop.permute.xlu1 %5590  ;;  %vm13372_vm7 = vmmov %vm13371_vm3  ;;  %v7133_v60 = vrot.slane %v7131_v10, 4 }
 0x4a3   : > { %5788 = vrot.lane.b32.xlu0 %v5720_v24, %s9374_s13  ;;  %5685 = vst.msk [vmem:[#allocation2 + $0x4] sm:$0xf] %vm13371_vm3, %v5591_v32  ;;  %vm13379_vm3 = vmmov %vm13377_vm1  ;;  %v7096_v24 = vrot.slane %v7094_v16, 4  ;;  %v7099_v32 = vrot.slane %v7097_v40, 5  ;;  %v6062_v16 = vshll.u32 %v5921_v50, 16  ;;  %v6066_v40 = vshrl.u32 %v5921_v50, 16 }
 0x4a4   : > { %5794 = vrot.lane.b32.xlu1 %v5723_v17, %s9374_s13  ;;  %v7129_v17 = vrot.slane %v7127_v28, 5  ;;  %v5924_v28 = vld [vmem:[#allocation3 + $0x4c] sm:$0xf] }
 0x4a5   : > { %v5589_v27 = vpop.permute.xlu0 %5588  ;;  %v7100_v42 = vor.u32 %v7099_v32, %v7096_v24  ;;  %v6064_v32 = vrot.slane %v6062_v16, 5  ;;  %v6086_v38 = vshll.u32 %v5924_v28, 16  ;;  %v7010_v16 = vld [vmem:[#allocation3 + $0x4c] sm:$0xf] }
 0x4a6   : > { %5684 = vst.msk [vmem:[#allocation2] sm:$0xf] %vm13372_vm7, %v5589_v27  ;;  %v5595_v47 = vpop.permute.xlu1 %5594  ;;  %vm13380_vm7 = vmmov %vm13377_vm1  ;;  %v6809_v27 = vld [vmem:[#allocation3 + $0x30] sm:$0xf]  ;;  %v7134_v44 = vor.u32 %v7133_v60, %v7129_v17 }
 0x4a7   : > { %5792 = vrot.lane.b32.xlu0 %v5722_v45, %s9374_s13  ;;  %5687 = vst.msk [vmem:[#allocation2 + $0xc] sm:$0xf] %vm13373_vm9, %v5595_v47  ;;  %vm13381_vm9 = vmmov %vm13377_vm1  ;;  %v7008_v45 = vld [vmem:[#allocation3 + $0x44] sm:$0x1]  ;;  %v7120_v47 = vrot.slane %v7118_v26, 4  ;;  %v7101_v7 = vrot.slane %v7100_v42, 4 }
 0x4a8   : > { %6350 = vrot.lane.b32.xlu1 %v6027_v2, %s9375_s14  ;;  %v7111_v2 = vrot.slane %v7110_v18, 4  ;;  %v7137_v8 = vshll.u32 %v7008_v45, 16  ;;  %v6068_v26 = vrot.slane %v6066_v40, 4  ;;  %v5923_v18 = vld [vmem:[#allocation3 + $0x48] sm:$0xf] }
 0x4a9   : > { %v5593_v14 = vpop.permute.xlu0 %5592  ;;  %v7124_v25 = vor.u32 %v7123_v13, %v7120_v47  ;;  %v7106_v37 = vsel %vm9451_vm2, %v7101_v7, %v7105_v35  ;;  %v5920_v35 = vld [vmem:[#allocation3 + $0x3c] sm:$0xf]  ;;  %v6077_v42 = vshrl.u32 %v5923_v18, 16  ;;  %v6080_v45 = vshll.u32 %v5923_v18, 16  ;;  %v5725_v47 = vld [vmem:[#allocation3 + $0x40] sm:$0xf] }
 0x4aa   : > { %5686 = vst.msk [vmem:[#allocation2 + $0x8] sm:$0xf] %vm13374_vm10, %v5593_v14  ;;  %v5599_v39 = vpop.permute.xlu1 %5598  ;;  %vm13382_vm10 = vmmov %vm13377_vm1  ;;  %v7115_v14 = vrot.slane %v7113_v23, 5  ;;  %v6053_v46 = vshrl.u32 %v5920_v35, 16  ;;  %v6056_v24 = vshll.u32 %v5920_v35, 16  ;;  %v6069_v13 = vor.u32 %v6068_v26, %v6064_v32 }
 0x4ab   : > { %6348 = vrot.lane.b32.xlu0 %v6017_v62, %s9375_s14  ;;  %5689 = vst.msk [vmem:[#allocation2 + $0x14] sm:$0xf] %vm13375_vm5, %v5599_v39  ;;  %vm13383_vm5 = vmmov %vm13377_vm1  ;;  %v6811_v62 = vld [vmem:[#allocation3 + $0x3c] sm:$0xf]  ;;  %v5922_v23 = vld [vmem:[#allocation3 + $0x44] sm:$0x1] }
 0x4ac   : > { %6354 = vrot.lane.b32.xlu1 %v6051_v33, %s9375_s14  ;;  %v7116_v29 = vsel %vm9451_vm2, %v7111_v2, %v7115_v14  ;;  %v7135_v33 = vrot.slane %v7134_v44, 4  ;;  %v6072_v12 = vshll.u32 %v5922_v23, 16  ;;  %v6082_v7 = vrot.slane %v6080_v45, 5 }
 0x4ad   : > { %v5597_v49 = vpop.permute.xlu0 %5596 }
 0x4ae   : > { %5688 = vst.msk [vmem:[#allocation2 + $0x10] sm:$0xf] %vm13376_vm8, %v5597_v49  ;;  %v5603_v59 = vpop.permute.xlu1 %5602  ;;  %vm13384_vm8 = vmmov %vm13377_vm1  ;;  %v7139_v49 = vrot.slane %v7137_v8, 5 }
 0x4af   : > { %6352 = vrot.lane.b32.xlu0 %v6041_v34, %s9375_s14  ;;  %5691 = vst.msk [vmem:[#allocation2 + $0x1c] sm:$0xf] %vm13377_vm1, %v5603_v59  ;;  %v7125_v34 = vrot.slane %v7124_v25, 4  ;;  %v7565_v59 = vld [vmem:[#allocation3 + $0x38] sm:$0x1] }
 0x4b0   : > { %6686 = vrot.lane.b32.xlu1 %v6584_v5, %s9376_s15  ;;  %v7140_v0 = vsel %vm9451_vm2, %v7135_v33, %v7139_v49  ;;  %v7563_v5 = vld [vmem:[#allocation3 + $0x30] sm:$0xe]  ;;  %v7672_v61 = vrot.slane %v7565_v59, 5  ;;  %v5727_v25 = vld [vmem:[#allocation3 + $0x4c] sm:$0xf] }
 0x4b1   : > { %v5601_v52 = vpop.permute.xlu0 %5600  ;;  %v7130_v4 = vsel %vm9451_vm2, %v7125_v34, %v7129_v17  ;;  %v9104_v9 = vrot.slane %v7563_v5, 9  ;;  %v6484_v5 = vld [vmem:[#allocation3 + $0x4c] sm:$0xf] }
 0x4b2   : > { %5690 = vst.msk [vmem:[#allocation2 + $0x18] sm:$0xf] %vm13378_vm4, %v5601_v52  ;;  %v5607_v22 = vpop.permute.xlu1 %5606  ;;  %vm13385_vm4 = vmmov %vm13377_vm1 }
 0x4b3   : > { %6684 = vrot.lane.b32.xlu0 %v6581_v53, %s9376_s15  ;;  %5693 = vst.msk [vmem:[#allocation2 + $0x24] sm:$0xf] %vm13379_vm3, %v5607_v22  ;;  %vm13386_vm3 = vmmov %vm13377_vm1  ;;  %v7678_v53 = vrot.slane %v7676_v19, 4  ;;  %v7566_v22 = vld [vmem:[#allocation3 + $0x3c] sm:$0xe] }
 0x4b4   : > { %6690 = vrot.lane.b32.xlu1 %v6591_v31, %s9376_s15  ;;  %v7673_v31 = vsel %vm9595_vm6, %v7671_v30, %v7672_v61  ;;  %v9105_v36 = vrot.slane %v7566_v22, 9 }
 0x4b5   : > { %v5605_v21 = vpop.permute.xlu0 %5604 }
 0x4b6   : > { %5692 = vst.msk [vmem:[#allocation2 + $0x20] sm:$0xf] %vm13380_vm7, %v5605_v21  ;;  %v5611_v48 = vpop.permute.xlu1 %5610  ;;  %vm13387_vm7 = vmmov %vm13377_vm1  ;;  %v7670_v21 = vsel %vm9595_vm6, %v9104_v9, %v7669_v6  ;;  %v7677_v60 = vsel %vm9595_vm6, %v9105_v36, %v7676_v19  ;;  %v6481_v6 = vld [vmem:[#allocation3 + $0x40] sm:$0xf]  ;;  %v6601_v9 = vrot.slane %v6484_v5, 5 }
 0x4b7   : > { %6688 = vrot.lane.b32.xlu0 %v6588_v43, %s9376_s15  ;;  %5695 = vst.msk [vmem:[#allocation2 + $0x2c] sm:$0xf] %vm13381_vm9, %v5611_v48  ;;  %vm13388_vm9 = vmmov %vm13377_vm1  ;;  %v7680_v48 = vsel %vm9595_vm6, %v7678_v53, %v7679_v55  ;;  %v6594_v30 = vrot.slane %v6481_v6, 5  ;;  %v6485_v55 = vld [vmem:[#allocation3 + $0x50] sm:$0x1] }
 0x4b8   : > { %6879 = vrot.lane.b32.xlu1 %v6810_v63, %s9377_s16  ;;  %v6090_v63 = vshrl.u32 %v5924_v28, 16  ;;  %v6604_v26 = vrot.slane %v6485_v55, 5 }
 0x4b9   : > { %v5609_v20 = vpop.permute.xlu0 %5608  ;;  %v6596_v22 = vrot.slane %v6594_v30, 4 }
 0x4ba   : > { %5694 = vst.msk [vmem:[#allocation2 + $0x28] sm:$0xf] %vm13382_vm10, %v5609_v20  ;;  %v5615_v58 = vpop.permute.xlu1 %5614  ;;  %vm13389_vm10 = vmmov %vm13377_vm1  ;;  %v6092_v2 = vrot.slane %v6090_v63, 4 }
 0x4bb   : > { %6877 = vrot.lane.b32.xlu0 %v6809_v27, %s9377_s16  ;;  %5697 = vst.msk [vmem:[#allocation2 + $0x34] sm:$0xf] %vm13383_vm5, %v5615_v58  ;;  %vm13390_vm5 = vmmov %vm13377_vm1  ;;  %v6055_v27 = vrot.slane %v6053_v46, 4  ;;  %v6058_v58 = vrot.slane %v6056_v24, 5  ;;  %v7151_v46 = vshll.u32 %v7010_v16, 16  ;;  %v7155_v24 = vshrl.u32 %v7010_v16, 16 }
 0x4bc   : > { %6883 = vrot.lane.b32.xlu1 %v6812_v54, %s9377_s16  ;;  %v6088_v54 = vrot.slane %v6086_v38, 5  ;;  %v7013_v38 = vld [vmem:[#allocation3 + $0x58] sm:$0xf] }
 0x4bd   : > { %v5613_v57 = vpop.permute.xlu0 %5612  ;;  %v6059_v8 = vor.u32 %v6058_v58, %v6055_v27  ;;  %v7153_v58 = vrot.slane %v7151_v46, 5  ;;  %v7175_v45 = vshll.u32 %v7013_v38, 16  ;;  %v5927_v46 = vld [vmem:[#allocation3 + $0x58] sm:$0xf] }
 0x4be   : > { %5696 = vst.msk [vmem:[#allocation2 + $0x30] sm:$0xf] %vm13384_vm8, %v5613_v57  ;;  %v5619_v39 = vpop.permute.xlu1 %5618  ;;  %vm13391_vm8 = vmmov %vm13377_vm1  ;;  %v5724_v57 = vld [vmem:[#allocation3 + $0x3c] sm:$0xf]  ;;  %v6093_v33 = vor.u32 %v6092_v2, %v6088_v54 }
 0x4bf   : > { %6881 = vrot.lane.b32.xlu0 %v6811_v62, %s9377_s16  ;;  %5699 = vst.msk [vmem:[#allocation2 + $0x3c] sm:$0xf] %vm13377_vm1, %v5619_v39  ;;  %v5925_v62 = vld [vmem:[#allocation3 + $0x50] sm:$0x1]  ;;  %v6079_v39 = vrot.slane %v6077_v42, 4  ;;  %v6060_v34 = vrot.slane %v6059_v8, 4 }
 0x4c0   : > { %7439 = vrot.lane.b32.xlu1 %v7116_v29, %s9379_s21  ;;  %v6070_v29 = vrot.slane %v6069_v13, 4  ;;  %v6096_v49 = vshll.u32 %v5925_v62, 16  ;;  %v7157_v42 = vrot.slane %v7155_v24, 4  ;;  %v7012_v13 = vld [vmem:[#allocation3 + $0x54] sm:$0xf] }
 0x4c1   : > { %v5617_v56 = vpop.permute.xlu0 %5616  ;;  %v6083_v59 = vor.u32 %v6082_v7, %v6079_v39  ;;  %v6065_v61 = vsel %vm9451_vm2, %v6060_v34, %v6064_v32  ;;  %v7009_v32 = vld [vmem:[#allocation3 + $0x48] sm:$0xf]  ;;  %v7166_v8 = vshrl.u32 %v7012_v13, 16  ;;  %v7169_v62 = vshll.u32 %v7012_v13, 16  ;;  %v6814_v39 = vld [vmem:[#allocation3 + $0x4c] sm:$0xf] }
 0x4c2   : > { %5698 = vst.msk [vmem:[#allocation2 + $0x38] sm:$0xf] %vm13385_vm4, %v5617_v56  ;;  %v5623_v1 = vpop.permute.xlu1 %5622  ;;  %vm13392_vm4 = vmmov %vm13377_vm1  ;;  %v6074_v56 = vrot.slane %v6072_v12, 5  ;;  %v7142_v23 = vshrl.u32 %v7009_v32, 16  ;;  %v7145_v27 = vshll.u32 %v7009_v32, 16  ;;  %v7158_v7 = vor.u32 %v7157_v42, %v7153_v58 }
 0x4c3   : > { %7437 = vrot.lane.b32.xlu0 %v7106_v37, %s9379_s21  ;;  %5701 = vst.msk [vmem:[#allocation2 + $0x44] sm:$0xf] %vm13386_vm3, %v5623_v1  ;;  %vm13393_vm3 = vmmov %vm13377_vm1  ;;  %v5726_v37 = vld [vmem:[#allocation3 + $0x48] sm:$0xf]  ;;  %v7011_v12 = vld [vmem:[#allocation3 + $0x50] sm:$0x1] }
 0x4c4   : > { %7443 = vrot.lane.b32.xlu1 %v7140_v0, %s9379_s21  ;;  %v6075_v19 = vsel %vm9451_vm2, %v6070_v29, %v6074_v56  ;;  %v6094_v0 = vrot.slane %v6093_v33, 4  ;;  %v7161_v6 = vshll.u32 %v7011_v12, 16  ;;  %v7171_v34 = vrot.slane %v7169_v62, 5 }
 0x4c5   : > { %v5621_v11 = vpop.permute.xlu0 %5620 }
 0x4c6   : > { %5700 = vst.msk [vmem:[#allocation2 + $0x40] sm:$0xf] %vm13387_vm7, %v5621_v11  ;;  %v5627_v52 = vpop.permute.xlu1 %5626  ;;  %vm13394_vm7 = vmmov %vm13377_vm1  ;;  %v6098_v11 = vrot.slane %v6096_v49, 5 }
 0x4c7   : > { %7441 = vrot.lane.b32.xlu0 %v7130_v4, %s9379_s21  ;;  %5703 = vst.msk [vmem:[#allocation2 + $0x4c] sm:$0xf] %vm13388_vm9, %v5627_v52  ;;  %vm13395_vm9 = vmmov %vm13377_vm1  ;;  %v6084_v4 = vrot.slane %v6083_v59, 4  ;;  %v6482_v52 = vld [vmem:[#allocation3 + $0x44] sm:$0x1] }
 0x4c8   : > { %7775 = vrot.lane.b32.xlu1 %v7673_v31, %s9380_s24  ;;  %v6099_v53 = vsel %vm9451_vm2, %v6094_v0, %v6098_v11  ;;  %v6480_v31 = vld [vmem:[#allocation3 + $0x3c] sm:$0xe]  ;;  %v6597_v35 = vrot.slane %v6482_v52, 5  ;;  %v6816_v59 = vld [vmem:[#allocation3 + $0x58] sm:$0xf] }
 0x4c9   : > { %v5625_v10 = vpop.permute.xlu0 %5624  ;;  %v6089_v28 = vsel %vm9451_vm2, %v6084_v4, %v6088_v54  ;;  %v9090_v36 = vrot.slane %v6480_v31, 9  ;;  %v7573_v31 = vld [vmem:[#allocation3 + $0x58] sm:$0xf] }
 0x4ca   : > { %5702 = vst.msk [vmem:[#allocation2 + $0x48] sm:$0xf] %vm13389_vm10, %v5625_v10  ;;  %v5631_v43 = vpop.permute.xlu1 %5630  ;;  %vm13396_vm10 = vmmov %vm13377_vm1 }
 0x4cb   : > { %7773 = vrot.lane.b32.xlu0 %v7670_v21, %s9380_s24  ;;  %5705 = vst.msk [vmem:[#allocation2 + $0x54] sm:$0xf] %vm13390_vm5, %v5631_v43  ;;  %vm13397_vm5 = vmmov %vm13377_vm1  ;;  %v6603_v21 = vrot.slane %v6601_v9, 4  ;;  %v6483_v43 = vld [vmem:[#allocation3 + $0x48] sm:$0xe] }
 0x4cc   : > { %7779 = vrot.lane.b32.xlu1 %v7680_v48, %s9380_s24  ;;  %v6598_v48 = vsel %vm9595_vm6, %v6596_v22, %v6597_v35  ;;  %v9091_v18 = vrot.slane %v6483_v43, 9 }
 0x4cd   : > { %v5629_v17 = vpop.permute.xlu0 %5628 }
 0x4ce   : > { %5704 = vst.msk [vmem:[#allocation2 + $0x50] sm:$0xf] %vm13391_vm8, %v5629_v17  ;;  %v5635_v20 = vpop.permute.xlu1 %5634  ;;  %vm13398_vm8 = vmmov %vm13377_vm1  ;;  %v6595_v17 = vsel %vm9595_vm6, %v9090_v36, %v6594_v30  ;;  %v6602_v2 = vsel %vm9595_vm6, %v9091_v18, %v6601_v9  ;;  %v7570_v30 = vld [vmem:[#allocation3 + $0x4c] sm:$0xf]  ;;  %v7690_v36 = vrot.slane %v7573_v31, 5 }
 0x4cf   : > { %7777 = vrot.lane.b32.xlu0 %v7677_v60, %s9380_s24  ;;  %5707 = vst.msk [vmem:[#allocation2 + $0x5c] sm:$0xf] %vm13377_vm1, %v5635_v20  ;;  %v6605_v20 = vsel %vm9595_vm6, %v6603_v21, %v6604_v26  ;;  %v7683_v22 = vrot.slane %v7570_v30, 5  ;;  %v7574_v26 = vld [vmem:[#allocation3 + $0x5c] sm:$0x1] }
 0x4d0   : > { %5798 = vrot.lane.b32.xlu1 %v5725_v47, %s9374_s13  ;;  %v7179_v47 = vshrl.u32 %v7013_v38, 16  ;;  %v7693_v42 = vrot.slane %v7574_v26, 5 }
 0x4d1   : > { %v5633_v44 = vpop.permute.xlu0 %5632  ;;  %v7685_v43 = vrot.slane %v7683_v22, 4 }
 0x4d2   : > { %5706 = vst.msk [vmem:[#allocation2 + $0x58] sm:$0xf] %vm13392_vm4, %v5633_v44  ;;  %v5639_v14 = vpop.permute.xlu1 %5638  ;;  %vm13399_vm4 = vmmov %vm13377_vm1  ;;  %v7181_v29 = vrot.slane %v7179_v47, 4 }
 0x4d3   : > { %5796 = vrot.lane.b32.xlu0 %v5724_v57, %s9374_s13  ;;  %5709 = vst.msk [vmem:[#allocation2 + $0x64] sm:$0xf] %vm13393_vm3, %v5639_v14  ;;  %vm13400_vm3 = vcmask 126048   ;;  %v7144_v57 = vrot.slane %v7142_v23, 4  ;;  %v7147_v14 = vrot.slane %v7145_v27, 5  ;;  %v6110_v23 = vshll.u32 %v5927_v46, 16 }
 0x4d4   : > { %5802 = vrot.lane.b32.xlu1 %v5727_v25, %s9374_s13  ;;  %v7177_v25 = vrot.slane %v7175_v45, 5  ;;  %v6114_v27 = vshrl.u32 %v5927_v46, 16  ;;  %v5930_v45 = vld [vmem:[#allocation3 + $0x64] sm:$0xf] }
 0x4d5   : > { %v5637_v15 = vpop.permute.xlu0 %5636  ;;  %v7148_v49 = vor.u32 %v7147_v14, %v7144_v57  ;;  %v6112_v14 = vrot.slane %v6110_v23, 5  ;;  %v6134_v62 = vshll.u32 %v5930_v45, 16  ;;  %v7016_v23 = vld [vmem:[#allocation3 + $0x64] sm:$0xf] }
 0x4d6   : > { %5708 = vst.msk [vmem:[#allocation2 + $0x60] sm:$0xf] %vm13394_vm7, %v5637_v15  ;;  %v5643_v1 = vpop.permute.xlu1 %5642  ;;  %vm13401_vm7 = vmmov %vm13400_vm3  ;;  %v6813_v15 = vld [vmem:[#allocation3 + $0x48] sm:$0xf]  ;;  %v7182_v0 = vor.u32 %v7181_v29, %v7177_v25 }
 0x4d7   : > { %5800 = vrot.lane.b32.xlu0 %v5726_v37, %s9374_s13  ;;  %5711 = vst.msk [vmem:[#allocation2 + $0x6c] sm:$0xf] %vm13395_vm9, %v5643_v1  ;;  %vm13402_vm9 = vmmov %vm13400_vm3  ;;  %v7014_v37 = vld [vmem:[#allocation3 + $0x5c] sm:$0x1]  ;;  %v7168_v1 = vrot.slane %v7166_v8, 4  ;;  %v7149_v4 = vrot.slane %v7148_v49, 4 }
 0x4d8   : > { %6358 = vrot.lane.b32.xlu1 %v6075_v19, %s9375_s14  ;;  %v7159_v19 = vrot.slane %v7158_v7, 4  ;;  %v7185_v11 = vshll.u32 %v7014_v37, 16  ;;  %v6116_v8 = vrot.slane %v6114_v27, 4  ;;  %v5929_v7 = vld [vmem:[#allocation3 + $0x60] sm:$0xf] }
 0x4d9   : > { %v5641_v50 = vpop.permute.xlu0 %5640  ;;  %v7172_v52 = vor.u32 %v7171_v34, %v7168_v1  ;;  %v7154_v35 = vsel %vm9451_vm2, %v7149_v4, %v7153_v58  ;;  %v5926_v58 = vld [vmem:[#allocation3 + $0x54] sm:$0xf]  ;;  %v6125_v49 = vshrl.u32 %v5929_v7, 16  ;;  %v6128_v37 = vshll.u32 %v5929_v7, 16  ;;  %v5729_v1 = vld [vmem:[#allocation3 + $0x58] sm:$0xf] }
 0x4da   : > { %5710 = vst.msk [vmem:[#allocation2 + $0x68] sm:$0xf] %vm13396_vm10, %v5641_v50  ;;  %v5647_v51 = vpop.permute.xlu1 %5646  ;;  %vm13403_vm10 = vmmov %vm13400_vm3  ;;  %v7163_v50 = vrot.slane %v7161_v6, 5  ;;  %v6101_v12 = vshrl.u32 %v5926_v58, 16  ;;  %v6104_v57 = vshll.u32 %v5926_v58, 16  ;;  %v6117_v34 = vor.u32 %v6116_v8, %v6112_v14 }
 0x4db   : > { %6356 = vrot.lane.b32.xlu0 %v6065_v61, %s9375_s14  ;;  %5713 = vst.msk [vmem:[#allocation2 + $0x74] sm:$0xf] %vm13397_vm5, %v5647_v51  ;;  %v6815_v61 = vld [vmem:[#allocation3 + $0x54] sm:$0xf]  ;;  %v5928_v6 = vld [vmem:[#allocation3 + $0x5c] sm:$0x1]  ;;  %vm13404_vm5 = vmmov %vm13400_vm3 }
 0x4dc   : > { %6362 = vrot.lane.b32.xlu1 %v6099_v53, %s9375_s14  ;;  %v7164_v9 = vsel %vm9451_vm2, %v7159_v19, %v7163_v50  ;;  %v7183_v53 = vrot.slane %v7182_v0, 4  ;;  %v6120_v30 = vshll.u32 %v5928_v6, 16  ;;  %v6130_v4 = vrot.slane %v6128_v37, 5 }
 0x4dd   : > { %v5645_v40 = vpop.permute.xlu0 %5644 }
 0x4de   : > { %5712 = vst.msk [vmem:[#allocation2 + $0x70] sm:$0xf] %vm13398_vm8, %v5645_v40  ;;  %v5651_v10 = vpop.permute.xlu1 %5650  ;;  %v7187_v40 = vrot.slane %v7185_v11, 5  ;;  %vm13405_vm8 = vmmov %vm13400_vm3 }
 0x4df   : > { %6360 = vrot.lane.b32.xlu0 %v6089_v28, %s9375_s14  ;;  %5715 = vst.msk [vmem:[#allocation2 + $0x7c] sm:$0xf] %vm13377_vm1, %v5651_v10  ;;  %v7173_v28 = vrot.slane %v7172_v52, 4  ;;  %v7571_v10 = vld [vmem:[#allocation3 + $0x50] sm:$0x1]  ;;  %vm13406_vm1 = vmmov %vm13400_vm3 }
 0x4e0   : > { %6694 = vrot.lane.b32.xlu1 %v6598_v48, %s9376_s15  ;;  %v7188_v21 = vsel %vm9451_vm2, %v7183_v53, %v7187_v40  ;;  %v7569_v48 = vld [vmem:[#allocation3 + $0x48] sm:$0xe]  ;;  %v7686_v32 = vrot.slane %v7571_v10, 5  ;;  %v5731_v52 = vld [vmem:[#allocation3 + $0x64] sm:$0xf] }
 0x4e1   : > { %v5649_v63 = vpop.permute.xlu0 %5648  ;;  %v7178_v38 = vsel %vm9451_vm2, %v7173_v28, %v7177_v25  ;;  %v9106_v18 = vrot.slane %v7569_v48, 9  ;;  %v6490_v48 = vld [vmem:[#allocation3 + $0x64] sm:$0xf] }
 0x4e2   : > { %5714 = vst.msk [vmem:[#allocation2 + $0x78] sm:$0xf] %vm13399_vm4, %v5649_v63  ;;  %v5783_v60 = vpop.permute.xlu1 %5782  ;;  %vm13407_vm4 = vmmov %vm13406_vm1 }
 0x4e3   : > { %6692 = vrot.lane.b32.xlu0 %v6595_v17, %s9376_s15  ;;  %5877 = vst.msk [vmem:[#allocation2 + $0x4] sm:$0xf] %vm13400_vm3, %v5783_v60  ;;  %v7692_v17 = vrot.slane %v7690_v36, 4  ;;  %v7572_v60 = vld [vmem:[#allocation3 + $0x54] sm:$0xe]  ;;  %vm13408_vm3 = vmmov %vm13406_vm1 }
 0x4e4   : > { %6698 = vrot.lane.b32.xlu1 %v6605_v20, %s9376_s15  ;;  %v7687_v20 = vsel %vm9595_vm6, %v7685_v43, %v7686_v32  ;;  %v9107_v13 = vrot.slane %v7572_v60, 9 }
 0x4e5   : > { %v5781_v54 = vpop.permute.xlu0 %5780 }
 0x4e6   : > { %5876 = vst.msk [vmem:[#allocation2] sm:$0xf] %vm13401_vm7, %v5781_v54  ;;  %v5787_v44 = vpop.permute.xlu1 %5786  ;;  %v7684_v54 = vsel %vm9595_vm6, %v9106_v18, %v7683_v22  ;;  %v7691_v29 = vsel %vm9595_vm6, %v9107_v13, %v7690_v36  ;;  %v6487_v22 = vld [vmem:[#allocation3 + $0x58] sm:$0xf]  ;;  %v6615_v18 = vrot.slane %v6490_v48, 5  ;;  %vm13409_vm7 = vmmov %vm13406_vm1 }
 0x4e7   : > { %6696 = vrot.lane.b32.xlu0 %v6602_v2, %s9376_s15  ;;  %5879 = vst.msk [vmem:[#allocation2 + $0xc] sm:$0xf] %vm13402_vm9, %v5787_v44  ;;  %v7694_v44 = vsel %vm9595_vm6, %v7692_v17, %v7693_v42  ;;  %v6608_v43 = vrot.slane %v6487_v22, 5  ;;  %v6491_v42 = vld [vmem:[#allocation3 + $0x68] sm:$0x1]  ;;  %vm13410_vm9 = vmmov %vm13406_vm1 }
 0x4e8   : > { %6887 = vrot.lane.b32.xlu1 %v6814_v39, %s9377_s16  ;;  %v6138_v39 = vshrl.u32 %v5930_v45, 16  ;;  %v6618_v8 = vrot.slane %v6491_v42, 5 }
 0x4e9   : > { %v5785_v33 = vpop.permute.xlu0 %5784  ;;  %v6610_v60 = vrot.slane %v6608_v43, 4 }
 0x4ea   : > { %5878 = vst.msk [vmem:[#allocation2 + $0x8] sm:$0xf] %vm13403_vm10, %v5785_v33  ;;  %v6343_v56 = vpop.permute.xlu1 %6342  ;;  %v6140_v19 = vrot.slane %v6138_v39, 4  ;;  %vm13411_vm10 = vmmov %vm13406_vm1 }
 0x4eb   : > { %6885 = vrot.lane.b32.xlu0 %v6813_v15, %s9377_s16  ;;  %6437 = vst.msk [vmem:[#allocation2 + $0x4] sm:$0xf] %vm2018_vm11, %v6343_v56  ;;  %v6103_v15 = vrot.slane %v6101_v12, 4  ;;  %v6106_v56 = vrot.slane %v6104_v57, 5  ;;  %v7199_v12 = vshll.u32 %v7016_v23, 16  ;;  %v7203_v57 = vshrl.u32 %v7016_v23, 16 }
 0x4ec   : > { %6891 = vrot.lane.b32.xlu1 %v6816_v59, %s9377_s16  ;;  %v6136_v59 = vrot.slane %v6134_v62, 5  ;;  %v7019_v62 = vld [vmem:[#allocation3 + $0x70] sm:$0xf] }
 0x4ed   : > { %v6341_v5 = vpop.permute.xlu0 %6340  ;;  %v6107_v11 = vor.u32 %v6106_v56, %v6103_v15  ;;  %v12433_v56 = vrot.slane %v7199_v12, 5  ;;  %v7223_v37 = vshll.u32 %v7019_v62, 16 }
 0x4ee   : > { %6436 = vst.msk [vmem:[#allocation2] sm:$0xf] %vm2018_vm11, %v6341_v5  ;;  %v6347_v51 = vpop.permute.xlu1 %6346  ;;  %v5728_v5 = vld [vmem:[#allocation3 + $0x54] sm:$0xf]  ;;  %v6141_v53 = vor.u32 %v6140_v19, %v6136_v59 }
 0x4ef   : > { %6889 = vrot.lane.b32.xlu0 %v6815_v61, %s9377_s16  ;;  %6439 = vst.msk [vmem:[#allocation2 + $0xc] sm:$0xf] %vm2018_vm11, %v6347_v51  ;;  %v5931_v61 = vld [vmem:[#allocation3 + $0x68] sm:$0x1]  ;;  %v6127_v51 = vrot.slane %v6125_v49, 4  ;;  %v6108_v28 = vrot.slane %v6107_v11, 4 }
 0x4f0   : > { %7447 = vrot.lane.b32.xlu1 %v7164_v9, %s9379_s21  ;;  %v6118_v9 = vrot.slane %v6117_v34, 4  ;;  %v6144_v40 = vshll.u32 %v5931_v61, 16  ;;  %v7205_v49 = vrot.slane %v7203_v57, 4  ;;  %v7018_v34 = vld [vmem:[#allocation3 + $0x6c] sm:$0xf] }
 0x4f1   : > { %v6345_v16 = vpop.permute.xlu0 %6344  ;;  %v6131_v10 = vor.u32 %v6130_v4, %v6127_v51  ;;  %v6113_v32 = vsel %vm9451_vm2, %v6108_v28, %v6112_v14  ;;  %v7015_v14 = vld [vmem:[#allocation3 + $0x60] sm:$0xf]  ;;  %v7214_v61 = vshrl.u32 %v7018_v34, 16  ;;  %v7217_v51 = vshll.u32 %v7018_v34, 16  ;;  %v6818_v4 = vld [vmem:[#allocation3 + $0x64] sm:$0xf] }
 0x4f2   : > { %6438 = vst.msk [vmem:[#allocation2 + $0x8] sm:$0xf] %vm2018_vm11, %v6345_v16  ;;  %v6679_v55 = vpop.permute.xlu1 %6678  ;;  %v6122_v16 = vrot.slane %v6120_v30, 5  ;;  %v7190_v6 = vshrl.u32 %v7015_v14, 16  ;;  %v7193_v15 = vshll.u32 %v7015_v14, 16 }
 0x4f3   : > { %7445 = vrot.lane.b32.xlu0 %v7154_v35, %s9379_s21  ;;  %6773 = vst.msk [vmem:[#allocation2 + $0x4] sm:$0xf] %vm2355_vm12, %v6679_v55  ;;  %v5730_v35 = vld [vmem:[#allocation3 + $0x60] sm:$0xf]  ;;  %v7017_v30 = vld [vmem:[#allocation3 + $0x68] sm:$0x1] }
 0x4f4   : > { %7451 = vrot.lane.b32.xlu1 %v7188_v21, %s9379_s21  ;;  %v6123_v36 = vsel %vm9451_vm2, %v6118_v9, %v6122_v16  ;;  %v6142_v21 = vrot.slane %v6141_v53, 4  ;;  %v7195_v11 = vrot.slane %v7193_v15, 5  ;;  %v7225_v9 = vrot.slane %v7223_v37, 5  ;;  %v7020_v28 = vld [vmem:[#allocation3 + $0x74] sm:$0x1] }
 0x4f5   : > { %v6677_v24 = vpop.permute.xlu0 %6676  ;;  %v7209_v16 = vshll.u32 %v7017_v30, 16  ;;  %v7575_v57 = vld [vmem:[#allocation3 + $0x60] sm:$0xe]  ;;  %v5933_v14 = vld [vmem:[#allocation3 + $0x70] sm:$0xf] }
 0x4f6   : > { %6772 = vst.msk [vmem:[#allocation2] sm:$0xf] %vm2355_vm12, %v6677_v24  ;;  %v6683_v63 = vpop.permute.xlu1 %6682  ;;  %v6146_v24 = vrot.slane %v6144_v40, 5  ;;  %v6817_v40 = vld [vmem:[#allocation3 + $0x60] sm:$0xf] }
 0x4f7   : > { %7449 = vrot.lane.b32.xlu0 %v7178_v38, %s9379_s21  ;;  %6775 = vst.msk [vmem:[#allocation2 + $0xc] sm:$0xf] %vm2355_vm12, %v6683_v63  ;;  %v6132_v38 = vrot.slane %v6131_v10, 4  ;;  %v6488_v63 = vld [vmem:[#allocation3 + $0x5c] sm:$0x1]  ;;  %v7216_v10 = vrot.slane %v7214_v61, 4 }
 0x4f8   : > { %7783 = vrot.lane.b32.xlu1 %v7687_v20, %s9380_s24  ;;  %v6147_v17 = vsel %vm9451_vm2, %v6142_v21, %v6146_v24  ;;  %v6486_v20 = vld [vmem:[#allocation3 + $0x54] sm:$0xe]  ;;  %v6611_v58 = vrot.slane %v6488_v63, 5  ;;  %v6820_v21 = vld [vmem:[#allocation3 + $0x70] sm:$0xf] }
 0x4f9   : > { %v6681_v47 = vpop.permute.xlu0 %6680  ;;  %v6137_v45 = vsel %vm9451_vm2, %v6132_v38, %v6136_v59  ;;  %v9092_v13 = vrot.slane %v6486_v20, 9  ;;  %v6819_v38 = vld [vmem:[#allocation3 + $0x6c] sm:$0xf]  ;;  %v5936_v34 = vld [vmem:[#allocation3 + $0x7c] sm:$0xf] }
 0x4fa   : > { %6774 = vst.msk [vmem:[#allocation2 + $0x8] sm:$0xf] %vm2355_vm12, %v6681_v47  ;;  %v6872_v2 = vpop.permute.xlu1 %6871  ;;  %v5932_v37 = vld [vmem:[#allocation3 + $0x6c] sm:$0xf] }
 0x4fb   : > { %7781 = vrot.lane.b32.xlu0 %v7684_v54, %s9380_s24  ;;  %6966 = vst.msk [vmem:[#allocation2 + $0x4] sm:$0xf] %vm2549_vm13, %v6872_v2  ;;  %v6617_v54 = vrot.slane %v6615_v18, 4  ;;  %v6489_v2 = vld [vmem:[#allocation3 + $0x60] sm:$0xe] }
 0x4fc   : > { %7787 = vrot.lane.b32.xlu1 %v7694_v44, %s9380_s24  ;;  %v6612_v44 = vsel %vm9595_vm6, %v6610_v60, %v6611_v58  ;;  %v9093_v7 = vrot.slane %v6489_v2, 9 }
 0x4fd   : > { %v6870_v25 = vpop.permute.xlu0 %6869 }
 0x4fe   : > { %6965 = vst.msk [vmem:[#allocation2] sm:$0xf] %vm2549_vm13, %v6870_v25  ;;  %v6876_v33 = vpop.permute.xlu1 %6875  ;;  %v6609_v25 = vsel %vm9595_vm6, %v9092_v13, %v6608_v43  ;;  %v6616_v19 = vsel %vm9595_vm6, %v9093_v7, %v6615_v18 }
 0x4ff   : > { %7785 = vrot.lane.b32.xlu0 %v7691_v29, %s9380_s24  ;;  %6968 = vst.msk [vmem:[#allocation2 + $0xc] sm:$0xf] %vm2549_vm13, %v6876_v33  ;;  %v6619_v33 = vsel %vm9595_vm6, %v6617_v54, %v6618_v8  ;;  %v7577_v54 = vld [vmem:[#allocation3 + $0x68] sm:$0x1] }
 0x500   : > { %5806 = vrot.lane.b32.xlu1 %v5729_v1, %s9374_s13  ;;  %v7227_v1 = vshrl.u32 %v7019_v62, 16  ;;  %v7700_v62 = vrot.slane %v7577_v54, 5 }
 0x501   : > { %v6874_v0 = vpop.permute.xlu0 %6873 }
 0x502   : > { %6967 = vst.msk [vmem:[#allocation2 + $0x8] sm:$0xf] %vm2549_vm13, %v6874_v0  ;;  %v7432_v50 = vpop.permute.xlu1 %7431  ;;  %v7229_v53 = vrot.slane %v7227_v1, 4 }
 0x503   : > { %5804 = vrot.lane.b32.xlu0 %v5728_v5, %s9374_s13  ;;  %7526 = vst.msk [vmem:[#allocation2 + $0x4] sm:$0xf] %vm3110_vm14, %v7432_v50  ;;  %v7192_v50 = vrot.slane %v7190_v6, 4  ;;  %v7578_v6 = vld [vmem:[#allocation3 + $0x6c] sm:$0xe] }
 0x504   : > { %5810 = vrot.lane.b32.xlu1 %v5731_v52, %s9374_s13  ;;  %v7206_v52 = vor.u32 %v7205_v49, %v12433_v56  ;;  %v7230_v48 = vor.u32 %v7229_v53, %v7225_v9  ;;  %v6162_v49 = vshrl.u32 %v5933_v14, 16 }
 0x505   : > { %v7430_v31 = vpop.permute.xlu0 %7429 }
 0x506   : > { %7525 = vst.msk [vmem:[#allocation2] sm:$0xf] %vm3110_vm14, %v7430_v31  ;;  %v7436_v55 = vpop.permute.xlu1 %7435  ;;  %v7207_v43 = vrot.slane %v7206_v52, 4  ;;  %v7231_v20 = vrot.slane %v7230_v48, 4  ;;  %v6186_v52 = vshrl.u32 %v5936_v34, 16 }
 0x507   : > { %5808 = vrot.lane.b32.xlu0 %v5730_v35, %s9374_s13  ;;  %7528 = vst.msk [vmem:[#allocation2 + $0xc] sm:$0xf] %vm3110_vm14, %v7436_v55  ;;  %v7196_v55 = vor.u32 %v7195_v11, %v7192_v50  ;;  %v6149_v50 = vshrl.u32 %v5932_v37, 16  ;;  %v6152_v11 = vshll.u32 %v5932_v37, 16 }
 0x508   : > { %6366 = vrot.lane.b32.xlu1 %v6123_v36, %s9375_s14  ;;  %v7219_v36 = vrot.slane %v7217_v51, 5  ;;  %v6164_v51 = vrot.slane %v6162_v49, 4 }
 0x509   : > { %v7434_v46 = vpop.permute.xlu0 %7433  ;;  %v7197_v18 = vrot.slane %v7196_v55, 4 }
 0x50a   : > { %7527 = vst.msk [vmem:[#allocation2 + $0x8] sm:$0xf] %vm3110_vm14, %v7434_v46  ;;  %v7768_v26 = vpop.permute.xlu1 %7767  ;;  %v7576_v46 = vld [vmem:[#allocation3 + $0x64] sm:$0xf] }
 0x50b   : > { %6364 = vrot.lane.b32.xlu0 %v6113_v32, %s9375_s14  ;;  %7862 = vst.msk [vmem:[#allocation2 + $0x4] sm:$0xf] %vm3447_vm15, %v7768_v26  ;;  %v7211_v32 = vrot.slane %v7209_v16, 5  ;;  %v7233_v26 = vshll.u32 %v7020_v28, 16  ;;  %v7697_v23 = vrot.slane %v7576_v46, 5 }
 0x50c   : > { %6370 = vrot.lane.b32.xlu1 %v6147_v17, %s9375_s14  ;;  %v7220_v17 = vor.u32 %v7219_v36, %v7216_v10  ;;  %v5934_v16 = vld [vmem:[#allocation3 + $0x74] sm:$0x1]  ;;  %v5733_v10 = vld [vmem:[#allocation3 + $0x70] sm:$0xf] }
 0x50d   : > { %v7766_v27 = vpop.permute.xlu0 %7765  ;;  %v7212_v60 = vsel %vm9451_vm2, %v7207_v43, %v7211_v32  ;;  %v7235_v42 = vrot.slane %v7233_v26, 5  ;;  %v7699_v12 = vrot.slane %v7697_v23, 4  ;;  %v6188_v43 = vrot.slane %v6186_v52, 4 }
 0x50e   : > { %7861 = vst.msk [vmem:[#allocation2] sm:$0xf] %vm3447_vm15, %v7766_v27  ;;  %v7772_v47 = vpop.permute.xlu1 %7771  ;;  %v7579_v27 = vld [vmem:[#allocation3 + $0x70] sm:$0xf]  ;;  %v7221_v13 = vrot.slane %v7220_v17, 4  ;;  %v6168_v46 = vshll.u32 %v5934_v16, 16 }
 0x50f   : > { %6368 = vrot.lane.b32.xlu0 %v6137_v45, %s9375_s14  ;;  %7864 = vst.msk [vmem:[#allocation2 + $0xc] sm:$0xf] %vm3447_vm15, %v7772_v47  ;;  %v7202_v45 = vsel %vm9451_vm2, %v7197_v18, %v12433_v56  ;;  %v7704_v2 = vrot.slane %v7579_v27, 5  ;;  %v7701_v15 = vsel %vm9595_vm6, %v7699_v12, %v7700_v62  ;;  %v6158_v56 = vshll.u32 %v5933_v14, 16  ;;  %v5735_v17 = vld [vmem:[#allocation3 + $0x7c] sm:$0xf] }
 0x510   : > { %6702 = vrot.lane.b32.xlu1 %v6612_v44, %s9376_s15  ;;  %v7236_v44 = vsel %vm9451_vm2, %v7231_v20, %v7235_v42  ;;  %v7226_v7 = vsel %vm9451_vm2, %v7221_v13, %v7225_v9  ;;  %v5935_v9 = vld [vmem:[#allocation3 + $0x78] sm:$0xf] }
 0x511   : > { %v7770_v39 = vpop.permute.xlu0 %7769  ;;  %v6160_v61 = vrot.slane %v6158_v56, 5  ;;  %v6173_v55 = vshrl.u32 %v5935_v9, 16  ;;  %v6176_v28 = vshll.u32 %v5935_v9, 16  ;;  %v7022_v56 = vld [vmem:[#allocation3 + $0x7c] sm:$0xf] }
 0x512   : > { %7863 = vst.msk [vmem:[#allocation2 + $0x8] sm:$0xf] %vm3447_vm15, %v7770_v39  ;;  %v5791_v29 = vpop.permute.xlu1 %5790  ;;  %v7580_v39 = vld [vmem:[#allocation3 + $0x74] sm:$0x1] }
 0x513   : > { %6700 = vrot.lane.b32.xlu0 %v6609_v25, %s9376_s15  ;;  %5881 = vst.msk [vmem:[#allocation2 + $0x14] sm:$0xf] %vm13404_vm5, %v5791_v29  ;;  %v9108_v29 = vrot.slane %v7575_v57, 9  ;;  %v7707_v1 = vrot.slane %v7580_v39, 5  ;;  %v6165_v36 = vor.u32 %v6164_v51, %v6160_v61  ;;  %v6178_v18 = vrot.slane %v6176_v28, 5  ;;  %vm13412_vm5 = vmmov %vm13406_vm1 }
 0x514   : > { %6706 = vrot.lane.b32.xlu1 %v6619_v33, %s9376_s15  ;;  %v7706_v33 = vrot.slane %v7704_v2, 4  ;;  %v6496_v57 = vld [vmem:[#allocation3 + $0x7c] sm:$0xf] }
 0x515   : > { %v5789_v59 = vpop.permute.xlu0 %5788  ;;  %v9344_v0 = vld [vmem:[#allocation2] sm:$0xff]  }
 0x516   : > { %5880 = vst.msk [vmem:[#allocation2 + $0x10] sm:$0xf] %vm13405_vm8, %v5789_v59  ;;  %v5795_v5 = vpop.permute.xlu1 %5794  ;;  %9271 = vmatprep.mubr.msk.bf16.mxu1 %vm3612_vm0, %v9344_v0  ;;  %v7698_v0 = vsel %vm9595_vm6, %v9108_v29, %v7697_v23  ;;  %v6493_v23 = vld [vmem:[#allocation3 + $0x70] sm:$0xf]  ;;  %v6629_v29 = vrot.slane %v6496_v57, 5  ;;  %vm13413_vm8 = vmmov %vm13406_vm1 }
 0x517   : > { %6704 = vrot.lane.b32.xlu0 %v6616_v19, %s9376_s15  ;;  %5883 = vst.msk [vmem:[#allocation2 + $0x1c] sm:$0xf] %vm13406_vm1, %v5795_v5  ;;  %v9109_v19 = vrot.slane %v7578_v6, 9  ;;  %v7708_v5 = vsel %vm9595_vm6, %v7706_v33, %v7707_v1  ;;  %v6622_v12 = vrot.slane %v6493_v23, 5  ;;  %v6497_v1 = vld [vmem:[#allocation3 + $0x80] sm:$0x1] }
 0x518   : > { %6895 = vrot.lane.b32.xlu1 %v6818_v4, %s9377_s16  ;;  %v6182_v4 = vshll.u32 %v5936_v34, 16  ;;  %v6632_v51 = vrot.slane %v6497_v1, 5 }
 0x519   : > { %v5793_v22 = vpop.permute.xlu0 %5792  ;;  %v9345_v31 = vld [vmem:[#allocation2 + $0x8] sm:$0xff]   ;;  %v6624_v6 = vrot.slane %v6622_v12, 4 }
 0x51a   : > { %5882 = vst.msk [vmem:[#allocation2 + $0x18] sm:$0xf] %vm13407_vm4, %v5793_v22  ;;  %v6351_v35 = vpop.permute.xlu1 %6350  ;;  %9272 = vmatmul.mubr.msk.bf16.vlgmr.msra.gmra.mxu1 %vm3612_vm0, %v9345_v31  ;;  %v7705_v22 = vsel %vm9595_vm6, %v9109_v19, %v7704_v2  ;;  %vm13414_vm4 = vmmov %vm13406_vm1 }
 0x51b   : > { %6893 = vrot.lane.b32.xlu0 %v6817_v40, %s9377_s16  ;;  %6441 = vst.msk [vmem:[#allocation2 + $0x14] sm:$0xf] %vm2018_vm11, %v6351_v35  ;;  %v6151_v40 = vrot.slane %v6149_v50, 4  ;;  %v6154_v35 = vrot.slane %v6152_v11, 5  ;;  %v7247_v50 = vshll.u32 %v7022_v56, 16  ;;  %v7251_v11 = vshrl.u32 %v7022_v56, 16 }
 0x51c   : > { %6899 = vrot.lane.b32.xlu1 %v6820_v21, %s9377_s16  ;;  %v6184_v21 = vrot.slane %v6182_v4, 5  ;;  %v7025_v4 = vld [vmem:[#allocation3 + $0x88] sm:$0xf] }
 0x51d   : > { %v6349_v24 = vpop.permute.xlu0 %6348  ;;  %v6155_v26 = vor.u32 %v6154_v35, %v6151_v40  ;;  %v12519_v35 = vrot.slane %v7247_v50, 5  ;;  %v7271_v28 = vshll.u32 %v7025_v4, 16 }
 0x51e   : > { %6440 = vst.msk [vmem:[#allocation2 + $0x10] sm:$0xf] %vm2018_vm11, %v6349_v24  ;;  %v6355_v63 = vpop.permute.xlu1 %6354  ;;  %v5732_v24 = vld [vmem:[#allocation3 + $0x6c] sm:$0xf]  ;;  %v6189_v20 = vor.u32 %v6188_v43, %v6184_v21 }
 0x51f   : > { %6897 = vrot.lane.b32.xlu0 %v6819_v38, %s9377_s16  ;;  %6443 = vst.msk [vmem:[#allocation2 + $0x1c] sm:$0xf] %vm2018_vm11, %v6355_v63  ;;  %v5937_v38 = vld [vmem:[#allocation3 + $0x80] sm:$0x1]  ;;  %v6175_v63 = vrot.slane %v6173_v55, 4  ;;  %v6156_v13 = vrot.slane %v6155_v26, 4 }
 0x520   : > { %7455 = vrot.lane.b32.xlu1 %v7212_v60, %s9379_s21  ;;  %v6166_v60 = vrot.slane %v6165_v36, 4  ;;  %v6192_v42 = vshll.u32 %v5937_v38, 16  ;;  %v7253_v55 = vrot.slane %v7251_v11, 4  ;;  %v7024_v36 = vld [vmem:[#allocation3 + $0x84] sm:$0xf] }
 0x521   : > { %v6353_v58 = vpop.permute.xlu0 %6352  ;;  %v6179_v54 = vor.u32 %v6178_v18, %v6175_v63  ;;  %v6161_v62 = vsel %vm9451_vm2, %v6156_v13, %v6160_v61  ;;  %v7021_v61 = vld [vmem:[#allocation3 + $0x78] sm:$0xf]  ;;  %v7262_v38 = vshrl.u32 %v7024_v36, 16  ;;  %v7265_v63 = vshll.u32 %v7024_v36, 16  ;;  %v6822_v18 = vld [vmem:[#allocation3 + $0x7c] sm:$0xf] }
 0x522   : > { %6442 = vst.msk [vmem:[#allocation2 + $0x18] sm:$0xf] %vm2018_vm11, %v6353_v58  ;;  %v6687_v47 = vpop.permute.xlu1 %6686  ;;  %v6170_v58 = vrot.slane %v6168_v46, 5  ;;  %v7238_v16 = vshrl.u32 %v7021_v61, 16  ;;  %v7241_v40 = vshll.u32 %v7021_v61, 16 }
 0x523   : > { %7453 = vrot.lane.b32.xlu0 %v7202_v45, %s9379_s21  ;;  %6777 = vst.msk [vmem:[#allocation2 + $0x14] sm:$0xf] %vm2355_vm12, %v6687_v47  ;;  %v5734_v45 = vld [vmem:[#allocation3 + $0x78] sm:$0xf]  ;;  %v7023_v46 = vld [vmem:[#allocation3 + $0x80] sm:$0x1] }
 0x524   : > { %7459 = vrot.lane.b32.xlu1 %v7236_v44, %s9379_s21  ;;  %v6171_v2 = vsel %vm9451_vm2, %v6166_v60, %v6170_v58  ;;  %v6190_v44 = vrot.slane %v6189_v20, 4  ;;  %v7243_v26 = vrot.slane %v7241_v40, 5  ;;  %v7273_v60 = vrot.slane %v7271_v28, 5  ;;  %v7026_v13 = vld [vmem:[#allocation3 + $0x8c] sm:$0x1] }
 0x525   : > { %v6685_v8 = vpop.permute.xlu0 %6684  ;;  %v7257_v58 = vshll.u32 %v7023_v46, 16  ;;  %v7581_v11 = vld [vmem:[#allocation3 + $0x78] sm:$0xe]  ;;  %v5939_v61 = vld [vmem:[#allocation3 + $0x88] sm:$0xf] }
 0x526   : > { %6776 = vst.msk [vmem:[#allocation2 + $0x10] sm:$0xf] %vm2355_vm12, %v6685_v8  ;;  %v6691_v25 = vpop.permute.xlu1 %6690  ;;  %v6194_v8 = vrot.slane %v6192_v42, 5  ;;  %v6821_v42 = vld [vmem:[#allocation3 + $0x78] sm:$0xf] }
 0x527   : > { %7457 = vrot.lane.b32.xlu0 %v7226_v7, %s9379_s21  ;;  %6779 = vst.msk [vmem:[#allocation2 + $0x1c] sm:$0xf] %vm2355_vm12, %v6691_v25  ;;  %v6180_v7 = vrot.slane %v6179_v54, 4  ;;  %v6494_v25 = vld [vmem:[#allocation3 + $0x74] sm:$0x1]  ;;  %v7264_v54 = vrot.slane %v7262_v38, 4 }
 0x528   : > { %7791 = vrot.lane.b32.xlu1 %v7701_v15, %s9380_s24  ;;  %v6195_v33 = vsel %vm9451_vm2, %v6190_v44, %v6194_v8  ;;  %v6492_v15 = vld [vmem:[#allocation3 + $0x6c] sm:$0xe]  ;;  %v6625_v37 = vrot.slane %v6494_v25, 5  ;;  %v6824_v44 = vld [vmem:[#allocation3 + $0x88] sm:$0xf] }
 0x529   : > { %v6689_v59 = vpop.permute.xlu0 %6688  ;;  %v6185_v34 = vsel %vm9451_vm2, %v6180_v7, %v6184_v21  ;;  %v9094_v19 = vrot.slane %v6492_v15, 9  ;;  %v6823_v7 = vld [vmem:[#allocation3 + $0x84] sm:$0xf]  ;;  %v5942_v36 = vld [vmem:[#allocation3 + $0x94] sm:$0xf] }
 0x52a   : > { %6778 = vst.msk [vmem:[#allocation2 + $0x18] sm:$0xf] %vm2355_vm12, %v6689_v59  ;;  %v6880_v30 = vpop.permute.xlu1 %6879  ;;  %v5938_v28 = vld [vmem:[#allocation3 + $0x84] sm:$0xf] }
 0x52b   : > { %7789 = vrot.lane.b32.xlu0 %v7698_v0, %s9380_s24  ;;  %6970 = vst.msk [vmem:[#allocation2 + $0x14] sm:$0xf] %vm2549_vm13, %v6880_v30  ;;  %v6631_v0 = vrot.slane %v6629_v29, 4  ;;  %v6495_v30 = vld [vmem:[#allocation3 + $0x78] sm:$0xe] }
 0x52c   : > { %7795 = vrot.lane.b32.xlu1 %v7708_v5, %s9380_s24  ;;  %v6626_v5 = vsel %vm9595_vm6, %v6624_v6, %v6625_v37  ;;  %v9095_v9 = vrot.slane %v6495_v30, 9 }
 0x52d   : > { %v6878_v53 = vpop.permute.xlu0 %6877 }
 0x52e   : > { %6969 = vst.msk [vmem:[#allocation2 + $0x10] sm:$0xf] %vm2549_vm13, %v6878_v53  ;;  %v6884_v31 = vpop.permute.xlu1 %6883  ;;  %v6623_v53 = vsel %vm9595_vm6, %v9094_v19, %v6622_v12  ;;  %v6630_v43 = vsel %vm9595_vm6, %v9095_v9, %v6629_v29 }
 0x52f   : > { %7793 = vrot.lane.b32.xlu0 %v7705_v22, %s9380_s24  ;;  %6972 = vst.msk [vmem:[#allocation2 + $0x1c] sm:$0xf] %vm2549_vm13, %v6884_v31  ;;  %v6633_v31 = vsel %vm9595_vm6, %v6631_v0, %v6632_v51  ;;  %v7583_v0 = vld [vmem:[#allocation3 + $0x80] sm:$0x1] }
 0x530   : > { %5814 = vrot.lane.b32.xlu1 %v5733_v10, %s9374_s13  ;;  %v7275_v10 = vshrl.u32 %v7025_v4, 16  ;;  %v7714_v4 = vrot.slane %v7583_v0, 5 }
 0x531   : > { %v6882_v48 = vpop.permute.xlu0 %6881 }
 0x532   : > { %6971 = vst.msk [vmem:[#allocation2 + $0x18] sm:$0xf] %vm2549_vm13, %v6882_v48  ;;  %v7440_v32 = vpop.permute.xlu1 %7439  ;;  %v7277_v20 = vrot.slane %v7275_v10, 4 }
 0x533   : > { %5812 = vrot.lane.b32.xlu0 %v5732_v24, %s9374_s13  ;;  %7530 = vst.msk [vmem:[#allocation2 + $0x14] sm:$0xf] %vm3110_vm14, %v7440_v32  ;;  %v7240_v32 = vrot.slane %v7238_v16, 4  ;;  %v7584_v16 = vld [vmem:[#allocation3 + $0x84] sm:$0xe] }
 0x534   : > { %5818 = vrot.lane.b32.xlu1 %v5735_v17, %s9374_s13  ;;  %v7254_v17 = vor.u32 %v7253_v55, %v12519_v35  ;;  %v7278_v57 = vor.u32 %v7277_v20, %v7273_v60  ;;  %v6210_v55 = vshrl.u32 %v5939_v61, 16 }
 0x535   : > { %v7438_v27 = vpop.permute.xlu0 %7437 }
 0x536   : > { %7529 = vst.msk [vmem:[#allocation2 + $0x10] sm:$0xf] %vm3110_vm14, %v7438_v27  ;;  %v7444_v47 = vpop.permute.xlu1 %7443  ;;  %v7255_v12 = vrot.slane %v7254_v17, 4  ;;  %v7279_v15 = vrot.slane %v7278_v57, 4  ;;  %v6234_v17 = vshrl.u32 %v5942_v36, 16 }
 0x537   : > { %5816 = vrot.lane.b32.xlu0 %v5734_v45, %s9374_s13  ;;  %7532 = vst.msk [vmem:[#allocation2 + $0x1c] sm:$0xf] %vm3110_vm14, %v7444_v47  ;;  %v7244_v47 = vor.u32 %v7243_v26, %v7240_v32  ;;  %v6197_v32 = vshrl.u32 %v5938_v28, 16  ;;  %v6200_v26 = vshll.u32 %v5938_v28, 16 }
 0x538   : > { %6374 = vrot.lane.b32.xlu1 %v6171_v2, %s9375_s14  ;;  %v7267_v2 = vrot.slane %v7265_v63, 5  ;;  %v6212_v63 = vrot.slane %v6210_v55, 4 }
 0x539   : > { %v7442_v14 = vpop.permute.xlu0 %7441  ;;  %v7245_v29 = vrot.slane %v7244_v47, 4 }
 0x53a   : > { %7531 = vst.msk [vmem:[#allocation2 + $0x18] sm:$0xf] %vm3110_vm14, %v7442_v14  ;;  %v7776_v39 = vpop.permute.xlu1 %7775  ;;  %v7582_v14 = vld [vmem:[#allocation3 + $0x7c] sm:$0xf] }
 0x53b   : > { %6372 = vrot.lane.b32.xlu0 %v6161_v62, %s9375_s14  ;;  %7866 = vst.msk [vmem:[#allocation2 + $0x14] sm:$0xf] %vm3447_vm15, %v7776_v39  ;;  %v7259_v62 = vrot.slane %v7257_v58, 5  ;;  %v7281_v39 = vshll.u32 %v7026_v13, 16  ;;  %v7711_v56 = vrot.slane %v7582_v14, 5 }
 0x53c   : > { %6378 = vrot.lane.b32.xlu1 %v6195_v33, %s9375_s14  ;;  %v7268_v33 = vor.u32 %v7267_v2, %v7264_v54  ;;  %v5940_v58 = vld [vmem:[#allocation3 + $0x8c] sm:$0x1]  ;;  %v5737_v54 = vld [vmem:[#allocation3 + $0x88] sm:$0xf] }
 0x53d   : > { %v7774_v49 = vpop.permute.xlu0 %7773  ;;  %v7260_v6 = vsel %vm9451_vm2, %v7255_v12, %v7259_v62  ;;  %v7283_v1 = vrot.slane %v7281_v39, 5  ;;  %v7713_v50 = vrot.slane %v7711_v56, 4  ;;  %v6236_v12 = vrot.slane %v6234_v17, 4 }
 0x53e   : > { %7865 = vst.msk [vmem:[#allocation2 + $0x10] sm:$0xf] %vm3447_vm15, %v7774_v49  ;;  %v7780_v59 = vpop.permute.xlu1 %7779  ;;  %v7585_v49 = vld [vmem:[#allocation3 + $0x88] sm:$0xf]  ;;  %v7269_v19 = vrot.slane %v7268_v33, 4  ;;  %v6216_v14 = vshll.u32 %v5940_v58, 16 }
 0x53f   : > { %6376 = vrot.lane.b32.xlu0 %v6185_v34, %s9375_s14  ;;  %7868 = vst.msk [vmem:[#allocation2 + $0x1c] sm:$0xf] %vm3447_vm15, %v7780_v59  ;;  %v7250_v34 = vsel %vm9451_vm2, %v7245_v29, %v12519_v35  ;;  %v7718_v30 = vrot.slane %v7585_v49, 5  ;;  %v7715_v40 = vsel %vm9595_vm6, %v7713_v50, %v7714_v4  ;;  %v6206_v35 = vshll.u32 %v5939_v61, 16  ;;  %v5739_v33 = vld [vmem:[#allocation3 + $0x94] sm:$0xf] }
 0x540   : > { %6710 = vrot.lane.b32.xlu1 %v6626_v5, %s9376_s15  ;;  %v7284_v5 = vsel %vm9451_vm2, %v7279_v15, %v7283_v1  ;;  %v7274_v9 = vsel %vm9451_vm2, %v7269_v19, %v7273_v60  ;;  %v5941_v60 = vld [vmem:[#allocation3 + $0x90] sm:$0xf] }
 0x541   : > { %v7778_v52 = vpop.permute.xlu0 %7777  ;;  %v6208_v38 = vrot.slane %v6206_v35, 5  ;;  %v6221_v47 = vshrl.u32 %v5941_v60, 16  ;;  %v6224_v13 = vshll.u32 %v5941_v60, 16  ;;  %v7028_v35 = vld [vmem:[#allocation3 + $0x94] sm:$0xf] }
 0x542   : > { %7867 = vst.msk [vmem:[#allocation2 + $0x18] sm:$0xf] %vm3447_vm15, %v7778_v52  ;;  %v5799_v22 = vpop.permute.xlu1 %5798  ;;  %v7586_v52 = vld [vmem:[#allocation3 + $0x8c] sm:$0x1] }
 0x543   : > { %6708 = vrot.lane.b32.xlu0 %v6623_v53, %s9376_s15  ;;  %5885 = vst.msk [vmem:[#allocation2 + $0x24] sm:$0xf] %vm13408_vm3, %v5799_v22  ;;  %v9110_v22 = vrot.slane %v7581_v11, 9  ;;  %v7721_v10 = vrot.slane %v7586_v52, 5  ;;  %v6213_v2 = vor.u32 %v6212_v63, %v6208_v38  ;;  %v6226_v29 = vrot.slane %v6224_v13, 5  ;;  %vm13415_vm3 = vmmov %vm13406_vm1 }
 0x544   : > { %6714 = vrot.lane.b32.xlu1 %v6633_v31, %s9376_s15  ;;  %v7720_v31 = vrot.slane %v7718_v30, 4  ;;  %v6502_v11 = vld [vmem:[#allocation3 + $0x94] sm:$0xf] }
 0x545   : > { %v5797_v21 = vpop.permute.xlu0 %5796  ;;  %v9346_v48 = vld [vmem:[#allocation2 + $0x10] sm:$0xff]  }
 0x546   : > { %5884 = vst.msk [vmem:[#allocation2 + $0x20] sm:$0xf] %vm13409_vm7, %v5797_v21  ;;  %v5803_v24 = vpop.permute.xlu1 %5802  ;;  %9275 = vmatprep.mubr.msk.bf16.mxu1 %vm3612_vm0, %v9346_v48  ;;  %v7712_v48 = vsel %vm9595_vm6, %v9110_v22, %v7711_v56  ;;  %v6499_v56 = vld [vmem:[#allocation3 + $0x88] sm:$0xf]  ;;  %v6643_v22 = vrot.slane %v6502_v11, 5  ;;  %vm13416_vm7 = vmmov %vm13406_vm1 }
 0x547   : > { %6712 = vrot.lane.b32.xlu0 %v6630_v43, %s9376_s15  ;;  %5887 = vst.msk [vmem:[#allocation2 + $0x2c] sm:$0xf] %vm13410_vm9, %v5803_v24  ;;  %v9111_v43 = vrot.slane %v7584_v16, 9  ;;  %v7722_v24 = vsel %vm9595_vm6, %v7720_v31, %v7721_v10  ;;  %v6636_v50 = vrot.slane %v6499_v56, 5  ;;  %v6503_v10 = vld [vmem:[#allocation3 + $0x98] sm:$0x1]  ;;  %vm13417_vm9 = vmmov %vm13406_vm1 }
 0x548   : > { %6903 = vrot.lane.b32.xlu1 %v6822_v18, %s9377_s16  ;;  %v6230_v18 = vshll.u32 %v5942_v36, 16  ;;  %v6646_v63 = vrot.slane %v6503_v10, 5 }
 0x549   : > { %v5801_v23 = vpop.permute.xlu0 %5800  ;;  %v9347_v27 = vld [vmem:[#allocation2 + $0x18] sm:$0xff]   ;;  %v6638_v16 = vrot.slane %v6636_v50, 4 }
 0x54a   : > { %5886 = vst.msk [vmem:[#allocation2 + $0x28] sm:$0xf] %vm13411_vm10, %v5801_v23  ;;  %v6359_v45 = vpop.permute.xlu1 %6358  ;;  %9276 = vmatmul.mubr.msk.bf16.gmra.mxu1 %vm3612_vm0, %v9347_v27  ;;  %v7719_v23 = vsel %vm9595_vm6, %v9111_v43, %v7718_v30  ;;  %vm13418_vm10 = vmmov %vm13406_vm1 }
 0x54b   : > { %6901 = vrot.lane.b32.xlu0 %v6821_v42, %s9377_s16  ;;  %6445 = vst.msk [vmem:[#allocation2 + $0x24] sm:$0xf] %vm2018_vm11, %v6359_v45  ;;  %v6199_v42 = vrot.slane %v6197_v32, 4  ;;  %v6202_v45 = vrot.slane %v6200_v26, 5  ;;  %v7295_v32 = vshll.u32 %v7028_v35, 16  ;;  %v7299_v26 = vshrl.u32 %v7028_v35, 16 }
 0x54c   : > { %6907 = vrot.lane.b32.xlu1 %v6824_v44, %s9377_s16  ;;  %v6232_v44 = vrot.slane %v6230_v18, 5  ;;  %v7031_v18 = vld [vmem:[#allocation3 + $0xa0] sm:$0xf] }
 0x54d   : > { %v6357_v8 = vpop.permute.xlu0 %6356  ;;  %v6203_v39 = vor.u32 %v6202_v45, %v6199_v42  ;;  %v12605_v45 = vrot.slane %v7295_v32, 5  ;;  %v7319_v13 = vshll.u32 %v7031_v18, 16 }
 0x54e   : > { %6444 = vst.msk [vmem:[#allocation2 + $0x20] sm:$0xf] %vm2018_vm11, %v6357_v8  ;;  %v6363_v25 = vpop.permute.xlu1 %6362  ;;  %v5736_v8 = vld [vmem:[#allocation3 + $0x84] sm:$0xf]  ;;  %v6237_v15 = vor.u32 %v6236_v12, %v6232_v44 }
 0x54f   : > { %6905 = vrot.lane.b32.xlu0 %v6823_v7, %s9377_s16  ;;  %6447 = vst.msk [vmem:[#allocation2 + $0x2c] sm:$0xf] %vm2018_vm11, %v6363_v25  ;;  %v5943_v7 = vld [vmem:[#allocation3 + $0x98] sm:$0x1]  ;;  %v6223_v25 = vrot.slane %v6221_v47, 4  ;;  %v6204_v19 = vrot.slane %v6203_v39, 4 }
 0x550   : > { %7463 = vrot.lane.b32.xlu1 %v7260_v6, %s9379_s21  ;;  %v6214_v6 = vrot.slane %v6213_v2, 4  ;;  %v6240_v1 = vshll.u32 %v5943_v7, 16  ;;  %v7301_v47 = vrot.slane %v7299_v26, 4  ;;  %v7030_v2 = vld [vmem:[#allocation3 + $0x9c] sm:$0xf] }
 0x551   : > { %v6361_v37 = vpop.permute.xlu0 %6360  ;;  %v6227_v0 = vor.u32 %v6226_v29, %v6223_v25  ;;  %v6209_v4 = vsel %vm9451_vm2, %v6204_v19, %v6208_v38  ;;  %v7027_v38 = vld [vmem:[#allocation3 + $0x90] sm:$0xf]  ;;  %v7310_v7 = vshrl.u32 %v7030_v2, 16  ;;  %v7313_v25 = vshll.u32 %v7030_v2, 16  ;;  %v6826_v29 = vld [vmem:[#allocation3 + $0x94] sm:$0xf] }
 0x552   : > { %6446 = vst.msk [vmem:[#allocation2 + $0x28] sm:$0xf] %vm2018_vm11, %v6361_v37  ;;  %v6695_v59 = vpop.permute.xlu1 %6694  ;;  %v6218_v37 = vrot.slane %v6216_v14, 5  ;;  %v7286_v58 = vshrl.u32 %v7027_v38, 16  ;;  %v7289_v42 = vshll.u32 %v7027_v38, 16 }
 0x553   : > { %7461 = vrot.lane.b32.xlu0 %v7250_v34, %s9379_s21  ;;  %6781 = vst.msk [vmem:[#allocation2 + $0x24] sm:$0xf] %vm2355_vm12, %v6695_v59  ;;  %v5738_v34 = vld [vmem:[#allocation3 + $0x90] sm:$0xf]  ;;  %v7029_v14 = vld [vmem:[#allocation3 + $0x98] sm:$0x1] }
 0x554   : > { %7467 = vrot.lane.b32.xlu1 %v7284_v5, %s9379_s21  ;;  %v6219_v30 = vsel %vm9451_vm2, %v6214_v6, %v6218_v37  ;;  %v6238_v5 = vrot.slane %v6237_v15, 4  ;;  %v7291_v39 = vrot.slane %v7289_v42, 5  ;;  %v7321_v6 = vrot.slane %v7319_v13, 5  ;;  %v7032_v19 = vld [vmem:[#allocation3 + $0xa4] sm:$0x1] }
 0x555   : > { %v6693_v51 = vpop.permute.xlu0 %6692  ;;  %v7305_v37 = vshll.u32 %v7029_v14, 16  ;;  %v7587_v26 = vld [vmem:[#allocation3 + $0x90] sm:$0xe]  ;;  %v5945_v38 = vld [vmem:[#allocation3 + $0xa0] sm:$0xf] }
 0x556   : > { %6780 = vst.msk [vmem:[#allocation2 + $0x20] sm:$0xf] %vm2355_vm12, %v6693_v51  ;;  %v6699_v53 = vpop.permute.xlu1 %6698  ;;  %v6242_v51 = vrot.slane %v6240_v1, 5  ;;  %v6825_v1 = vld [vmem:[#allocation3 + $0x90] sm:$0xf] }
 0x557   : > { %7465 = vrot.lane.b32.xlu0 %v7274_v9, %s9379_s21  ;;  %6783 = vst.msk [vmem:[#allocation2 + $0x2c] sm:$0xf] %vm2355_vm12, %v6699_v53  ;;  %v6228_v9 = vrot.slane %v6227_v0, 4  ;;  %v6500_v53 = vld [vmem:[#allocation3 + $0x8c] sm:$0x1]  ;;  %v7312_v0 = vrot.slane %v7310_v7, 4 }
 0x558   : > { %7799 = vrot.lane.b32.xlu1 %v7715_v40, %s9380_s24  ;;  %v6243_v31 = vsel %vm9451_vm2, %v6238_v5, %v6242_v51  ;;  %v6498_v40 = vld [vmem:[#allocation3 + $0x84] sm:$0xe]  ;;  %v6639_v28 = vrot.slane %v6500_v53, 5  ;;  %v6828_v5 = vld [vmem:[#allocation3 + $0xa0] sm:$0xf] }
 0x559   : > { %v6697_v21 = vpop.permute.xlu0 %6696  ;;  %v6233_v36 = vsel %vm9451_vm2, %v6228_v9, %v6232_v44  ;;  %v9096_v43 = vrot.slane %v6498_v40, 9  ;;  %v6827_v9 = vld [vmem:[#allocation3 + $0x9c] sm:$0xf]  ;;  %v5948_v2 = vld [vmem:[#allocation3 + $0xac] sm:$0xf] }
 0x55a   : > { %6782 = vst.msk [vmem:[#allocation2 + $0x28] sm:$0xf] %vm2355_vm12, %v6697_v21  ;;  %v6888_v46 = vpop.permute.xlu1 %6887  ;;  %v5944_v13 = vld [vmem:[#allocation3 + $0x9c] sm:$0xf] }
 0x55b   : > { %7797 = vrot.lane.b32.xlu0 %v7712_v48, %s9380_s24  ;;  %6974 = vst.msk [vmem:[#allocation2 + $0x24] sm:$0xf] %vm2549_vm13, %v6888_v46  ;;  %v6645_v48 = vrot.slane %v6643_v22, 4  ;;  %v6501_v46 = vld [vmem:[#allocation3 + $0x90] sm:$0xe] }
 0x55c   : > { %7803 = vrot.lane.b32.xlu1 %v7722_v24, %s9380_s24  ;;  %v6640_v24 = vsel %vm9595_vm6, %v6638_v16, %v6639_v28  ;;  %v9097_v60 = vrot.slane %v6501_v46, 9 }
 0x55d   : > { %v6886_v20 = vpop.permute.xlu0 %6885 }
 0x55e   : > { %6973 = vst.msk [vmem:[#allocation2 + $0x20] sm:$0xf] %vm2549_vm13, %v6886_v20  ;;  %v6892_v27 = vpop.permute.xlu1 %6891  ;;  %v6637_v20 = vsel %vm9595_vm6, %v9096_v43, %v6636_v50  ;;  %v6644_v12 = vsel %vm9595_vm6, %v9097_v60, %v6643_v22 }
 0x55f   : > { %7801 = vrot.lane.b32.xlu0 %v7719_v23, %s9380_s24  ;;  %6976 = vst.msk [vmem:[#allocation2 + $0x2c] sm:$0xf] %vm2549_vm13, %v6892_v27  ;;  %v6647_v27 = vsel %vm9595_vm6, %v6645_v48, %v6646_v63  ;;  %v7589_v48 = vld [vmem:[#allocation3 + $0x98] sm:$0x1] }
 0x560   : > { %5822 = vrot.lane.b32.xlu1 %v5737_v54, %s9374_s13  ;;  %v7323_v54 = vshrl.u32 %v7031_v18, 16  ;;  %v7728_v18 = vrot.slane %v7589_v48, 5 }
 0x561   : > { %v6890_v57 = vpop.permute.xlu0 %6889 }
 0x562   : > { %6975 = vst.msk [vmem:[#allocation2 + $0x28] sm:$0xf] %vm2549_vm13, %v6890_v57  ;;  %v7448_v62 = vpop.permute.xlu1 %7447  ;;  %v7325_v15 = vrot.slane %v7323_v54, 4 }
 0x563   : > { %5820 = vrot.lane.b32.xlu0 %v5736_v8, %s9374_s13  ;;  %7534 = vst.msk [vmem:[#allocation2 + $0x24] sm:$0xf] %vm3110_vm14, %v7448_v62  ;;  %v7288_v62 = vrot.slane %v7286_v58, 4  ;;  %v7590_v58 = vld [vmem:[#allocation3 + $0x9c] sm:$0xe] }
 0x564   : > { %5826 = vrot.lane.b32.xlu1 %v5739_v33, %s9374_s13  ;;  %v7302_v33 = vor.u32 %v7301_v47, %v12605_v45  ;;  %v7326_v11 = vor.u32 %v7325_v15, %v7321_v6  ;;  %v6258_v47 = vshrl.u32 %v5945_v38, 16 }
 0x565   : > { %v7446_v49 = vpop.permute.xlu0 %7445 }
 0x566   : > { %7533 = vst.msk [vmem:[#allocation2 + $0x20] sm:$0xf] %vm3110_vm14, %v7446_v49  ;;  %v7452_v59 = vpop.permute.xlu1 %7451  ;;  %v7303_v50 = vrot.slane %v7302_v33, 4  ;;  %v7327_v40 = vrot.slane %v7326_v11, 4  ;;  %v6282_v33 = vshrl.u32 %v5948_v2, 16 }
 0x567   : > { %5824 = vrot.lane.b32.xlu0 %v5738_v34, %s9374_s13  ;;  %7536 = vst.msk [vmem:[#allocation2 + $0x2c] sm:$0xf] %vm3110_vm14, %v7452_v59  ;;  %v7292_v59 = vor.u32 %v7291_v39, %v7288_v62  ;;  %v6245_v62 = vshrl.u32 %v5944_v13, 16  ;;  %v6248_v39 = vshll.u32 %v5944_v13, 16 }
 0x568   : > { %6382 = vrot.lane.b32.xlu1 %v6219_v30, %s9375_s14  ;;  %v7315_v30 = vrot.slane %v7313_v25, 5  ;;  %v6260_v25 = vrot.slane %v6258_v47, 4 }
 0x569   : > { %v7450_v61 = vpop.permute.xlu0 %7449  ;;  %v7293_v22 = vrot.slane %v7292_v59, 4 }
 0x56a   : > { %7535 = vst.msk [vmem:[#allocation2 + $0x28] sm:$0xf] %vm3110_vm14, %v7450_v61  ;;  %v7784_v52 = vpop.permute.xlu1 %7783  ;;  %v7588_v61 = vld [vmem:[#allocation3 + $0x94] sm:$0xf] }
 0x56b   : > { %6380 = vrot.lane.b32.xlu0 %v6209_v4, %s9375_s14  ;;  %7870 = vst.msk [vmem:[#allocation2 + $0x24] sm:$0xf] %vm3447_vm15, %v7784_v52  ;;  %v7307_v4 = vrot.slane %v7305_v37, 5  ;;  %v7329_v52 = vshll.u32 %v7032_v19, 16  ;;  %v7725_v35 = vrot.slane %v7588_v61, 5 }
 0x56c   : > { %6386 = vrot.lane.b32.xlu1 %v6243_v31, %s9375_s14  ;;  %v7316_v31 = vor.u32 %v7315_v30, %v7312_v0  ;;  %v5946_v37 = vld [vmem:[#allocation3 + $0xa4] sm:$0x1]  ;;  %v5741_v0 = vld [vmem:[#allocation3 + $0xa0] sm:$0xf] }
 0x56d   : > { %v7782_v55 = vpop.permute.xlu0 %7781  ;;  %v7308_v16 = vsel %vm9451_vm2, %v7303_v50, %v7307_v4  ;;  %v7331_v10 = vrot.slane %v7329_v52, 5  ;;  %v7727_v32 = vrot.slane %v7725_v35, 4  ;;  %v6284_v50 = vrot.slane %v6282_v33, 4 }
 0x56e   : > { %7869 = vst.msk [vmem:[#allocation2 + $0x20] sm:$0xf] %vm3447_vm15, %v7782_v55  ;;  %v7788_v21 = vpop.permute.xlu1 %7787  ;;  %v7591_v55 = vld [vmem:[#allocation3 + $0xa0] sm:$0xf]  ;;  %v7317_v43 = vrot.slane %v7316_v31, 4  ;;  %v6264_v61 = vshll.u32 %v5946_v37, 16 }
 0x56f   : > { %6384 = vrot.lane.b32.xlu0 %v6233_v36, %s9375_s14  ;;  %7872 = vst.msk [vmem:[#allocation2 + $0x2c] sm:$0xf] %vm3447_vm15, %v7788_v21  ;;  %v7298_v36 = vsel %vm9451_vm2, %v7293_v22, %v12605_v45  ;;  %v7732_v46 = vrot.slane %v7591_v55, 5  ;;  %v7729_v42 = vsel %vm9595_vm6, %v7727_v32, %v7728_v18  ;;  %v6254_v45 = vshll.u32 %v5945_v38, 16  ;;  %v5743_v31 = vld [vmem:[#allocation3 + $0xac] sm:$0xf] }
 0x570   : > { %6718 = vrot.lane.b32.xlu1 %v6640_v24, %s9376_s15  ;;  %v7332_v24 = vsel %vm9451_vm2, %v7327_v40, %v7331_v10  ;;  %v7322_v60 = vsel %vm9451_vm2, %v7317_v43, %v7321_v6  ;;  %v5947_v6 = vld [vmem:[#allocation3 + $0xa8] sm:$0xf] }
 0x571   : > { %v7786_v17 = vpop.permute.xlu0 %7785  ;;  %v6256_v7 = vrot.slane %v6254_v45, 5  ;;  %v6269_v59 = vshrl.u32 %v5947_v6, 16  ;;  %v6272_v19 = vshll.u32 %v5947_v6, 16  ;;  %v7034_v45 = vld [vmem:[#allocation3 + $0xac] sm:$0xf] }
 0x572   : > { %7871 = vst.msk [vmem:[#allocation2 + $0x28] sm:$0xf] %vm3447_vm15, %v7786_v17  ;;  %v5807_v23 = vpop.permute.xlu1 %5806  ;;  %v7592_v17 = vld [vmem:[#allocation3 + $0xa4] sm:$0x1] }
 0x573   : > { %6716 = vrot.lane.b32.xlu0 %v6637_v20, %s9376_s15  ;;  %5889 = vst.msk [vmem:[#allocation2 + $0x34] sm:$0xf] %vm13412_vm5, %v5807_v23  ;;  %v9112_v23 = vrot.slane %v7587_v26, 9  ;;  %v7735_v54 = vrot.slane %v7592_v17, 5  ;;  %v6261_v30 = vor.u32 %v6260_v25, %v6256_v7  ;;  %v6274_v22 = vrot.slane %v6272_v19, 5  ;;  %vm13419_vm5 = vmmov %vm13406_vm1 }
 0x574   : > { %6722 = vrot.lane.b32.xlu1 %v6647_v27, %s9376_s15  ;;  %v7734_v27 = vrot.slane %v7732_v46, 4  ;;  %v6508_v26 = vld [vmem:[#allocation3 + $0xac] sm:$0xf] }
 0x575   : > { %v5805_v44 = vpop.permute.xlu0 %5804  ;;  %v9348_v57 = vld [vmem:[#allocation2 + $0x20] sm:$0xff]  }
 0x576   : > { %5888 = vst.msk [vmem:[#allocation2 + $0x30] sm:$0xf] %vm13413_vm8, %v5805_v44  ;;  %v5811_v8 = vpop.permute.xlu1 %5810  ;;  %9279 = vmatprep.mubr.msk.bf16.mxu1 %vm3612_vm0, %v9348_v57  ;;  %v7726_v57 = vsel %vm9595_vm6, %v9112_v23, %v7725_v35  ;;  %v6505_v35 = vld [vmem:[#allocation3 + $0xa0] sm:$0xf]  ;;  %v6657_v23 = vrot.slane %v6508_v26, 5  ;;  %vm13420_vm8 = vmmov %vm13406_vm1 }
 0x577   : > { %6720 = vrot.lane.b32.xlu0 %v6644_v12, %s9376_s15  ;;  %5891 = vst.msk [vmem:[#allocation2 + $0x3c] sm:$0xf] %vm13406_vm1, %v5811_v8  ;;  %v9113_v12 = vrot.slane %v7590_v58, 9  ;;  %v7736_v8 = vsel %vm9595_vm6, %v7734_v27, %v7735_v54  ;;  %v6650_v32 = vrot.slane %v6505_v35, 5  ;;  %v6509_v54 = vld [vmem:[#allocation3 + $0xb0] sm:$0x1] }
 0x578   : > { %6911 = vrot.lane.b32.xlu1 %v6826_v29, %s9377_s16  ;;  %v6278_v29 = vshll.u32 %v5948_v2, 16  ;;  %v6660_v25 = vrot.slane %v6509_v54, 5 }
 0x579   : > { %v5809_v56 = vpop.permute.xlu0 %5808  ;;  %v9349_v49 = vld [vmem:[#allocation2 + $0x28] sm:$0xff]   ;;  %v6652_v58 = vrot.slane %v6650_v32, 4 }
 0x57a   : > { %5890 = vst.msk [vmem:[#allocation2 + $0x38] sm:$0xf] %vm13414_vm4, %v5809_v56  ;;  %v6367_v34 = vpop.permute.xlu1 %6366  ;;  %9280 = vmatmul.mubr.msk.bf16.gmra.mxu1 %vm3612_vm0, %v9349_v49  ;;  %v7733_v56 = vsel %vm9595_vm6, %v9113_v12, %v7732_v46  ;;  %vm13421_vm4 = vmmov %vm13406_vm1 }
 0x57b   : > { %6909 = vrot.lane.b32.xlu0 %v6825_v1, %s9377_s16  ;;  %6449 = vst.msk [vmem:[#allocation2 + $0x34] sm:$0xf] %vm2018_vm11, %v6367_v34  ;;  %v6247_v1 = vrot.slane %v6245_v62, 4  ;;  %v6250_v34 = vrot.slane %v6248_v39, 5  ;;  %v7343_v62 = vshll.u32 %v7034_v45, 16  ;;  %v7347_v39 = vshrl.u32 %v7034_v45, 16 }
 0x57c   : > { %6915 = vrot.lane.b32.xlu1 %v6828_v5, %s9377_s16  ;;  %v6280_v5 = vrot.slane %v6278_v29, 5  ;;  %v7037_v29 = vld [vmem:[#allocation3 + $0xb8] sm:$0xf] }
 0x57d   : > { %v6365_v51 = vpop.permute.xlu0 %6364  ;;  %v6251_v52 = vor.u32 %v6250_v34, %v6247_v1  ;;  %v12691_v34 = vrot.slane %v7343_v62, 5  ;;  %v7367_v19 = vshll.u32 %v7037_v29, 16 }
 0x57e   : > { %6448 = vst.msk [vmem:[#allocation2 + $0x30] sm:$0xf] %vm2018_vm11, %v6365_v51  ;;  %v6371_v53 = vpop.permute.xlu1 %6370  ;;  %v5740_v51 = vld [vmem:[#allocation3 + $0x9c] sm:$0xf]  ;;  %v6285_v40 = vor.u32 %v6284_v50, %v6280_v5 }
 0x57f   : > { %6913 = vrot.lane.b32.xlu0 %v6827_v9, %s9377_s16  ;;  %6451 = vst.msk [vmem:[#allocation2 + $0x3c] sm:$0xf] %vm2018_vm11, %v6371_v53  ;;  %v5949_v9 = vld [vmem:[#allocation3 + $0xb0] sm:$0x1]  ;;  %v6271_v53 = vrot.slane %v6269_v59, 4  ;;  %v6252_v43 = vrot.slane %v6251_v52, 4 }
 0x580   : > { %7471 = vrot.lane.b32.xlu1 %v7308_v16, %s9379_s21  ;;  %v6262_v16 = vrot.slane %v6261_v30, 4  ;;  %v6288_v10 = vshll.u32 %v5949_v9, 16  ;;  %v7349_v59 = vrot.slane %v7347_v39, 4  ;;  %v7036_v30 = vld [vmem:[#allocation3 + $0xb4] sm:$0xf] }
 0x581   : > { %v6369_v28 = vpop.permute.xlu0 %6368  ;;  %v6275_v48 = vor.u32 %v6274_v22, %v6271_v53  ;;  %v6257_v18 = vsel %vm9451_vm2, %v6252_v43, %v6256_v7  ;;  %v7033_v7 = vld [vmem:[#allocation3 + $0xa8] sm:$0xf]  ;;  %v7358_v9 = vshrl.u32 %v7036_v30, 16  ;;  %v7361_v53 = vshll.u32 %v7036_v30, 16  ;;  %v6830_v22 = vld [vmem:[#allocation3 + $0xac] sm:$0xf] }
 0x582   : > { %6450 = vst.msk [vmem:[#allocation2 + $0x38] sm:$0xf] %vm2018_vm11, %v6369_v28  ;;  %v6703_v21 = vpop.permute.xlu1 %6702  ;;  %v6266_v28 = vrot.slane %v6264_v61, 5  ;;  %v7334_v37 = vshrl.u32 %v7033_v7, 16  ;;  %v7337_v1 = vshll.u32 %v7033_v7, 16 }
 0x583   : > { %7469 = vrot.lane.b32.xlu0 %v7298_v36, %s9379_s21  ;;  %6785 = vst.msk [vmem:[#allocation2 + $0x34] sm:$0xf] %vm2355_vm12, %v6703_v21  ;;  %v5742_v36 = vld [vmem:[#allocation3 + $0xa8] sm:$0xf]  ;;  %v7035_v61 = vld [vmem:[#allocation3 + $0xb0] sm:$0x1] }
 0x584   : > { %7475 = vrot.lane.b32.xlu1 %v7332_v24, %s9379_s21  ;;  %v6267_v46 = vsel %vm9451_vm2, %v6262_v16, %v6266_v28  ;;  %v6286_v24 = vrot.slane %v6285_v40, 4  ;;  %v7339_v52 = vrot.slane %v7337_v1, 5  ;;  %v7369_v16 = vrot.slane %v7367_v19, 5  ;;  %v7038_v43 = vld [vmem:[#allocation3 + $0xbc] sm:$0x1] }
 0x585   : > { %v6701_v63 = vpop.permute.xlu0 %6700  ;;  %v7353_v28 = vshll.u32 %v7035_v61, 16  ;;  %v7593_v39 = vld [vmem:[#allocation3 + $0xa8] sm:$0xe]  ;;  %v5951_v7 = vld [vmem:[#allocation3 + $0xb8] sm:$0xf] }
 0x586   : > { %6784 = vst.msk [vmem:[#allocation2 + $0x30] sm:$0xf] %vm2355_vm12, %v6701_v63  ;;  %v6707_v20 = vpop.permute.xlu1 %6706  ;;  %v6290_v63 = vrot.slane %v6288_v10, 5  ;;  %v6829_v10 = vld [vmem:[#allocation3 + $0xa8] sm:$0xf] }
 0x587   : > { %7473 = vrot.lane.b32.xlu0 %v7322_v60, %s9379_s21  ;;  %6787 = vst.msk [vmem:[#allocation2 + $0x3c] sm:$0xf] %vm2355_vm12, %v6707_v20  ;;  %v6276_v60 = vrot.slane %v6275_v48, 4  ;;  %v6506_v20 = vld [vmem:[#allocation3 + $0xa4] sm:$0x1]  ;;  %v7360_v48 = vrot.slane %v7358_v9, 4 }
 0x588   : > { %7807 = vrot.lane.b32.xlu1 %v7729_v42, %s9380_s24  ;;  %v6291_v27 = vsel %vm9451_vm2, %v6286_v24, %v6290_v63  ;;  %v6504_v42 = vld [vmem:[#allocation3 + $0x9c] sm:$0xe]  ;;  %v6653_v13 = vrot.slane %v6506_v20, 5  ;;  %v6832_v24 = vld [vmem:[#allocation3 + $0xb8] sm:$0xf] }
 0x589   : > { %v6705_v44 = vpop.permute.xlu0 %6704  ;;  %v6281_v2 = vsel %vm9451_vm2, %v6276_v60, %v6280_v5  ;;  %v9098_v12 = vrot.slane %v6504_v42, 9  ;;  %v6831_v60 = vld [vmem:[#allocation3 + $0xb4] sm:$0xf]  ;;  %v5954_v30 = vld [vmem:[#allocation3 + $0xc4] sm:$0xf] }
 0x58a   : > { %6786 = vst.msk [vmem:[#allocation2 + $0x38] sm:$0xf] %vm2355_vm12, %v6705_v44  ;;  %v6896_v14 = vpop.permute.xlu1 %6895  ;;  %v5950_v19 = vld [vmem:[#allocation3 + $0xb4] sm:$0xf] }
 0x58b   : > { %7805 = vrot.lane.b32.xlu0 %v7726_v57, %s9380_s24  ;;  %6978 = vst.msk [vmem:[#allocation2 + $0x34] sm:$0xf] %vm2549_vm13, %v6896_v14  ;;  %v6659_v57 = vrot.slane %v6657_v23, 4  ;;  %v6507_v14 = vld [vmem:[#allocation3 + $0xa8] sm:$0xe] }
 0x58c   : > { %7811 = vrot.lane.b32.xlu1 %v7736_v8, %s9380_s24  ;;  %v6654_v8 = vsel %vm9595_vm6, %v6652_v58, %v6653_v13  ;;  %v9099_v6 = vrot.slane %v6507_v14, 9 }
 0x58d   : > { %v6894_v15 = vpop.permute.xlu0 %6893 }
 0x58e   : > { %6977 = vst.msk [vmem:[#allocation2 + $0x30] sm:$0xf] %vm2549_vm13, %v6894_v15  ;;  %v6900_v49 = vpop.permute.xlu1 %6899  ;;  %v6651_v15 = vsel %vm9595_vm6, %v9098_v12, %v6650_v32  ;;  %v6658_v50 = vsel %vm9595_vm6, %v9099_v6, %v6657_v23 }
 0x58f   : > { %7809 = vrot.lane.b32.xlu0 %v7733_v56, %s9380_s24  ;;  %6980 = vst.msk [vmem:[#allocation2 + $0x3c] sm:$0xf] %vm2549_vm13, %v6900_v49  ;;  %v6661_v49 = vsel %vm9595_vm6, %v6659_v57, %v6660_v25  ;;  %v7595_v57 = vld [vmem:[#allocation3 + $0xb0] sm:$0x1] }
 0x590   : > { %5830 = vrot.lane.b32.xlu1 %v5741_v0, %s9374_s13  ;;  %v7371_v0 = vshrl.u32 %v7037_v29, 16  ;;  %v7742_v29 = vrot.slane %v7595_v57, 5 }
 0x591   : > { %v6898_v11 = vpop.permute.xlu0 %6897 }
 0x592   : > { %6979 = vst.msk [vmem:[#allocation2 + $0x38] sm:$0xf] %vm2549_vm13, %v6898_v11  ;;  %v7456_v4 = vpop.permute.xlu1 %7455  ;;  %v7373_v40 = vrot.slane %v7371_v0, 4 }
 0x593   : > { %5828 = vrot.lane.b32.xlu0 %v5740_v51, %s9374_s13  ;;  %7538 = vst.msk [vmem:[#allocation2 + $0x34] sm:$0xf] %vm3110_vm14, %v7456_v4  ;;  %v7336_v4 = vrot.slane %v7334_v37, 4  ;;  %v7596_v37 = vld [vmem:[#allocation3 + $0xb4] sm:$0xe] }
 0x594   : > { %5834 = vrot.lane.b32.xlu1 %v5743_v31, %s9374_s13  ;;  %v7350_v31 = vor.u32 %v7349_v59, %v12691_v34  ;;  %v7374_v26 = vor.u32 %v7373_v40, %v7369_v16  ;;  %v6306_v59 = vshrl.u32 %v5951_v7, 16 }
 0x595   : > { %v7454_v55 = vpop.permute.xlu0 %7453 }
 0x596   : > { %7537 = vst.msk [vmem:[#allocation2 + $0x30] sm:$0xf] %vm3110_vm14, %v7454_v55  ;;  %v7460_v21 = vpop.permute.xlu1 %7459  ;;  %v7351_v32 = vrot.slane %v7350_v31, 4  ;;  %v7375_v42 = vrot.slane %v7374_v26, 4  ;;  %v6330_v31 = vshrl.u32 %v5954_v30, 16 }
 0x597   : > { %5832 = vrot.lane.b32.xlu0 %v5742_v36, %s9374_s13  ;;  %7540 = vst.msk [vmem:[#allocation2 + $0x3c] sm:$0xf] %vm3110_vm14, %v7460_v21  ;;  %v7340_v21 = vor.u32 %v7339_v52, %v7336_v4  ;;  %v6293_v4 = vshrl.u32 %v5950_v19, 16  ;;  %v6296_v52 = vshll.u32 %v5950_v19, 16 }
 0x598   : > { %6390 = vrot.lane.b32.xlu1 %v6267_v46, %s9375_s14  ;;  %v7363_v46 = vrot.slane %v7361_v53, 5  ;;  %v6308_v53 = vrot.slane %v6306_v59, 4 }
 0x599   : > { %v7458_v38 = vpop.permute.xlu0 %7457  ;;  %v7341_v23 = vrot.slane %v7340_v21, 4 }
 0x59a   : > { %7539 = vst.msk [vmem:[#allocation2 + $0x38] sm:$0xf] %vm3110_vm14, %v7458_v38  ;;  %v7792_v17 = vpop.permute.xlu1 %7791  ;;  %v7594_v38 = vld [vmem:[#allocation3 + $0xac] sm:$0xf] }
 0x59b   : > { %6388 = vrot.lane.b32.xlu0 %v6257_v18, %s9375_s14  ;;  %7874 = vst.msk [vmem:[#allocation2 + $0x34] sm:$0xf] %vm3447_vm15, %v7792_v17  ;;  %v7355_v18 = vrot.slane %v7353_v28, 5  ;;  %v7377_v17 = vshll.u32 %v7038_v43, 16  ;;  %v7739_v45 = vrot.slane %v7594_v38, 5 }
 0x59c   : > { %6394 = vrot.lane.b32.xlu1 %v6291_v27, %s9375_s14  ;;  %v7364_v27 = vor.u32 %v7363_v46, %v7360_v48  ;;  %v5952_v28 = vld [vmem:[#allocation3 + $0xbc] sm:$0x1]  ;;  %v5745_v48 = vld [vmem:[#allocation3 + $0xb8] sm:$0xf] }
 0x59d   : > { %v7790_v47 = vpop.permute.xlu0 %7789  ;;  %v7356_v58 = vsel %vm9451_vm2, %v7351_v32, %v7355_v18  ;;  %v7379_v54 = vrot.slane %v7377_v17, 5  ;;  %v7741_v62 = vrot.slane %v7739_v45, 4  ;;  %v6332_v32 = vrot.slane %v6330_v31, 4 }
 0x59e   : > { %7873 = vst.msk [vmem:[#allocation2 + $0x30] sm:$0xf] %vm3447_vm15, %v7790_v47  ;;  %v7796_v44 = vpop.permute.xlu1 %7795  ;;  %v7597_v47 = vld [vmem:[#allocation3 + $0xb8] sm:$0xf]  ;;  %v7365_v12 = vrot.slane %v7364_v27, 4  ;;  %v6312_v38 = vshll.u32 %v5952_v28, 16 }
 0x59f   : > { %6392 = vrot.lane.b32.xlu0 %v6281_v2, %s9375_s14  ;;  %7876 = vst.msk [vmem:[#allocation2 + $0x3c] sm:$0xf] %vm3447_vm15, %v7796_v44  ;;  %v7346_v2 = vsel %vm9451_vm2, %v7341_v23, %v12691_v34  ;;  %v7746_v14 = vrot.slane %v7597_v47, 5  ;;  %v7743_v1 = vsel %vm9595_vm6, %v7741_v62, %v7742_v29  ;;  %v6302_v34 = vshll.u32 %v5951_v7, 16  ;;  %v5747_v27 = vld [vmem:[#allocation3 + $0xc4] sm:$0xf] }
 0x5a0   : > { %6726 = vrot.lane.b32.xlu1 %v6654_v8, %s9376_s15  ;;  %v7380_v8 = vsel %vm9451_vm2, %v7375_v42, %v7379_v54  ;;  %v7370_v6 = vsel %vm9451_vm2, %v7365_v12, %v7369_v16  ;;  %v5953_v16 = vld [vmem:[#allocation3 + $0xc0] sm:$0xf] }
 0x5a1   : > { %v7794_v33 = vpop.permute.xlu0 %7793  ;;  %v6304_v9 = vrot.slane %v6302_v34, 5  ;;  %v6317_v21 = vshrl.u32 %v5953_v16, 16  ;;  %v6320_v43 = vshll.u32 %v5953_v16, 16  ;;  %v7040_v34 = vld [vmem:[#allocation3 + $0xc4] sm:$0xf] }
 0x5a2   : > { %7875 = vst.msk [vmem:[#allocation2 + $0x38] sm:$0xf] %vm3447_vm15, %v7794_v33  ;;  %v5815_v56 = vpop.permute.xlu1 %5814  ;;  %v7598_v33 = vld [vmem:[#allocation3 + $0xbc] sm:$0x1] }
 0x5a3   : > { %6724 = vrot.lane.b32.xlu0 %v6651_v15, %s9376_s15  ;;  %5893 = vst.msk [vmem:[#allocation2 + $0x44] sm:$0xf] %vm13415_vm3, %v5815_v56  ;;  %v9114_v56 = vrot.slane %v7593_v39, 9  ;;  %v7749_v0 = vrot.slane %v7598_v33, 5  ;;  %v6309_v46 = vor.u32 %v6308_v53, %v6304_v9  ;;  %v6322_v23 = vrot.slane %v6320_v43, 5  ;;  %vm13424_vm3 = vmmov %vm13406_vm1 }
 0x5a4   : > { %6730 = vrot.lane.b32.xlu1 %v6661_v49, %s9376_s15  ;;  %v7748_v49 = vrot.slane %v7746_v14, 4  ;;  %v6514_v39 = vld [vmem:[#allocation3 + $0xc4] sm:$0xf]  ;;  %v7039_v53 = vld [vmem:[#allocation3 + $0xc0] sm:$0xf] }
 0x5a5   : > { %v5813_v5 = vpop.permute.xlu0 %5812  ;;  %v9350_v11 = vld [vmem:[#allocation2 + $0x30] sm:$0xff]  }
 0x5a6   : > { %5892 = vst.msk [vmem:[#allocation2 + $0x40] sm:$0xf] %vm13416_vm7, %v5813_v5  ;;  %v5819_v51 = vpop.permute.xlu1 %5818  ;;  %9283 = vmatprep.mubr.msk.bf16.mxu1 %vm3612_vm0, %v9350_v11  ;;  %v7740_v11 = vsel %vm9595_vm6, %v9114_v56, %v7739_v45  ;;  %v6511_v45 = vld [vmem:[#allocation3 + $0xb8] sm:$0xf]  ;;  %vm13425_vm7 = vmmov %vm13406_vm1 }
 0x5a7   : > { %6728 = vrot.lane.b32.xlu0 %v6658_v50, %s9376_s15  ;;  %5895 = vst.msk [vmem:[#allocation2 + $0x4c] sm:$0xf] %vm13417_vm9, %v5819_v51  ;;  %v9115_v50 = vrot.slane %v7596_v37, 9  ;;  %v7750_v51 = vsel %vm9595_vm6, %v7748_v49, %v7749_v0  ;;  %v6664_v62 = vrot.slane %v6511_v45, 5  ;;  %v6510_v37 = vld [vmem:[#allocation3 + $0xb4] sm:$0xe]  ;;  %vm13426_vm9 = vmmov %vm13406_vm1 }
 0x5a8   : > { %6919 = vrot.lane.b32.xlu1 %v6830_v22, %s9377_s16  ;;  %v6326_v22 = vshll.u32 %v5954_v30, 16  ;;  %v6515_v0 = vld [vmem:[#allocation3 + $0xc8] sm:$0x1] }
 0x5a9   : > { %v5817_v35 = vpop.permute.xlu0 %5816  ;;  %v9351_v55 = vld [vmem:[#allocation2 + $0x38] sm:$0xff]   ;;  %v6666_v49 = vrot.slane %v6664_v62, 4  ;;  %v6674_v31 = vrot.slane %v6515_v0, 5 }
 0x5aa   : > { %5894 = vst.msk [vmem:[#allocation2 + $0x48] sm:$0xf] %vm13418_vm10, %v5817_v35  ;;  %v6375_v36 = vpop.permute.xlu1 %6374  ;;  %9284 = vmatmul.mubr.msk.bf16.gmra.mxu1 %vm3612_vm0, %v9351_v55  ;;  %v7747_v35 = vsel %vm9595_vm6, %v9115_v50, %v7746_v14  ;;  %v9100_v50 = vrot.slane %v6510_v37, 9  ;;  %vm13427_vm10 = vmmov %vm13406_vm1 }
 0x5ab   : > { %6917 = vrot.lane.b32.xlu0 %v6829_v10, %s9377_s16  ;;  %6453 = vst.msk [vmem:[#allocation2 + $0x44] sm:$0xf] %vm2018_vm11, %v6375_v36  ;;  %v6295_v10 = vrot.slane %v6293_v4, 4  ;;  %v6298_v36 = vrot.slane %v6296_v52, 5  ;;  %v7391_v52 = vshll.u32 %v7040_v34, 16 }
 0x5ac   : > { %6923 = vrot.lane.b32.xlu1 %v6832_v24, %s9377_s16  ;;  %v6328_v24 = vrot.slane %v6326_v22, 5 }
 0x5ad   : > { %v6373_v63 = vpop.permute.xlu0 %6372  ;;  %v6299_v17 = vor.u32 %v6298_v36, %v6295_v10  ;;  %v7382_v36 = vshrl.u32 %v7039_v53, 16 }
 0x5ae   : > { %6452 = vst.msk [vmem:[#allocation2 + $0x40] sm:$0xf] %vm2018_vm11, %v6373_v63  ;;  %v6379_v20 = vpop.permute.xlu1 %6378  ;;  %v5744_v63 = vld [vmem:[#allocation3 + $0xb4] sm:$0xf]  ;;  %v6333_v42 = vor.u32 %v6332_v32, %v6328_v24 }
 0x5af   : > { %6921 = vrot.lane.b32.xlu0 %v6831_v60, %s9377_s16  ;;  %6455 = vst.msk [vmem:[#allocation2 + $0x4c] sm:$0xf] %vm2018_vm11, %v6379_v20  ;;  %v5955_v60 = vld [vmem:[#allocation3 + $0xc8] sm:$0x1]  ;;  %v6319_v20 = vrot.slane %v6317_v21, 4  ;;  %v6300_v12 = vrot.slane %v6299_v17, 4 }
 0x5b0   : > { %7479 = vrot.lane.b32.xlu1 %v7356_v58, %s9379_s21  ;;  %v6310_v58 = vrot.slane %v6309_v46, 4  ;;  %v6336_v54 = vshll.u32 %v5955_v60, 16  ;;  %v7385_v21 = vshll.u32 %v7039_v53, 16 }
 0x5b1   : > { %v6377_v13 = vpop.permute.xlu0 %6376  ;;  %v6323_v57 = vor.u32 %v6322_v23, %v6319_v20  ;;  %v6305_v29 = vsel %vm9451_vm2, %v6300_v12, %v6304_v9  ;;  %v7395_v9 = vshrl.u32 %v7040_v34, 16  ;;  %v7384_v23 = vrot.slane %v7382_v36, 4  ;;  %v6836_v12 = vld [vmem:[#allocation3 + $0xd0] sm:$0xf] }
 0x5b2   : > { %6454 = vst.msk [vmem:[#allocation2 + $0x48] sm:$0xf] %vm2018_vm11, %v6377_v13  ;;  %v6711_v44 = vpop.permute.xlu1 %6710  ;;  %v6314_v13 = vrot.slane %v6312_v38, 5  ;;  %v7603_v34 = vld [vmem:[#allocation3 + $0xd0] sm:$0xf] }
 0x5b3   : > { %7477 = vrot.lane.b32.xlu0 %v7346_v2, %s9379_s21  ;;  %6789 = vst.msk [vmem:[#allocation2 + $0x44] sm:$0xf] %vm2355_vm12, %v6711_v44  ;;  %v5746_v2 = vld [vmem:[#allocation3 + $0xc0] sm:$0xf]  ;;  %v7397_v46 = vrot.slane %v7395_v9, 4 }
 0x5b4   : > { %7483 = vrot.lane.b32.xlu1 %v7380_v8, %s9379_s21  ;;  %v6315_v14 = vsel %vm9451_vm2, %v6310_v58, %v6314_v13  ;;  %v6334_v8 = vrot.slane %v6333_v42, 4  ;;  %v7044_v58 = vld [vmem:[#allocation3 + $0xd4] sm:$0x1]  ;;  %v6834_v42 = vld [vmem:[#allocation3 + $0xc4] sm:$0xf] }
 0x5b5   : > { %v6709_v25 = vpop.permute.xlu0 %6708  ;;  %v7599_v9 = vld [vmem:[#allocation3 + $0xc0] sm:$0xe] }
 0x5b6   : > { %6788 = vst.msk [vmem:[#allocation2 + $0x40] sm:$0xf] %vm2355_vm12, %v6709_v25  ;;  %v6715_v15 = vpop.permute.xlu1 %6714  ;;  %v6338_v25 = vrot.slane %v6336_v54, 5 }
 0x5b7   : > { %7481 = vrot.lane.b32.xlu0 %v7370_v6, %s9379_s21  ;;  %6791 = vst.msk [vmem:[#allocation2 + $0x4c] sm:$0xf] %vm2355_vm12, %v6715_v15  ;;  %v6324_v6 = vrot.slane %v6323_v57, 4  ;;  %v6512_v15 = vld [vmem:[#allocation3 + $0xbc] sm:$0x1] }
 0x5b8   : > { %7815 = vrot.lane.b32.xlu1 %v7743_v1, %s9380_s24  ;;  %v6339_v56 = vsel %vm9451_vm2, %v6334_v8, %v6338_v25  ;;  %v6671_v1 = vrot.slane %v6514_v39, 5  ;;  %v6667_v19 = vrot.slane %v6512_v15, 5  ;;  %v6833_v8 = vld [vmem:[#allocation3 + $0xc0] sm:$0xf]  ;;  %v6835_v25 = vld [vmem:[#allocation3 + $0xcc] sm:$0xf] }
 0x5b9   : > { %v6713_v5 = vpop.permute.xlu0 %6712  ;;  %v6329_v30 = vsel %vm9451_vm2, %v6324_v6, %v6328_v24  ;;  %v7041_v24 = vld [vmem:[#allocation3 + $0xc8] sm:$0x1] }
 0x5ba   : > { %6790 = vst.msk [vmem:[#allocation2 + $0x48] sm:$0xf] %vm2355_vm12, %v6713_v5  ;;  %v6904_v61 = vpop.permute.xlu1 %6903  ;;  %v6673_v4 = vrot.slane %v6671_v1, 4 }
 0x5bb   : > { %7813 = vrot.lane.b32.xlu0 %v7740_v11, %s9380_s24  ;;  %6982 = vst.msk [vmem:[#allocation2 + $0x44] sm:$0xf] %vm2549_vm13, %v6904_v61  ;;  %v6513_v11 = vld [vmem:[#allocation3 + $0xc0] sm:$0xe]  ;;  %v7043_v61 = vld [vmem:[#allocation3 + $0xd0] sm:$0xf] }
 0x5bc   : > { %7819 = vrot.lane.b32.xlu1 %v7750_v51, %s9380_s24  ;;  %v6668_v51 = vsel %vm9595_vm6, %v6666_v49, %v6667_v19  ;;  %v7415_v16 = vshll.u32 %v7043_v61, 16  ;;  %v9101_v10 = vrot.slane %v6513_v11, 9  ;;  %v6675_v43 = vsel %vm9595_vm6, %v6673_v4, %v6674_v31  ;;  %v7604_v4 = vld [vmem:[#allocation3 + $0xd4] sm:$0x1] }
 0x5bd   : > { %v6902_v40 = vpop.permute.xlu0 %6901 }
 0x5be   : > { %6981 = vst.msk [vmem:[#allocation2 + $0x40] sm:$0xf] %vm2549_vm13, %v6902_v40  ;;  %v6908_v55 = vpop.permute.xlu1 %6907  ;;  %v7419_v40 = vshrl.u32 %v7043_v61, 16  ;;  %v6672_v60 = vsel %vm9595_vm6, %v9101_v10, %v6671_v1 }
 0x5bf   : > { %7817 = vrot.lane.b32.xlu0 %v7747_v35, %s9380_s24  ;;  %6984 = vst.msk [vmem:[#allocation2 + $0x4c] sm:$0xf] %vm2549_vm13, %v6908_v55  ;;  %v7042_v35 = vld [vmem:[#allocation3 + $0xcc] sm:$0xf]  ;;  %v6665_v55 = vsel %vm9595_vm6, %v9100_v50, %v6664_v62  ;;  %v7760_v50 = vrot.slane %v7603_v34, 5 }
 0x5c0   : > { %5838 = vrot.lane.b32.xlu1 %v5745_v48, %s9374_s13  ;;  %v12777_v48 = vrot.slane %v7391_v52, 5  ;;  %v7406_v32 = vshrl.u32 %v7042_v35, 16  ;;  %v7421_v17 = vrot.slane %v7419_v40, 4  ;;  %v7763_v40 = vrot.slane %v7604_v4, 5 }
 0x5c1   : > { %v6906_v26 = vpop.permute.xlu0 %6905 }
 0x5c2   : > { %6983 = vst.msk [vmem:[#allocation2 + $0x48] sm:$0xf] %vm2549_vm13, %v6906_v26  ;;  %v7464_v18 = vpop.permute.xlu1 %7463  ;;  %v7409_v26 = vshll.u32 %v7042_v35, 16  ;;  %v7398_v45 = vor.u32 %v7397_v46, %v12777_v48  ;;  %v7408_v13 = vrot.slane %v7406_v32, 4  ;;  %v7602_v35 = vld [vmem:[#allocation3 + $0xcc] sm:$0xe] }
 0x5c3   : > { %5836 = vrot.lane.b32.xlu0 %v5744_v63, %s9374_s13  ;;  %7542 = vst.msk [vmem:[#allocation2 + $0x44] sm:$0xf] %vm3110_vm14, %v7464_v18  ;;  %v12780_v18 = vrot.slane %v7415_v16, 5  ;;  %v7762_v16 = vrot.slane %v7760_v50, 4  ;;  %v9117_v41 = vrot.slane %v7602_v35, 9 }
 0x5c4   : > { %5842 = vrot.lane.b32.xlu1 %v5747_v27, %s9374_s13  ;;  %v7387_v27 = vrot.slane %v7385_v21, 5  ;;  %v7411_v54 = vrot.slane %v7409_v26, 5 }
 0x5c5   : > { %v7462_v47 = vpop.permute.xlu0 %7461  ;;  %v7422_v57 = vor.u32 %v7421_v17, %v12780_v18  ;;  %v7764_v21 = vsel %vm9595_vm6, %v7762_v16, %v7763_v40  ;;  %v7761_v46 = vsel %vm9595_vm6, %v9117_v41, %v7760_v50 }
 0x5c6   : > { %7541 = vst.msk [vmem:[#allocation2 + $0x40] sm:$0xf] %vm3110_vm14, %v7462_v47  ;;  %v7468_v44 = vpop.permute.xlu1 %7467  ;;  %v7401_v47 = vshll.u32 %v7041_v24, 16  ;;  %v7388_v39 = vor.u32 %v7387_v27, %v7384_v23 }
 0x5c7   : > { %5840 = vrot.lane.b32.xlu0 %v5746_v2, %s9374_s13  ;;  %7544 = vst.msk [vmem:[#allocation2 + $0x4c] sm:$0xf] %vm3110_vm14, %v7468_v44 }
 0x5c8   : > { %6398 = vrot.lane.b32.xlu1 %v6315_v14, %s9375_s14  ;;  %v7425_v14 = vshll.u32 %v7044_v58, 16  ;;  %v7403_v15 = vrot.slane %v7401_v47, 5  ;;  %v7389_v1 = vrot.slane %v7388_v39, 4 }
 0x5c9   : > { %v7466_v7 = vpop.permute.xlu0 %7465 }
 0x5ca   : > { %7543 = vst.msk [vmem:[#allocation2 + $0x48] sm:$0xf] %vm3110_vm14, %v7466_v7  ;;  %v7800_v33 = vpop.permute.xlu1 %7799  ;;  %v7399_v7 = vrot.slane %v7398_v45, 4  ;;  %v7427_v49 = vrot.slane %v7425_v14, 5  ;;  %v7394_v11 = vsel %vm9451_vm2, %v7389_v1, %v12777_v48 }
 0x5cb   : > { %6396 = vrot.lane.b32.xlu0 %v6305_v29, %s9375_s14  ;;  %7878 = vst.msk [vmem:[#allocation2 + $0x44] sm:$0xf] %vm3447_vm15, %v7800_v33  ;;  %v7412_v29 = vor.u32 %v7411_v54, %v7408_v13  ;;  %v7600_v33 = vld [vmem:[#allocation3 + $0xc4] sm:$0xf] }
 0x5cc   : > { %6402 = vrot.lane.b32.xlu1 %v6339_v56, %s9375_s14  ;;  %v7423_v56 = vrot.slane %v7422_v57, 4  ;;  %v7753_v19 = vrot.slane %v7600_v33, 5 }
 0x5cd   : > { %v7798_v59 = vpop.permute.xlu0 %7797  ;;  %v7413_v0 = vrot.slane %v7412_v29, 4 }
 0x5ce   : > { %7877 = vst.msk [vmem:[#allocation2 + $0x40] sm:$0xf] %vm3447_vm15, %v7798_v59  ;;  %v7804_v5 = vpop.permute.xlu1 %7803  ;;  %v7404_v59 = vsel %vm9451_vm2, %v7399_v7, %v7403_v15  ;;  %v7755_v52 = vrot.slane %v7753_v19, 4 }
 0x5cf   : > { %6400 = vrot.lane.b32.xlu0 %v6329_v30, %s9375_s14  ;;  %7880 = vst.msk [vmem:[#allocation2 + $0x4c] sm:$0xf] %vm3447_vm15, %v7804_v5  ;;  %v7428_v5 = vsel %vm9451_vm2, %v7423_v56, %v7427_v49  ;;  %v7418_v53 = vsel %vm9451_vm2, %v7413_v0, %v12780_v18  ;;  %vm13422_vm2 = vmmov %vm13406_vm1 }
 0x5d0   : > { %6734 = vrot.lane.b32.xlu1 %v6668_v51, %s9376_s15  ;;  %v7601_v51 = vld [vmem:[#allocation3 + $0xc8] sm:$0x1] }
 0x5d1   : > { %v7802_v22 = vpop.permute.xlu0 %7801  ;;  %v7756_v31 = vrot.slane %v7601_v51, 5 }
 0x5d2   : > { %7879 = vst.msk [vmem:[#allocation2 + $0x48] sm:$0xf] %vm3447_vm15, %v7802_v22  ;;  %v5823_v28 = vpop.permute.xlu1 %5822 }
 0x5d3   : > { %6732 = vrot.lane.b32.xlu0 %v6665_v55, %s9376_s15  ;;  %5897 = vst.msk [vmem:[#allocation2 + $0x54] sm:$0xf] %vm13419_vm5, %v5823_v28  ;;  %v9116_v28 = vrot.slane %v7599_v9, 9  ;;  %v7757_v10 = vsel %vm9595_vm6, %v7755_v52, %v7756_v31  ;;  %vm13428_vm5 = vmmov %vm13406_vm1 }
 0x5d4   : > { %6738 = vrot.lane.b32.xlu1 %v6675_v43, %s9376_s15 }
 0x5d5   : > { %v5821_v38 = vpop.permute.xlu0 %5820  ;;  %v9352_v63 = vld [vmem:[#allocation2 + $0x40] sm:$0xff]   ;;  %v7754_v43 = vsel %vm9595_vm6, %v9116_v28, %v7753_v19  ;;  %vm13423_vm6 = vmmov %vm13406_vm1 }
 0x5d6   : > { %5896 = vst.msk [vmem:[#allocation2 + $0x50] sm:$0xf] %vm13420_vm8, %v5821_v38  ;;  %v5827_v20 = vpop.permute.xlu1 %5826  ;;  %9287 = vmatprep.mubr.msk.bf16.mxu1 %vm3612_vm0, %v9352_v63  ;;  %vm13429_vm8 = vmmov %vm13406_vm1 }
 0x5d7   : > { %6736 = vrot.lane.b32.xlu0 %v6672_v60, %s9376_s15  ;;  %5899 = vst.msk [vmem:[#allocation2 + $0x5c] sm:$0xf] %vm13406_vm1, %v5827_v20 }
 0x5d8   : > { %6927 = vrot.lane.b32.xlu1 %v6834_v42, %s9377_s16 }
 0x5d9   : > { %v5825_v2 = vpop.permute.xlu0 %5824  ;;  %v9353_v44 = vld [vmem:[#allocation2 + $0x48] sm:$0xff]  }
 0x5da   : > { %5898 = vst.msk [vmem:[#allocation2 + $0x58] sm:$0xf] %vm13421_vm4, %v5825_v2  ;;  %v6383_v62 = vpop.permute.xlu1 %6382  ;;  %9288 = vmatmul.mubr.msk.bf16.gmra.mxu1 %vm3612_vm0, %v9353_v44 }
 0x5db   : > { %6925 = vrot.lane.b32.xlu0 %v6833_v8, %s9377_s16  ;;  %6457 = vst.msk [vmem:[#allocation2 + $0x54] sm:$0xf] %vm2018_vm11, %v6383_v62 }
 0x5dc   : > { %6931 = vrot.lane.b32.xlu1 %v6836_v12, %s9377_s16 }
 0x5dd   : > { %v6381_v6 = vpop.permute.xlu0 %6380 }
 0x5de   : > { %6456 = vst.msk [vmem:[#allocation2 + $0x50] sm:$0xf] %vm2018_vm11, %v6381_v6  ;;  %v6387_v37 = vpop.permute.xlu1 %6386 }
 0x5df   : > { %6929 = vrot.lane.b32.xlu0 %v6835_v25, %s9377_s16  ;;  %6459 = vst.msk [vmem:[#allocation2 + $0x5c] sm:$0xf] %vm2018_vm11, %v6387_v37 }
 0x5e0   : > { %7487 = vrot.lane.b32.xlu1 %v7404_v59, %s9379_s21 }
 0x5e1   : > { %v6385_v30 = vpop.permute.xlu0 %6384 }
 0x5e2   : > { %6458 = vst.msk [vmem:[#allocation2 + $0x58] sm:$0xf] %vm2018_vm11, %v6385_v30  ;;  %v6719_v61 = vpop.permute.xlu1 %6718 }
 0x5e3   : > { %7485 = vrot.lane.b32.xlu0 %v7394_v11, %s9379_s21  ;;  %6793 = vst.msk [vmem:[#allocation2 + $0x54] sm:$0xf] %vm2355_vm12, %v6719_v61 }
 0x5e4   : > { %7491 = vrot.lane.b32.xlu1 %v7428_v5, %s9379_s21 }
 0x5e5   : > { %v6717_v22 = vpop.permute.xlu0 %6716 }
 0x5e6   : > { %6792 = vst.msk [vmem:[#allocation2 + $0x50] sm:$0xf] %vm2355_vm12, %v6717_v22  ;;  %v6723_v55 = vpop.permute.xlu1 %6722 }
 0x5e7   : > { %7489 = vrot.lane.b32.xlu0 %v7418_v53, %s9379_s21  ;;  %6795 = vst.msk [vmem:[#allocation2 + $0x5c] sm:$0xf] %vm2355_vm12, %v6723_v55 }
 0x5e8   : > { %7823 = vrot.lane.b32.xlu1 %v7757_v10, %s9380_s24 }
 0x5e9   : > { %v6721_v36 = vpop.permute.xlu0 %6720 }
 0x5ea   : > { %6794 = vst.msk [vmem:[#allocation2 + $0x58] sm:$0xf] %vm2355_vm12, %v6721_v36  ;;  %v6912_v48 = vpop.permute.xlu1 %6911 }
 0x5eb   : > { %7821 = vrot.lane.b32.xlu0 %v7754_v43, %s9380_s24  ;;  %6986 = vst.msk [vmem:[#allocation2 + $0x54] sm:$0xf] %vm2549_vm13, %v6912_v48 }
 0x5ec   : > { %7827 = vrot.lane.b32.xlu1 %v7764_v21, %s9380_s24 }
 0x5ed   : > { %v6910_v24 = vpop.permute.xlu0 %6909 }
 0x5ee   : > { %6985 = vst.msk [vmem:[#allocation2 + $0x50] sm:$0xf] %vm2549_vm13, %v6910_v24  ;;  %v6916_v32 = vpop.permute.xlu1 %6915 }
 0x5ef   : > { %7825 = vrot.lane.b32.xlu0 %v7761_v46, %s9380_s24  ;;  %6988 = vst.msk [vmem:[#allocation2 + $0x5c] sm:$0xf] %vm2549_vm13, %v6916_v32  ;;  %v12896_v32 = vpop.f32.mrf.mxu1 }
 0x5f1   : > { %v6914_v26 = vpop.permute.xlu0 %6913 }
 0x5f2   : > { %6987 = vst.msk [vmem:[#allocation2 + $0x58] sm:$0xf] %vm2549_vm13, %v6914_v26  ;;  %v7472_v38 = vpop.permute.xlu1 %7471  ;;  %v12898_v26 = vpop.f32.mrf.mxu1 }
 0x5f3   : > { %7546 = vst.msk [vmem:[#allocation2 + $0x54] sm:$0xf] %vm3110_vm14, %v7472_v38 }
 0x5f4   : > { %v12900_v38 = vpop.f32.mrf.mxu1 }
 0x5f5   : > { %v7470_v63 = vpop.permute.xlu0 %7469 }
 0x5f6   : > { %7545 = vst.msk [vmem:[#allocation2 + $0x50] sm:$0xf] %vm3110_vm14, %v7470_v63  ;;  %v7476_v18 = vpop.permute.xlu1 %7475  ;;  %v12902_v63 = vpop.f32.mrf.mxu1 }
 0x5f7   : > { %7548 = vst.msk [vmem:[#allocation2 + $0x5c] sm:$0xf] %vm3110_vm14, %v7476_v18 }
 0x5f9   : > { %v7474_v3 = vpop.permute.xlu0 %7473 }
 0x5fa   : > { %7547 = vst.msk [vmem:[#allocation2 + $0x58] sm:$0xf] %vm3110_vm14, %v7474_v3  ;;  %v7808_v17 = vpop.permute.xlu1 %7807 }
 0x5fb   : > { %7882 = vst.msk [vmem:[#allocation2 + $0x54] sm:$0xf] %vm3447_vm15, %v7808_v17 }
 0x5fd   : > { %v7806_v60 = vpop.permute.xlu0 %7805 }
 0x5fe   : > { %7881 = vst.msk [vmem:[#allocation2 + $0x50] sm:$0xf] %vm3447_vm15, %v7806_v60  ;;  %v7812_v20 = vpop.permute.xlu1 %7811 }
 0x5ff   : > { %7884 = vst.msk [vmem:[#allocation2 + $0x5c] sm:$0xf] %vm3447_vm15, %v7812_v20  ;;  %v8342_v20 = vmul.f32 %v12902_v63, %v12902_v63 }
 0x601   : > { %v7810_v23 = vpop.permute.xlu0 %7809 }
 0x602   : > { %7883 = vst.msk [vmem:[#allocation2 + $0x58] sm:$0xf] %vm3447_vm15, %v7810_v23  ;;  %v5831_v27 = vpop.permute.xlu1 %5830 }
 0x603   : > { %5901 = vst.msk [vmem:[#allocation2 + $0x64] sm:$0xf] %vm13422_vm2, %v5831_v27  ;;  %v8341_v27 = vmul.f32 %v12898_v26, %v12898_v26 }
 0x605   : > { %v5829_v58 = vpop.permute.xlu0 %5828  ;;  %v9354_v42 = vld [vmem:[#allocation2 + $0x50] sm:$0xff]  }
 0x606   : > { %5900 = vst.msk [vmem:[#allocation2 + $0x60] sm:$0xf] %vm13423_vm6, %v5829_v58  ;;  %v5835_v45 = vpop.permute.xlu1 %5834  ;;  %9291 = vmatprep.mubr.msk.bf16.mxu1 %vm3612_vm0, %v9354_v42  ;;  %v8303_v58 = vadd.f32 %v12902_v63, %v12898_v26  ;;  %v8373_v42 = vadd.f32 %v8342_v20, %v8341_v27 }
 0x607   : > { %5903 = vst.msk [vmem:[#allocation2 + $0x6c] sm:$0xf] %vm13424_vm3, %v5835_v45 }
 0x609   : > { %v5833_v47 = vpop.permute.xlu0 %5832  ;;  %v9355_v13 = vld [vmem:[#allocation2 + $0x58] sm:$0xff]  }
 0x60a   : > { %5902 = vst.msk [vmem:[#allocation2 + $0x68] sm:$0xf] %vm13425_vm7, %v5833_v47  ;;  %v6391_v54 = vpop.permute.xlu1 %6390  ;;  %9292 = vmatmul.mubr.msk.bf16.gmra.mxu1 %vm3612_vm0, %v9355_v13  ;;  %v12904_v18 = vpop.f32.mrf.mxu1  ;;  %v8343_v47 = vmul.f32 %v12896_v32, %v12896_v32  ;;  %v8304_v13 = vadd.f32 %v12896_v32, %v8303_v58 }
 0x60b   : > { %6461 = vst.msk [vmem:[#allocation2 + $0x64] sm:$0xf] %vm2018_vm11, %v6391_v54 }
 0x60c   : > { %v12906_v3 = vpop.f32.mrf.mxu1  ;;  %v8374_v54 = vadd.f32 %v8373_v42, %v8343_v47 }
 0x60d   : > { %v6389_v2 = vpop.permute.xlu0 %6388 }
 0x60e   : > { %6460 = vst.msk [vmem:[#allocation2 + $0x60] sm:$0xf] %vm2018_vm11, %v6389_v2  ;;  %v6395_v44 = vpop.permute.xlu1 %6394  ;;  %v12908_v17 = vpop.f32.mrf.mxu1 }
 0x60f   : > { %6463 = vst.msk [vmem:[#allocation2 + $0x6c] sm:$0xf] %vm2018_vm11, %v6395_v44  ;;  %v8344_v44 = vmul.f32 %v12900_v38, %v12900_v38 }
 0x610   : > { %v12910_v60 = vpop.f32.mrf.mxu1 }
 0x611   : > { %v6393_v12 = vpop.permute.xlu0 %6392 }
 0x612   : > { %6462 = vst.msk [vmem:[#allocation2 + $0x68] sm:$0xf] %vm2018_vm11, %v6393_v12  ;;  %v6727_v57 = vpop.permute.xlu1 %6726  ;;  %v8305_v12 = vadd.f32 %v12900_v38, %v8304_v13 }
 0x613   : > { %6797 = vst.msk [vmem:[#allocation2 + $0x64] sm:$0xf] %vm2355_vm12, %v6727_v57  ;;  %v8345_v57 = vmul.f32 %v12906_v3, %v12906_v3 }
 0x615   : > { %v6725_v14 = vpop.permute.xlu0 %6724 }
 0x616   : > { %6796 = vst.msk [vmem:[#allocation2 + $0x60] sm:$0xf] %vm2355_vm12, %v6725_v14  ;;  %v6731_v8 = vpop.permute.xlu1 %6730  ;;  %v8306_v14 = vadd.f32 %v8305_v12, %v12906_v3 }
 0x617   : > { %6799 = vst.msk [vmem:[#allocation2 + $0x6c] sm:$0xf] %vm2355_vm12, %v6731_v8  ;;  %v8375_v8 = vadd.f32 %v8374_v54, %v8344_v44 }
 0x619   : > { %v6729_v62 = vpop.permute.xlu0 %6728 }
 0x61a   : > { %6798 = vst.msk [vmem:[#allocation2 + $0x68] sm:$0xf] %vm2355_vm12, %v6729_v62  ;;  %v6920_v39 = vpop.permute.xlu1 %6919  ;;  %v8346_v62 = vmul.f32 %v12910_v60, %v12910_v60 }
 0x61b   : > { %6990 = vst.msk [vmem:[#allocation2 + $0x64] sm:$0xf] %vm2549_vm13, %v6920_v39 }
 0x61d   : > { %v6918_v7 = vpop.permute.xlu0 %6917 }
 0x61e   : > { %6989 = vst.msk [vmem:[#allocation2 + $0x60] sm:$0xf] %vm2549_vm13, %v6918_v7  ;;  %v6924_v25 = vpop.permute.xlu1 %6923  ;;  %v8376_v7 = vadd.f32 %v8375_v8, %v8345_v57 }
 0x61f   : > { %6992 = vst.msk [vmem:[#allocation2 + $0x6c] sm:$0xf] %vm2549_vm13, %v6924_v25  ;;  %v8307_v25 = vadd.f32 %v8306_v14, %v12910_v60 }
 0x621   : > { %v6922_v29 = vpop.permute.xlu0 %6921 }
 0x622   : > { %6991 = vst.msk [vmem:[#allocation2 + $0x68] sm:$0xf] %vm2549_vm13, %v6922_v29  ;;  %v7480_v33 = vpop.permute.xlu1 %7479 }
 0x623   : > { %7550 = vst.msk [vmem:[#allocation2 + $0x64] sm:$0xf] %vm3110_vm14, %v7480_v33  ;;  %v8377_v33 = vadd.f32 %v8376_v7, %v8346_v62 }
 0x625   : > { %v7478_v6 = vpop.permute.xlu0 %7477 }
 0x626   : > { %7549 = vst.msk [vmem:[#allocation2 + $0x60] sm:$0xf] %vm3110_vm14, %v7478_v6  ;;  %v7484_v15 = vpop.permute.xlu1 %7483  ;;  %v8347_v6 = vmul.f32 %v12904_v18, %v12904_v18 }
 0x627   : > { %7552 = vst.msk [vmem:[#allocation2 + $0x6c] sm:$0xf] %vm3110_vm14, %v7484_v15  ;;  %v8308_v15 = vadd.f32 %v12904_v18, %v8307_v25 }
 0x629   : > { %v7482_v56 = vpop.permute.xlu0 %7481 }
 0x62a   : > { %7551 = vst.msk [vmem:[#allocation2 + $0x68] sm:$0xf] %vm3110_vm14, %v7482_v56  ;;  %v7816_v49 = vpop.permute.xlu1 %7815 }
 0x62b   : > { %7886 = vst.msk [vmem:[#allocation2 + $0x64] sm:$0xf] %vm3447_vm15, %v7816_v49  ;;  %v8378_v49 = vadd.f32 %v8377_v33, %v8347_v6 }
 0x62d   : > { %v7814_v37 = vpop.permute.xlu0 %7813 }
 0x62e   : > { %7885 = vst.msk [vmem:[#allocation2 + $0x60] sm:$0xf] %vm3447_vm15, %v7814_v37  ;;  %v7820_v1 = vpop.permute.xlu1 %7819  ;;  %v8348_v37 = vmul.f32 %v12908_v17, %v12908_v17 }
 0x62f   : > { %7888 = vst.msk [vmem:[#allocation2 + $0x6c] sm:$0xf] %vm3447_vm15, %v7820_v1  ;;  %v8309_v1 = vadd.f32 %v12908_v17, %v8308_v15 }
 0x631   : > { %v7818_v34 = vpop.permute.xlu0 %7817 }
 0x632   : > { %7887 = vst.msk [vmem:[#allocation2 + $0x68] sm:$0xf] %vm3447_vm15, %v7818_v34  ;;  %v5839_v59 = vpop.permute.xlu1 %5838 }
 0x633   : > { %5905 = vst.msk [vmem:[#allocation2 + $0x74] sm:$0xf] %vm13426_vm9, %v5839_v59 }
 0x635   : > { %v5837_v19 = vpop.permute.xlu0 %5836  ;;  %v9356_v0 = vld [vmem:[#allocation2 + $0x60] sm:$0xff]  }
 0x636   : > { %5904 = vst.msk [vmem:[#allocation2 + $0x70] sm:$0xf] %vm13427_vm10, %v5837_v19  ;;  %v5843_v30 = vpop.permute.xlu1 %5842  ;;  %9295 = vmatprep.mubr.msk.bf16.mxu1 %vm3612_vm0, %v9356_v0  ;;  %v8379_v0 = vadd.f32 %v8378_v49, %v8348_v37 }
 0x637   : > { %5907 = vst.msk [vmem:[#allocation2 + $0x7c] sm:$0xf] %vm13428_vm5, %v5843_v30 }
 0x639   : > { %v5841_v5 = vpop.permute.xlu0 %5840  ;;  %v9357_v50 = vld [vmem:[#allocation2 + $0x68] sm:$0xff]  }
 0x63a   : > { %5906 = vst.msk [vmem:[#allocation2 + $0x78] sm:$0xf] %vm13429_vm8, %v5841_v5  ;;  %v6399_v11 = vpop.permute.xlu1 %6398  ;;  %9296 = vmatmul.mubr.msk.bf16.gmra.mxu1 %vm3612_vm0, %v9357_v50  ;;  %v12914_v23 = vpop.f32.mrf.mxu1 }
 0x63b   : > { %6465 = vst.msk [vmem:[#allocation2 + $0x74] sm:$0xf] %vm2018_vm11, %v6399_v11 }
 0x63c   : > { %v12920_v45 = vpop.f32.mrf.mxu1 }
 0x63d   : > { %v6397_v61 = vpop.permute.xlu0 %6396  ;;  %v8349_v34 = vmul.f32 %v12920_v45, %v12920_v45  ;;  %v8310_v19 = vadd.f32 %v8309_v1, %v12920_v45 }
 0x63e   : > { %6464 = vst.msk [vmem:[#allocation2 + $0x70] sm:$0xf] %vm2018_vm11, %v6397_v61  ;;  %v6403_v51 = vpop.permute.xlu1 %6402  ;;  %v12925_v2 = vpop.f32.mrf.mxu1 }
 0x63f   : > { %6467 = vst.msk [vmem:[#allocation2 + $0x7c] sm:$0xf] %vm2018_vm11, %v6403_v51  ;;  %v8380_v5 = vadd.f32 %v8379_v0, %v8349_v34 }
 0x640   : > { %v12935_v39 = vpop.f32.mrf.mxu1 }
 0x641   : > { %v6401_v4 = vpop.permute.xlu0 %6400  ;;  %v8350_v30 = vmul.f32 %v12935_v39, %v12935_v39  ;;  %v8311_v50 = vadd.f32 %v8310_v19, %v12935_v39 }
 0x642   : > { %6466 = vst.msk [vmem:[#allocation2 + $0x78] sm:$0xf] %vm2018_vm11, %v6401_v4  ;;  %v6735_v52 = vpop.permute.xlu1 %6734  ;;  %v8351_v4 = vmul.f32 %v12914_v23, %v12914_v23  ;;  %vm8589_vm11 = vcmask 31744  }
 0x643   : > { %6801 = vst.msk [vmem:[#allocation2 + $0x74] sm:$0xf] %vm2355_vm12, %v6735_v52  ;;  %v8381_v61 = vadd.f32 %v8380_v5, %v8350_v30  ;;  %v8312_v52 = vadd.f32 %v12914_v23, %v8311_v50 }
 0x645   : > { %v6733_v9 = vpop.permute.xlu0 %6732 }
 0x646   : > { %6800 = vst.msk [vmem:[#allocation2 + $0x70] sm:$0xf] %vm2355_vm12, %v6733_v9  ;;  %v6739_v53 = vpop.permute.xlu1 %6738  ;;  %v8382_v9 = vadd.f32 %v8381_v61, %v8351_v4 }
 0x647   : > { %6803 = vst.msk [vmem:[#allocation2 + $0x7c] sm:$0xf] %vm2355_vm12, %v6739_v53 }
 0x649   : > { %v6737_v22 = vpop.permute.xlu0 %6736 }
 0x64a   : > { %6802 = vst.msk [vmem:[#allocation2 + $0x78] sm:$0xf] %vm2355_vm12, %v6737_v22  ;;  %v6928_v31 = vpop.permute.xlu1 %6927  ;;  %v8352_v22 = vmul.f32 %v12925_v2, %v12925_v2 }
 0x64b   : > { %6994 = vst.msk [vmem:[#allocation2 + $0x74] sm:$0xf] %vm2549_vm13, %v6928_v31  ;;  %v8313_v31 = vadd.f32 %v12925_v2, %v8312_v52 }
 0x64d   : > { %v6926_v16 = vpop.permute.xlu0 %6925 }
 0x64e   : > { %6993 = vst.msk [vmem:[#allocation2 + $0x70] sm:$0xf] %vm2549_vm13, %v6926_v16  ;;  %v6932_v40 = vpop.permute.xlu1 %6931 }
 0x64f   : > { %6996 = vst.msk [vmem:[#allocation2 + $0x7c] sm:$0xf] %vm2549_vm13, %v6932_v40 }
 0x651   : > { %v6930_v35 = vpop.permute.xlu0 %6929 }
 0x652   : > { %6995 = vst.msk [vmem:[#allocation2 + $0x78] sm:$0xf] %vm2549_vm13, %v6930_v35  ;;  %v7488_v55 = vpop.permute.xlu1 %7487  ;;  %v8383_v35 = vadd.f32 %v8382_v9, %v8352_v22 }
 0x653   : > { %7554 = vst.msk [vmem:[#allocation2 + $0x74] sm:$0xf] %vm3110_vm14, %v7488_v55 }
 0x655   : > { %v7486_v28 = vpop.permute.xlu0 %7485 }
 0x656   : > { %7553 = vst.msk [vmem:[#allocation2 + $0x70] sm:$0xf] %vm3110_vm14, %v7486_v28  ;;  %v7492_v10 = vpop.permute.xlu1 %7491 }
 0x657   : > { %7556 = vst.msk [vmem:[#allocation2 + $0x7c] sm:$0xf] %vm3110_vm14, %v7492_v10 }
 0x659   : > { %v7490_v41 = vpop.permute.xlu0 %7489 }
 0x65a   : > { %7555 = vst.msk [vmem:[#allocation2 + $0x78] sm:$0xf] %vm3110_vm14, %v7490_v41  ;;  %v7824_v36 = vpop.permute.xlu1 %7823 }
 0x65b   : > { %7890 = vst.msk [vmem:[#allocation2 + $0x74] sm:$0xf] %vm3447_vm15, %v7824_v36 }
 0x65d   : > { %v7822_v21 = vpop.permute.xlu0 %7821 }
 0x65e   : > { %7889 = vst.msk [vmem:[#allocation2 + $0x70] sm:$0xf] %vm3447_vm15, %v7822_v21  ;;  %v7828_v43 = vpop.permute.xlu1 %7827 }
 0x65f   : > { %7892 = vst.msk [vmem:[#allocation2 + $0x7c] sm:$0xf] %vm3447_vm15, %v7828_v43 }
 0x661   : > { %v7826_v48 = vpop.permute.xlu0 %7825 }
 0x662   : > { %7891 = vst.msk [vmem:[#allocation2 + $0x78] sm:$0xf] %vm3447_vm15, %v7826_v48 }
 0x665   : > { %v9358_v46 = vld [vmem:[#allocation2 + $0x70] sm:$0xff]  }
 0x666   : > { %9299 = vmatprep.mubr.msk.bf16.mxu1 %vm3612_vm0, %v9358_v46 }
 0x669   : > { %v9359_v24 = vld [vmem:[#allocation2 + $0x78] sm:$0xff]  }
 0x66a   : > { %9300 = vmatmul.mubr.msk.bf16.gmra.mxu1 %vm3612_vm0, %v9359_v24  ;;  %v12938_v29 = vpop.f32.mrf.mxu1 }
 0x66b   : > { %v8355_v43 = vmul.f32 %v12938_v29, %v12938_v29 }
 0x66c   : > { %v12943_v56 = vpop.f32.mrf.mxu1 }
 0x66d   : > { %v8353_v16 = vmul.f32 %v12943_v56, %v12943_v56  ;;  %v8314_v40 = vadd.f32 %v8313_v31, %v12943_v56 }
 0x66e   : > { %v12950_v59 = vpop.f32.mrf.mxu1 }
 0x66f   : > { %v8384_v10 = vadd.f32 %v8383_v35, %v8353_v16  ;;  %v8356_v20 = vmul.f32 %v12950_v59, %v12950_v59 }
 0x670   : > { %v12956_v11 = vpop.f32.mrf.mxu1 }
 0x671   : > { %v8354_v55 = vmul.f32 %v12956_v11, %v12956_v11  ;;  %v8315_v41 = vadd.f32 %v8314_v40, %v12956_v11 }
 0x673   : > { %v8385_v36 = vadd.f32 %v8384_v10, %v8354_v55  ;;  %v8316_v48 = vadd.f32 %v12938_v29, %v8315_v41 }
 0x675   : > { %v8386_v24 = vadd.f32 %v8385_v36, %v8355_v43  ;;  %v8317_v27 = vadd.f32 %v12950_v59, %v8316_v48 }
 0x677   : > { %v8387_v13 = vadd.f32 %v8386_v24, %v8356_v20 }
 0x69a   : > { %v12958_v51 = vpop.f32.mrf.mxu1 }
 0x69b   : > { %v8359_v8 = vmul.f32 %v12958_v51, %v12958_v51 }
 0x69c   : > { %v12963_v53 = vpop.f32.mrf.mxu1 }
 0x69d   : > { %v8357_v58 = vmul.f32 %v12963_v53, %v12963_v53  ;;  %v8318_v47 = vadd.f32 %v8317_v27, %v12963_v53 }
 0x69e   : > { %v12973_v28 = vpop.f32.mrf.mxu1 }
 0x69f   : > { %v8388_v44 = vadd.f32 %v8387_v13, %v8357_v58  ;;  %v8360_v6 = vmul.f32 %v12973_v28, %v12973_v28 }
 0x6a0   : > { %v12976_v21 = vpop.f32.mrf.mxu1 }
 0x6a1   : > { %v8358_v54 = vmul.f32 %v12976_v21, %v12976_v21  ;;  %v8319_v12 = vadd.f32 %v8318_v47, %v12976_v21 }
 0x6a3   : > { %v8389_v14 = vadd.f32 %v8388_v44, %v8358_v54  ;;  %v8320_v62 = vadd.f32 %v12958_v51, %v8319_v12 }
 0x6a5   : > { %v8390_v25 = vadd.f32 %v8389_v14, %v8359_v8  ;;  %v8321_v15 = vadd.f32 %v12973_v28, %v8320_v62 }
 0x6a7   : > { %v8391_v1 = vadd.f32 %v8390_v25, %v8360_v6 }
 0x6ca   : > { %v12981_v46 = vpop.f32.mrf.mxu1 }
 0x6cb   : > { %v8363_v61 = vmul.f32 %v12981_v46, %v12981_v46 }
 0x6cc   : > { %v12988_v42 = vpop.f32.mrf.mxu1 }
 0x6cd   : > { %v8361_v49 = vmul.f32 %v12988_v42, %v12988_v42  ;;  %v8322_v37 = vadd.f32 %v8321_v15, %v12988_v42 }
 0x6ce   : > { %v12994_v57 = vpop.f32.mrf.mxu1 }
 0x6cf   : > { %v8392_v0 = vadd.f32 %v8391_v1, %v8361_v49  ;;  %v8364_v22 = vmul.f32 %v12994_v57, %v12994_v57 }
 0x6d0   : > { %v12999_v7 = vpop.f32.mrf.mxu1 }
 0x6d1   : > { %v8362_v34 = vmul.f32 %v12999_v7, %v12999_v7  ;;  %v8323_v30 = vadd.f32 %v8322_v37, %v12999_v7 }
 0x6d3   : > { %v8393_v5 = vadd.f32 %v8392_v0, %v8362_v34  ;;  %v8324_v4 = vadd.f32 %v12981_v46, %v8323_v30 }
 0x6d5   : > { %v8394_v52 = vadd.f32 %v8393_v5, %v8363_v61  ;;  %v8325_v31 = vadd.f32 %v12994_v57, %v8324_v4 }
 0x6d7   : > { %v8395_v35 = vadd.f32 %v8394_v52, %v8364_v22 }
 0x6fa   : > { %v13001_v33 = vpop.f32.mrf.mxu1 }
 0x6fb   : > { %v8367_v43 = vmul.f32 %v13001_v33, %v13001_v33 }
 0x6fc   : > { %v13011_v19 = vpop.f32.mrf.mxu1 }
 0x6fd   : > { %v8365_v16 = vmul.f32 %v13011_v19, %v13011_v19  ;;  %v8326_v40 = vadd.f32 %v8325_v31, %v13011_v19 }
 0x6fe   : > { %v13014_v50 = vpop.f32.mrf.mxu1 }
 0x6ff   : > { %v8396_v10 = vadd.f32 %v8395_v35, %v8365_v16  ;;  %v8368_v58 = vmul.f32 %v13014_v50, %v13014_v50 }
 0x700   : > { %v13019_v9 = vpop.f32.mrf.mxu1 }
 0x701   : > { %v8366_v55 = vmul.f32 %v13019_v9, %v13019_v9  ;;  %v8327_v41 = vadd.f32 %v8326_v40, %v13019_v9 }
 0x703   : > { %v8397_v36 = vadd.f32 %v8396_v10, %v8366_v55  ;;  %v8328_v48 = vadd.f32 %v13001_v33, %v8327_v41 }
 0x705   : > { %v8398_v20 = vadd.f32 %v8397_v36, %v8367_v43  ;;  %v8329_v47 = vadd.f32 %v13014_v50, %v8328_v48 }
 0x707   : > { %v8399_v12 = vadd.f32 %v8398_v20, %v8368_v58 }
 0x72a   : > { %v13033_v24 = vpop.f32.mrf.mxu1 }
 0x72b   : > { %v8371_v6 = vmul.f32 %v13033_v24, %v13033_v24 }
 0x72c   : > { %v13035_v27 = vpop.f32.mrf.mxu1 }
 0x72d   : > { %v8369_v13 = vmul.f32 %v13035_v27, %v13035_v27  ;;  %v8330_v44 = vadd.f32 %v8329_v47, %v13035_v27  ;;  %v8269_v47 = vld [vmem:[%s13252_s6] sm:$0x1] }
 0x72e   : > { %v13042_v54 = vpop.f32.mrf.mxu1 }
 0x72f   : > { %v8400_v8 = vadd.f32 %v8399_v12, %v8369_v13  ;;  %v8372_v37 = vmul.f32 %v13042_v54, %v13042_v54  ;;  %v8270_v12 = vld [vmem:[%s13253_s7] sm:$0x1] }
 0x730   : > { %v13045_v14 = vpop.f32.mrf.mxu1 }
 0x731   : > { %v8331_v62 = vadd.f32 %v8330_v44, %v13045_v14  ;;  %v8370_v25 = vmul.f32 %v13045_v14, %v13045_v14 }
 0x733   : > { %v8332_v15 = vadd.f32 %v13033_v24, %v8331_v62  ;;  %v8401_v49 = vadd.f32 %v8400_v8, %v8370_v25  ;;  %v13430_v62 = vld [vmem:[#allocation8_spill] sm:$0xff] }
 0x735   : > { %v8333_v1 = vadd.f32 %v13042_v54, %v8332_v15  ;;  %v8402_v34 = vadd.f32 %v8401_v49, %v8371_v6 }
 0x737   : > { %v8334_v0 = vrot.slane %v8333_v1, 4  ;;  %v8403_v30 = vadd.f32 %v8402_v34, %v8372_v37 }
 0x739   : > { %v8335_v5 = vadd.f32 %v8334_v0, %v8333_v1  ;;  %v8404_v61 = vrot.slane %v8403_v30, 4 }
 0x73b   : > { %v8336_v4 = vrot.slane %v8335_v5, 2  ;;  %v8405_v52 = vadd.f32 %v8404_v61, %v8403_v30 }
 0x73d   : > { %v8337_v22 = vadd.f32 %v8336_v4, %v8335_v5  ;;  %v8406_v31 = vrot.slane %v8405_v52, 2 }
 0x73f   : > { %v8338_v16 = vrot.slane %v8337_v22, 1  ;;  %v8407_v40 = vadd.f32 %v8406_v31, %v8405_v52 }
 0x741   : > { %v8339_v35 = vadd.f32 %v8338_v16, %v8337_v22  ;;  %v8408_v55 = vrot.slane %v8407_v40, 1 }
 0x743   : > { %v8340_v10 = vmul.f32 0.00390625, %v8339_v35  ;;  %v8409_v41 = vadd.f32 %v8408_v55, %v8407_v40 }
 0x745   : > { %v8410_v36 = vmul.f32 0.00390625, %v8409_v41  ;;  %v8411_v43 = vmul.f32 %v8340_v10, %v8340_v10  ;;  %v8494_v41 = vld [vmem:[%s13102_s22 + $0x8] sm:$0xff] }
 0x747   : > { %v8412_v48 = vsub.f32 %v8410_v36, %v8411_v43  ;;  %v8495_v36 = vld [vmem:[%s13102_s22 + $0x10] sm:$0xff]  ;;  %v8496_v43 = vld [vmem:[%s13102_s22 + $0x18] sm:$0xff] }
 0x749   : > { %v8413_v20 = vmax.f32 %v8412_v48, 0.0 }
 0x74b   : > { %v8414_v58 = vadd.f32 1e-05, %v8413_v20 }
 0x74d   : > { %9362 = vrsqrt.f32 %v8414_v58 }
 0x75a   : > { %v9363_v13 = vpop.eup %9362 }
 0x75b   : > { %v8416_v44 = vmul.f32 %v9363_v13, %v8269_v47  ;;  %v8497_v13 = vld [vmem:[%s13102_s22 + $0x20] sm:$0xff] }
 0x75d   : > { %v8417_v8 = vmul.f32 %v8416_v44, %v8340_v10  ;;  %v8422_v25 = vrot.slane %v8416_v44, %v13430_v62  ;;  %v8493_v10 = vld [vmem:[%s13102_s22] sm:$0xff]  ;;  %v8498_v44 = vld [vmem:[%s13102_s22 + $0x28] sm:$0xff] }
 0x75f   : > { %v8418_v6 = vsub.f32 %v8270_v12, %v8417_v8  ;;  %v8423_v15 = vmul.f32 %v8422_v25, %v12898_v26  ;;  %v8424_v49 = vmul.f32 %v8422_v25, %v12902_v63  ;;  %v8425_v37 = vmul.f32 %v12896_v32, %v8422_v25  ;;  %v8499_v12 = vld [vmem:[%s13102_s22 + $0x30] sm:$0xff]  ;;  %v8500_v8 = vld [vmem:[%s13102_s22 + $0x38] sm:$0xff] }
 0x760   : > { %v8426_v1 = vmul.f32 %v12900_v38, %v8422_v25  ;;  %v8427_v34 = vmul.f32 %v8422_v25, %v12906_v3  ;;  %v8428_v0 = vmul.f32 %v8422_v25, %v12910_v60  ;;  %v8429_v30 = vmul.f32 %v12904_v18, %v8422_v25 }
 0x761   : > { %v8430_v5 = vmul.f32 %v12908_v17, %v8422_v25  ;;  %v8431_v61 = vmul.f32 %v8422_v25, %v12920_v45  ;;  %v8432_v4 = vmul.f32 %v8422_v25, %v12935_v39  ;;  %v8433_v26 = vmul.f32 %v12914_v23, %v8422_v25 }
 0x762   : > { %v8434_v63 = vmul.f32 %v12925_v2, %v8422_v25  ;;  %v8435_v32 = vmul.f32 %v8422_v25, %v12943_v56  ;;  %v8436_v38 = vmul.f32 %v8422_v25, %v12956_v11  ;;  %v8437_v3 = vmul.f32 %v12938_v29, %v8422_v25 }
 0x763   : > { %v8438_v60 = vmul.f32 %v12950_v59, %v8422_v25  ;;  %v8439_v18 = vmul.f32 %v8422_v25, %v12963_v53  ;;  %v8440_v17 = vmul.f32 %v8422_v25, %v12976_v21  ;;  %v8441_v45 = vmul.f32 %v12958_v51, %v8422_v25 }
 0x764   : > { %v8442_v39 = vmul.f32 %v12973_v28, %v8422_v25  ;;  %v8443_v23 = vmul.f32 %v8422_v25, %v12988_v42  ;;  %v8444_v2 = vmul.f32 %v8422_v25, %v12999_v7  ;;  %v8445_v56 = vmul.f32 %v12981_v46, %v8422_v25 }
 0x765   : > { %v8446_v29 = vmul.f32 %v12994_v57, %v8422_v25  ;;  %v8447_v59 = vmul.f32 %v8422_v25, %v13011_v19  ;;  %v8448_v11 = vmul.f32 %v8422_v25, %v13019_v9  ;;  %v8449_v53 = vmul.f32 %v13001_v33, %v8422_v25 }
 0x766   : > { %v8450_v51 = vmul.f32 %v13014_v50, %v8422_v25  ;;  %v8459_v21 = vrot.slane %v8418_v6, %v13430_v62  ;;  %v8451_v28 = vmul.f32 %v8422_v25, %v13035_v27  ;;  %v8452_v42 = vmul.f32 %v8422_v25, %v13045_v14 }
 0x767   : > { %v8453_v7 = vmul.f32 %v13033_v24, %v8422_v25  ;;  %v8454_v46 = vmul.f32 %v13042_v54, %v8422_v25 }
 0x768   : > { %v8461_v57 = vadd.f32 %v8459_v21, %v8423_v15  ;;  %v8462_v33 = vadd.f32 %v8459_v21, %v8424_v49  ;;  %v8463_v19 = vadd.f32 %v8459_v21, %v8425_v37  ;;  %v8464_v50 = vadd.f32 %v8459_v21, %v8426_v1  ;;  %v8501_v49 = vld [vmem:[%s13102_s22 + $0x40] sm:$0xff]  ;;  %v8502_v37 = vld [vmem:[%s13102_s22 + $0x48] sm:$0xff]  ;;  %v8503_v1 = vld [vmem:[%s13102_s22 + $0x50] sm:$0xff] }
 0x769   : > { %v8465_v9 = vadd.f32 %v8459_v21, %v8427_v34  ;;  %v8466_v27 = vadd.f32 %v8459_v21, %v8428_v0  ;;  %v8467_v14 = vadd.f32 %v8459_v21, %v8429_v30  ;;  %v8468_v24 = vadd.f32 %v8459_v21, %v8430_v5 }
 0x76a   : > { %v8469_v52 = vadd.f32 %v8459_v21, %v8431_v61  ;;  %v8470_v54 = vadd.f32 %v8459_v21, %v8432_v4  ;;  %v8471_v22 = vadd.f32 %v8459_v21, %v8433_v26  ;;  %v8472_v31 = vadd.f32 %v8459_v21, %v8434_v63  ;;  %v8504_v61 = vld [vmem:[%s13102_s22 + $0x58] sm:$0xff]  ;;  %v8505_v4 = vld [vmem:[%s13102_s22 + $0x60] sm:$0xff]  ;;  %v8506_v26 = vld [vmem:[%s13102_s22 + $0x68] sm:$0xff] }
 0x76b   : > { %v8473_v16 = vadd.f32 %v8459_v21, %v8435_v32  ;;  %v8474_v40 = vadd.f32 %v8459_v21, %v8436_v38  ;;  %v8475_v35 = vadd.f32 %v8459_v21, %v8437_v3  ;;  %v8476_v55 = vadd.f32 %v8459_v21, %v8438_v60  ;;  %v8507_v60 = vld [vmem:[%s13102_s22 + $0x70] sm:$0xff] }
 0x76c   : > { %v8477_v48 = vadd.f32 %v8459_v21, %v8439_v18  ;;  %v8478_v20 = vadd.f32 %v8459_v21, %v8440_v17  ;;  %v8479_v58 = vadd.f32 %v8459_v21, %v8441_v45  ;;  %v8480_v47 = vadd.f32 %v8459_v21, %v8442_v39  ;;  %v8508_v18 = vld [vmem:[%s13102_s22 + $0x78] sm:$0xff]  ;;  %v8509_v17 = vld [vmem:[%s13102_s22 + $0x80] sm:$0xff]  ;;  %v8510_v45 = vld [vmem:[%s13102_s22 + $0x88] sm:$0xff] }
 0x76d   : > { %v8481_v62 = vadd.f32 %v8459_v21, %v8443_v23  ;;  %v8482_v25 = vadd.f32 %v8459_v21, %v8444_v2  ;;  %v8483_v6 = vadd.f32 %v8459_v21, %v8445_v56  ;;  %v8484_v15 = vadd.f32 %v8459_v21, %v8446_v29  ;;  %v8511_v39 = vld [vmem:[%s13102_s22 + $0x90] sm:$0xff]  ;;  %v8512_v23 = vld [vmem:[%s13102_s22 + $0x98] sm:$0xff] }
 0x76e   : > { %v8485_v34 = vadd.f32 %v8459_v21, %v8447_v59  ;;  %v8486_v0 = vadd.f32 %v8459_v21, %v8448_v11  ;;  %v8487_v30 = vadd.f32 %v8459_v21, %v8449_v53  ;;  %v8488_v5 = vadd.f32 %v8459_v21, %v8450_v51  ;;  %v8513_v11 = vld [vmem:[%s13102_s22 + $0xa0] sm:$0xff]  ;;  %v8514_v53 = vld [vmem:[%s13102_s22 + $0xa8] sm:$0xff]  ;;  %v8515_v51 = vld [vmem:[%s13102_s22 + $0xb0] sm:$0xff] }
 0x76f   : > { %v8489_v63 = vadd.f32 %v8459_v21, %v8451_v28  ;;  %v8490_v32 = vadd.f32 %v8459_v21, %v8452_v42  ;;  %v8491_v38 = vadd.f32 %v8459_v21, %v8453_v7  ;;  %v8492_v3 = vadd.f32 %v8459_v21, %v8454_v46  ;;  %v8516_v46 = vld [vmem:[%s13102_s22 + $0xb8] sm:$0xff] }
 0x770   : > { %v8525_v2 = vadd.f32 %v8493_v10, %v8461_v57  ;;  %v8526_v56 = vadd.f32 %v8494_v41, %v8462_v33  ;;  %v8527_v29 = vadd.f32 %v8495_v36, %v8463_v19  ;;  %v8528_v59 = vadd.f32 %v8496_v43, %v8464_v50  ;;  %v8517_v10 = vld [vmem:[%s13102_s22 + $0xc0] sm:$0xff]  ;;  %v8518_v57 = vld [vmem:[%s13102_s22 + $0xc8] sm:$0xff]  ;;  %v8519_v50 = vld [vmem:[%s13102_s22 + $0xd0] sm:$0xff] }
 0x771   : > { %v8529_v21 = vadd.f32 %v8497_v13, %v8465_v9  ;;  %v8530_v28 = vadd.f32 %v8498_v44, %v8466_v27  ;;  %v8531_v42 = vadd.f32 %v8499_v12, %v8467_v14  ;;  %v8532_v7 = vadd.f32 %v8500_v8, %v8468_v24  ;;  %v8520_v43 = vld [vmem:[%s13102_s22 + $0xd8] sm:$0xff]  ;;  %v8521_v9 = vld [vmem:[%s13102_s22 + $0xe0] sm:$0xff]  ;;  %v8522_v14 = vld [vmem:[%s13102_s22 + $0xe8] sm:$0xff] }
 0x772   : > { %v8533_v33 = vadd.f32 %v8501_v49, %v8469_v52  ;;  %v8534_v41 = vadd.f32 %v8502_v37, %v8470_v54  ;;  %v8535_v19 = vadd.f32 %v8503_v1, %v8471_v22  ;;  %v8536_v36 = vadd.f32 %v8504_v61, %v8472_v31  ;;  %v8523_v8 = vld [vmem:[%s13102_s22 + $0xf0] sm:$0xff]  ;;  %v8524_v24 = vld [vmem:[%s13102_s22 + $0xf8] sm:$0xff] }
 0x773   : > { %v8537_v13 = vadd.f32 %v8505_v4, %v8473_v16  ;;  %v8538_v27 = vadd.f32 %v8506_v26, %v8474_v40  ;;  %v8539_v44 = vadd.f32 %v8507_v60, %v8475_v35  ;;  %v8540_v12 = vadd.f32 %v8508_v18, %v8476_v55 }
 0x774   : > { %v8541_v49 = vadd.f32 %v8509_v17, %v8477_v48  ;;  %v8542_v52 = vadd.f32 %v8510_v45, %v8478_v20  ;;  %v8543_v37 = vadd.f32 %v8511_v39, %v8479_v58  ;;  %v8544_v54 = vadd.f32 %v8512_v23, %v8480_v47 }
 0x775   : > { %v13136_v1 = vadd.f32 %v8513_v11, %v8481_v62  ;;  %v13138_v22 = vadd.f32 %v8514_v53, %v8482_v25  ;;  %v13140_v31 = vadd.f32 %v8515_v51, %v8483_v6  ;;  %v13142_v61 = vadd.f32 %v8516_v46, %v8484_v15 }
 0x776   : > { %v13144_v16 = vadd.f32 %v8517_v10, %v8485_v34  ;;  %v13146_v40 = vadd.f32 %v8518_v57, %v8486_v0  ;;  %v13148_v35 = vadd.f32 %v8519_v50, %v8487_v30  ;;  %v13150_v55 = vadd.f32 %v8520_v43, %v8488_v5 }
 0x777   : > { %v13159_v48 = vadd.f32 %v8521_v9, %v8489_v63  ;;  %v13161_v20 = vadd.f32 %v8522_v14, %v8490_v32  ;;  %v13163_v58 = vadd.f32 %v8523_v8, %v8491_v38  ;;  %v13165_v47 = vadd.f32 %v8524_v24, %v8492_v3 }
 0x778   : > { %v8557_v62 = vmax.f32 %v8525_v2, 0.0  ;;  %v8558_v25 = vmax.f32 %v8526_v56, 0.0  ;;  %v8559_v6 = vmax.f32 %v8527_v29, 0.0  ;;  %v8560_v15 = vmax.f32 %v8528_v59, 0.0 }
 0x779   : > { %v8561_v34 = vmax.f32 %v8529_v21, 0.0  ;;  %v8562_v0 = vmax.f32 %v8530_v28, 0.0  ;;  %v8563_v30 = vmax.f32 %v8531_v42, 0.0  ;;  %v8564_v5 = vmax.f32 %v8532_v7, 0.0 }
 0x77a   : > { %v8565_v4 = vmax.f32 %v8533_v33, 0.0  ;;  %v8566_v26 = vmax.f32 %v8534_v41, 0.0  ;;  %v8567_v63 = vmax.f32 %v8535_v19, 0.0  ;;  %v8568_v32 = vmax.f32 %v8536_v36, 0.0  ;;  %8590 = vst.msk [vmem:[%s13157_s25] sm:$0xff] %vm8589_vm11, %v8557_v62  ;;  %8591 = vst.msk [vmem:[%s13157_s25 + $0x8] sm:$0xff] %vm8589_vm11, %v8558_v25 }
 0x77b   : > { %8592 = vst.msk [vmem:[%s13157_s25 + $0x10] sm:$0xff] %vm8589_vm11, %v8559_v6  ;;  %8593 = vst.msk [vmem:[%s13157_s25 + $0x18] sm:$0xff] %vm8589_vm11, %v8560_v15  ;;  %v8569_v38 = vmax.f32 %v8537_v13, 0.0  ;;  %v8570_v3 = vmax.f32 %v8538_v27, 0.0  ;;  %v8571_v60 = vmax.f32 %v8539_v44, 0.0  ;;  %v8572_v18 = vmax.f32 %v8540_v12, 0.0 }
 0x77c   : > { %8594 = vst.msk [vmem:[%s13157_s25 + $0x20] sm:$0xff] %vm8589_vm11, %v8561_v34  ;;  %8595 = vst.msk [vmem:[%s13157_s25 + $0x28] sm:$0xff] %vm8589_vm11, %v8562_v0  ;;  %v8573_v17 = vmax.f32 %v8541_v49, 0.0  ;;  %v8574_v45 = vmax.f32 %v8542_v52, 0.0  ;;  %v8575_v39 = vmax.f32 %v8543_v37, 0.0  ;;  %v8576_v23 = vmax.f32 %v8544_v54, 0.0 }
 0x77d   : > { %8596 = vst.msk [vmem:[%s13157_s25 + $0x30] sm:$0xff] %vm8589_vm11, %v8563_v30  ;;  %8597 = vst.msk [vmem:[%s13157_s25 + $0x38] sm:$0xff] %vm8589_vm11, %v8564_v5  ;;  %v8577_v2 = vmax.f32 %v13136_v1, 0.0  ;;  %v8578_v56 = vmax.f32 %v13138_v22, 0.0  ;;  %v8579_v29 = vmax.f32 %v13140_v31, 0.0  ;;  %v8580_v59 = vmax.f32 %v13142_v61, 0.0 }
 0x77e   : > { %8598 = vst.msk [vmem:[%s13157_s25 + $0x40] sm:$0xff] %vm8589_vm11, %v8565_v4  ;;  %8599 = vst.msk [vmem:[%s13157_s25 + $0x48] sm:$0xff] %vm8589_vm11, %v8566_v26  ;;  %v8581_v11 = vmax.f32 %v13144_v16, 0.0  ;;  %v8582_v53 = vmax.f32 %v13146_v40, 0.0  ;;  %v8583_v51 = vmax.f32 %v13148_v35, 0.0  ;;  %v8584_v21 = vmax.f32 %v13150_v55, 0.0 }
 0x77f   : > { %8600 = vst.msk [vmem:[%s13157_s25 + $0x50] sm:$0xff] %vm8589_vm11, %v8567_v63  ;;  %8601 = vst.msk [vmem:[%s13157_s25 + $0x58] sm:$0xff] %vm8589_vm11, %v8568_v32  ;;  %v8585_v28 = vmax.f32 %v13159_v48, 0.0  ;;  %v8586_v42 = vmax.f32 %v13161_v20, 0.0  ;;  %v8587_v7 = vmax.f32 %v13163_v58, 0.0  ;;  %v8588_v46 = vmax.f32 %v13165_v47, 0.0 }
 0x780   : > { %8602 = vst.msk [vmem:[%s13157_s25 + $0x60] sm:$0xff] %vm8589_vm11, %v8569_v38  ;;  %8603 = vst.msk [vmem:[%s13157_s25 + $0x68] sm:$0xff] %vm8589_vm11, %v8570_v3 }
 0x781   : > { %8604 = vst.msk [vmem:[%s13157_s25 + $0x70] sm:$0xff] %vm8589_vm11, %v8571_v60  ;;  %8605 = vst.msk [vmem:[%s13157_s25 + $0x78] sm:$0xff] %vm8589_vm11, %v8572_v18 }
 0x782   : > { %8606 = vst.msk [vmem:[%s13157_s25 + $0x80] sm:$0xff] %vm8589_vm11, %v8573_v17  ;;  %8607 = vst.msk [vmem:[%s13157_s25 + $0x88] sm:$0xff] %vm8589_vm11, %v8574_v45 }
 0x783   : > { %8608 = vst.msk [vmem:[%s13157_s25 + $0x90] sm:$0xff] %vm8589_vm11, %v8575_v39  ;;  %8609 = vst.msk [vmem:[%s13157_s25 + $0x98] sm:$0xff] %vm8589_vm11, %v8576_v23 }
 0x784   : > { %8610 = vst.msk [vmem:[%s13157_s25 + $0xa0] sm:$0xff] %vm8589_vm11, %v8577_v2  ;;  %8611 = vst.msk [vmem:[%s13157_s25 + $0xa8] sm:$0xff] %vm8589_vm11, %v8578_v56 }
 0x785   : > { %8612 = vst.msk [vmem:[%s13157_s25 + $0xb0] sm:$0xff] %vm8589_vm11, %v8579_v29  ;;  %8613 = vst.msk [vmem:[%s13157_s25 + $0xb8] sm:$0xff] %vm8589_vm11, %v8580_v59 }
 0x786   : > { %8614 = vst.msk [vmem:[%s13157_s25 + $0xc0] sm:$0xff] %vm8589_vm11, %v8581_v11  ;;  %8615 = vst.msk [vmem:[%s13157_s25 + $0xc8] sm:$0xff] %vm8589_vm11, %v8582_v53 }
 0x787   : > { %8616 = vst.msk [vmem:[%s13157_s25 + $0xd0] sm:$0xff] %vm8589_vm11, %v8583_v51  ;;  %8617 = vst.msk [vmem:[%s13157_s25 + $0xd8] sm:$0xff] %vm8589_vm11, %v8584_v21 }
 0x788   : > { %8618 = vst.msk [vmem:[%s13157_s25 + $0xe0] sm:$0xff] %vm8589_vm11, %v8585_v28  ;;  %8619 = vst.msk [vmem:[%s13157_s25 + $0xe8] sm:$0xff] %vm8589_vm11, %v8586_v42 }
 0x789   : > { %8620 = vst.msk [vmem:[%s13157_s25 + $0xf0] sm:$0xff] %vm8589_vm11, %v8587_v7  ;;  %8621 = vst.msk [vmem:[%s13157_s25 + $0xf8] sm:$0xff] %vm8589_vm11, %v8588_v46 }
 0x78a PF: > { %s18_s27 = sadd.s32 1, %s9370_s27  }
 0x78b   : > { %p15_p4 = scmp.ge.s32.totalorder %s18_s27, 4  }
 0x78d   :  { %17 = sbr.rel (!%p15_p4) target bundleno = 1 (0x1), region = 90 }

</bundles_post_ra>
